<compile_context>
chip_gen: v5e
topology: v5e:2x2
jax: 0.10.0
libtpu: 0.0.40
codegen_flags: <defaults>
</compile_context>

<pallas_src>
import jax
import jax.numpy as jnp
from jax import lax
from jax.experimental import pallas as pl
from jax.experimental.pallas import tpu as pltpu


def tpa_kernel(
    x_ref,      # (S, I, TB)  input sequence tile, batch on lanes
    wih_ref,    # (4H, I)     fused LSTM input weights, gate rows i|f|o|g
    whh_ref,    # (4H, H)     fused LSTM hidden weights, gate rows i|f|o|g
    b_ref,      # (4H, 1)     fused LSTM bias (b_ih + b_hh)
    wc_ref,     # (F, H)      Conv2d(1,F,(H,1)) expressed as a linear map (transposed)
    bc_ref,     # (F, 1)
    w1_ref,     # (F, H)      linear1 (transposed)
    b1_ref,     # (F, 1)
    w2h_ref,    # (H, H)      linear2 rows acting on h_now (transposed)
    w2v_ref,    # (H, F)      linear2 rows acting on v (transposed)
    b2_ref,     # (H, 1)
    wf_ref,     # (O, H)      fc_layer (transposed)
    bf_ref,     # (O, 1)
    out_ref,    # (O, TB)
    xw_ref,     # VMEM scratch (S, 4H, TB): staged input-projection slabs
    hfeat_ref,  # VMEM scratch (S, F, TB): per-step "conv" features
):
    f32 = jnp.float32
    S, I, TB = x_ref.shape
    H = whh_ref.shape[1]

    # ---- input projection for every timestep, staged as per-step slabs ------
    # One small (4H, I) x (I, TB) matmul per step, bias folded in.  Entirely off
    # the recurrent critical path; the loop below reads contiguous xw_ref[t].
    wih = wih_ref[...]
    b = b_ref[...]
    for t in range(S):
        xw_ref[t] = jnp.dot(wih, x_ref[t], preferred_element_type=f32) + b

    # ---- LSTM recurrence: fused gates, lane-dense, fully unrolled -----------
    # TODO(synk): for long sequences switch to lax.fori_loop (unroll=True on a
    # short fixed chunk) to bound trace/code size; for S=8 full unroll is best.
    whh = whh_ref[...]
    wc = wc_ref[...]
    bc = bc_ref[...]
    h = jnp.zeros((H, TB), f32)
    c = jnp.zeros((H, TB), f32)
    for t in range(S):
        g = xw_ref[t] + jnp.dot(whh, h, preferred_element_type=f32)   # (4H, TB)
        sg = jax.nn.sigmoid(g[: 3 * H])          # i | f | o in one EUP pass
        gg = jnp.tanh(g[3 * H:])                 # g gate
        i_g = sg[:H]
        f_g = sg[H: 2 * H]
        o_g = sg[2 * H: 3 * H]
        c = f_g * c + i_g * gg
        h = o_g * jnp.tanh(c)
        # Per-step "conv" feature: small MXU matmul off the h/c chain, stored
        # lane-dense so the post-loop attention never materializes (S,TB,H).
        hfeat_ref[t] = jnp.dot(wc, h, preferred_element_type=f32) + bc   # (F, TB)

    h_last = h                                                          # (H, TB)

    # ---- temporal pattern attention (softmax over the sequence axis) --------
    w_h = jnp.dot(w1_ref[...], h_last, preferred_element_type=f32) + b1_ref[...]  # (F, TB)
    hf = hfeat_ref[...]                                                 # (S, F, TB)
    score = jnp.sum(hf * w_h[None, :, :], axis=1)                       # (S, TB)
    m = jnp.max(score, axis=0, keepdims=True)
    e = jnp.exp(score - m)
    a = e / jnp.sum(e, axis=0, keepdims=True)   # exact divide: keeps 1e-4 tol
    v = jnp.sum(a[:, None, :] * hf, axis=0)                             # (F, TB)

    # linear2 on concat([h_now, v]) as a split matmul (no in-kernel concat)
    h_prime = (jnp.dot(w2h_ref[...], h_last, preferred_element_type=f32)
               + jnp.dot(w2v_ref[...], v, preferred_element_type=f32)
               + b2_ref[...])                                           # (H, TB)
    out_ref[...] = (jnp.dot(wf_ref[...], h_prime, preferred_element_type=f32)
                    + bf_ref[...]).astype(out_ref.dtype)                # (O, TB)


def _pick_tile_b(B):
    # Batch sits on the LANE axis, so tiles should be multiples of 128 lanes.
    # tb=128 keeps the fully unrolled recurrence comfortably inside the 64-vreg
    # file (g is 16 vregs, h/c 4 each at TB=128); for B >= 256 it also yields a
    # grid of >= 2 "parallel" steps so both v7x TensorCores get batch tiles.
    # (At B == 128 we accept grid=(1,): splitting into 2x64-lane tiles would
    # halve lane occupancy per core for no net gain.)
    if B % 128 == 0:
        return 128
    # Small / awkward batches: one whole-batch tile — a block equal to the full
    # array extent satisfies the (8,128) BlockSpec rule.
    return B


def tpa_forward(x, p):
    B, S, I = x.shape
    H = p["whh"].shape[-1]
    F = p["wc"].shape[-1]
    O = p["wf"].shape[-1]

    # ---- host-side layout plumbing (cheap, once per call) -------------------
    # Gate blocks reordered to i|f|o|g and stacked on SUBLANES so the kernel's
    # single sigmoid covers rows [0, 3H) and tanh covers [3H, 4H).
    order = (0, 1, 3, 2)                       # params are stored i, f, g, o
    wih_t = jnp.concatenate([p["wih"][k].T for k in order], axis=0)    # (4H, I)
    whh_t = jnp.concatenate([p["whh"][k].T for k in order], axis=0)    # (4H, H)
    b_t = jnp.concatenate([p["b"][k] for k in order], axis=0).reshape(4 * H, 1)

    xT = jnp.transpose(x, (1, 2, 0))           # (S, I, B): batch on lanes

    wc_t = p["wc"].T                            # (F, H)
    bc_t = p["bc"].reshape(F, 1)
    w1_t = p["w1"].T                            # (F, H)
    b1_t = p["b1"].reshape(F, 1)
    w2h_t = p["w2h"].T                          # (H, H)
    w2v_t = p["w2v"].T                          # (H, F)
    b2_t = p["b2"].reshape(H, 1)
    wf_t = p["wf"].T                            # (O, H)
    bf_t = p["bf"].reshape(O, 1)

    tb = _pick_tile_b(B)
    grid = (B // tb,)

    args = (xT, wih_t, whh_t, b_t, wc_t, bc_t, w1_t, b1_t,
            w2h_t, w2v_t, b2_t, wf_t, bf_t)

    def resident(a):
        # Full-array block mapped to block (0,...,0) every grid step: the
        # weight stays resident in VMEM across the whole batch loop.
        # (pipeline_mode=pl.Buffered(1) would single-buffer these; skipped as a
        # marginal win to keep the lowering maximally portable.)
        nd = a.ndim
        return pl.BlockSpec(a.shape, lambda i, _nd=nd: (0,) * _nd)

    in_specs = [pl.BlockSpec((S, I, tb), lambda i: (0, 0, i))]
    in_specs += [resident(a) for a in args[1:]]

    out_t = pl.pallas_call(
        tpa_kernel,
        out_shape=jax.ShapeDtypeStruct((O, B), jnp.float32),
        grid=grid,
        in_specs=in_specs,
        out_specs=pl.BlockSpec((O, tb), lambda i: (0, i)),
        scratch_shapes=[pltpu.VMEM((S, 4 * H, tb), jnp.float32),   # xw slabs
                        pltpu.VMEM((S, F, tb), jnp.float32)],       # conv feats
        compiler_params=pltpu.CompilerParams(
            dimension_semantics=("parallel",)),
    )(*args)

    return out_t.T                              # (B, O)


def tpa_reference(x, p):
    """Pure-JAX mirror of the PyTorch forward (for correctness checking)."""
    B, S, I = x.shape
    H = p["whh"].shape[-1]

    def step(carry, x_t):
        h, c = carry
        g = [jnp.dot(x_t, p["wih"][k]) + jnp.dot(h, p["whh"][k]) + p["b"][k]
             for k in range(4)]
        i_g = jax.nn.sigmoid(g[0])
        f_g = jax.nn.sigmoid(g[1])
        g_g = jnp.tanh(g[2])
        o_g = jax.nn.sigmoid(g[3])
        c = f_g * c + i_g * g_g
        h = o_g * jnp.tanh(c)
        return (h, c), h

    (h_last, _), outs = lax.scan(
        step, (jnp.zeros((B, H)), jnp.zeros((B, H))), jnp.swapaxes(x, 0, 1))
    outs = jnp.swapaxes(outs, 0, 1)                                     # (B, S, H)

    Hfeat = jnp.einsum("bth,hf->btf", outs, p["wc"]) + p["bc"]          # (B, S, F)
    w_h = jnp.dot(h_last, p["w1"]) + p["b1"]                            # (B, F)
    score = jnp.sum(Hfeat * w_h[:, None, :], axis=2)                    # (B, S)
    a = jax.nn.softmax(score, axis=1)
    v = jnp.sum(a[:, :, None] * Hfeat, axis=1)                          # (B, F)
    h_v = jnp.concatenate([h_last, v], axis=1)                          # (B, H+F)
    w2 = jnp.concatenate([p["w2h"], p["w2v"]], axis=0)                  # (H+F, H)
    h_prime = jnp.dot(h_v, w2) + p["b2"]
    return jnp.dot(h_prime, p["wf"]) + p["bf"]


def make_params(key, input_size, hidden_size, filter_num, output_size):
    ks = jax.random.split(key, 13)
    s = 0.1
    f32 = jnp.float32
    return {
        "wih": s * jax.random.normal(ks[0], (4, input_size, hidden_size), f32),
        "whh": s * jax.random.normal(ks[1], (4, hidden_size, hidden_size), f32),
        "b":   s * jax.random.normal(ks[2], (4, hidden_size), f32),
        "wc":  s * jax.random.normal(ks[3], (hidden_size, filter_num), f32),
        "bc":  s * jax.random.normal(ks[4], (1, filter_num), f32),
        "w1":  s * jax.random.normal(ks[5], (hidden_size, filter_num), f32),
        "b1":  s * jax.random.normal(ks[6], (1, filter_num), f32),
        "w2h": s * jax.random.normal(ks[7], (hidden_size, hidden_size), f32),
        "w2v": s * jax.random.normal(ks[8], (filter_num, hidden_size), f32),
        "b2":  s * jax.random.normal(ks[9], (1, hidden_size), f32),
        "wf":  s * jax.random.normal(ks[10], (hidden_size, output_size), f32),
        "bf":  s * jax.random.normal(ks[11], (1, output_size), f32),
    }


if __name__ == "__main__":
    # small shapes consistent with the module
    batch, seq_len, input_size = 2, 8, 8
    hidden_size, filter_num, output_size = 32, 16, 4

    key = jax.random.PRNGKey(0)
    kx, kp = jax.random.split(key)
    x = jax.random.normal(kx, (batch, seq_len, input_size), jnp.float32)
    params = make_params(kp, input_size, hidden_size, filter_num, output_size)

    out = jax.block_until_ready(tpa_forward(x, params))
    ref = jax.block_until_ready(tpa_reference(x, params))

    assert out.shape == (batch, output_size), out.shape
    assert jnp.allclose(out, ref, rtol=1e-4, atol=1e-4), (out, ref)
    print("KERNEL_OK")
</pallas_src>

<mosaic_0001>
module attributes {stable_mosaic.version = 11 : i64} {
  func.func @tpa_kernel(%arg0: i32, %arg1: memref<8x8x2xf32, #tpu.memory_space<vmem>>, %arg2: memref<128x8xf32, #tpu.memory_space<vmem>>, %arg3: memref<128x32xf32, #tpu.memory_space<vmem>>, %arg4: memref<128x1xf32, #tpu.memory_space<vmem>>, %arg5: memref<16x32xf32, #tpu.memory_space<vmem>>, %arg6: memref<16x1xf32, #tpu.memory_space<vmem>>, %arg7: memref<16x32xf32, #tpu.memory_space<vmem>>, %arg8: memref<16x1xf32, #tpu.memory_space<vmem>>, %arg9: memref<32x32xf32, #tpu.memory_space<vmem>>, %arg10: memref<32x16xf32, #tpu.memory_space<vmem>>, %arg11: memref<32x1xf32, #tpu.memory_space<vmem>>, %arg12: memref<4x32xf32, #tpu.memory_space<vmem>>, %arg13: memref<4x1xf32, #tpu.memory_space<vmem>>, %arg14: memref<4x2xf32, #tpu.memory_space<vmem>>, %arg15: memref<8x128x2xf32, #tpu.memory_space<vmem>>, %arg16: memref<8x16x2xf32, #tpu.memory_space<vmem>>) attributes {dimension_semantics = [#tpu.dimension_semantics<parallel>], iteration_bounds = array<i64: 1>, scalar_prefetch = 0 : i64, scratch_operands = 2 : i64, tpu.core_type = #tpu.core_type<tc>, window_params = [{transform_indices = @transform_0, window_bounds = array<i64: 8, 8, 2>}, {pipeline_mode = #tpu.pipeline_mode<synchronous>, transform_indices = @transform_1, window_bounds = array<i64: 128, 8>}, {pipeline_mode = #tpu.pipeline_mode<synchronous>, transform_indices = @transform_2, window_bounds = array<i64: 128, 32>}, {pipeline_mode = #tpu.pipeline_mode<synchronous>, transform_indices = @transform_3, window_bounds = array<i64: 128, 1>}, {pipeline_mode = #tpu.pipeline_mode<synchronous>, transform_indices = @transform_4, window_bounds = array<i64: 16, 32>}, {pipeline_mode = #tpu.pipeline_mode<synchronous>, transform_indices = @transform_5, window_bounds = array<i64: 16, 1>}, {pipeline_mode = #tpu.pipeline_mode<synchronous>, transform_indices = @transform_6, window_bounds = array<i64: 16, 32>}, {pipeline_mode = #tpu.pipeline_mode<synchronous>, transform_indices = @transform_7, window_bounds = array<i64: 16, 1>}, {pipeline_mode = #tpu.pipeline_mode<synchronous>, transform_indices = @transform_8, window_bounds = array<i64: 32, 32>}, {pipeline_mode = #tpu.pipeline_mode<synchronous>, transform_indices = @transform_9, window_bounds = array<i64: 32, 16>}, {pipeline_mode = #tpu.pipeline_mode<synchronous>, transform_indices = @transform_10, window_bounds = array<i64: 32, 1>}, {pipeline_mode = #tpu.pipeline_mode<synchronous>, transform_indices = @transform_11, window_bounds = array<i64: 4, 32>}, {pipeline_mode = #tpu.pipeline_mode<synchronous>, transform_indices = @transform_12, window_bounds = array<i64: 4, 1>}, {transform_indices = @transform_13, window_bounds = array<i64: 4, 2>}]} {
    %c0 = arith.constant 0 : index
    %c0_0 = arith.constant 0 : index
    %0 = vector.load %arg2[%c0, %c0_0] : memref<128x8xf32, #tpu.memory_space<vmem>>, vector<128x8xf32>
    %c0_1 = arith.constant 0 : index
    %c0_2 = arith.constant 0 : index
    %1 = vector.load %arg4[%c0_1, %c0_2] : memref<128x1xf32, #tpu.memory_space<vmem>>, vector<128x1xf32>
    %c0_3 = arith.constant 0 : index
    %c0_4 = arith.constant 0 : index
    %c0_5 = arith.constant 0 : index
    %2 = vector.load %arg1[%c0_3, %c0_4, %c0_5] : memref<8x8x2xf32, #tpu.memory_space<vmem>>, vector<1x8x2xf32>
    %3 = vector.shape_cast %2 : vector<1x8x2xf32> to vector<8x2xf32>
    %cst = arith.constant dense<0.000000e+00> : vector<128x2xf32>
    %4 = tpu.matmul %0, %3, %cst {dimension_numbers = #tpu.dot_dimension_numbers<[1], [0], [0], [1], [0, 0, 1, 1], [], []>} : vector<128x8xf32>, vector<8x2xf32>, vector<128x2xf32> -> vector<128x2xf32>
    %5 = vector.broadcast %1 : vector<128x1xf32> to vector<128x2xf32>
    %6 = arith.addf %4, %5 : vector<128x2xf32>
    %c0_6 = arith.constant 0 : index
    %c0_7 = arith.constant 0 : index
    %c0_8 = arith.constant 0 : index
    %7 = vector.load %arg15[%c0_6, %c0_7, %c0_8] : memref<8x128x2xf32, #tpu.memory_space<vmem>>, vector<1x128x2xf32>
    %8 = vector.shape_cast %7 : vector<1x128x2xf32> to vector<128x2xf32>
    %9 = vector.shape_cast %6 : vector<128x2xf32> to vector<1x128x2xf32>
    tpu.vector_store %arg15[%c0_6, %c0_7, %c0_8], %9 {strides = array<i32>} : memref<8x128x2xf32, #tpu.memory_space<vmem>>, vector<1x128x2xf32>,
    %c1 = arith.constant 1 : index
    %c0_9 = arith.constant 0 : index
    %c0_10 = arith.constant 0 : index
    %10 = vector.load %arg1[%c1, %c0_9, %c0_10] : memref<8x8x2xf32, #tpu.memory_space<vmem>>, vector<1x8x2xf32>
    %11 = vector.shape_cast %10 : vector<1x8x2xf32> to vector<8x2xf32>
    %cst_11 = arith.constant dense<0.000000e+00> : vector<128x2xf32>
    %12 = tpu.matmul %0, %11, %cst_11 {dimension_numbers = #tpu.dot_dimension_numbers<[1], [0], [0], [1], [0, 0, 1, 1], [], []>} : vector<128x8xf32>, vector<8x2xf32>, vector<128x2xf32> -> vector<128x2xf32>
    %13 = vector.broadcast %1 : vector<128x1xf32> to vector<128x2xf32>
    %14 = arith.addf %12, %13 : vector<128x2xf32>
    %c1_12 = arith.constant 1 : index
    %c0_13 = arith.constant 0 : index
    %c0_14 = arith.constant 0 : index
    %15 = vector.load %arg15[%c1_12, %c0_13, %c0_14] : memref<8x128x2xf32, #tpu.memory_space<vmem>>, vector<1x128x2xf32>
    %16 = vector.shape_cast %15 : vector<1x128x2xf32> to vector<128x2xf32>
    %17 = vector.shape_cast %14 : vector<128x2xf32> to vector<1x128x2xf32>
    tpu.vector_store %arg15[%c1_12, %c0_13, %c0_14], %17 {strides = array<i32>} : memref<8x128x2xf32, #tpu.memory_space<vmem>>, vector<1x128x2xf32>,
    %c2 = arith.constant 2 : index
    %c0_15 = arith.constant 0 : index
    %c0_16 = arith.constant 0 : index
    %18 = vector.load %arg1[%c2, %c0_15, %c0_16] : memref<8x8x2xf32, #tpu.memory_space<vmem>>, vector<1x8x2xf32>
    %19 = vector.shape_cast %18 : vector<1x8x2xf32> to vector<8x2xf32>
    %cst_17 = arith.constant dense<0.000000e+00> : vector<128x2xf32>
    %20 = tpu.matmul %0, %19, %cst_17 {dimension_numbers = #tpu.dot_dimension_numbers<[1], [0], [0], [1], [0, 0, 1, 1], [], []>} : vector<128x8xf32>, vector<8x2xf32>, vector<128x2xf32> -> vector<128x2xf32>
    %21 = vector.broadcast %1 : vector<128x1xf32> to vector<128x2xf32>
    %22 = arith.addf %20, %21 : vector<128x2xf32>
    %c2_18 = arith.constant 2 : index
    %c0_19 = arith.constant 0 : index
    %c0_20 = arith.constant 0 : index
    %23 = vector.load %arg15[%c2_18, %c0_19, %c0_20] : memref<8x128x2xf32, #tpu.memory_space<vmem>>, vector<1x128x2xf32>
    %24 = vector.shape_cast %23 : vector<1x128x2xf32> to vector<128x2xf32>
    %25 = vector.shape_cast %22 : vector<128x2xf32> to vector<1x128x2xf32>
    tpu.vector_store %arg15[%c2_18, %c0_19, %c0_20], %25 {strides = array<i32>} : memref<8x128x2xf32, #tpu.memory_space<vmem>>, vector<1x128x2xf32>,
    %c3 = arith.constant 3 : index
    %c0_21 = arith.constant 0 : index
    %c0_22 = arith.constant 0 : index
    %26 = vector.load %arg1[%c3, %c0_21, %c0_22] : memref<8x8x2xf32, #tpu.memory_space<vmem>>, vector<1x8x2xf32>
    %27 = vector.shape_cast %26 : vector<1x8x2xf32> to vector<8x2xf32>
    %cst_23 = arith.constant dense<0.000000e+00> : vector<128x2xf32>
    %28 = tpu.matmul %0, %27, %cst_23 {dimension_numbers = #tpu.dot_dimension_numbers<[1], [0], [0], [1], [0, 0, 1, 1], [], []>} : vector<128x8xf32>, vector<8x2xf32>, vector<128x2xf32> -> vector<128x2xf32>
    %29 = vector.broadcast %1 : vector<128x1xf32> to vector<128x2xf32>
    %30 = arith.addf %28, %29 : vector<128x2xf32>
    %c3_24 = arith.constant 3 : index
    %c0_25 = arith.constant 0 : index
    %c0_26 = arith.constant 0 : index
    %31 = vector.load %arg15[%c3_24, %c0_25, %c0_26] : memref<8x128x2xf32, #tpu.memory_space<vmem>>, vector<1x128x2xf32>
    %32 = vector.shape_cast %31 : vector<1x128x2xf32> to vector<128x2xf32>
    %33 = vector.shape_cast %30 : vector<128x2xf32> to vector<1x128x2xf32>
    tpu.vector_store %arg15[%c3_24, %c0_25, %c0_26], %33 {strides = array<i32>} : memref<8x128x2xf32, #tpu.memory_space<vmem>>, vector<1x128x2xf32>,
    %c4 = arith.constant 4 : index
    %c0_27 = arith.constant 0 : index
    %c0_28 = arith.constant 0 : index
    %34 = vector.load %arg1[%c4, %c0_27, %c0_28] : memref<8x8x2xf32, #tpu.memory_space<vmem>>, vector<1x8x2xf32>
    %35 = vector.shape_cast %34 : vector<1x8x2xf32> to vector<8x2xf32>
    %cst_29 = arith.constant dense<0.000000e+00> : vector<128x2xf32>
    %36 = tpu.matmul %0, %35, %cst_29 {dimension_numbers = #tpu.dot_dimension_numbers<[1], [0], [0], [1], [0, 0, 1, 1], [], []>} : vector<128x8xf32>, vector<8x2xf32>, vector<128x2xf32> -> vector<128x2xf32>
    %37 = vector.broadcast %1 : vector<128x1xf32> to vector<128x2xf32>
    %38 = arith.addf %36, %37 : vector<128x2xf32>
    %c4_30 = arith.constant 4 : index
    %c0_31 = arith.constant 0 : index
    %c0_32 = arith.constant 0 : index
    %39 = vector.load %arg15[%c4_30, %c0_31, %c0_32] : memref<8x128x2xf32, #tpu.memory_space<vmem>>, vector<1x128x2xf32>
    %40 = vector.shape_cast %39 : vector<1x128x2xf32> to vector<128x2xf32>
    %41 = vector.shape_cast %38 : vector<128x2xf32> to vector<1x128x2xf32>
    tpu.vector_store %arg15[%c4_30, %c0_31, %c0_32], %41 {strides = array<i32>} : memref<8x128x2xf32, #tpu.memory_space<vmem>>, vector<1x128x2xf32>,
    %c5 = arith.constant 5 : index
    %c0_33 = arith.constant 0 : index
    %c0_34 = arith.constant 0 : index
    %42 = vector.load %arg1[%c5, %c0_33, %c0_34] : memref<8x8x2xf32, #tpu.memory_space<vmem>>, vector<1x8x2xf32>
    %43 = vector.shape_cast %42 : vector<1x8x2xf32> to vector<8x2xf32>
    %cst_35 = arith.constant dense<0.000000e+00> : vector<128x2xf32>
    %44 = tpu.matmul %0, %43, %cst_35 {dimension_numbers = #tpu.dot_dimension_numbers<[1], [0], [0], [1], [0, 0, 1, 1], [], []>} : vector<128x8xf32>, vector<8x2xf32>, vector<128x2xf32> -> vector<128x2xf32>
    %45 = vector.broadcast %1 : vector<128x1xf32> to vector<128x2xf32>
    %46 = arith.addf %44, %45 : vector<128x2xf32>
    %c5_36 = arith.constant 5 : index
    %c0_37 = arith.constant 0 : index
    %c0_38 = arith.constant 0 : index
    %47 = vector.load %arg15[%c5_36, %c0_37, %c0_38] : memref<8x128x2xf32, #tpu.memory_space<vmem>>, vector<1x128x2xf32>
    %48 = vector.shape_cast %47 : vector<1x128x2xf32> to vector<128x2xf32>
    %49 = vector.shape_cast %46 : vector<128x2xf32> to vector<1x128x2xf32>
    tpu.vector_store %arg15[%c5_36, %c0_37, %c0_38], %49 {strides = array<i32>} : memref<8x128x2xf32, #tpu.memory_space<vmem>>, vector<1x128x2xf32>,
    %c6 = arith.constant 6 : index
    %c0_39 = arith.constant 0 : index
    %c0_40 = arith.constant 0 : index
    %50 = vector.load %arg1[%c6, %c0_39, %c0_40] : memref<8x8x2xf32, #tpu.memory_space<vmem>>, vector<1x8x2xf32>
    %51 = vector.shape_cast %50 : vector<1x8x2xf32> to vector<8x2xf32>
    %cst_41 = arith.constant dense<0.000000e+00> : vector<128x2xf32>
    %52 = tpu.matmul %0, %51, %cst_41 {dimension_numbers = #tpu.dot_dimension_numbers<[1], [0], [0], [1], [0, 0, 1, 1], [], []>} : vector<128x8xf32>, vector<8x2xf32>, vector<128x2xf32> -> vector<128x2xf32>
    %53 = vector.broadcast %1 : vector<128x1xf32> to vector<128x2xf32>
    %54 = arith.addf %52, %53 : vector<128x2xf32>
    %c6_42 = arith.constant 6 : index
    %c0_43 = arith.constant 0 : index
    %c0_44 = arith.constant 0 : index
    %55 = vector.load %arg15[%c6_42, %c0_43, %c0_44] : memref<8x128x2xf32, #tpu.memory_space<vmem>>, vector<1x128x2xf32>
    %56 = vector.shape_cast %55 : vector<1x128x2xf32> to vector<128x2xf32>
    %57 = vector.shape_cast %54 : vector<128x2xf32> to vector<1x128x2xf32>
    tpu.vector_store %arg15[%c6_42, %c0_43, %c0_44], %57 {strides = array<i32>} : memref<8x128x2xf32, #tpu.memory_space<vmem>>, vector<1x128x2xf32>,
    %c7 = arith.constant 7 : index
    %c0_45 = arith.constant 0 : index
    %c0_46 = arith.constant 0 : index
    %58 = vector.load %arg1[%c7, %c0_45, %c0_46] : memref<8x8x2xf32, #tpu.memory_space<vmem>>, vector<1x8x2xf32>
    %59 = vector.shape_cast %58 : vector<1x8x2xf32> to vector<8x2xf32>
    %cst_47 = arith.constant dense<0.000000e+00> : vector<128x2xf32>
    %60 = tpu.matmul %0, %59, %cst_47 {dimension_numbers = #tpu.dot_dimension_numbers<[1], [0], [0], [1], [0, 0, 1, 1], [], []>} : vector<128x8xf32>, vector<8x2xf32>, vector<128x2xf32> -> vector<128x2xf32>
    %61 = vector.broadcast %1 : vector<128x1xf32> to vector<128x2xf32>
    %62 = arith.addf %60, %61 : vector<128x2xf32>
    %c7_48 = arith.constant 7 : index
    %c0_49 = arith.constant 0 : index
    %c0_50 = arith.constant 0 : index
    %63 = vector.load %arg15[%c7_48, %c0_49, %c0_50] : memref<8x128x2xf32, #tpu.memory_space<vmem>>, vector<1x128x2xf32>
    %64 = vector.shape_cast %63 : vector<1x128x2xf32> to vector<128x2xf32>
    %65 = vector.shape_cast %62 : vector<128x2xf32> to vector<1x128x2xf32>
    tpu.vector_store %arg15[%c7_48, %c0_49, %c0_50], %65 {strides = array<i32>} : memref<8x128x2xf32, #tpu.memory_space<vmem>>, vector<1x128x2xf32>,
    %c0_51 = arith.constant 0 : index
    %c0_52 = arith.constant 0 : index
    %66 = vector.load %arg3[%c0_51, %c0_52] : memref<128x32xf32, #tpu.memory_space<vmem>>, vector<128x32xf32>
    %c0_53 = arith.constant 0 : index
    %c0_54 = arith.constant 0 : index
    %67 = vector.load %arg5[%c0_53, %c0_54] : memref<16x32xf32, #tpu.memory_space<vmem>>, vector<16x32xf32>
    %c0_55 = arith.constant 0 : index
    %c0_56 = arith.constant 0 : index
    %68 = vector.load %arg6[%c0_55, %c0_56] : memref<16x1xf32, #tpu.memory_space<vmem>>, vector<16x1xf32>
    %cst_57 = arith.constant 0.000000e+00 : f32
    %69 = vector.broadcast %cst_57 : f32 to vector<32x2xf32>
    %cst_58 = arith.constant 0.000000e+00 : f32
    %70 = vector.broadcast %cst_58 : f32 to vector<32x2xf32>
    %c0_59 = arith.constant 0 : index
    %c0_60 = arith.constant 0 : index
    %c0_61 = arith.constant 0 : index
    %71 = vector.load %arg15[%c0_59, %c0_60, %c0_61] : memref<8x128x2xf32, #tpu.memory_space<vmem>>, vector<1x128x2xf32>
    %72 = vector.shape_cast %71 : vector<1x128x2xf32> to vector<128x2xf32>
    %cst_62 = arith.constant dense<0.000000e+00> : vector<128x2xf32>
    %73 = tpu.matmul %66, %69, %cst_62 {dimension_numbers = #tpu.dot_dimension_numbers<[1], [0], [0], [1], [0, 0, 1, 1], [], []>} : vector<128x32xf32>, vector<32x2xf32>, vector<128x2xf32> -> vector<128x2xf32>
    %74 = arith.addf %72, %73 : vector<128x2xf32>
    %75 = vector.extract_strided_slice %74 {offsets = [0, 0], sizes = [96, 2], strides = [1, 1]} : vector<128x2xf32> to vector<96x2xf32>
    %76 = arith.negf %75 : vector<96x2xf32>
    %77 = math.exp %76 : vector<96x2xf32>
    %cst_63 = arith.constant 1.000000e+00 : f32
    %78 = vector.broadcast %cst_63 : f32 to vector<96x2xf32>
    %79 = arith.addf %78, %77 : vector<96x2xf32>
    %80 = arith.divf %78, %79 : vector<96x2xf32>
    %81 = vector.extract_strided_slice %74 {offsets = [96, 0], sizes = [32, 2], strides = [1, 1]} : vector<128x2xf32> to vector<32x2xf32>
    %82 = math.tanh %81 : vector<32x2xf32>
    %83 = vector.extract_strided_slice %80 {offsets = [0, 0], sizes = [32, 2], strides = [1, 1]} : vector<96x2xf32> to vector<32x2xf32>
    %84 = vector.extract_strided_slice %80 {offsets = [32, 0], sizes = [32, 2], strides = [1, 1]} : vector<96x2xf32> to vector<32x2xf32>
    %85 = vector.extract_strided_slice %80 {offsets = [64, 0], sizes = [32, 2], strides = [1, 1]} : vector<96x2xf32> to vector<32x2xf32>
    %86 = arith.mulf %84, %70 : vector<32x2xf32>
    %87 = arith.mulf %83, %82 : vector<32x2xf32>
    %88 = arith.addf %86, %87 : vector<32x2xf32>
    %89 = math.tanh %88 : vector<32x2xf32>
    %90 = arith.mulf %85, %89 : vector<32x2xf32>
    %cst_64 = arith.constant dense<0.000000e+00> : vector<16x2xf32>
    %91 = tpu.matmul %67, %90, %cst_64 {dimension_numbers = #tpu.dot_dimension_numbers<[1], [0], [0], [1], [0, 0, 1, 1], [], []>} : vector<16x32xf32>, vector<32x2xf32>, vector<16x2xf32> -> vector<16x2xf32>
    %92 = vector.broadcast %68 : vector<16x1xf32> to vector<16x2xf32>
    %93 = arith.addf %91, %92 : vector<16x2xf32>
    %c0_65 = arith.constant 0 : index
    %c0_66 = arith.constant 0 : index
    %c0_67 = arith.constant 0 : index
    %94 = vector.load %arg16[%c0_65, %c0_66, %c0_67] : memref<8x16x2xf32, #tpu.memory_space<vmem>>, vector<1x16x2xf32>
    %95 = vector.shape_cast %94 : vector<1x16x2xf32> to vector<16x2xf32>
    %96 = vector.shape_cast %93 : vector<16x2xf32> to vector<1x16x2xf32>
    tpu.vector_store %arg16[%c0_65, %c0_66, %c0_67], %96 {strides = array<i32>} : memref<8x16x2xf32, #tpu.memory_space<vmem>>, vector<1x16x2xf32>,
    %c1_68 = arith.constant 1 : index
    %c0_69 = arith.constant 0 : index
    %c0_70 = arith.constant 0 : index
    %97 = vector.load %arg15[%c1_68, %c0_69, %c0_70] : memref<8x128x2xf32, #tpu.memory_space<vmem>>, vector<1x128x2xf32>
    %98 = vector.shape_cast %97 : vector<1x128x2xf32> to vector<128x2xf32>
    %cst_71 = arith.constant dense<0.000000e+00> : vector<128x2xf32>
    %99 = tpu.matmul %66, %90, %cst_71 {dimension_numbers = #tpu.dot_dimension_numbers<[1], [0], [0], [1], [0, 0, 1, 1], [], []>} : vector<128x32xf32>, vector<32x2xf32>, vector<128x2xf32> -> vector<128x2xf32>
    %100 = arith.addf %98, %99 : vector<128x2xf32>
    %101 = vector.extract_strided_slice %100 {offsets = [0, 0], sizes = [96, 2], strides = [1, 1]} : vector<128x2xf32> to vector<96x2xf32>
    %102 = arith.negf %101 : vector<96x2xf32>
    %103 = math.exp %102 : vector<96x2xf32>
    %cst_72 = arith.constant 1.000000e+00 : f32
    %104 = vector.broadcast %cst_72 : f32 to vector<96x2xf32>
    %105 = arith.addf %104, %103 : vector<96x2xf32>
    %106 = arith.divf %104, %105 : vector<96x2xf32>
    %107 = vector.extract_strided_slice %100 {offsets = [96, 0], sizes = [32, 2], strides = [1, 1]} : vector<128x2xf32> to vector<32x2xf32>
    %108 = math.tanh %107 : vector<32x2xf32>
    %109 = vector.extract_strided_slice %106 {offsets = [0, 0], sizes = [32, 2], strides = [1, 1]} : vector<96x2xf32> to vector<32x2xf32>
    %110 = vector.extract_strided_slice %106 {offsets = [32, 0], sizes = [32, 2], strides = [1, 1]} : vector<96x2xf32> to vector<32x2xf32>
    %111 = vector.extract_strided_slice %106 {offsets = [64, 0], sizes = [32, 2], strides = [1, 1]} : vector<96x2xf32> to vector<32x2xf32>
    %112 = arith.mulf %110, %88 : vector<32x2xf32>
    %113 = arith.mulf %109, %108 : vector<32x2xf32>
    %114 = arith.addf %112, %113 : vector<32x2xf32>
    %115 = math.tanh %114 : vector<32x2xf32>
    %116 = arith.mulf %111, %115 : vector<32x2xf32>
    %cst_73 = arith.constant dense<0.000000e+00> : vector<16x2xf32>
    %117 = tpu.matmul %67, %116, %cst_73 {dimension_numbers = #tpu.dot_dimension_numbers<[1], [0], [0], [1], [0, 0, 1, 1], [], []>} : vector<16x32xf32>, vector<32x2xf32>, vector<16x2xf32> -> vector<16x2xf32>
    %118 = vector.broadcast %68 : vector<16x1xf32> to vector<16x2xf32>
    %119 = arith.addf %117, %118 : vector<16x2xf32>
    %c1_74 = arith.constant 1 : index
    %c0_75 = arith.constant 0 : index
    %c0_76 = arith.constant 0 : index
    %120 = vector.load %arg16[%c1_74, %c0_75, %c0_76] : memref<8x16x2xf32, #tpu.memory_space<vmem>>, vector<1x16x2xf32>
    %121 = vector.shape_cast %120 : vector<1x16x2xf32> to vector<16x2xf32>
    %122 = vector.shape_cast %119 : vector<16x2xf32> to vector<1x16x2xf32>
    tpu.vector_store %arg16[%c1_74, %c0_75, %c0_76], %122 {strides = array<i32>} : memref<8x16x2xf32, #tpu.memory_space<vmem>>, vector<1x16x2xf32>,
    %c2_77 = arith.constant 2 : index
    %c0_78 = arith.constant 0 : index
    %c0_79 = arith.constant 0 : index
    %123 = vector.load %arg15[%c2_77, %c0_78, %c0_79] : memref<8x128x2xf32, #tpu.memory_space<vmem>>, vector<1x128x2xf32>
    %124 = vector.shape_cast %123 : vector<1x128x2xf32> to vector<128x2xf32>
    %cst_80 = arith.constant dense<0.000000e+00> : vector<128x2xf32>
    %125 = tpu.matmul %66, %116, %cst_80 {dimension_numbers = #tpu.dot_dimension_numbers<[1], [0], [0], [1], [0, 0, 1, 1], [], []>} : vector<128x32xf32>, vector<32x2xf32>, vector<128x2xf32> -> vector<128x2xf32>
    %126 = arith.addf %124, %125 : vector<128x2xf32>
    %127 = vector.extract_strided_slice %126 {offsets = [0, 0], sizes = [96, 2], strides = [1, 1]} : vector<128x2xf32> to vector<96x2xf32>
    %128 = arith.negf %127 : vector<96x2xf32>
    %129 = math.exp %128 : vector<96x2xf32>
    %cst_81 = arith.constant 1.000000e+00 : f32
    %130 = vector.broadcast %cst_81 : f32 to vector<96x2xf32>
    %131 = arith.addf %130, %129 : vector<96x2xf32>
    %132 = arith.divf %130, %131 : vector<96x2xf32>
    %133 = vector.extract_strided_slice %126 {offsets = [96, 0], sizes = [32, 2], strides = [1, 1]} : vector<128x2xf32> to vector<32x2xf32>
    %134 = math.tanh %133 : vector<32x2xf32>
    %135 = vector.extract_strided_slice %132 {offsets = [0, 0], sizes = [32, 2], strides = [1, 1]} : vector<96x2xf32> to vector<32x2xf32>
    %136 = vector.extract_strided_slice %132 {offsets = [32, 0], sizes = [32, 2], strides = [1, 1]} : vector<96x2xf32> to vector<32x2xf32>
    %137 = vector.extract_strided_slice %132 {offsets = [64, 0], sizes = [32, 2], strides = [1, 1]} : vector<96x2xf32> to vector<32x2xf32>
    %138 = arith.mulf %136, %114 : vector<32x2xf32>
    %139 = arith.mulf %135, %134 : vector<32x2xf32>
    %140 = arith.addf %138, %139 : vector<32x2xf32>
    %141 = math.tanh %140 : vector<32x2xf32>
    %142 = arith.mulf %137, %141 : vector<32x2xf32>
    %cst_82 = arith.constant dense<0.000000e+00> : vector<16x2xf32>
    %143 = tpu.matmul %67, %142, %cst_82 {dimension_numbers = #tpu.dot_dimension_numbers<[1], [0], [0], [1], [0, 0, 1, 1], [], []>} : vector<16x32xf32>, vector<32x2xf32>, vector<16x2xf32> -> vector<16x2xf32>
    %144 = vector.broadcast %68 : vector<16x1xf32> to vector<16x2xf32>
    %145 = arith.addf %143, %144 : vector<16x2xf32>
    %c2_83 = arith.constant 2 : index
    %c0_84 = arith.constant 0 : index
    %c0_85 = arith.constant 0 : index
    %146 = vector.load %arg16[%c2_83, %c0_84, %c0_85] : memref<8x16x2xf32, #tpu.memory_space<vmem>>, vector<1x16x2xf32>
    %147 = vector.shape_cast %146 : vector<1x16x2xf32> to vector<16x2xf32>
    %148 = vector.shape_cast %145 : vector<16x2xf32> to vector<1x16x2xf32>
    tpu.vector_store %arg16[%c2_83, %c0_84, %c0_85], %148 {strides = array<i32>} : memref<8x16x2xf32, #tpu.memory_space<vmem>>, vector<1x16x2xf32>,
    %c3_86 = arith.constant 3 : index
    %c0_87 = arith.constant 0 : index
    %c0_88 = arith.constant 0 : index
    %149 = vector.load %arg15[%c3_86, %c0_87, %c0_88] : memref<8x128x2xf32, #tpu.memory_space<vmem>>, vector<1x128x2xf32>
    %150 = vector.shape_cast %149 : vector<1x128x2xf32> to vector<128x2xf32>
    %cst_89 = arith.constant dense<0.000000e+00> : vector<128x2xf32>
    %151 = tpu.matmul %66, %142, %cst_89 {dimension_numbers = #tpu.dot_dimension_numbers<[1], [0], [0], [1], [0, 0, 1, 1], [], []>} : vector<128x32xf32>, vector<32x2xf32>, vector<128x2xf32> -> vector<128x2xf32>
    %152 = arith.addf %150, %151 : vector<128x2xf32>
    %153 = vector.extract_strided_slice %152 {offsets = [0, 0], sizes = [96, 2], strides = [1, 1]} : vector<128x2xf32> to vector<96x2xf32>
    %154 = arith.negf %153 : vector<96x2xf32>
    %155 = math.exp %154 : vector<96x2xf32>
    %cst_90 = arith.constant 1.000000e+00 : f32
    %156 = vector.broadcast %cst_90 : f32 to vector<96x2xf32>
    %157 = arith.addf %156, %155 : vector<96x2xf32>
    %158 = arith.divf %156, %157 : vector<96x2xf32>
    %159 = vector.extract_strided_slice %152 {offsets = [96, 0], sizes = [32, 2], strides = [1, 1]} : vector<128x2xf32> to vector<32x2xf32>
    %160 = math.tanh %159 : vector<32x2xf32>
    %161 = vector.extract_strided_slice %158 {offsets = [0, 0], sizes = [32, 2], strides = [1, 1]} : vector<96x2xf32> to vector<32x2xf32>
    %162 = vector.extract_strided_slice %158 {offsets = [32, 0], sizes = [32, 2], strides = [1, 1]} : vector<96x2xf32> to vector<32x2xf32>
    %163 = vector.extract_strided_slice %158 {offsets = [64, 0], sizes = [32, 2], strides = [1, 1]} : vector<96x2xf32> to vector<32x2xf32>
    %164 = arith.mulf %162, %140 : vector<32x2xf32>
    %165 = arith.mulf %161, %160 : vector<32x2xf32>
    %166 = arith.addf %164, %165 : vector<32x2xf32>
    %167 = math.tanh %166 : vector<32x2xf32>
    %168 = arith.mulf %163, %167 : vector<32x2xf32>
    %cst_91 = arith.constant dense<0.000000e+00> : vector<16x2xf32>
    %169 = tpu.matmul %67, %168, %cst_91 {dimension_numbers = #tpu.dot_dimension_numbers<[1], [0], [0], [1], [0, 0, 1, 1], [], []>} : vector<16x32xf32>, vector<32x2xf32>, vector<16x2xf32> -> vector<16x2xf32>
    %170 = vector.broadcast %68 : vector<16x1xf32> to vector<16x2xf32>
    %171 = arith.addf %169, %170 : vector<16x2xf32>
    %c3_92 = arith.constant 3 : index
    %c0_93 = arith.constant 0 : index
    %c0_94 = arith.constant 0 : index
    %172 = vector.load %arg16[%c3_92, %c0_93, %c0_94] : memref<8x16x2xf32, #tpu.memory_space<vmem>>, vector<1x16x2xf32>
    %173 = vector.shape_cast %172 : vector<1x16x2xf32> to vector<16x2xf32>
    %174 = vector.shape_cast %171 : vector<16x2xf32> to vector<1x16x2xf32>
    tpu.vector_store %arg16[%c3_92, %c0_93, %c0_94], %174 {strides = array<i32>} : memref<8x16x2xf32, #tpu.memory_space<vmem>>, vector<1x16x2xf32>,
    %c4_95 = arith.constant 4 : index
    %c0_96 = arith.constant 0 : index
    %c0_97 = arith.constant 0 : index
    %175 = vector.load %arg15[%c4_95, %c0_96, %c0_97] : memref<8x128x2xf32, #tpu.memory_space<vmem>>, vector<1x128x2xf32>
    %176 = vector.shape_cast %175 : vector<1x128x2xf32> to vector<128x2xf32>
    %cst_98 = arith.constant dense<0.000000e+00> : vector<128x2xf32>
    %177 = tpu.matmul %66, %168, %cst_98 {dimension_numbers = #tpu.dot_dimension_numbers<[1], [0], [0], [1], [0, 0, 1, 1], [], []>} : vector<128x32xf32>, vector<32x2xf32>, vector<128x2xf32> -> vector<128x2xf32>
    %178 = arith.addf %176, %177 : vector<128x2xf32>
    %179 = vector.extract_strided_slice %178 {offsets = [0, 0], sizes = [96, 2], strides = [1, 1]} : vector<128x2xf32> to vector<96x2xf32>
    %180 = arith.negf %179 : vector<96x2xf32>
    %181 = math.exp %180 : vector<96x2xf32>
    %cst_99 = arith.constant 1.000000e+00 : f32
    %182 = vector.broadcast %cst_99 : f32 to vector<96x2xf32>
    %183 = arith.addf %182, %181 : vector<96x2xf32>
    %184 = arith.divf %182, %183 : vector<96x2xf32>
    %185 = vector.extract_strided_slice %178 {offsets = [96, 0], sizes = [32, 2], strides = [1, 1]} : vector<128x2xf32> to vector<32x2xf32>
    %186 = math.tanh %185 : vector<32x2xf32>
    %187 = vector.extract_strided_slice %184 {offsets = [0, 0], sizes = [32, 2], strides = [1, 1]} : vector<96x2xf32> to vector<32x2xf32>
    %188 = vector.extract_strided_slice %184 {offsets = [32, 0], sizes = [32, 2], strides = [1, 1]} : vector<96x2xf32> to vector<32x2xf32>
    %189 = vector.extract_strided_slice %184 {offsets = [64, 0], sizes = [32, 2], strides = [1, 1]} : vector<96x2xf32> to vector<32x2xf32>
    %190 = arith.mulf %188, %166 : vector<32x2xf32>
    %191 = arith.mulf %187, %186 : vector<32x2xf32>
    %192 = arith.addf %190, %191 : vector<32x2xf32>
    %193 = math.tanh %192 : vector<32x2xf32>
    %194 = arith.mulf %189, %193 : vector<32x2xf32>
    %cst_100 = arith.constant dense<0.000000e+00> : vector<16x2xf32>
    %195 = tpu.matmul %67, %194, %cst_100 {dimension_numbers = #tpu.dot_dimension_numbers<[1], [0], [0], [1], [0, 0, 1, 1], [], []>} : vector<16x32xf32>, vector<32x2xf32>, vector<16x2xf32> -> vector<16x2xf32>
    %196 = vector.broadcast %68 : vector<16x1xf32> to vector<16x2xf32>
    %197 = arith.addf %195, %196 : vector<16x2xf32>
    %c4_101 = arith.constant 4 : index
    %c0_102 = arith.constant 0 : index
    %c0_103 = arith.constant 0 : index
    %198 = vector.load %arg16[%c4_101, %c0_102, %c0_103] : memref<8x16x2xf32, #tpu.memory_space<vmem>>, vector<1x16x2xf32>
    %199 = vector.shape_cast %198 : vector<1x16x2xf32> to vector<16x2xf32>
    %200 = vector.shape_cast %197 : vector<16x2xf32> to vector<1x16x2xf32>
    tpu.vector_store %arg16[%c4_101, %c0_102, %c0_103], %200 {strides = array<i32>} : memref<8x16x2xf32, #tpu.memory_space<vmem>>, vector<1x16x2xf32>,
    %c5_104 = arith.constant 5 : index
    %c0_105 = arith.constant 0 : index
    %c0_106 = arith.constant 0 : index
    %201 = vector.load %arg15[%c5_104, %c0_105, %c0_106] : memref<8x128x2xf32, #tpu.memory_space<vmem>>, vector<1x128x2xf32>
    %202 = vector.shape_cast %201 : vector<1x128x2xf32> to vector<128x2xf32>
    %cst_107 = arith.constant dense<0.000000e+00> : vector<128x2xf32>
    %203 = tpu.matmul %66, %194, %cst_107 {dimension_numbers = #tpu.dot_dimension_numbers<[1], [0], [0], [1], [0, 0, 1, 1], [], []>} : vector<128x32xf32>, vector<32x2xf32>, vector<128x2xf32> -> vector<128x2xf32>
    %204 = arith.addf %202, %203 : vector<128x2xf32>
    %205 = vector.extract_strided_slice %204 {offsets = [0, 0], sizes = [96, 2], strides = [1, 1]} : vector<128x2xf32> to vector<96x2xf32>
    %206 = arith.negf %205 : vector<96x2xf32>
    %207 = math.exp %206 : vector<96x2xf32>
    %cst_108 = arith.constant 1.000000e+00 : f32
    %208 = vector.broadcast %cst_108 : f32 to vector<96x2xf32>
    %209 = arith.addf %208, %207 : vector<96x2xf32>
    %210 = arith.divf %208, %209 : vector<96x2xf32>
    %211 = vector.extract_strided_slice %204 {offsets = [96, 0], sizes = [32, 2], strides = [1, 1]} : vector<128x2xf32> to vector<32x2xf32>
    %212 = math.tanh %211 : vector<32x2xf32>
    %213 = vector.extract_strided_slice %210 {offsets = [0, 0], sizes = [32, 2], strides = [1, 1]} : vector<96x2xf32> to vector<32x2xf32>
    %214 = vector.extract_strided_slice %210 {offsets = [32, 0], sizes = [32, 2], strides = [1, 1]} : vector<96x2xf32> to vector<32x2xf32>
    %215 = vector.extract_strided_slice %210 {offsets = [64, 0], sizes = [32, 2], strides = [1, 1]} : vector<96x2xf32> to vector<32x2xf32>
    %216 = arith.mulf %214, %192 : vector<32x2xf32>
    %217 = arith.mulf %213, %212 : vector<32x2xf32>
    %218 = arith.addf %216, %217 : vector<32x2xf32>
    %219 = math.tanh %218 : vector<32x2xf32>
    %220 = arith.mulf %215, %219 : vector<32x2xf32>
    %cst_109 = arith.constant dense<0.000000e+00> : vector<16x2xf32>
    %221 = tpu.matmul %67, %220, %cst_109 {dimension_numbers = #tpu.dot_dimension_numbers<[1], [0], [0], [1], [0, 0, 1, 1], [], []>} : vector<16x32xf32>, vector<32x2xf32>, vector<16x2xf32> -> vector<16x2xf32>
    %222 = vector.broadcast %68 : vector<16x1xf32> to vector<16x2xf32>
    %223 = arith.addf %221, %222 : vector<16x2xf32>
    %c5_110 = arith.constant 5 : index
    %c0_111 = arith.constant 0 : index
    %c0_112 = arith.constant 0 : index
    %224 = vector.load %arg16[%c5_110, %c0_111, %c0_112] : memref<8x16x2xf32, #tpu.memory_space<vmem>>, vector<1x16x2xf32>
    %225 = vector.shape_cast %224 : vector<1x16x2xf32> to vector<16x2xf32>
    %226 = vector.shape_cast %223 : vector<16x2xf32> to vector<1x16x2xf32>
    tpu.vector_store %arg16[%c5_110, %c0_111, %c0_112], %226 {strides = array<i32>} : memref<8x16x2xf32, #tpu.memory_space<vmem>>, vector<1x16x2xf32>,
    %c6_113 = arith.constant 6 : index
    %c0_114 = arith.constant 0 : index
    %c0_115 = arith.constant 0 : index
    %227 = vector.load %arg15[%c6_113, %c0_114, %c0_115] : memref<8x128x2xf32, #tpu.memory_space<vmem>>, vector<1x128x2xf32>
    %228 = vector.shape_cast %227 : vector<1x128x2xf32> to vector<128x2xf32>
    %cst_116 = arith.constant dense<0.000000e+00> : vector<128x2xf32>
    %229 = tpu.matmul %66, %220, %cst_116 {dimension_numbers = #tpu.dot_dimension_numbers<[1], [0], [0], [1], [0, 0, 1, 1], [], []>} : vector<128x32xf32>, vector<32x2xf32>, vector<128x2xf32> -> vector<128x2xf32>
    %230 = arith.addf %228, %229 : vector<128x2xf32>
    %231 = vector.extract_strided_slice %230 {offsets = [0, 0], sizes = [96, 2], strides = [1, 1]} : vector<128x2xf32> to vector<96x2xf32>
    %232 = arith.negf %231 : vector<96x2xf32>
    %233 = math.exp %232 : vector<96x2xf32>
    %cst_117 = arith.constant 1.000000e+00 : f32
    %234 = vector.broadcast %cst_117 : f32 to vector<96x2xf32>
    %235 = arith.addf %234, %233 : vector<96x2xf32>
    %236 = arith.divf %234, %235 : vector<96x2xf32>
    %237 = vector.extract_strided_slice %230 {offsets = [96, 0], sizes = [32, 2], strides = [1, 1]} : vector<128x2xf32> to vector<32x2xf32>
    %238 = math.tanh %237 : vector<32x2xf32>
    %239 = vector.extract_strided_slice %236 {offsets = [0, 0], sizes = [32, 2], strides = [1, 1]} : vector<96x2xf32> to vector<32x2xf32>
    %240 = vector.extract_strided_slice %236 {offsets = [32, 0], sizes = [32, 2], strides = [1, 1]} : vector<96x2xf32> to vector<32x2xf32>
    %241 = vector.extract_strided_slice %236 {offsets = [64, 0], sizes = [32, 2], strides = [1, 1]} : vector<96x2xf32> to vector<32x2xf32>
    %242 = arith.mulf %240, %218 : vector<32x2xf32>
    %243 = arith.mulf %239, %238 : vector<32x2xf32>
    %244 = arith.addf %242, %243 : vector<32x2xf32>
    %245 = math.tanh %244 : vector<32x2xf32>
    %246 = arith.mulf %241, %245 : vector<32x2xf32>
    %cst_118 = arith.constant dense<0.000000e+00> : vector<16x2xf32>
    %247 = tpu.matmul %67, %246, %cst_118 {dimension_numbers = #tpu.dot_dimension_numbers<[1], [0], [0], [1], [0, 0, 1, 1], [], []>} : vector<16x32xf32>, vector<32x2xf32>, vector<16x2xf32> -> vector<16x2xf32>
    %248 = vector.broadcast %68 : vector<16x1xf32> to vector<16x2xf32>
    %249 = arith.addf %247, %248 : vector<16x2xf32>
    %c6_119 = arith.constant 6 : index
    %c0_120 = arith.constant 0 : index
    %c0_121 = arith.constant 0 : index
    %250 = vector.load %arg16[%c6_119, %c0_120, %c0_121] : memref<8x16x2xf32, #tpu.memory_space<vmem>>, vector<1x16x2xf32>
    %251 = vector.shape_cast %250 : vector<1x16x2xf32> to vector<16x2xf32>
    %252 = vector.shape_cast %249 : vector<16x2xf32> to vector<1x16x2xf32>
    tpu.vector_store %arg16[%c6_119, %c0_120, %c0_121], %252 {strides = array<i32>} : memref<8x16x2xf32, #tpu.memory_space<vmem>>, vector<1x16x2xf32>,
    %c7_122 = arith.constant 7 : index
    %c0_123 = arith.constant 0 : index
    %c0_124 = arith.constant 0 : index
    %253 = vector.load %arg15[%c7_122, %c0_123, %c0_124] : memref<8x128x2xf32, #tpu.memory_space<vmem>>, vector<1x128x2xf32>
    %254 = vector.shape_cast %253 : vector<1x128x2xf32> to vector<128x2xf32>
    %cst_125 = arith.constant dense<0.000000e+00> : vector<128x2xf32>
    %255 = tpu.matmul %66, %246, %cst_125 {dimension_numbers = #tpu.dot_dimension_numbers<[1], [0], [0], [1], [0, 0, 1, 1], [], []>} : vector<128x32xf32>, vector<32x2xf32>, vector<128x2xf32> -> vector<128x2xf32>
    %256 = arith.addf %254, %255 : vector<128x2xf32>
    %257 = vector.extract_strided_slice %256 {offsets = [0, 0], sizes = [96, 2], strides = [1, 1]} : vector<128x2xf32> to vector<96x2xf32>
    %258 = arith.negf %257 : vector<96x2xf32>
    %259 = math.exp %258 : vector<96x2xf32>
    %cst_126 = arith.constant 1.000000e+00 : f32
    %260 = vector.broadcast %cst_126 : f32 to vector<96x2xf32>
    %261 = arith.addf %260, %259 : vector<96x2xf32>
    %262 = arith.divf %260, %261 : vector<96x2xf32>
    %263 = vector.extract_strided_slice %256 {offsets = [96, 0], sizes = [32, 2], strides = [1, 1]} : vector<128x2xf32> to vector<32x2xf32>
    %264 = math.tanh %263 : vector<32x2xf32>
    %265 = vector.extract_strided_slice %262 {offsets = [0, 0], sizes = [32, 2], strides = [1, 1]} : vector<96x2xf32> to vector<32x2xf32>
    %266 = vector.extract_strided_slice %262 {offsets = [32, 0], sizes = [32, 2], strides = [1, 1]} : vector<96x2xf32> to vector<32x2xf32>
    %267 = vector.extract_strided_slice %262 {offsets = [64, 0], sizes = [32, 2], strides = [1, 1]} : vector<96x2xf32> to vector<32x2xf32>
    %268 = arith.mulf %266, %244 : vector<32x2xf32>
    %269 = arith.mulf %265, %264 : vector<32x2xf32>
    %270 = arith.addf %268, %269 : vector<32x2xf32>
    %271 = math.tanh %270 : vector<32x2xf32>
    %272 = arith.mulf %267, %271 : vector<32x2xf32>
    %cst_127 = arith.constant dense<0.000000e+00> : vector<16x2xf32>
    %273 = tpu.matmul %67, %272, %cst_127 {dimension_numbers = #tpu.dot_dimension_numbers<[1], [0], [0], [1], [0, 0, 1, 1], [], []>} : vector<16x32xf32>, vector<32x2xf32>, vector<16x2xf32> -> vector<16x2xf32>
    %274 = vector.broadcast %68 : vector<16x1xf32> to vector<16x2xf32>
    %275 = arith.addf %273, %274 : vector<16x2xf32>
    %c7_128 = arith.constant 7 : index
    %c0_129 = arith.constant 0 : index
    %c0_130 = arith.constant 0 : index
    %276 = vector.load %arg16[%c7_128, %c0_129, %c0_130] : memref<8x16x2xf32, #tpu.memory_space<vmem>>, vector<1x16x2xf32>
    %277 = vector.shape_cast %276 : vector<1x16x2xf32> to vector<16x2xf32>
    %278 = vector.shape_cast %275 : vector<16x2xf32> to vector<1x16x2xf32>
    tpu.vector_store %arg16[%c7_128, %c0_129, %c0_130], %278 {strides = array<i32>} : memref<8x16x2xf32, #tpu.memory_space<vmem>>, vector<1x16x2xf32>,
    %c0_131 = arith.constant 0 : index
    %c0_132 = arith.constant 0 : index
    %279 = vector.load %arg7[%c0_131, %c0_132] : memref<16x32xf32, #tpu.memory_space<vmem>>, vector<16x32xf32>
    %cst_133 = arith.constant dense<0.000000e+00> : vector<16x2xf32>
    %280 = tpu.matmul %279, %272, %cst_133 {dimension_numbers = #tpu.dot_dimension_numbers<[1], [0], [0], [1], [0, 0, 1, 1], [], []>} : vector<16x32xf32>, vector<32x2xf32>, vector<16x2xf32> -> vector<16x2xf32>
    %c0_134 = arith.constant 0 : index
    %c0_135 = arith.constant 0 : index
    %281 = vector.load %arg8[%c0_134, %c0_135] : memref<16x1xf32, #tpu.memory_space<vmem>>, vector<16x1xf32>
    %282 = vector.broadcast %281 : vector<16x1xf32> to vector<16x2xf32>
    %283 = arith.addf %280, %282 : vector<16x2xf32>
    %c0_136 = arith.constant 0 : index
    %c0_137 = arith.constant 0 : index
    %c0_138 = arith.constant 0 : index
    %284 = vector.load %arg16[%c0_136, %c0_137, %c0_138] : memref<8x16x2xf32, #tpu.memory_space<vmem>>, vector<8x16x2xf32>
    %285 = vector.shape_cast %283 : vector<16x2xf32> to vector<1x16x2xf32>
    %286 = vector.broadcast %285 : vector<1x16x2xf32> to vector<8x16x2xf32>
    %287 = arith.mulf %284, %286 : vector<8x16x2xf32>
    %cst_139 = arith.constant dense<0.000000e+00> : vector<8x2xf32>
    %288 = vector.multi_reduction <add>, %287, %cst_139 [1] : vector<8x16x2xf32> to vector<8x2xf32>
    %cst_140 = arith.constant dense<0xFF800000> : vector<2xf32>
    %289 = vector.multi_reduction <maximumf>, %288, %cst_140 [0] : vector<8x2xf32> to vector<2xf32>
    %290 = vector.shape_cast %289 : vector<2xf32> to vector<1x2xf32>
    %291 = vector.broadcast %290 : vector<1x2xf32> to vector<8x2xf32>
    %292 = arith.subf %288, %291 : vector<8x2xf32>
    %293 = math.exp %292 : vector<8x2xf32>
    %cst_141 = arith.constant dense<0.000000e+00> : vector<2xf32>
    %294 = vector.multi_reduction <add>, %293, %cst_141 [0] : vector<8x2xf32> to vector<2xf32>
    %295 = vector.shape_cast %294 : vector<2xf32> to vector<1x2xf32>
    %296 = vector.broadcast %295 : vector<1x2xf32> to vector<8x2xf32>
    %297 = arith.divf %293, %296 : vector<8x2xf32>
    %298 = vector.shape_cast %297 : vector<8x2xf32> to vector<8x1x2xf32>
    %299 = vector.broadcast %298 : vector<8x1x2xf32> to vector<8x16x2xf32>
    %300 = arith.mulf %299, %284 : vector<8x16x2xf32>
    %cst_142 = arith.constant dense<0.000000e+00> : vector<16x2xf32>
    %301 = vector.multi_reduction <add>, %300, %cst_142 [0] : vector<8x16x2xf32> to vector<16x2xf32>
    %c0_143 = arith.constant 0 : index
    %c0_144 = arith.constant 0 : index
    %302 = vector.load %arg9[%c0_143, %c0_144] : memref<32x32xf32, #tpu.memory_space<vmem>>, vector<32x32xf32>
    %cst_145 = arith.constant dense<0.000000e+00> : vector<32x2xf32>
    %303 = tpu.matmul %302, %272, %cst_145 {dimension_numbers = #tpu.dot_dimension_numbers<[1], [0], [0], [1], [0, 0, 1, 1], [], []>} : vector<32x32xf32>, vector<32x2xf32>, vector<32x2xf32> -> vector<32x2xf32>
    %c0_146 = arith.constant 0 : index
    %c0_147 = arith.constant 0 : index
    %304 = vector.load %arg10[%c0_146, %c0_147] : memref<32x16xf32, #tpu.memory_space<vmem>>, vector<32x16xf32>
    %cst_148 = arith.constant dense<0.000000e+00> : vector<32x2xf32>
    %305 = tpu.matmul %304, %301, %cst_148 {dimension_numbers = #tpu.dot_dimension_numbers<[1], [0], [0], [1], [0, 0, 1, 1], [], []>} : vector<32x16xf32>, vector<16x2xf32>, vector<32x2xf32> -> vector<32x2xf32>
    %306 = arith.addf %303, %305 : vector<32x2xf32>
    %c0_149 = arith.constant 0 : index
    %c0_150 = arith.constant 0 : index
    %307 = vector.load %arg11[%c0_149, %c0_150] : memref<32x1xf32, #tpu.memory_space<vmem>>, vector<32x1xf32>
    %308 = vector.broadcast %307 : vector<32x1xf32> to vector<32x2xf32>
    %309 = arith.addf %306, %308 : vector<32x2xf32>
    %c0_151 = arith.constant 0 : index
    %c0_152 = arith.constant 0 : index
    %310 = vector.load %arg12[%c0_151, %c0_152] : memref<4x32xf32, #tpu.memory_space<vmem>>, vector<4x32xf32>
    %cst_153 = arith.constant dense<0.000000e+00> : vector<4x2xf32>
    %311 = tpu.matmul %310, %309, %cst_153 {dimension_numbers = #tpu.dot_dimension_numbers<[1], [0], [0], [1], [0, 0, 1, 1], [], []>} : vector<4x32xf32>, vector<32x2xf32>, vector<4x2xf32> -> vector<4x2xf32>
    %c0_154 = arith.constant 0 : index
    %c0_155 = arith.constant 0 : index
    %312 = vector.load %arg13[%c0_154, %c0_155] : memref<4x1xf32, #tpu.memory_space<vmem>>, vector<4x1xf32>
    %313 = vector.broadcast %312 : vector<4x1xf32> to vector<4x2xf32>
    %314 = arith.addf %311, %313 : vector<4x2xf32>
    %c0_156 = arith.constant 0 : index
    %c0_157 = arith.constant 0 : index
    %315 = vector.load %arg14[%c0_156, %c0_157] : memref<4x2xf32, #tpu.memory_space<vmem>>, vector<4x2xf32>
    tpu.vector_store %arg14[%c0_156, %c0_157], %314 {strides = array<i32>} : memref<4x2xf32, #tpu.memory_space<vmem>>, vector<4x2xf32>,
    return
  }
  func.func @transform_0(%arg0: i32) -> (i32, i32, i32) {
    %c0_i32 = arith.constant 0 : i32
    %c0_i32_0 = arith.constant 0 : i32
    %c0_i32_1 = arith.constant 0 : i32
    return %c0_i32, %c0_i32_0, %arg0 : i32, i32, i32
  }
  func.func @transform_1(%arg0: i32) -> (i32, i32) {
    %c0_i32 = arith.constant 0 : i32
    %c0_i32_0 = arith.constant 0 : i32
    %c0_i32_1 = arith.constant 0 : i32
    return %c0_i32, %c0_i32_0 : i32, i32
  }
  func.func @transform_2(%arg0: i32) -> (i32, i32) {
    %c0_i32 = arith.constant 0 : i32
    %c0_i32_0 = arith.constant 0 : i32
    %c0_i32_1 = arith.constant 0 : i32
    return %c0_i32, %c0_i32_0 : i32, i32
  }
  func.func @transform_3(%arg0: i32) -> (i32, i32) {
    %c0_i32 = arith.constant 0 : i32
    %c0_i32_0 = arith.constant 0 : i32
    %c0_i32_1 = arith.constant 0 : i32
    return %c0_i32, %c0_i32_0 : i32, i32
  }
  func.func @transform_4(%arg0: i32) -> (i32, i32) {
    %c0_i32 = arith.constant 0 : i32
    %c0_i32_0 = arith.constant 0 : i32
    %c0_i32_1 = arith.constant 0 : i32
    return %c0_i32, %c0_i32_0 : i32, i32
  }
  func.func @transform_5(%arg0: i32) -> (i32, i32) {
    %c0_i32 = arith.constant 0 : i32
    %c0_i32_0 = arith.constant 0 : i32
    %c0_i32_1 = arith.constant 0 : i32
    return %c0_i32, %c0_i32_0 : i32, i32
  }
  func.func @transform_6(%arg0: i32) -> (i32, i32) {
    %c0_i32 = arith.constant 0 : i32
    %c0_i32_0 = arith.constant 0 : i32
    %c0_i32_1 = arith.constant 0 : i32
    return %c0_i32, %c0_i32_0 : i32, i32
  }
  func.func @transform_7(%arg0: i32) -> (i32, i32) {
    %c0_i32 = arith.constant 0 : i32
    %c0_i32_0 = arith.constant 0 : i32
    %c0_i32_1 = arith.constant 0 : i32
    return %c0_i32, %c0_i32_0 : i32, i32
  }
  func.func @transform_8(%arg0: i32) -> (i32, i32) {
    %c0_i32 = arith.constant 0 : i32
    %c0_i32_0 = arith.constant 0 : i32
    %c0_i32_1 = arith.constant 0 : i32
    return %c0_i32, %c0_i32_0 : i32, i32
  }
  func.func @transform_9(%arg0: i32) -> (i32, i32) {
    %c0_i32 = arith.constant 0 : i32
    %c0_i32_0 = arith.constant 0 : i32
    %c0_i32_1 = arith.constant 0 : i32
    return %c0_i32, %c0_i32_0 : i32, i32
  }
  func.func @transform_10(%arg0: i32) -> (i32, i32) {
    %c0_i32 = arith.constant 0 : i32
    %c0_i32_0 = arith.constant 0 : i32
    %c0_i32_1 = arith.constant 0 : i32
    return %c0_i32, %c0_i32_0 : i32, i32
  }
  func.func @transform_11(%arg0: i32) -> (i32, i32) {
    %c0_i32 = arith.constant 0 : i32
    %c0_i32_0 = arith.constant 0 : i32
    %c0_i32_1 = arith.constant 0 : i32
    return %c0_i32, %c0_i32_0 : i32, i32
  }
  func.func @transform_12(%arg0: i32) -> (i32, i32) {
    %c0_i32 = arith.constant 0 : i32
    %c0_i32_0 = arith.constant 0 : i32
    %c0_i32_1 = arith.constant 0 : i32
    return %c0_i32, %c0_i32_0 : i32, i32
  }
  func.func @transform_13(%arg0: i32) -> (i32, i32) {
    %c0_i32 = arith.constant 0 : i32
    %c0_i32_0 = arith.constant 0 : i32
    return %c0_i32, %arg0 : i32, i32
  }
}

</mosaic_0001>

<bundles_post_ra>
// kernel: tpu_custom_call.1
= control target key start
LH: loop header
LB: loop body
LE: loop exit
PB: predicated region body
PF: predicated region fallthrough
CT: control target
= control target key end

     0   :  { %vm157_vm0 = vcmask 64512   ;;  %v5400_v0 = vmov 0   ;;  %vm271_vm1 = vcmask 15360   ;;  %vm912_vm2 = vcmask 261120   ;;  %s9523_s3 = inlined_call_operand.vmem [shape: f32[128,1], index: 3, kind: input, shape index: {}]   ;;  %s9524_s0 = inlined_call_operand.vmem [shape: f32[8,8,2], index: 0, kind: input, shape index: {}]   ;;  %s9525_s1 = inlined_call_operand.vmem [shape: f32[128,8], index: 1, kind: input, shape index: {}]   ;;  %s9526_s2 = inlined_call_operand.vmem [shape: f32[128,32], index: 2, kind: input, shape index: {}]   ;;  %s9527_s7 = inlined_call_operand.vmem [shape: f32[16,1], index: 7, kind: input, shape index: {}]   ;;  %s9528_s5 = inlined_call_operand.vmem [shape: f32[16,1], index: 5, kind: input, shape index: {}]   ;;  %s9529_s10 = inlined_call_operand.vmem [shape: f32[32,1], index: 10, kind: input, shape index: {}]   ;;  %s9530_s12 = inlined_call_operand.vmem [shape: f32[4,1], index: 12, kind: input, shape index: {}]   ;;  %s9531_s4 = inlined_call_operand.vmem [shape: f32[16,32], index: 4, kind: input, shape index: {}]   ;;  %s9532_s6 = inlined_call_operand.vmem [shape: f32[16,32], index: 6, kind: input, shape index: {}]   ;;  %s9533_s8 = inlined_call_operand.vmem [shape: f32[32,32], index: 8, kind: input, shape index: {}]   ;;  %s9534_s9 = inlined_call_operand.vmem [shape: f32[32,16], index: 9, kind: input, shape index: {}]   ;;  %s9535_s11 = inlined_call_operand.vmem [shape: f32[4,32], index: 11, kind: input, shape index: {}]   ;;  %s9536_s13 = inlined_call_operand.vmem [shape: f32[4,2], index: 13, kind: output, shape index: {}]  }
   0x1   :  { %4805 = vset.pattern.permute.xlu0 %v5400_v0  ;;  %v63_v1 = vld [vmem:[%s9523_s3 + $0x18] sm:$0xff]  ;;  %v76_v2 = vld [vmem:[%s9524_s0] sm:$0xff]  ;;  %4806 = vset.pattern.permute.xlu1 %v5400_v0  ;;  %v62_v4 = vld [vmem:[%s9523_s3 + $0x10] sm:$0xff] }
   0x2   :  { %v5481_v3 = vld [vmem:[%s9525_s1] sm:$0xff]  ;;  %94 = vperm.xlu0 %4805, %v63_v1   ;;  %221 = vmatpush.msra.mxu0 %v76_v2  ;;  %v67_v5 = vld [vmem:[%s9523_s3 + $0x38] sm:$0xff]  ;;  %v5494_v6 = vld [vmem:[%s9525_s1 + $0x8] sm:$0xff] }
   0x3   :  { %4415 = vmatmul.msk.f32.vlgmr.msra.gmra.mxu0 %vm157_vm0, %v5481_v3  ;;  %4807 = vset.pattern.permute.xlu2 %v5400_v0  ;;  %v66_v7 = vld [vmem:[%s9523_s3 + $0x30] sm:$0xff]  ;;  %v61_v8 = vld [vmem:[%s9523_s3 + $0x8] sm:$0xff]  ;;  %v60_v9 = vld [vmem:[%s9523_s3] sm:$0xff] }
   0x4   :  { %89 = vperm.xlu1 %4806, %v62_v4   ;;  %4801 = vmatpush.msra.mxu3 %v76_v2  ;;  %v5510_v10 = vld [vmem:[%s9525_s1 + $0x10] sm:$0xff]  ;;  %v64_v11 = vld [vmem:[%s9523_s3 + $0x20] sm:$0xff]  ;;  %v5520_v12 = vld [vmem:[%s9525_s1 + $0x18] sm:$0xff] }
   0x5   :  { %84 = vperm.xlu2 %4807, %v61_v8   ;;  %v4431_v13 = vld [vmem:[%s9524_s0 + $0x8] sm:$0xff]  ;;  %v5530_v14 = vld [vmem:[%s9525_s1 + $0x78] sm:$0xff]  ;;  %v5541_v15 = vld [vmem:[%s9525_s1 + $0x20] sm:$0xff] }
   0x6   :  { %4802 = vmatpush.msra.mxu2 %v4431_v13  ;;  %4430 = vmatmul.msk.f32.vlgmr.msra.gmra.mxu3 %vm157_vm0, %v5530_v14  ;;  %v4448_v16 = vld [vmem:[%s9524_s0 + $0x10] sm:$0xff]  ;;  %v4465_v17 = vld [vmem:[%s9524_s0 + $0x18] sm:$0xff]  ;;  %v5560_v18 = vld [vmem:[%s9525_s1 + $0x28] sm:$0xff] }
   0x7   :  { %4447 = vmatmul.msk.f32.vlgmr.msra.gmra.mxu2 %vm157_vm0, %v5530_v14  ;;  %305 = vmatpush.msra.mxu1 %v4431_v13  ;;  %v65_v19 = vld [vmem:[%s9523_s3 + $0x28] sm:$0xff]  ;;  %v5576_v20 = vld [vmem:[%s9525_s1 + $0x30] sm:$0xff]  ;;  %v5592_v22 = vld [vmem:[%s9525_s1 + $0x38] sm:$0xff] }
   0x8   :  { %4432 = vmatmul.msk.f32.vlgmr.msra.gmra.mxu1 %vm157_vm0, %v5481_v3  ;;  %389 = vmatpush.msrb.mxu2 %v4448_v16  ;;  %v69_v21 = vld [vmem:[%s9523_s3 + $0x48] sm:$0xff]  ;;  %v71_v23 = vld [vmem:[%s9523_s3 + $0x58] sm:$0xff]  ;;  %v70_v24 = vld [vmem:[%s9523_s3 + $0x50] sm:$0xff] }
   0x9   :  { %473 = vmatpush.msrb.mxu3 %v4465_v17  ;;  %v5611_v25 = vld [vmem:[%s9525_s1 + $0x40] sm:$0xff]  ;;  %v75_v27 = vld [vmem:[%s9523_s3 + $0x78] sm:$0xff]  ;;  %v5630_v28 = vld [vmem:[%s9525_s1 + $0x48] sm:$0xff] }
   0xa   :  { %114 = vperm.xlu0 %4805, %v67_v5   ;;  %v68_v26 = vld [vmem:[%s9523_s3 + $0x40] sm:$0xff]  ;;  %v5646_v30 = vld [vmem:[%s9525_s1 + $0x50] sm:$0xff]  ;;  %v5662_v32 = vld [vmem:[%s9525_s1 + $0x58] sm:$0xff] }
   0xb   :  { %4416 = vmatmul.msk.f32.gmra.mxu0 %vm157_vm0, %v5494_v6  ;;  %v72_v29 = vld [vmem:[%s9523_s3 + $0x60] sm:$0xff]  ;;  %v74_v33 = vld [vmem:[%s9523_s3 + $0x70] sm:$0xff]  ;;  %v5691_v35 = vld [vmem:[%s9525_s1 + $0x68] sm:$0xff] }
   0xc   :  { %109 = vperm.xlu1 %4806, %v66_v7   ;;  %v4482_v31 = vld [vmem:[%s9524_s0 + $0x20] sm:$0xff]  ;;  %v73_v36 = vld [vmem:[%s9523_s3 + $0x68] sm:$0xff]  ;;  %v5707_v37 = vld [vmem:[%s9525_s1 + $0x70] sm:$0xff] }
   0xd   :  { %104 = vperm.xlu2 %4807, %v65_v19   ;;  %557 = vmatpush.msrb.mxu0 %v4482_v31  ;;  %v5678_v34 = vld [vmem:[%s9525_s1 + $0x60] sm:$0xff]  ;;  %v4516_v58 = vld [vmem:[%s9524_s0 + $0x30] sm:$0xff]  ;;  %v4533_v59 = vld [vmem:[%s9524_s0 + $0x38] sm:$0xff] }
   0xe   :  { %4466 = vmatmul.msk.f32.vlgmr.msrb.gmra.mxu3 %vm157_vm0, %v5481_v3  ;;  %725 = vmatpush.msra.mxu2 %v4516_v58  ;;  %v4499_v0 = vld [vmem:[%s9524_s0 + $0x28] sm:$0xff] }
   0xf   :  { %4449 = vmatmul.msk.f32.vlgmr.msrb.gmra.mxu2 %vm157_vm0, %v5481_v3  ;;  %809 = vmatpush.msra.mxu3 %v4533_v59 }
  0x10   :  { %4433 = vmatmul.msk.f32.gmra.mxu1 %vm157_vm0, %v5494_v6 }
  0x11   :  { %641 = vmatpush.msrb.mxu1 %v4499_v0 }
  0x12   :  { %79 = vperm.xlu0 %4805, %v60_v9  }
  0x13   :  { %4417 = vmatmul.msk.f32.gmra.mxu0 %vm157_vm0, %v5510_v10 }
  0x14   :  { %99 = vperm.xlu1 %4806, %v64_v11  }
  0x15   :  { %134 = vperm.xlu2 %4807, %v71_v23  }
  0x16   :  { %4467 = vmatmul.msk.f32.gmra.mxu3 %vm157_vm0, %v5494_v6 }
  0x17   :  { %4450 = vmatmul.msk.f32.gmra.mxu2 %vm157_vm0, %v5494_v6 }
  0x18   :  { %4434 = vmatmul.msk.f32.gmra.mxu1 %vm157_vm0, %v5510_v10 }
  0x1a   :  { %129 = vperm.xlu0 %4805, %v70_v24  }
  0x1b   :  { %4418 = vmatmul.msk.f32.gmra.mxu0 %vm157_vm0, %v5520_v12 }
  0x1c   :  { %124 = vperm.xlu1 %4806, %v69_v21  }
  0x1d   :  { %119 = vperm.xlu2 %4807, %v68_v26  }
  0x1e   :  { %4468 = vmatmul.msk.f32.gmra.mxu3 %vm157_vm0, %v5510_v10 }
  0x1f   :  { %4451 = vmatmul.msk.f32.gmra.mxu2 %vm157_vm0, %v5510_v10 }
  0x20   :  { %4435 = vmatmul.msk.f32.gmra.mxu1 %vm157_vm0, %v5520_v12 }
  0x22   :  { %154 = vperm.xlu0 %4805, %v75_v27  }
  0x23   :  { %4419 = vmatmul.msk.f32.gmra.mxu0 %vm157_vm0, %v5541_v15 }
  0x24   :  { %149 = vperm.xlu1 %4806, %v74_v33  }
  0x25   :  { %144 = vperm.xlu2 %4807, %v73_v36  }
  0x26   :  { %4469 = vmatmul.msk.f32.gmra.mxu3 %vm157_vm0, %v5520_v12 }
  0x27   :  { %4452 = vmatmul.msk.f32.gmra.mxu2 %vm157_vm0, %v5520_v12 }
  0x28   :  { %4436 = vmatmul.msk.f32.gmra.mxu1 %vm157_vm0, %v5541_v15 }
  0x2a   :  { %139 = vperm.xlu0 %4805, %v72_v29  }
  0x2b   :  { %4420 = vmatmul.msk.f32.gmra.mxu0 %vm157_vm0, %v5560_v18 }
  0x2e   :  { %4470 = vmatmul.msk.f32.gmra.mxu3 %vm157_vm0, %v5541_v15 }
  0x2f   :  { %4453 = vmatmul.msk.f32.gmra.mxu2 %vm157_vm0, %v5541_v15 }
  0x30   :  { %4437 = vmatmul.msk.f32.gmra.mxu1 %vm157_vm0, %v5560_v18 }
  0x33   :  { %4421 = vmatmul.msk.f32.gmra.mxu0 %vm157_vm0, %v5576_v20 }
  0x36   :  { %4471 = vmatmul.msk.f32.gmra.mxu3 %vm157_vm0, %v5560_v18 }
  0x37   :  { %4454 = vmatmul.msk.f32.gmra.mxu2 %vm157_vm0, %v5560_v18 }
  0x38   :  { %4438 = vmatmul.msk.f32.gmra.mxu1 %vm157_vm0, %v5576_v20 }
  0x3b   :  { %4422 = vmatmul.msk.f32.gmra.mxu0 %vm157_vm0, %v5592_v22 }
  0x3e   :  { %4472 = vmatmul.msk.f32.gmra.mxu3 %vm157_vm0, %v5576_v20 }
  0x3f   :  { %4455 = vmatmul.msk.f32.gmra.mxu2 %vm157_vm0, %v5576_v20 }
  0x40   :  { %4439 = vmatmul.msk.f32.gmra.mxu1 %vm157_vm0, %v5592_v22 }
  0x43   :  { %4423 = vmatmul.msk.f32.gmra.mxu0 %vm157_vm0, %v5611_v25 }
  0x46   :  { %4473 = vmatmul.msk.f32.gmra.mxu3 %vm157_vm0, %v5592_v22 }
  0x47   :  { %4456 = vmatmul.msk.f32.gmra.mxu2 %vm157_vm0, %v5592_v22 }
  0x48   :  { %4440 = vmatmul.msk.f32.gmra.mxu1 %vm157_vm0, %v5611_v25 }
  0x4b   :  { %4424 = vmatmul.msk.f32.gmra.mxu0 %vm157_vm0, %v5630_v28 }
  0x4e   :  { %4474 = vmatmul.msk.f32.gmra.mxu3 %vm157_vm0, %v5611_v25 }
  0x4f   :  { %4457 = vmatmul.msk.f32.gmra.mxu2 %vm157_vm0, %v5611_v25 }
  0x50   :  { %4441 = vmatmul.msk.f32.gmra.mxu1 %vm157_vm0, %v5630_v28 }
  0x53   :  { %4425 = vmatmul.msk.f32.gmra.mxu0 %vm157_vm0, %v5646_v30 }
  0x56   :  { %4475 = vmatmul.msk.f32.gmra.mxu3 %vm157_vm0, %v5630_v28 }
  0x57   :  { %4458 = vmatmul.msk.f32.gmra.mxu2 %vm157_vm0, %v5630_v28 }
  0x58   :  { %4442 = vmatmul.msk.f32.gmra.mxu1 %vm157_vm0, %v5646_v30 }
  0x5b   :  { %4426 = vmatmul.msk.f32.gmra.mxu0 %vm157_vm0, %v5662_v32 }
  0x5e   :  { %4476 = vmatmul.msk.f32.gmra.mxu3 %vm157_vm0, %v5646_v30 }
  0x5f   :  { %4459 = vmatmul.msk.f32.gmra.mxu2 %vm157_vm0, %v5646_v30  ;;  %v5736_v43 = vpop.permute.xlu2 %84 }
  0x60   :  { %4443 = vmatmul.msk.f32.gmra.mxu1 %vm157_vm0, %v5662_v32 }
  0x63   :  { %4427 = vmatmul.msk.f32.gmra.mxu0 %vm157_vm0, %v5678_v34 }
  0x66   :  { %4477 = vmatmul.msk.f32.gmra.mxu3 %vm157_vm0, %v5662_v32 }
  0x67   :  { %4460 = vmatmul.msk.f32.gmra.mxu2 %vm157_vm0, %v5662_v32  ;;  %v5779_v57 = vpop.permute.xlu2 %104 }
  0x68   :  { %4444 = vmatmul.msk.f32.gmra.mxu1 %vm157_vm0, %v5678_v34 }
  0x6b   :  { %4428 = vmatmul.msk.f32.gmra.mxu0 %vm157_vm0, %v5691_v35 }
  0x6e   :  { %4478 = vmatmul.msk.f32.gmra.mxu3 %vm157_vm0, %v5678_v34 }
  0x6f   :  { %4461 = vmatmul.msk.f32.gmra.mxu2 %vm157_vm0, %v5678_v34  ;;  %v5814_v9 = vpop.permute.xlu2 %134 }
  0x70   :  { %4445 = vmatmul.msk.f32.gmra.mxu1 %vm157_vm0, %v5691_v35 }
  0x73   :  { %4429 = vmatmul.msk.f32.gmra.mxu0 %vm157_vm0, %v5707_v37 }
  0x74   :  { %v5711_v38 = vpop.permute.xlu0 %94 }
  0x76   :  { %v5744_v46 = vpop.permute.xlu1 %89  ;;  %4479 = vmatmul.msk.f32.gmra.mxu3 %vm157_vm0, %v5691_v35 }
  0x77   :  { %4462 = vmatmul.msk.f32.gmra.mxu2 %vm157_vm0, %v5691_v35 }
  0x78   :  { %4446 = vmatmul.msk.f32.gmra.mxu1 %vm157_vm0, %v5707_v37 }
  0x7b   :  { %4483 = vmatmul.msk.f32.vlgmr.msrb.gmra.mxu0 %vm157_vm0, %v5481_v3 }
  0x7c   :  { %v5721_v39 = vpop.permute.xlu0 %114 }
  0x7e   :  { %v5759_v49 = vpop.permute.xlu1 %109  ;;  %4480 = vmatmul.msk.f32.gmra.mxu3 %vm157_vm0, %v5707_v37 }
  0x7f   :  { %4463 = vmatmul.msk.f32.gmra.mxu2 %vm157_vm0, %v5707_v37 }
  0x80   :  { %v223_v40 = vpop.f32.mrf.mxu0  ;;  %4500 = vmatmul.msk.f32.vlgmr.msrb.gmra.mxu1 %vm157_vm0, %v5481_v3 }
  0x83   :  { %4484 = vmatmul.msk.f32.gmra.mxu0 %vm157_vm0, %v5494_v6 }
  0x84   :  { %v5731_v41 = vpop.permute.xlu0 %79 }
  0x85   :  { %v224_v42 = vadd.f32 %v223_v40, %v5731_v41  ;;  %v5843_v40 = vpop.permute.xlu2 %119 }
  0x86   :  { %v5771_v52 = vpop.permute.xlu1 %99  ;;  %4481 = vmatmul.msk.f32.gmra.mxu3 %vm157_vm0, %v5530_v14 }
  0x87   :  { %272 = vst.msk [vmem:[#allocation2] sm:$0xff] %vm271_vm1, %v224_v42  ;;  %4464 = vmatmul.msk.f32.gmra.mxu2 %vm157_vm0, %v5530_v14 }
  0x88   :  { %v226_v44 = vpop.f32.mrf.mxu0  ;;  %4501 = vmatmul.msk.f32.gmra.mxu1 %vm157_vm0, %v5494_v6 }
  0x89   :  { %v227_v45 = vadd.f32 %v226_v44, %v5736_v43  ;;  %v268_v55 = vpop.f32.mrf.mxu3 }
  0x8a   :  { %v352_v56 = vpop.f32.mrf.mxu2 }
  0x8b   :  { %273 = vst.msk [vmem:[#allocation2 + $0x8] sm:$0xff] %vm271_vm1, %v227_v45  ;;  %4485 = vmatmul.msk.f32.gmra.mxu0 %vm157_vm0, %v5510_v10 }
  0x8c   :  { %v5803_v4 = vpop.permute.xlu0 %129 }
  0x8e   :  { %4534 = vmatmul.msk.f32.vlgmr.msra.gmra.mxu3 %vm157_vm0, %v5481_v3 }
  0x8f   :  { %4517 = vmatmul.msk.f32.vlgmr.msra.gmra.mxu2 %vm157_vm0, %v5481_v3  ;;  %v307_v3 = vpop.f32.mrf.mxu1 }
  0x90   :  { %v229_v47 = vpop.f32.mrf.mxu0  ;;  %v308_v11 = vadd.f32 %v307_v3, %v5731_v41  ;;  %4502 = vmatmul.msk.f32.gmra.mxu1 %vm157_vm0, %v5510_v10 }
  0x91   :  { %v230_v48 = vadd.f32 %v229_v47, %v5744_v46  ;;  %v475_v63 = vpop.f32.mrf.mxu3 }
  0x92   :  { %v391_v62 = vpop.f32.mrf.mxu2  ;;  %v476_v2 = vadd.f32 %v475_v63, %v5731_v41  ;;  %356 = vst.msk [vmem:[#allocation2 + $0x80] sm:$0xff] %vm271_vm1, %v308_v11 }
  0x93   :  { %274 = vst.msk [vmem:[#allocation2 + $0x10] sm:$0xff] %vm271_vm1, %v230_v48  ;;  %4486 = vmatmul.msk.f32.gmra.mxu0 %vm157_vm0, %v5520_v12  ;;  %v392_v1 = vadd.f32 %v391_v62, %v5731_v41 }
  0x94   :  { %524 = vst.msk [vmem:[#allocation2 + $0x180] sm:$0xff] %vm271_vm1, %v476_v2  ;;  %v5822_v19 = vpop.permute.xlu0 %154 }
  0x95   :  { %440 = vst.msk [vmem:[#allocation2 + $0x100] sm:$0xff] %vm271_vm1, %v392_v1  ;;  %v269_v21 = vadd.f32 %v268_v55, %v5822_v19  ;;  %v353_v23 = vadd.f32 %v352_v56, %v5822_v19 }
  0x96   :  { %4535 = vmatmul.msk.f32.gmra.mxu3 %vm157_vm0, %v5494_v6 }
  0x97   :  { %4518 = vmatmul.msk.f32.gmra.mxu2 %vm157_vm0, %v5494_v6  ;;  %287 = vst.msk [vmem:[#allocation2 + $0x78] sm:$0xff] %vm271_vm1, %v269_v21  ;;  %v310_v6 = vpop.f32.mrf.mxu1 }
  0x98   :  { %v232_v50 = vpop.f32.mrf.mxu0  ;;  %371 = vst.msk [vmem:[#allocation2 + $0xf8] sm:$0xff] %vm271_vm1, %v353_v23  ;;  %v311_v29 = vadd.f32 %v310_v6, %v5736_v43  ;;  %4503 = vmatmul.msk.f32.gmra.mxu1 %vm157_vm0, %v5520_v12 }
  0x99   :  { %v233_v51 = vadd.f32 %v232_v50, %v5711_v38  ;;  %v478_v16 = vpop.f32.mrf.mxu3 }
  0x9a   :  { %v394_v8 = vpop.f32.mrf.mxu2  ;;  %v479_v17 = vadd.f32 %v478_v16, %v5736_v43  ;;  %357 = vst.msk [vmem:[#allocation2 + $0x88] sm:$0xff] %vm271_vm1, %v311_v29 }
  0x9b   :  { %275 = vst.msk [vmem:[#allocation2 + $0x18] sm:$0xff] %vm271_vm1, %v233_v51  ;;  %4487 = vmatmul.msk.f32.gmra.mxu0 %vm157_vm0, %v5541_v15  ;;  %v395_v13 = vadd.f32 %v394_v8, %v5736_v43 }
  0x9c   :  { %525 = vst.msk [vmem:[#allocation2 + $0x188] sm:$0xff] %vm271_vm1, %v479_v17 }
  0x9d   :  { %441 = vst.msk [vmem:[#allocation2 + $0x108] sm:$0xff] %vm271_vm1, %v395_v13 }
  0x9e   :  { %4536 = vmatmul.msk.f32.gmra.mxu3 %vm157_vm0, %v5510_v10 }
  0x9f   :  { %4519 = vmatmul.msk.f32.gmra.mxu2 %vm157_vm0, %v5510_v10  ;;  %v313_v10 = vpop.f32.mrf.mxu1 }
  0xa0   :  { %v235_v53 = vpop.f32.mrf.mxu0  ;;  %v314_v47 = vadd.f32 %v313_v10, %v5744_v46  ;;  %4504 = vmatmul.msk.f32.gmra.mxu1 %vm157_vm0, %v5541_v15 }
  0xa1   :  { %v236_v54 = vadd.f32 %v235_v53, %v5771_v52  ;;  %v481_v33 = vpop.f32.mrf.mxu3  ;;  %v5861_v53 = vpop.permute.xlu1 %124 }
  0xa2   :  { %v397_v27 = vpop.f32.mrf.mxu2  ;;  %v482_v36 = vadd.f32 %v481_v33, %v5744_v46  ;;  %358 = vst.msk [vmem:[#allocation2 + $0x90] sm:$0xff] %vm271_vm1, %v314_v47 }
  0xa3   :  { %276 = vst.msk [vmem:[#allocation2 + $0x20] sm:$0xff] %vm271_vm1, %v236_v54  ;;  %4488 = vmatmul.msk.f32.gmra.mxu0 %vm157_vm0, %v5560_v18  ;;  %v398_v31 = vadd.f32 %v397_v27, %v5744_v46 }
  0xa4   :  { %526 = vst.msk [vmem:[#allocation2 + $0x190] sm:$0xff] %vm271_vm1, %v482_v36 }
  0xa5   :  { %442 = vst.msk [vmem:[#allocation2 + $0x110] sm:$0xff] %vm271_vm1, %v398_v31 }
  0xa6   :  { %4537 = vmatmul.msk.f32.gmra.mxu3 %vm157_vm0, %v5520_v12 }
  0xa7   :  { %4520 = vmatmul.msk.f32.gmra.mxu2 %vm157_vm0, %v5520_v12  ;;  %v316_v12 = vpop.f32.mrf.mxu1 }
  0xa8   :  { %v238_v60 = vpop.f32.mrf.mxu0  ;;  %v317_v58 = vadd.f32 %v316_v12, %v5711_v38  ;;  %4505 = vmatmul.msk.f32.gmra.mxu1 %vm157_vm0, %v5560_v18 }
  0xa9   :  { %v239_v61 = vadd.f32 %v238_v60, %v5779_v57  ;;  %v484_v50 = vpop.f32.mrf.mxu3 }
  0xaa   :  { %v400_v45 = vpop.f32.mrf.mxu2  ;;  %v485_v51 = vadd.f32 %v484_v50, %v5711_v38  ;;  %359 = vst.msk [vmem:[#allocation2 + $0x98] sm:$0xff] %vm271_vm1, %v317_v58 }
  0xab   :  { %277 = vst.msk [vmem:[#allocation2 + $0x28] sm:$0xff] %vm271_vm1, %v239_v61  ;;  %4489 = vmatmul.msk.f32.gmra.mxu0 %vm157_vm0, %v5576_v20  ;;  %v401_v48 = vadd.f32 %v400_v45, %v5711_v38 }
  0xac   :  { %527 = vst.msk [vmem:[#allocation2 + $0x198] sm:$0xff] %vm271_vm1, %v485_v51 }
  0xad   :  { %443 = vst.msk [vmem:[#allocation2 + $0x118] sm:$0xff] %vm271_vm1, %v401_v48 }
  0xae   :  { %4538 = vmatmul.msk.f32.gmra.mxu3 %vm157_vm0, %v5541_v15 }
  0xaf   :  { %4521 = vmatmul.msk.f32.gmra.mxu2 %vm157_vm0, %v5541_v15  ;;  %v319_v15 = vpop.f32.mrf.mxu1 }
  0xb0   :  { %v241_v5 = vpop.f32.mrf.mxu0  ;;  %v320_v1 = vadd.f32 %v319_v15, %v5771_v52  ;;  %4506 = vmatmul.msk.f32.gmra.mxu1 %vm157_vm0, %v5576_v20 }
  0xb1   :  { %v242_v7 = vadd.f32 %v241_v5, %v5759_v49  ;;  %v487_v60 = vpop.f32.mrf.mxu3 }
  0xb2   :  { %v403_v56 = vpop.f32.mrf.mxu2  ;;  %v488_v61 = vadd.f32 %v487_v60, %v5771_v52  ;;  %360 = vst.msk [vmem:[#allocation2 + $0xa0] sm:$0xff] %vm271_vm1, %v320_v1 }
  0xb3   :  { %278 = vst.msk [vmem:[#allocation2 + $0x30] sm:$0xff] %vm271_vm1, %v242_v7  ;;  %4490 = vmatmul.msk.f32.gmra.mxu0 %vm157_vm0, %v5592_v22  ;;  %v404_v59 = vadd.f32 %v403_v56, %v5771_v52  ;;  %v5401_v7 = vmov 0.0  }
  0xb4   :  { %528 = vst.msk [vmem:[#allocation2 + $0x1a0] sm:$0xff] %vm271_vm1, %v488_v61  ;;  %976 = vmatpush.msra.mxu0 %v5401_v7 }
  0xb5   :  { %444 = vst.msk [vmem:[#allocation2 + $0x120] sm:$0xff] %vm271_vm1, %v404_v59 }
  0xb6   :  { %4539 = vmatmul.msk.f32.gmra.mxu3 %vm157_vm0, %v5560_v18 }
  0xb7   :  { %4522 = vmatmul.msk.f32.gmra.mxu2 %vm157_vm0, %v5560_v18  ;;  %v322_v18 = vpop.f32.mrf.mxu1 }
  0xb8   :  { %v244_v24 = vpop.f32.mrf.mxu0  ;;  %v323_v16 = vadd.f32 %v322_v18, %v5779_v57  ;;  %4507 = vmatmul.msk.f32.gmra.mxu1 %vm157_vm0, %v5592_v22 }
  0xb9   :  { %v245_v26 = vadd.f32 %v244_v24, %v5721_v39  ;;  %v490_v5 = vpop.f32.mrf.mxu3  ;;  %v5911_v24 = vpop.permute.xlu0 %139 }
  0xba   :  { %v406_v0 = vpop.f32.mrf.mxu2  ;;  %v491_v3 = vadd.f32 %v490_v5, %v5779_v57  ;;  %361 = vst.msk [vmem:[#allocation2 + $0xa8] sm:$0xff] %vm271_vm1, %v323_v16 }
  0xbb   :  { %279 = vst.msk [vmem:[#allocation2 + $0x38] sm:$0xff] %vm271_vm1, %v245_v26  ;;  %4491 = vmatmul.msk.f32.gmra.mxu0 %vm157_vm0, %v5611_v25  ;;  %v407_v2 = vadd.f32 %v406_v0, %v5779_v57 }
  0xbc   :  { %529 = vst.msk [vmem:[#allocation2 + $0x1a8] sm:$0xff] %vm271_vm1, %v491_v3 }
  0xbd   :  { %445 = vst.msk [vmem:[#allocation2 + $0x128] sm:$0xff] %vm271_vm1, %v407_v2 }
  0xbe   :  { %4540 = vmatmul.msk.f32.gmra.mxu3 %vm157_vm0, %v5576_v20 }
  0xbf   :  { %4523 = vmatmul.msk.f32.gmra.mxu2 %vm157_vm0, %v5576_v20  ;;  %v325_v20 = vpop.f32.mrf.mxu1 }
  0xc0   :  { %v247_v42 = vpop.f32.mrf.mxu0  ;;  %v326_v29 = vadd.f32 %v325_v20, %v5759_v49  ;;  %4508 = vmatmul.msk.f32.gmra.mxu1 %vm157_vm0, %v5611_v25 }
  0xc1   :  { %v248_v44 = vadd.f32 %v247_v42, %v5843_v40  ;;  %v493_v21 = vpop.f32.mrf.mxu3  ;;  %v5929_v42 = vpop.permute.xlu2 %144 }
  0xc2   :  { %v409_v13 = vpop.f32.mrf.mxu2  ;;  %v494_v23 = vadd.f32 %v493_v21, %v5759_v49  ;;  %362 = vst.msk [vmem:[#allocation2 + $0xb0] sm:$0xff] %vm271_vm1, %v326_v29 }
  0xc3   :  { %280 = vst.msk [vmem:[#allocation2 + $0x40] sm:$0xff] %vm271_vm1, %v248_v44  ;;  %4492 = vmatmul.msk.f32.gmra.mxu0 %vm157_vm0, %v5630_v28  ;;  %v410_v17 = vadd.f32 %v409_v13, %v5759_v49 }
  0xc4   :  { %530 = vst.msk [vmem:[#allocation2 + $0x1b0] sm:$0xff] %vm271_vm1, %v494_v23 }
  0xc5   :  { %446 = vst.msk [vmem:[#allocation2 + $0x130] sm:$0xff] %vm271_vm1, %v410_v17 }
  0xc6   :  { %4541 = vmatmul.msk.f32.gmra.mxu3 %vm157_vm0, %v5592_v22 }
  0xc7   :  { %4524 = vmatmul.msk.f32.gmra.mxu2 %vm157_vm0, %v5592_v22  ;;  %v328_v22 = vpop.f32.mrf.mxu1 }
  0xc8   :  { %v250_v54 = vpop.f32.mrf.mxu0  ;;  %v329_v47 = vadd.f32 %v328_v22, %v5721_v39  ;;  %4509 = vmatmul.msk.f32.gmra.mxu1 %vm157_vm0, %v5630_v28 }
  0xc9   :  { %v251_v55 = vadd.f32 %v250_v54, %v5861_v53  ;;  %v496_v33 = vpop.f32.mrf.mxu3  ;;  %v5947_v54 = vpop.permute.xlu1 %149 }
  0xca   :  { %v412_v27 = vpop.f32.mrf.mxu2  ;;  %v497_v36 = vadd.f32 %v496_v33, %v5721_v39  ;;  %363 = vst.msk [vmem:[#allocation2 + $0xb8] sm:$0xff] %vm271_vm1, %v329_v47 }
  0xcb   :  { %281 = vst.msk [vmem:[#allocation2 + $0x48] sm:$0xff] %vm271_vm1, %v251_v55  ;;  %4493 = vmatmul.msk.f32.gmra.mxu0 %vm157_vm0, %v5646_v30  ;;  %v413_v31 = vadd.f32 %v412_v27, %v5721_v39 }
  0xcc   :  { %531 = vst.msk [vmem:[#allocation2 + $0x1b8] sm:$0xff] %vm271_vm1, %v497_v36 }
  0xcd   :  { %447 = vst.msk [vmem:[#allocation2 + $0x138] sm:$0xff] %vm271_vm1, %v413_v31 }
  0xce   :  { %4542 = vmatmul.msk.f32.gmra.mxu3 %vm157_vm0, %v5611_v25 }
  0xcf   :  { %4525 = vmatmul.msk.f32.gmra.mxu2 %vm157_vm0, %v5611_v25  ;;  %v331_v25 = vpop.f32.mrf.mxu1 }
  0xd0   :  { %v253_v62 = vpop.f32.mrf.mxu0  ;;  %v332_v58 = vadd.f32 %v331_v25, %v5843_v40  ;;  %4510 = vmatmul.msk.f32.gmra.mxu1 %vm157_vm0, %v5646_v30 }
  0xd1   :  { %v254_v63 = vadd.f32 %v253_v62, %v5803_v4  ;;  %v499_v50 = vpop.f32.mrf.mxu3 }
  0xd2   :  { %v415_v45 = vpop.f32.mrf.mxu2  ;;  %v500_v51 = vadd.f32 %v499_v50, %v5843_v40  ;;  %364 = vst.msk [vmem:[#allocation2 + $0xc0] sm:$0xff] %vm271_vm1, %v332_v58 }
  0xd3   :  { %282 = vst.msk [vmem:[#allocation2 + $0x50] sm:$0xff] %vm271_vm1, %v254_v63  ;;  %4494 = vmatmul.msk.f32.gmra.mxu0 %vm157_vm0, %v5662_v32  ;;  %v416_v48 = vadd.f32 %v415_v45, %v5843_v40  ;;  %v876_v63 = vld [vmem:[%s9526_s2] sm:$0xff] }
  0xd4   :  { %532 = vst.msk [vmem:[#allocation2 + $0x1c0] sm:$0xff] %vm271_vm1, %v500_v51 }
  0xd5   :  { %448 = vst.msk [vmem:[#allocation2 + $0x140] sm:$0xff] %vm271_vm1, %v416_v48 }
  0xd6   :  { %4543 = vmatmul.msk.f32.gmra.mxu3 %vm157_vm0, %v5630_v28 }
  0xd7   :  { %4526 = vmatmul.msk.f32.gmra.mxu2 %vm157_vm0, %v5630_v28  ;;  %v334_v28 = vpop.f32.mrf.mxu1 }
  0xd8   :  { %v256_v8 = vpop.f32.mrf.mxu0  ;;  %v335_v1 = vadd.f32 %v334_v28, %v5861_v53  ;;  %4511 = vmatmul.msk.f32.gmra.mxu1 %vm157_vm0, %v5662_v32 }
  0xd9   :  { %v257_v11 = vadd.f32 %v256_v8, %v5814_v9  ;;  %v502_v60 = vpop.f32.mrf.mxu3  ;;  %v877_v8 = vld [vmem:[%s9526_s2 + $0x8] sm:$0xff] }
  0xda   :  { %v418_v56 = vpop.f32.mrf.mxu2  ;;  %v503_v61 = vadd.f32 %v502_v60, %v5861_v53  ;;  %365 = vst.msk [vmem:[#allocation2 + $0xc8] sm:$0xff] %vm271_vm1, %v335_v1 }
  0xdb   :  { %283 = vst.msk [vmem:[#allocation2 + $0x58] sm:$0xff] %vm271_vm1, %v257_v11  ;;  %4495 = vmatmul.msk.f32.gmra.mxu0 %vm157_vm0, %v5678_v34  ;;  %v419_v59 = vadd.f32 %v418_v56, %v5861_v53 }
  0xdc   :  { %533 = vst.msk [vmem:[#allocation2 + $0x1c8] sm:$0xff] %vm271_vm1, %v503_v61 }
  0xdd   :  { %449 = vst.msk [vmem:[#allocation2 + $0x148] sm:$0xff] %vm271_vm1, %v419_v59 }
  0xde   :  { %4544 = vmatmul.msk.f32.gmra.mxu3 %vm157_vm0, %v5646_v30 }
  0xdf   :  { %4527 = vmatmul.msk.f32.gmra.mxu2 %vm157_vm0, %v5646_v30  ;;  %v337_v30 = vpop.f32.mrf.mxu1 }
  0xe0   :  { %v259_v26 = vpop.f32.mrf.mxu0  ;;  %v338_v13 = vadd.f32 %v337_v30, %v5803_v4  ;;  %4512 = vmatmul.msk.f32.gmra.mxu1 %vm157_vm0, %v5678_v34  ;;  %v4353_v30 = vld [vmem:[%s9529_s10 + $0x10] sm:$0xff] }
  0xe1   :  { %v260_v6 = vadd.f32 %v259_v26, %v5911_v24  ;;  %v505_v5 = vpop.f32.mrf.mxu3  ;;  %v878_v26 = vld [vmem:[%s9526_s2 + $0x10] sm:$0xff] }
  0xe2   :  { %v421_v0 = vpop.f32.mrf.mxu2  ;;  %v506_v7 = vadd.f32 %v505_v5, %v5803_v4  ;;  %366 = vst.msk [vmem:[#allocation2 + $0xd0] sm:$0xff] %vm271_vm1, %v338_v13 }
  0xe3   :  { %284 = vst.msk [vmem:[#allocation2 + $0x60] sm:$0xff] %vm271_vm1, %v260_v6  ;;  %4496 = vmatmul.msk.f32.gmra.mxu0 %vm157_vm0, %v5691_v35  ;;  %v422_v2 = vadd.f32 %v421_v0, %v5803_v4  ;;  %v894_v0 = vld [vmem:[%s9528_s5] sm:$0xff] }
  0xe4   :  { %534 = vst.msk [vmem:[#allocation2 + $0x1d0] sm:$0xff] %vm271_vm1, %v506_v7  ;;  %1296 = vperm.xlu1 %4806, %v894_v0  }
  0xe5   :  { %450 = vst.msk [vmem:[#allocation2 + $0x150] sm:$0xff] %vm271_vm1, %v422_v2 }
  0xe6   :  { %4545 = vmatmul.msk.f32.gmra.mxu3 %vm157_vm0, %v5662_v32 }
  0xe7   :  { %4528 = vmatmul.msk.f32.gmra.mxu2 %vm157_vm0, %v5662_v32  ;;  %v340_v32 = vpop.f32.mrf.mxu1 }
  0xe8   :  { %v262_v44 = vpop.f32.mrf.mxu0  ;;  %v341_v27 = vadd.f32 %v340_v32, %v5814_v9  ;;  %4513 = vmatmul.msk.f32.gmra.mxu1 %vm157_vm0, %v5691_v35 }
  0xe9   :  { %v263_v10 = vadd.f32 %v262_v44, %v5929_v42  ;;  %v508_v17 = vpop.f32.mrf.mxu3  ;;  %v879_v44 = vld [vmem:[%s9526_s2 + $0x18] sm:$0xff] }
  0xea   :  { %v424_v18 = vpop.f32.mrf.mxu2  ;;  %v509_v21 = vadd.f32 %v508_v17, %v5814_v9  ;;  %367 = vst.msk [vmem:[#allocation2 + $0xd8] sm:$0xff] %vm271_vm1, %v341_v27  ;;  %v4352_v27 = vld [vmem:[%s9529_s10 + $0x8] sm:$0xff] }
  0xeb   :  { %285 = vst.msk [vmem:[#allocation2 + $0x68] sm:$0xff] %vm271_vm1, %v263_v10  ;;  %4497 = vmatmul.msk.f32.gmra.mxu0 %vm157_vm0, %v5707_v37  ;;  %v425_v16 = vadd.f32 %v424_v18, %v5814_v9  ;;  %v3963_v18 = vld [vmem:[%s9527_s7 + $0x8] sm:$0xff] }
  0xec   :  { %535 = vst.msk [vmem:[#allocation2 + $0x1d8] sm:$0xff] %vm271_vm1, %v509_v21  ;;  %3971 = vperm.xlu1 %4806, %v3963_v18  }
  0xed   :  { %451 = vst.msk [vmem:[#allocation2 + $0x158] sm:$0xff] %vm271_vm1, %v425_v16 }
  0xee   :  { %4546 = vmatmul.msk.f32.gmra.mxu3 %vm157_vm0, %v5678_v34 }
  0xef   :  { %4529 = vmatmul.msk.f32.gmra.mxu2 %vm157_vm0, %v5678_v34  ;;  %v343_v34 = vpop.f32.mrf.mxu1 }
  0xf0   :  { %v265_v55 = vpop.f32.mrf.mxu0  ;;  %v344_v45 = vadd.f32 %v343_v34, %v5911_v24  ;;  %4514 = vmatmul.msk.f32.gmra.mxu1 %vm157_vm0, %v5707_v37  ;;  %v6120_v34 = vld [vmem:[%s9526_s2 + $0x40] sm:$0xff] }
  0xf1   :  { %v266_v12 = vadd.f32 %v265_v55, %v5947_v54  ;;  %v511_v31 = vpop.f32.mrf.mxu3  ;;  %v880_v55 = vld [vmem:[%s9526_s2 + $0x20] sm:$0xff] }
  0xf2   :  { %v427_v20 = vpop.f32.mrf.mxu2  ;;  %v512_v33 = vadd.f32 %v511_v31, %v5911_v24  ;;  %368 = vst.msk [vmem:[#allocation2 + $0xe0] sm:$0xff] %vm271_vm1, %v344_v45  ;;  %v895_v45 = vld [vmem:[%s9528_s5 + $0x8] sm:$0xff] }
  0xf3   :  { %286 = vst.msk [vmem:[#allocation2 + $0x70] sm:$0xff] %vm271_vm1, %v266_v12  ;;  %4498 = vmatmul.msk.f32.gmra.mxu0 %vm157_vm0, %v5530_v14  ;;  %v428_v29 = vadd.f32 %v427_v20, %v5911_v24  ;;  %v4380_v20 = vld [vmem:[%s9530_s12] sm:$0xf]  ;;  %1301 = vperm.xlu2 %4807, %v895_v45  }
  0xf4   :  { %536 = vst.msk [vmem:[#allocation2 + $0x1e0] sm:$0xff] %vm271_vm1, %v512_v33  ;;  %4362 = vperm.xlu1 %4806, %v4352_v27  }
  0xf5   :  { %452 = vst.msk [vmem:[#allocation2 + $0x160] sm:$0xff] %vm271_vm1, %v428_v29 }
  0xf6   :  { %4547 = vmatmul.msk.f32.gmra.mxu3 %vm157_vm0, %v5691_v35 }
  0xf7   :  { %4530 = vmatmul.msk.f32.gmra.mxu2 %vm157_vm0, %v5691_v35  ;;  %v346_v35 = vpop.f32.mrf.mxu1 }
  0xf8   :  { %v559_v62 = vpop.f32.mrf.mxu0  ;;  %v347_v56 = vadd.f32 %v346_v35, %v5929_v42  ;;  %4515 = vmatmul.msk.f32.gmra.mxu1 %vm157_vm0, %v5530_v14  ;;  %v6138_v35 = vld [vmem:[%s9526_s2 + $0x48] sm:$0xff] }
  0xf9   :  { %v560_v15 = vadd.f32 %v559_v62, %v5731_v41  ;;  %v514_v48 = vpop.f32.mrf.mxu3  ;;  %v881_v62 = vld [vmem:[%s9526_s2 + $0x28] sm:$0xff] }
  0xfa   :  { %v430_v22 = vpop.f32.mrf.mxu2  ;;  %v515_v50 = vadd.f32 %v514_v48, %v5929_v42  ;;  %369 = vst.msk [vmem:[#allocation2 + $0xe8] sm:$0xff] %vm271_vm1, %v347_v56  ;;  %v4354_v56 = vld [vmem:[%s9529_s10 + $0x18] sm:$0xff] }
  0xfb   :  { %608 = vst.msk [vmem:[#allocation2 + $0x200] sm:$0xff] %vm271_vm1, %v560_v15  ;;  %4550 = vmatmul.msk.f32.vlgmr.msra.gmra.mxu0 %vm912_vm2, %v876_v63  ;;  %v431_v47 = vadd.f32 %v430_v22, %v5929_v42  ;;  %4372 = vperm.xlu2 %4807, %v4354_v56  }
  0xfc   :  { %537 = vst.msk [vmem:[#allocation2 + $0x1e8] sm:$0xff] %vm271_vm1, %v515_v50 }
  0xfd   :  { %453 = vst.msk [vmem:[#allocation2 + $0x168] sm:$0xff] %vm271_vm1, %v431_v47 }
  0xfe   :  { %4548 = vmatmul.msk.f32.gmra.mxu3 %vm157_vm0, %v5707_v37 }
  0xff   :  { %4531 = vmatmul.msk.f32.gmra.mxu2 %vm157_vm0, %v5707_v37  ;;  %v3962_v37 = vld [vmem:[%s9527_s7] sm:$0xff]  ;;  %v349_v15 = vpop.f32.mrf.mxu1 }
 0x100   :  { %v562_v3 = vpop.f32.mrf.mxu0  ;;  %3966 = vperm.xlu0 %4805, %v3962_v37   ;;  %v350_v1 = vadd.f32 %v349_v15, %v5947_v54  ;;  %v6156_v37 = vld [vmem:[%s9526_s2 + $0x50] sm:$0xff] }
 0x101   :  { %v563_v11 = vadd.f32 %v562_v3, %v5736_v43  ;;  %v517_v59 = vpop.f32.mrf.mxu3 }
 0x102   :  { %v433_v25 = vpop.f32.mrf.mxu2  ;;  %v518_v60 = vadd.f32 %v517_v59, %v5947_v54  ;;  %370 = vst.msk [vmem:[#allocation2 + $0xf0] sm:$0xff] %vm271_vm1, %v350_v1 }
 0x103   :  { %609 = vst.msk [vmem:[#allocation2 + $0x208] sm:$0xff] %vm271_vm1, %v563_v11  ;;  %4551 = vmatmul.msk.f32.gmra.mxu0 %vm912_vm2, %v877_v8  ;;  %v434_v58 = vadd.f32 %v433_v25, %v5947_v54  ;;  %v882_v8 = vld [vmem:[%s9526_s2 + $0x30] sm:$0xff] }
 0x104   :  { %538 = vst.msk [vmem:[#allocation2 + $0x1f0] sm:$0xff] %vm271_vm1, %v518_v60 }
 0x105   :  { %454 = vst.msk [vmem:[#allocation2 + $0x170] sm:$0xff] %vm271_vm1, %v434_v58 }
 0x106   :  { %4549 = vmatmul.msk.f32.gmra.mxu3 %vm157_vm0, %v5530_v14 }
 0x107   :  { %4532 = vmatmul.msk.f32.gmra.mxu2 %vm157_vm0, %v5530_v14  ;;  %v643_v14 = vpop.f32.mrf.mxu1 }
 0x108   :  { %v565_v23 = vpop.f32.mrf.mxu0  ;;  %4367 = vperm.xlu0 %4805, %v4353_v30   ;;  %v644_v13 = vadd.f32 %v643_v14, %v5731_v41 }
 0x109   :  { %v566_v6 = vadd.f32 %v565_v23, %v5744_v46  ;;  %v520_v5 = vpop.f32.mrf.mxu3 }
 0x10a   :  { %v436_v28 = vpop.f32.mrf.mxu2  ;;  %v521_v7 = vadd.f32 %v520_v5, %v5822_v19  ;;  %692 = vst.msk [vmem:[#allocation2 + $0x280] sm:$0xff] %vm271_vm1, %v644_v13 }
 0x10b   :  { %610 = vst.msk [vmem:[#allocation2 + $0x210] sm:$0xff] %vm271_vm1, %v566_v6  ;;  %4552 = vmatmul.msk.f32.gmra.mxu0 %vm912_vm2, %v878_v26  ;;  %v437_v2 = vadd.f32 %v436_v28, %v5822_v19  ;;  %v883_v6 = vld [vmem:[%s9526_s2 + $0x38] sm:$0xff]  ;;  %v4351_v28 = vld [vmem:[%s9529_s10] sm:$0xff] }
 0x10c   :  { %539 = vst.msk [vmem:[#allocation2 + $0x1f8] sm:$0xff] %vm271_vm1, %v521_v7  ;;  %4357 = vperm.xlu2 %4807, %v4351_v28  }
 0x10d   :  { %455 = vst.msk [vmem:[#allocation2 + $0x178] sm:$0xff] %vm271_vm1, %v437_v2 }
 0x110   :  { %v568_v36 = vpop.f32.mrf.mxu0  ;;  %4383 = vperm.xlu0 %4805, %v4380_v20   ;;  %v6199_v20 = vld [vmem:[%s9526_s2 + $0x68] sm:$0xff] }
 0x111   :  { %v569_v10 = vadd.f32 %v568_v36, %v5711_v38  ;;  %v811_v17 = vpop.f32.mrf.mxu3 }
 0x112   :  { %v727_v16 = vpop.f32.mrf.mxu2  ;;  %v812_v23 = vadd.f32 %v811_v17, %v5731_v41 }
 0x113   :  { %611 = vst.msk [vmem:[#allocation2 + $0x218] sm:$0xff] %vm271_vm1, %v569_v10  ;;  %4553 = vmatmul.msk.f32.gmra.mxu0 %vm912_vm2, %v879_v44  ;;  %v728_v21 = vadd.f32 %v727_v16, %v5731_v41  ;;  %v646_v41 = vpop.f32.mrf.mxu1 }
 0x114   :  { %860 = vst.msk [vmem:[#allocation2 + $0x380] sm:$0xff] %vm271_vm1, %v812_v23  ;;  %v647_v29 = vadd.f32 %v646_v41, %v5736_v43 }
 0x115   :  { %776 = vst.msk [vmem:[#allocation2 + $0x300] sm:$0xff] %vm271_vm1, %v728_v21  ;;  %v6189_v21 = vld [vmem:[%s9526_s2 + $0x60] sm:$0xff] }
 0x116   :  { %693 = vst.msk [vmem:[#allocation2 + $0x288] sm:$0xff] %vm271_vm1, %v647_v29 }
 0x118   :  { %v571_v51 = vpop.f32.mrf.mxu0 }
 0x119   :  { %v572_v12 = vadd.f32 %v571_v51, %v5771_v52  ;;  %v814_v33 = vpop.f32.mrf.mxu3 }
 0x11a   :  { %v730_v31 = vpop.f32.mrf.mxu2  ;;  %v815_v44 = vadd.f32 %v814_v33, %v5736_v43 }
 0x11b   :  { %612 = vst.msk [vmem:[#allocation2 + $0x220] sm:$0xff] %vm271_vm1, %v572_v12  ;;  %4554 = vmatmul.msk.f32.gmra.mxu0 %vm912_vm2, %v880_v55  ;;  %v731_v36 = vadd.f32 %v730_v31, %v5736_v43  ;;  %v649_v43 = vpop.f32.mrf.mxu1 }
 0x11c   :  { %861 = vst.msk [vmem:[#allocation2 + $0x388] sm:$0xff] %vm271_vm1, %v815_v44  ;;  %v650_v47 = vadd.f32 %v649_v43, %v5744_v46 }
 0x11d   :  { %777 = vst.msk [vmem:[#allocation2 + $0x308] sm:$0xff] %vm271_vm1, %v731_v36  ;;  %v6208_v36 = vld [vmem:[%s9526_s2 + $0x70] sm:$0xff] }
 0x11e   :  { %694 = vst.msk [vmem:[#allocation2 + $0x290] sm:$0xff] %vm271_vm1, %v650_v47 }
 0x120   :  { %v574_v61 = vpop.f32.mrf.mxu0 }
 0x121   :  { %v575_v63 = vadd.f32 %v574_v61, %v5779_v57  ;;  %v817_v50 = vpop.f32.mrf.mxu3 }
 0x122   :  { %v733_v48 = vpop.f32.mrf.mxu2  ;;  %v818_v55 = vadd.f32 %v817_v50, %v5744_v46  ;;  %v6219_v50 = vld [vmem:[%s9526_s2 + $0x78] sm:$0xff] }
 0x123   :  { %613 = vst.msk [vmem:[#allocation2 + $0x228] sm:$0xff] %vm271_vm1, %v575_v63  ;;  %4555 = vmatmul.msk.f32.gmra.mxu0 %vm912_vm2, %v881_v62  ;;  %v734_v51 = vadd.f32 %v733_v48, %v5744_v46  ;;  %v652_v46 = vpop.f32.mrf.mxu1 }
 0x124   :  { %862 = vst.msk [vmem:[#allocation2 + $0x390] sm:$0xff] %vm271_vm1, %v818_v55  ;;  %v653_v58 = vadd.f32 %v652_v46, %v5711_v38 }
 0x125   :  { %778 = vst.msk [vmem:[#allocation2 + $0x310] sm:$0xff] %vm271_vm1, %v734_v51 }
 0x126   :  { %695 = vst.msk [vmem:[#allocation2 + $0x298] sm:$0xff] %vm271_vm1, %v653_v58 }
 0x128   :  { %v577_v3 = vpop.f32.mrf.mxu0 }
 0x129   :  { %v578_v11 = vadd.f32 %v577_v3, %v5759_v49  ;;  %v820_v60 = vpop.f32.mrf.mxu3 }
 0x12a   :  { %v736_v59 = vpop.f32.mrf.mxu2  ;;  %v821_v62 = vadd.f32 %v820_v60, %v5711_v38 }
 0x12b   :  { %614 = vst.msk [vmem:[#allocation2 + $0x230] sm:$0xff] %vm271_vm1, %v578_v11  ;;  %4556 = vmatmul.msk.f32.gmra.mxu0 %vm912_vm2, %v882_v8  ;;  %v737_v61 = vadd.f32 %v736_v59, %v5711_v38  ;;  %v655_v38 = vpop.f32.mrf.mxu1  ;;  %v6174_v8 = vld [vmem:[%s9526_s2 + $0x58] sm:$0xff] }
 0x12c   :  { %863 = vst.msk [vmem:[#allocation2 + $0x398] sm:$0xff] %vm271_vm1, %v821_v62  ;;  %v656_v0 = vadd.f32 %v655_v38, %v5771_v52 }
 0x12d   :  { %779 = vst.msk [vmem:[#allocation2 + $0x318] sm:$0xff] %vm271_vm1, %v737_v61 }
 0x12e   :  { %696 = vst.msk [vmem:[#allocation2 + $0x2a0] sm:$0xff] %vm271_vm1, %v656_v0 }
 0x130   :  { %v580_v26 = vpop.f32.mrf.mxu0 }
 0x131   :  { %v581_v32 = vadd.f32 %v580_v26, %v5721_v39  ;;  %v823_v2 = vpop.f32.mrf.mxu3 }
 0x132   :  { %v739_v1 = vpop.f32.mrf.mxu2  ;;  %v824_v7 = vadd.f32 %v823_v2, %v5771_v52 }
 0x133   :  { %615 = vst.msk [vmem:[#allocation2 + $0x238] sm:$0xff] %vm271_vm1, %v581_v32  ;;  %4557 = vmatmul.msk.f32.gmra.mxu0 %vm912_vm2, %v883_v6  ;;  %v740_v5 = vadd.f32 %v739_v1, %v5771_v52  ;;  %v658_v52 = vpop.f32.mrf.mxu1 }
 0x134   :  { %864 = vst.msk [vmem:[#allocation2 + $0x3a0] sm:$0xff] %vm271_vm1, %v824_v7  ;;  %v659_v30 = vadd.f32 %v658_v52, %v5779_v57 }
 0x135   :  { %780 = vst.msk [vmem:[#allocation2 + $0x320] sm:$0xff] %vm271_vm1, %v740_v5 }
 0x136   :  { %697 = vst.msk [vmem:[#allocation2 + $0x2a8] sm:$0xff] %vm271_vm1, %v659_v30 }
 0x138   :  { %v583_v10 = vpop.f32.mrf.mxu0 }
 0x139   :  { %v584_v22 = vadd.f32 %v583_v10, %v5843_v40  ;;  %v826_v18 = vpop.f32.mrf.mxu3 }
 0x13a   :  { %v742_v14 = vpop.f32.mrf.mxu2  ;;  %v827_v16 = vadd.f32 %v826_v18, %v5779_v57 }
 0x13b   :  { %616 = vst.msk [vmem:[#allocation2 + $0x240] sm:$0xff] %vm271_vm1, %v584_v22  ;;  %4558 = vmatmul.msk.f32.gmra.mxu0 %vm912_vm2, %v6120_v34  ;;  %v743_v13 = vadd.f32 %v742_v14, %v5779_v57  ;;  %v661_v57 = vpop.f32.mrf.mxu1 }
 0x13c   :  { %865 = vst.msk [vmem:[#allocation2 + $0x3a8] sm:$0xff] %vm271_vm1, %v827_v16  ;;  %v662_v45 = vadd.f32 %v661_v57, %v5759_v49 }
 0x13d   :  { %781 = vst.msk [vmem:[#allocation2 + $0x328] sm:$0xff] %vm271_vm1, %v743_v13 }
 0x13e   :  { %698 = vst.msk [vmem:[#allocation2 + $0x2b0] sm:$0xff] %vm271_vm1, %v662_v45 }
 0x140   :  { %v586_v12 = vpop.f32.mrf.mxu0 }
 0x141   :  { %v587_v25 = vadd.f32 %v586_v12, %v5861_v53  ;;  %v829_v6 = vpop.f32.mrf.mxu3 }
 0x142   :  { %v745_v26 = vpop.f32.mrf.mxu2  ;;  %v830_v51 = vadd.f32 %v829_v6, %v5759_v49 }
 0x143   :  { %617 = vst.msk [vmem:[#allocation2 + $0x248] sm:$0xff] %vm271_vm1, %v587_v25  ;;  %4559 = vmatmul.msk.f32.gmra.mxu0 %vm912_vm2, %v6138_v35  ;;  %v664_v27 = vpop.f32.mrf.mxu1  ;;  %v746_v47 = vadd.f32 %v745_v26, %v5759_v49 }
 0x144   :  { %866 = vst.msk [vmem:[#allocation2 + $0x3b0] sm:$0xff] %vm271_vm1, %v830_v51  ;;  %v665_v56 = vadd.f32 %v664_v27, %v5721_v39 }
 0x145   :  { %782 = vst.msk [vmem:[#allocation2 + $0x330] sm:$0xff] %vm271_vm1, %v746_v47 }
 0x146   :  { %699 = vst.msk [vmem:[#allocation2 + $0x2b8] sm:$0xff] %vm271_vm1, %v665_v56  ;;  %v897_v56 = vld [vmem:[#allocation2 + $0x8] sm:$0xff] }
 0x148   :  { %v589_v63 = vpop.f32.mrf.mxu0 }
 0x149   :  { %v590_v15 = vadd.f32 %v589_v63, %v5803_v4  ;;  %v832_v31 = vpop.f32.mrf.mxu3 }
 0x14a   :  { %v748_v29 = vpop.f32.mrf.mxu2  ;;  %v833_v58 = vadd.f32 %v832_v31, %v5721_v39 }
 0x14b   :  { %618 = vst.msk [vmem:[#allocation2 + $0x250] sm:$0xff] %vm271_vm1, %v590_v15  ;;  %4560 = vmatmul.msk.f32.gmra.mxu0 %vm912_vm2, %v6156_v37  ;;  %v667_v10 = vpop.f32.mrf.mxu1  ;;  %v749_v49 = vadd.f32 %v748_v29, %v5721_v39 }
 0x14c   :  { %867 = vst.msk [vmem:[#allocation2 + $0x3b8] sm:$0xff] %vm271_vm1, %v833_v58  ;;  %v668_v63 = vadd.f32 %v667_v10, %v5843_v40 }
 0x14d   :  { %783 = vst.msk [vmem:[#allocation2 + $0x338] sm:$0xff] %vm271_vm1, %v749_v49 }
 0x14e   :  { %700 = vst.msk [vmem:[#allocation2 + $0x2c0] sm:$0xff] %vm271_vm1, %v668_v63 }
 0x150   :  { %v592_v3 = vpop.f32.mrf.mxu0 }
 0x151   :  { %v593_v11 = vadd.f32 %v592_v3, %v5814_v9  ;;  %v835_v43 = vpop.f32.mrf.mxu3 }
 0x152   :  { %v751_v22 = vpop.f32.mrf.mxu2  ;;  %v836_v38 = vadd.f32 %v835_v43, %v5843_v40 }
 0x153   :  { %619 = vst.msk [vmem:[#allocation2 + $0x258] sm:$0xff] %vm271_vm1, %v593_v11  ;;  %4561 = vmatmul.msk.f32.gmra.mxu0 %vm912_vm2, %v6174_v8  ;;  %v670_v12 = vpop.f32.mrf.mxu1  ;;  %v752_v15 = vadd.f32 %v751_v22, %v5843_v40 }
 0x154   :  { %868 = vst.msk [vmem:[#allocation2 + $0x3c0] sm:$0xff] %vm271_vm1, %v836_v38  ;;  %v671_v2 = vadd.f32 %v670_v12, %v5861_v53 }
 0x155   :  { %784 = vst.msk [vmem:[#allocation2 + $0x340] sm:$0xff] %vm271_vm1, %v752_v15  ;;  %v899_v15 = vld [vmem:[#allocation2 + $0x18] sm:$0xff] }
 0x156   :  { %701 = vst.msk [vmem:[#allocation2 + $0x2c8] sm:$0xff] %vm271_vm1, %v671_v2 }
 0x158   :  { %v595_v17 = vpop.f32.mrf.mxu0 }
 0x159   :  { %v596_v23 = vadd.f32 %v595_v17, %v5911_v24  ;;  %v838_v46 = vpop.f32.mrf.mxu3 }
 0x15a   :  { %v754_v25 = vpop.f32.mrf.mxu2  ;;  %v839_v7 = vadd.f32 %v838_v46, %v5861_v53 }
 0x15b   :  { %620 = vst.msk [vmem:[#allocation2 + $0x260] sm:$0xff] %vm271_vm1, %v596_v23  ;;  %4562 = vmatmul.msk.f32.gmra.mxu0 %vm912_vm2, %v6189_v21  ;;  %v673_v60 = vpop.f32.mrf.mxu1  ;;  %v755_v5 = vadd.f32 %v754_v25, %v5861_v53 }
 0x15c   :  { %869 = vst.msk [vmem:[#allocation2 + $0x3c8] sm:$0xff] %vm271_vm1, %v839_v7  ;;  %v674_v14 = vadd.f32 %v673_v60, %v5803_v4  ;;  %v901_v7 = vld [vmem:[#allocation2 + $0x28] sm:$0xff] }
 0x15d   :  { %785 = vst.msk [vmem:[#allocation2 + $0x348] sm:$0xff] %vm271_vm1, %v755_v5 }
 0x15e   :  { %702 = vst.msk [vmem:[#allocation2 + $0x2d0] sm:$0xff] %vm271_vm1, %v674_v14 }
 0x160   :  { %v598_v32 = vpop.f32.mrf.mxu0 }
 0x161   :  { %v599_v41 = vadd.f32 %v598_v32, %v5929_v42  ;;  %v841_v62 = vpop.f32.mrf.mxu3 }
 0x162   :  { %v757_v61 = vpop.f32.mrf.mxu2  ;;  %v842_v13 = vadd.f32 %v841_v62, %v5803_v4 }
 0x163   :  { %621 = vst.msk [vmem:[#allocation2 + $0x268] sm:$0xff] %vm271_vm1, %v599_v41  ;;  %4563 = vmatmul.msk.f32.gmra.mxu0 %vm912_vm2, %v6199_v20  ;;  %v676_v39 = vpop.f32.mrf.mxu1  ;;  %v758_v18 = vadd.f32 %v757_v61, %v5803_v4  ;;  %v898_v61 = vld [vmem:[#allocation2 + $0x10] sm:$0xff] }
 0x164   :  { %870 = vst.msk [vmem:[#allocation2 + $0x3d0] sm:$0xff] %vm271_vm1, %v842_v13  ;;  %v677_v57 = vadd.f32 %v676_v39, %v5814_v9 }
 0x165   :  { %786 = vst.msk [vmem:[#allocation2 + $0x350] sm:$0xff] %vm271_vm1, %v758_v18 }
 0x166   :  { %703 = vst.msk [vmem:[#allocation2 + $0x2d8] sm:$0xff] %vm271_vm1, %v677_v57 }
 0x168   :  { %v601_v33 = vpop.f32.mrf.mxu0 }
 0x169   :  { %v602_v44 = vadd.f32 %v601_v33, %v5947_v54  ;;  %v844_v1 = vpop.f32.mrf.mxu3 }
 0x16a   :  { %v760_v0 = vpop.f32.mrf.mxu2  ;;  %v845_v6 = vadd.f32 %v844_v1, %v5814_v9 }
 0x16b   :  { %622 = vst.msk [vmem:[#allocation2 + $0x270] sm:$0xff] %vm271_vm1, %v602_v44  ;;  %4564 = vmatmul.msk.f32.gmra.mxu0 %vm912_vm2, %v6208_v36  ;;  %v679_v40 = vpop.f32.mrf.mxu1  ;;  %v761_v26 = vadd.f32 %v760_v0, %v5814_v9 }
 0x16c   :  { %871 = vst.msk [vmem:[#allocation2 + $0x3d8] sm:$0xff] %vm271_vm1, %v845_v6  ;;  %v680_v29 = vadd.f32 %v679_v40, %v5911_v24 }
 0x16d   :  { %787 = vst.msk [vmem:[#allocation2 + $0x358] sm:$0xff] %vm271_vm1, %v761_v26 }
 0x16e   :  { %704 = vst.msk [vmem:[#allocation2 + $0x2e0] sm:$0xff] %vm271_vm1, %v680_v29 }
 0x170   :  { %v604_v48 = vpop.f32.mrf.mxu0 }
 0x171   :  { %v605_v55 = vadd.f32 %v604_v48, %v5822_v19  ;;  %v847_v52 = vpop.f32.mrf.mxu3 }
 0x172   :  { %v763_v11 = vpop.f32.mrf.mxu2  ;;  %v848_v33 = vadd.f32 %v847_v52, %v5911_v24 }
 0x173   :  { %623 = vst.msk [vmem:[#allocation2 + $0x278] sm:$0xff] %vm271_vm1, %v605_v55  ;;  %4565 = vmatmul.msk.f32.gmra.mxu0 %vm912_vm2, %v6219_v50  ;;  %v682_v53 = vpop.f32.mrf.mxu1  ;;  %v764_v31 = vadd.f32 %v763_v11, %v5911_v24 }
 0x174   :  { %872 = vst.msk [vmem:[#allocation2 + $0x3e0] sm:$0xff] %vm271_vm1, %v848_v33  ;;  %v683_v48 = vadd.f32 %v682_v53, %v5929_v42 }
 0x175   :  { %788 = vst.msk [vmem:[#allocation2 + $0x360] sm:$0xff] %vm271_vm1, %v764_v31 }
 0x176   :  { %705 = vst.msk [vmem:[#allocation2 + $0x2e8] sm:$0xff] %vm271_vm1, %v683_v48 }
 0x178   :  { %v6232_v59 = vpop.f32.mrf.mxu0 }
 0x179   :  { %v850_v17 = vpop.f32.mrf.mxu3 }
 0x17a   :  { %v766_v16 = vpop.f32.mrf.mxu2  ;;  %v851_v55 = vadd.f32 %v850_v17, %v5929_v42 }
 0x17b   :  { %v685_v4 = vpop.f32.mrf.mxu1  ;;  %v767_v51 = vadd.f32 %v766_v16, %v5929_v42  ;;  %v896_v42 = vld [vmem:[#allocation2] sm:$0xff] }
 0x17c   :  { %v686_v24 = vadd.f32 %v685_v4, %v5947_v54  ;;  %873 = vst.msk [vmem:[#allocation2 + $0x3e8] sm:$0xff] %vm271_vm1, %v851_v55  ;;  %v1026_v46 = vadd.f32 %v6232_v59, %v896_v42  ;;  %v900_v59 = vld [vmem:[#allocation2 + $0x20] sm:$0xff] }
 0x17d   :  { %789 = vst.msk [vmem:[#allocation2 + $0x368] sm:$0xff] %vm271_vm1, %v767_v51  ;;  %v905_v51 = vld [vmem:[#allocation2 + $0x48] sm:$0xff] }
 0x17e   :  { %706 = vst.msk [vmem:[#allocation2 + $0x2f0] sm:$0xff] %vm271_vm1, %v686_v24  ;;  %v4566_v58 = vmul.f32 -1.442695, %v1026_v46  ;;  %v906_v24 = vld [vmem:[#allocation2 + $0x50] sm:$0xff] }
 0x180   :  { %v6240_v28 = vpop.f32.mrf.mxu0  ;;  %4808 = vpow2.f32 %v4566_v58 }
 0x181   :  { %v853_v41 = vpop.f32.mrf.mxu3  ;;  %v1027_v49 = vadd.f32 %v6240_v28, %v897_v56  ;;  %v902_v28 = vld [vmem:[#allocation2 + $0x30] sm:$0xff]  ;;  %v904_v56 = vld [vmem:[#allocation2 + $0x40] sm:$0xff] }
 0x182   :  { %v769_v32 = vpop.f32.mrf.mxu2 }
 0x183   :  { %v688_v9 = vpop.f32.mrf.mxu1  ;;  %v770_v12 = vadd.f32 %v769_v32, %v5947_v54  ;;  %v4567_v60 = vmul.f32 -1.442695, %v1027_v49 }
 0x184   :  { %v689_v44 = vadd.f32 %v688_v9, %v5822_v19  ;;  %v907_v9 = vld [vmem:[#allocation2 + $0x58] sm:$0xff] }
 0x185   :  { %790 = vst.msk [vmem:[#allocation2 + $0x370] sm:$0xff] %vm271_vm1, %v770_v12  ;;  %4810 = vpow2.f32 %v4567_v60 }
 0x186   :  { %707 = vst.msk [vmem:[#allocation2 + $0x2f8] sm:$0xff] %vm271_vm1, %v689_v44  ;;  %v4809_v38 = vpop.eup %4808 }
 0x187   :  { %v6297_v5 = vadd.f32 1.0, %v4809_v38 }
 0x188   :  { %v6248_v3 = vpop.f32.mrf.mxu0 }
 0x189   :  { %v856_v22 = vpop.f32.mrf.mxu3  ;;  %vm1095_vm3 = vweird.f32 %v6297_v5 }
 0x18a   :  { %v772_v10 = vpop.f32.mrf.mxu2  ;;  %v857_v45 = vadd.f32 %v856_v22, %v5822_v19 }
 0x18b   :  { %v773_v43 = vadd.f32 %v772_v10, %v5822_v19  ;;  %v854_v19 = vadd.f32 %v853_v41, %v5947_v54  ;;  %v1028_v54 = vadd.f32 %v6248_v3, %v898_v61  ;;  %v4811_v1 = vpop.eup %4810  ;;  %v903_v3 = vld [vmem:[#allocation2 + $0x38] sm:$0xff] }
 0x18c   :  { %875 = vst.msk [vmem:[#allocation2 + $0x3f8] sm:$0xff] %vm271_vm1, %v857_v45  ;;  %v6299_v14 = vadd.f32 1.0, %v4811_v1 }
 0x18d   :  { %791 = vst.msk [vmem:[#allocation2 + $0x378] sm:$0xff] %vm271_vm1, %v773_v43  ;;  %v4568_v63 = vmul.f32 -1.442695, %v1028_v54 }
 0x18e   :  { %874 = vst.msk [vmem:[#allocation2 + $0x3f0] sm:$0xff] %vm271_vm1, %v854_v19  ;;  %v1114_v1 = vand.u32 2147483647, %v6299_v14  ;;  %vm1110_vm6 = vweird.f32 %v6299_v14 }
 0x18f   :  { %4812 = vpow2.f32 %v4568_v63 }
 0x190   :  { %v6253_v30 = vpop.f32.mrf.mxu0  ;;  %4814 = vrcp.f32 %v6297_v5  ;;  %vm6374_vm8 = vcmp.eq.f32.partialorder %v1114_v1, 8.507059e+37 }
 0x191   :  { %v1029_v39 = vadd.f32 %v6253_v30, %v899_v15 }
 0x193   :  { %v4569_v11 = vmul.f32 -1.442695, %v1029_v39 }
 0x195   :  { %v4813_v53 = vpop.eup %4812  ;;  %4816 = vpow2.f32 %v4569_v11 }
 0x196   :  { %4818 = vrcp.f32 %v6299_v14  ;;  %v6303_v57 = vadd.f32 1.0, %v4813_v53  ;;  %v6305_v26 = vpop.eup %4814 }
 0x197   :  { %v1091_v33 = vmul.f32 %v6305_v26, %v6297_v5  ;;  %vm1096_vm4 = vweird.f32 %v6305_v26 }
 0x198   :  { %v990_v23 = vpop.f32.mrf.mxu0  ;;  %vm6370_vm7 = vmor %vm1095_vm3, %vm1096_vm4  ;;  %vm1125_vm10 = vweird.f32 %v6303_v57 }
 0x199   :  { %v1030_v2 = vadd.f32 %v990_v23, %v900_v59  ;;  %v1092_v12 = vsub.f32 1.0, %v1091_v33  ;;  %v1101_v59 = vand.u32 2147483648, %v6297_v5 }
 0x19b   :  { %v4570_v13 = vmul.f32 -1.442695, %v1030_v2  ;;  %v4817_v6 = vpop.eup %4816  ;;  %v1093_v63 = vmul.f32 %v6305_v26, %v1092_v12  ;;  %v1116_v2 = vand.u32 2147483648, %v6299_v14  ;;  %v6362_v53 = vor.u32 1.1754944e-38, %v1101_v59 }
 0x19c   :  { %v6308_v4 = vpop.eup %4818  ;;  %v6310_v29 = vadd.f32 1.0, %v4817_v6 }
 0x19d   :  { %4820 = vpow2.f32 %v4570_v13  ;;  %v1106_v10 = vmul.f32 %v6308_v4, %v6299_v14  ;;  %vm1111_vm5 = vweird.f32 %v6308_v4 }
 0x19e   :  { %vm6385_vm9 = vmor %vm1110_vm6, %vm1111_vm5  ;;  %vm1140_vm13 = vweird.f32 %v6310_v29 }
 0x19f   :  { %v1107_v42 = vsub.f32 1.0, %v1106_v10 }
 0x1a0   :  { %v993_v27 = vpop.f32.mrf.mxu0 }
 0x1a1   :  { %v1031_v52 = vadd.f32 %v993_v27, %v901_v7  ;;  %v1108_v39 = vmul.f32 %v6308_v4, %v1107_v42 }
 0x1a3   :  { %v4571_v16 = vmul.f32 -1.442695, %v1031_v52  ;;  %v4821_v32 = vpop.eup %4820  ;;  %v1099_v52 = vand.u32 2147483647, %v6297_v5 }
 0x1a4   :  { %v6316_v22 = vadd.f32 1.0, %v4821_v32 }
 0x1a6   :  { %vm1155_vm0 = vweird.f32 %v6316_v22 }
 0x1a8   :  { %v996_v47 = vpop.f32.mrf.mxu0 }
 0x1a9   :  { %v1032_v40 = vadd.f32 %v996_v47, %v902_v28 }
 0x1ab   :  { %v4572_v30 = vmul.f32 -1.442695, %v1032_v40  ;;  %v6351_v40 = vadd.f32 %v6305_v26, %v1093_v63 }
 0x1ad   :  { %4822 = vpow2.f32 %v4572_v30 }
 0x1ae   :  { %4824 = vpow2.f32 %v4571_v16  ;;  %v1129_v16 = vand.u32 2147483647, %v6303_v57 }
 0x1b0   :  { %v999_v25 = vpop.f32.mrf.mxu0  ;;  %vm6404_vm12 = vcmp.eq.f32.partialorder %v1129_v16, 8.507059e+37 }
 0x1b1   :  { %v1033_v18 = vadd.f32 %v999_v25, %v903_v3  ;;  %v1109_v3 = vadd.f32 %v6308_v4, %v1108_v39 }
 0x1b3   :  { %v4573_v23 = vmul.f32 -1.442695, %v1033_v18  ;;  %v4823_v27 = vpop.eup %4822 }
 0x1b4   :  { %v4825_v31 = vpop.eup %4824  ;;  %v6320_v47 = vadd.f32 1.0, %v4823_v27  ;;  %v1131_v27 = vand.u32 2147483648, %v6303_v57 }
 0x1b5   :  { %4826 = vpow2.f32 %v4573_v23  ;;  %v6323_v48 = vadd.f32 1.0, %v4825_v31  ;;  %v1098_v31 = vsel %vm6370_vm7, %v6305_v26, %v6351_v40 }
 0x1b6   :  { %4828 = vrcp.f32 %v6303_v57 }
 0x1b7   :  { %4830 = vrcp.f32 %v6310_v29  ;;  %vm1170_vm4 = vweird.f32 %v6323_v48 }
 0x1b8   :  { %v6293_v62 = vpop.f32.mrf.mxu0  ;;  %4832 = vrcp.f32 %v6316_v22 }
 0x1b9   :  { %4834 = vrcp.f32 %v6320_v47  ;;  %v1034_v58 = vadd.f32 %v6293_v62, %v904_v56  ;;  %v1132_v56 = vor.u32 1.1754944e-38, %v1131_v27 }
 0x1ba   :  { %4836 = vrcp.f32 %v6323_v48 }
 0x1bb   :  { %v4827_v44 = vpop.eup %4826 }
 0x1bc   :  { %v6318_v45 = vpop.eup %4828  ;;  %v6325_v19 = vadd.f32 1.0, %v4827_v44 }
 0x1bd   :  { %v1121_v46 = vmul.f32 %v6318_v45, %v6303_v57  ;;  %v6337_v15 = vpop.eup %4830  ;;  %vm1126_vm11 = vweird.f32 %v6318_v45  ;;  %v1161_v57 = vand.u32 2147483648, %v6316_v22 }
 0x1be   :  { %4838 = vrcp.f32 %v6325_v19  ;;  %v6341_v62 = vpop.eup %4832  ;;  %v1136_v7 = vmul.f32 %v6337_v15, %v6310_v29  ;;  %vm6418_vm14 = vmor %vm1125_vm10, %vm1126_vm11  ;;  %vm1141_vm15 = vweird.f32 %v6337_v15  ;;  %vm6475_vm10 = vcmp.eq.f32.partialorder %v1099_v52, 8.507059e+37  ;;  %v911_v52 = vld [vmem:[#allocation2 + $0x78] sm:$0xff] }
 0x1bf   :  { %v1122_v38 = vsub.f32 1.0, %v1121_v46  ;;  %v6346_v28 = vpop.eup %4834  ;;  %vm1156_vm3 = vweird.f32 %v6341_v62  ;;  %vm6459_vm6 = vmor %vm1140_vm13, %vm1141_vm15  ;;  %vm1200_vm15 = vweird.f32 %v6325_v19 }
 0x1c0   :  { %v1005_v0 = vpop.f32.mrf.mxu0  ;;  %v6354_v11 = vpop.eup %4836  ;;  %v1181_v23 = vmul.f32 %v6346_v28, %v6320_v47  ;;  %v1137_v14 = vsub.f32 1.0, %v1136_v7  ;;  %v910_v7 = vld [vmem:[#allocation2 + $0x70] sm:$0xff]  ;;  %vm1186_vm5 = vweird.f32 %v6346_v28 }
 0x1c1   :  { %v1035_v25 = vadd.f32 %v1005_v0, %v905_v51  ;;  %v4574_v0 = vmul.f32 -1.442695, %v1034_v58  ;;  %v1123_v18 = vmul.f32 %v6318_v45, %v1122_v38  ;;  %v1166_v10 = vmul.f32 %v6354_v11, %v6323_v48 }
 0x1c2   :  { %v1182_v46 = vsub.f32 1.0, %v1181_v23  ;;  %v1138_v63 = vmul.f32 %v6337_v15, %v1137_v14 }
 0x1c3   :  { %v4575_v54 = vmul.f32 -1.442695, %v1035_v25  ;;  %v1167_v39 = vsub.f32 1.0, %v1166_v10  ;;  %v908_v10 = vld [vmem:[#allocation2 + $0x60] sm:$0xff] }
 0x1c4   :  { %v6360_v13 = vpop.eup %4838 }
 0x1c5   :  { %v1196_v12 = vmul.f32 %v6360_v13, %v6325_v19  ;;  %v1168_v27 = vmul.f32 %v6354_v11, %v1167_v39  ;;  %vm1201_vm13 = vweird.f32 %v6360_v13 }
 0x1c7   :  { %v1169_v42 = vadd.f32 %v6354_v11, %v1168_v27 }
 0x1c8   :  { %v1008_v17 = vpop.f32.mrf.mxu0 }
 0x1c9   :  { %v1036_v55 = vadd.f32 %v1008_v17, %v906_v24  ;;  %v1124_v24 = vadd.f32 %v6318_v45, %v1123_v18  ;;  %v1183_v18 = vmul.f32 %v6346_v28, %v1182_v46  ;;  %v1189_v46 = vand.u32 2147483647, %v6320_v47 }
 0x1cb   :  { %v4576_v61 = vmul.f32 -1.442695, %v1036_v55  ;;  %v1151_v55 = vmul.f32 %v6341_v62, %v6316_v22  ;;  %v1128_v59 = vsel %vm6418_vm14, %v6318_v45, %v1124_v24  ;;  %v909_v45 = vld [vmem:[#allocation2 + $0x68] sm:$0xff]  ;;  %v1184_v24 = vadd.f32 %v6346_v28, %v1183_v18  ;;  %vm6505_vm14 = vmor %vm1155_vm0, %vm1156_vm3 }
 0x1cc   :  { %v1133_v32 = vsel %vm6404_vm12, %v1132_v56, %v1128_v59  ;;  %vm1190_vm0 = vcmp.eq.f32.partialorder %v1189_v46, 8.507059e+37  ;;  %vm6529_vm3 = vmor %vm1200_vm15, %vm1201_vm13 }
 0x1cd   :  { %v1152_v1 = vsub.f32 1.0, %v1151_v55  ;;  %v1191_v55 = vand.u32 2147483648, %v6320_v47 }
 0x1cf   :  { %v1153_v33 = vmul.f32 %v6341_v62, %v1152_v1  ;;  %v1192_v18 = vor.u32 1.1754944e-38, %v1191_v55 }
 0x1d0   :  { %v1011_v41 = vpop.f32.mrf.mxu0 }
 0x1d1   :  { %v1037_v43 = vadd.f32 %v1011_v41, %v907_v9  ;;  %v1117_v41 = vor.u32 1.1754944e-38, %v1116_v2  ;;  %v1146_v9 = vand.u32 2147483648, %v6310_v29  ;;  %v1197_v2 = vsub.f32 1.0, %v1196_v12 }
 0x1d3   :  { %v4577_v49 = vmul.f32 -1.442695, %v1037_v43  ;;  %v1113_v43 = vsel %vm6385_vm9, %v6308_v4, %v1109_v3  ;;  %v1144_v4 = vand.u32 2147483647, %v6310_v29  ;;  %v6423_v38 = vor.u32 1.1754944e-38, %v1146_v9 }
 0x1d4   :  { %v1176_v9 = vand.u32 2147483648, %v6323_v48  ;;  %vm1185_vm9 = vweird.f32 %v6320_v47 }
 0x1d5   :  { %4840 = vpow2.f32 %v4577_v49  ;;  %vm6481_vm11 = vcmp.eq.f32.partialorder %v1144_v4, 8.507059e+37  ;;  %vm6491_vm12 = vmor %vm1185_vm9, %vm1186_vm5 }
 0x1d6   :  { %4842 = vpow2.f32 %v4576_v61  ;;  %v6414_v61 = vsel %vm6374_vm8, %v1117_v41, %v1113_v43  ;;  %v6443_v41 = vadd.f32 %v6337_v15, %v1138_v63  ;;  %vm1171_vm8 = vweird.f32 %v6354_v11 }
 0x1d7   :  { %4844 = vpow2.f32 %v4575_v54  ;;  %v1154_v54 = vadd.f32 %v6341_v62, %v1153_v33  ;;  %v1188_v1 = vsel %vm6491_vm12, %v6346_v28, %v1184_v24  ;;  %vm6517_vm5 = vmor %vm1170_vm4, %vm1171_vm8  ;;  %v1162_v24 = vor.u32 1.1754944e-38, %v1161_v57 }
 0x1d8   :  { %v6332_v60 = vpop.f32.mrf.mxu0  ;;  %4846 = vpow2.f32 %v4574_v0  ;;  %v1143_v12 = vsel %vm6459_vm6, %v6337_v15, %v6443_v41  ;;  %v1206_v15 = vand.u32 2147483648, %v6325_v19  ;;  %v1173_v28 = vsel %vm6517_vm5, %v6354_v11, %v1169_v42 }
 0x1d9   :  { %v1038_v43 = vadd.f32 %v6332_v60, %v908_v10  ;;  %v1174_v60 = vand.u32 2147483647, %v6323_v48  ;;  %v1103_v57 = vsel %vm6475_vm10, %v6362_v53, %v1098_v31 }
 0x1db   :  { %v4841_v17 = vpop.eup %4840  ;;  %vm1175_vm4 = vcmp.eq.f32.partialorder %v1174_v60, 8.507059e+37 }
 0x1dc   :  { %v4843_v44 = vpop.eup %4842  ;;  %v6402_v25 = vadd.f32 1.0, %v4841_v17  ;;  %v1159_v17 = vand.u32 2147483647, %v6316_v22  ;;  %v1148_v22 = vsel %vm6481_vm11, %v6423_v38, %v1143_v12 }
 0x1dd   :  { %v4845_v51 = vpop.eup %4844  ;;  %v6410_v58 = vadd.f32 1.0, %v4843_v44  ;;  %v1198_v44 = vmul.f32 %v6360_v13, %v1197_v2 }
 0x1de   :  { %v4847_v49 = vpop.eup %4846  ;;  %v6425_v0 = vadd.f32 1.0, %v4845_v51  ;;  %4848 = vrcp.f32 %v6402_v25  ;;  %vm1160_vm8 = vcmp.eq.f32.partialorder %v1159_v17, 8.507059e+37  ;;  %vm1260_vm9 = vweird.f32 %v6402_v25 }
 0x1df   :  { %v6435_v16 = vadd.f32 1.0, %v4847_v49  ;;  %4850 = vrcp.f32 %v6410_v58  ;;  %v1199_v47 = vadd.f32 %v6360_v13, %v1198_v44  ;;  %v1264_v59 = vand.u32 2147483647, %v6402_v25 }
 0x1e0   :  { %v1017_v30 = vpop.f32.mrf.mxu0  ;;  %4852 = vrcp.f32 %v6425_v0  ;;  %vm1230_vm5 = vweird.f32 %v6425_v0 }
 0x1e1   :  { %v1039_v14 = vadd.f32 %v1017_v30, %v909_v45  ;;  %v1204_v45 = vand.u32 2147483647, %v6325_v19  ;;  %v1158_v19 = vsel %vm6505_vm14, %v6341_v62, %v1154_v54  ;;  %v1203_v11 = vsel %vm6529_vm3, %v6360_v13, %v1199_v47 }
 0x1e2   :  { %v1266_v47 = vand.u32 2147483648, %v6402_v25  ;;  %vm1245_vm14 = vweird.f32 %v6410_v58 }
 0x1e3   :  { %vm1205_vm6 = vcmp.eq.f32.partialorder %v1204_v45, 8.507059e+37 }
 0x1e4   :  { %v6463_v51 = vpop.eup %4848 }
 0x1e5   :  { %v6485_v49 = vpop.eup %4850  ;;  %v1256_v39 = vmul.f32 %v6463_v51, %v6402_v25  ;;  %vm1261_vm7 = vweird.f32 %v6463_v51 }
 0x1e6   :  { %v6497_v4 = vpop.eup %4852  ;;  %v1241_v48 = vmul.f32 %v6485_v49, %v6410_v58  ;;  %vm1246_vm10 = vweird.f32 %v6485_v49  ;;  %vm6582_vm11 = vmor %vm1260_vm9, %vm1261_vm7 }
 0x1e7   :  { %v1257_v44 = vsub.f32 1.0, %v1256_v39  ;;  %vm1231_vm12 = vweird.f32 %v6497_v4  ;;  %vm6596_vm15 = vmor %vm1245_vm14, %vm1246_vm10 }
 0x1e8   :  { %v1020_v3 = vpop.f32.mrf.mxu0  ;;  %v1242_v42 = vsub.f32 1.0, %v1241_v48  ;;  %vm6610_vm3 = vmor %vm1230_vm5, %vm1231_vm12 }
 0x1e9   :  { %v1040_v23 = vadd.f32 %v1020_v3, %v910_v7  ;;  %v1177_v3 = vor.u32 1.1754944e-38, %v1176_v9  ;;  %v1207_v9 = vor.u32 1.1754944e-38, %v1206_v15  ;;  %v1258_v6 = vmul.f32 %v6463_v51, %v1257_v44 }
 0x1ea   :  { %v1243_v53 = vmul.f32 %v6485_v49, %v1242_v42 }
 0x1eb   :  { %4854 = vtanh.f32 %v1040_v23  ;;  %v1178_v30 = vsel %vm1175_vm4, %v1177_v3, %v1173_v28  ;;  %v1208_v60 = vsel %vm1205_vm6, %v1207_v9, %v1203_v11  ;;  %v1259_v38 = vadd.f32 %v6463_v51, %v1258_v6  ;;  %v6675_v6 = vld [vmem:[%s9526_s2 + $0x28] sm:$0xff] }
 0x1ec   :  { %4856 = vrcp.f32 %v6435_v16  ;;  %v1275_v15 = vmul.f32 0.0, %v1178_v30  ;;  %v1277_v26 = vmul.f32 0.0, %v1208_v60  ;;  %v1249_v3 = vand.u32 2147483647, %v6410_v58 }
 0x1ed   :  { %4858 = vtanh.f32 %v1039_v14  ;;  %v1193_v14 = vsel %vm1190_vm0, %v1192_v18, %v1188_v1  ;;  %v1244_v1 = vadd.f32 %v6485_v49, %v1243_v53  ;;  %v1263_v25 = vsel %vm6582_vm11, %v6463_v51, %v1259_v38 }
 0x1ee   :  { %4860 = vtanh.f32 %v1038_v43  ;;  %v1226_v43 = vmul.f32 %v6497_v4, %v6425_v0  ;;  %v1276_v13 = vmul.f32 0.0, %v1193_v14  ;;  %v1267_v23 = vor.u32 1.1754944e-38, %v1266_v47 }
 0x1ef   :  { %v1236_v28 = vand.u32 2147483648, %v6425_v0  ;;  %vm1265_vm0 = vcmp.eq.f32.partialorder %v1264_v59, 8.507059e+37  ;;  %v1248_v51 = vsel %vm6596_vm15, %v6485_v49, %v1244_v1  ;;  %vm1215_vm4 = vweird.f32 %v6435_v16  ;;  %v1337_v1 = vld [vmem:[#allocation2 + $0x90] sm:$0xff] }
 0x1f0   :  { %v1023_v63 = vpop.f32.mrf.mxu0  ;;  %v1227_v5 = vsub.f32 1.0, %v1226_v43  ;;  %v1268_v14 = vsel %vm1265_vm0, %v1267_v23, %v1263_v25  ;;  %v1221_v9 = vand.u32 2147483648, %v6435_v16  ;;  %vm1250_vm6 = vcmp.eq.f32.partialorder %v1249_v3, 8.507059e+37  ;;  %v1338_v23 = vld [vmem:[#allocation2 + $0x98] sm:$0xff] }
 0x1f1   :  { %v1041_v2 = vadd.f32 %v1023_v63, %v911_v52  ;;  %v4855_v7 = vpop.eup %4854  ;;  %v1219_v49 = vand.u32 2147483647, %v6435_v16 }
 0x1f2   :  { %v6522_v41 = vpop.eup %4856  ;;  %v1280_v10 = vmul.f32 %v4855_v7, %v1133_v32  ;;  %v1163_v32 = vsel %vm1160_vm8, %v1162_v24, %v1158_v19  ;;  %v1228_v12 = vmul.f32 %v6497_v4, %v1227_v5  ;;  %v1251_v7 = vand.u32 2147483648, %v6410_v58  ;;  %v6682_v5 = vld [vmem:[%s9526_s2 + $0x30] sm:$0xff] }
 0x1f3   :  { %4862 = vtanh.f32 %v1041_v2  ;;  %v4859_v33 = vpop.eup %4858  ;;  %v1211_v62 = vmul.f32 %v6522_v41, %v6435_v16  ;;  %v1274_v31 = vmul.f32 0.0, %v1163_v32  ;;  %vm1216_vm13 = vweird.f32 %v6522_v41  ;;  %v6640_v32 = vld [vmem:[%s9531_s4 + $0x8] sm:$0xff] }
 0x1f4   :  { %v4861_v55 = vpop.eup %4860  ;;  %v1279_v46 = vmul.f32 %v4859_v33, %v6414_v61  ;;  %v6561_v54 = vadd.f32 %v1280_v10, %v1276_v13  ;;  %v1229_v18 = vadd.f32 %v6497_v4, %v1228_v12  ;;  %v1234_v58 = vand.u32 2147483647, %v6425_v0  ;;  %vm1217_vm8 = vmor %vm1215_vm4, %vm1216_vm13  ;;  %v1335_v12 = vld [vmem:[#allocation2 + $0x80] sm:$0xff] }
 0x1f5   :  { %v1278_v52 = vmul.f32 %v4861_v55, %v1103_v57  ;;  %v1212_v63 = vsub.f32 1.0, %v1211_v62  ;;  %v1252_v11 = vor.u32 1.1754944e-38, %v1251_v7  ;;  %v1237_v24 = vor.u32 1.1754944e-38, %v1236_v28  ;;  %v6626_v57 = vld [vmem:[%s9531_s4] sm:$0xff] }
 0x1f6   :  { %v6565_v29 = vadd.f32 %v1279_v46, %v1275_v15  ;;  %4864 = vtanh.f32 %v6561_v54  ;;  %v1233_v0 = vsel %vm6610_vm3, %v6497_v4, %v1229_v18  ;;  %vm1235_vm7 = vcmp.eq.f32.partialorder %v1234_v58, 8.507059e+37  ;;  %v6647_v46 = vld [vmem:[%s9526_s2 + $0x8] sm:$0xff]  ;;  %v6668_v15 = vld [vmem:[%s9526_s2 + $0x20] sm:$0xff] }
 0x1f7   :  { %v6573_v56 = vadd.f32 %v1278_v52, %v1274_v31  ;;  %v1213_v39 = vmul.f32 %v6522_v41, %v1212_v63  ;;  %v1253_v43 = vsel %vm1250_vm6, %v1252_v11, %v1248_v51  ;;  %v1238_v13 = vsel %vm1235_vm7, %v1237_v24, %v1233_v0  ;;  %v6689_v52 = vld [vmem:[%s9526_s2 + $0x38] sm:$0xff]  ;;  %v1341_v11 = vld [vmem:[#allocation2 + $0xb0] sm:$0xff] }
 0x1f8   :  { %v1222_v60 = vor.u32 1.1754944e-38, %v1221_v9  ;;  %vm1220_vm9 = vcmp.eq.f32.partialorder %v1219_v49, 8.507059e+37  ;;  %v1340_v9 = vld [vmem:[#allocation2 + $0xa8] sm:$0xff] }
 0x1f9   :  { %v4863_v17 = vpop.eup %4862  ;;  %v1214_v48 = vadd.f32 %v6522_v41, %v1213_v39  ;;  %v1336_v39 = vld [vmem:[#allocation2 + $0x88] sm:$0xff] }
 0x1fa   :  { %v1281_v40 = vmul.f32 %v4863_v17, %v1148_v22  ;;  %v6654_v22 = vld [vmem:[%s9526_s2 + $0x10] sm:$0xff]  ;;  %v6661_v17 = vld [vmem:[%s9526_s2 + $0x18] sm:$0xff] }
 0x1fb   :  { %v1218_v62 = vsel %vm1217_vm8, %v6522_v41, %v1214_v48  ;;  %v6633_v41 = vld [vmem:[%s9526_s2] sm:$0xff] }
 0x1fc   :  { %v6567_v61 = vadd.f32 %v1281_v40, %v1277_v26  ;;  %v4865_v27 = vpop.eup %4864  ;;  %v1223_v16 = vsel %vm1220_vm9, %v1222_v60, %v1218_v62  ;;  %v6713_v26 = vpop.permute.xlu2 %1301  ;;  %v1339_v48 = vld [vmem:[#allocation2 + $0xa0] sm:$0xff] }
 0x1fd   :  { %v1292_v30 = vmul.f32 %v4865_v27, %v1253_v43 }
 0x1fe   :  { %4866 = vtanh.f32 %v6567_v61 }
 0x1ff   :  { %4868 = vtanh.f32 %v6565_v29 }
 0x200   :  { %4870 = vtanh.f32 %v6573_v56 }
 0x204   :  { %v4867_v19 = vpop.eup %4866 }
 0x205   :  { %v1293_v44 = vmul.f32 %v4867_v19, %v1268_v14  ;;  %v4869_v10 = vpop.eup %4868 }
 0x206   :  { %v4871_v55 = vpop.eup %4870  ;;  %v1291_v4 = vmul.f32 %v4869_v10, %v1238_v13  ;;  %v1342_v10 = vld [vmem:[#allocation2 + $0xb8] sm:$0xff] }
 0x207   :  { %1322 = vmatpush.msra.mxu1 %v1293_v44  ;;  %1363 = vmatpush.msrb.mxu2 %v1293_v44  ;;  %v1290_v42 = vmul.f32 %v4871_v55, %v1223_v16 }
 0x209   :  { %1323 = vmatpush.msra.mxu1 %v1292_v30  ;;  %1364 = vmatpush.msrb.mxu2 %v1292_v30 }
 0x20b   :  { %1324 = vmatpush.msra.mxu1 %v1291_v4  ;;  %1365 = vmatpush.msrb.mxu2 %v1291_v4 }
 0x20d   :  { %1325 = vmatpush.msra.mxu1 %v1290_v42  ;;  %1366 = vmatpush.msrb.mxu2 %v1290_v42 }
 0x20e   :  { %4578 = vmatmul.msk.f32.vlgmr.msra.gmra.mxu1 %vm912_vm2, %v6626_v57  ;;  %4580 = vmatmul.msk.f32.vlgmr.msrb.gmra.mxu2 %vm912_vm2, %v6633_v41 }
 0x216   :  { %4579 = vmatmul.msk.f32.gmra.mxu1 %vm912_vm2, %v6640_v32  ;;  %4581 = vmatmul.msk.f32.gmra.mxu2 %vm912_vm2, %v6647_v46 }
 0x21e   :  { %4582 = vmatmul.msk.f32.gmra.mxu2 %vm912_vm2, %v6654_v22 }
 0x226   :  { %4583 = vmatmul.msk.f32.gmra.mxu2 %vm912_vm2, %v6661_v17 }
 0x22e   :  { %4584 = vmatmul.msk.f32.gmra.mxu2 %vm912_vm2, %v6668_v15 }
 0x236   :  { %4585 = vmatmul.msk.f32.gmra.mxu2 %vm912_vm2, %v6675_v6 }
 0x23e   :  { %4586 = vmatmul.msk.f32.gmra.mxu2 %vm912_vm2, %v6682_v5 }
 0x246   :  { %4587 = vmatmul.msk.f32.gmra.mxu2 %vm912_vm2, %v6689_v52 }
 0x24e   :  { %4588 = vmatmul.msk.f32.gmra.mxu2 %vm912_vm2, %v6120_v34  ;;  %v6709_v34 = vpop.permute.xlu1 %1296 }
 0x256   :  { %4589 = vmatmul.msk.f32.gmra.mxu2 %vm912_vm2, %v6138_v35 }
 0x25e   :  { %4590 = vmatmul.msk.f32.gmra.mxu2 %vm912_vm2, %v6156_v37 }
 0x266   :  { %4591 = vmatmul.msk.f32.gmra.mxu2 %vm912_vm2, %v6174_v8 }
 0x26e   :  { %4592 = vmatmul.msk.f32.gmra.mxu2 %vm912_vm2, %v6189_v21 }
 0x276   :  { %4593 = vmatmul.msk.f32.gmra.mxu2 %vm912_vm2, %v6199_v20 }
 0x27e   :  { %4594 = vmatmul.msk.f32.gmra.mxu2 %vm912_vm2, %v6208_v36 }
 0x286   :  { %4595 = vmatmul.msk.f32.gmra.mxu2 %vm912_vm2, %v6219_v50 }
 0x28b   :  { %v1327_v35 = vpop.f32.mrf.mxu1 }
 0x28c   :  { %v1328_v37 = vadd.f32 %v1327_v35, %v6709_v34 }
 0x28e   :  { %1333 = vst.msk [vmem:[#allocation3] sm:$0xff] %vm271_vm1, %v1328_v37 }
 0x291   :  { %v1368_v8 = vpop.f32.mrf.mxu2 }
 0x292   :  { %v1416_v47 = vadd.f32 %v1368_v8, %v1335_v12 }
 0x293   :  { %v1330_v21 = vpop.f32.mrf.mxu1 }
 0x294   :  { %v1331_v40 = vadd.f32 %v1330_v21, %v6713_v26  ;;  %v4596_v7 = vmul.f32 -1.442695, %v1416_v47  ;;  %v1345_v47 = vld [vmem:[#allocation2 + $0xd0] sm:$0xff] }
 0x296   :  { %1334 = vst.msk [vmem:[#allocation3 + $0x8] sm:$0xff] %vm271_vm1, %v1331_v40  ;;  %4872 = vpow2.f32 %v4596_v7 }
 0x299   :  { %v1371_v20 = vpop.f32.mrf.mxu2 }
 0x29a   :  { %v1417_v59 = vadd.f32 %v1371_v20, %v1336_v39 }
 0x29c   :  { %v4597_v25 = vmul.f32 -1.442695, %v1417_v59  ;;  %v4873_v28 = vpop.eup %4872  ;;  %v1344_v59 = vld [vmem:[#allocation2 + $0xc8] sm:$0xff] }
 0x29d   :  { %v6719_v33 = vadd.f32 1.0, %v4873_v28 }
 0x29e   :  { %4874 = vpow2.f32 %v4597_v25 }
 0x29f   :  { %vm1485_vm10 = vweird.f32 %v6719_v33 }
 0x2a1   :  { %v1374_v36 = vpop.f32.mrf.mxu2 }
 0x2a2   :  { %v1418_v2 = vadd.f32 %v1374_v36, %v1337_v1 }
 0x2a4   :  { %v4598_v3 = vmul.f32 -1.442695, %v1418_v2  ;;  %v4875_v51 = vpop.eup %4874 }
 0x2a5   :  { %v6721_v0 = vadd.f32 1.0, %v4875_v51 }
 0x2a6   :  { %4876 = vpow2.f32 %v4598_v3 }
 0x2a7   :  { %vm1500_vm13 = vweird.f32 %v6721_v0 }
 0x2a9   :  { %v1377_v63 = vpop.f32.mrf.mxu2 }
 0x2aa   :  { %v1419_v45 = vadd.f32 %v1377_v63, %v1338_v23  ;;  %v1346_v63 = vld [vmem:[#allocation2 + $0xd8] sm:$0xff] }
 0x2ac   :  { %v4599_v58 = vmul.f32 -1.442695, %v1419_v45  ;;  %v4877_v19 = vpop.eup %4876  ;;  %v1343_v45 = vld [vmem:[#allocation2 + $0xc0] sm:$0xff] }
 0x2ad   :  { %v6723_v43 = vadd.f32 1.0, %v4877_v19 }
 0x2ae   :  { %4878 = vpow2.f32 %v4599_v58 }
 0x2af   :  { %4880 = vrcp.f32 %v6719_v33  ;;  %vm1515_vm3 = vweird.f32 %v6723_v43 }
 0x2b0   :  { %4882 = vrcp.f32 %v6721_v0 }
 0x2b1   :  { %v1380_v53 = vpop.f32.mrf.mxu2  ;;  %4884 = vrcp.f32 %v6723_v43 }
 0x2b2   :  { %v1420_v14 = vadd.f32 %v1380_v53, %v1339_v48 }
 0x2b4   :  { %v4600_v30 = vmul.f32 -1.442695, %v1420_v14  ;;  %v4879_v4 = vpop.eup %4878 }
 0x2b5   :  { %v6728_v16 = vpop.eup %4880  ;;  %v6732_v35 = vadd.f32 1.0, %v4879_v4 }
 0x2b6   :  { %4886 = vpow2.f32 %v4600_v30  ;;  %v6730_v42 = vpop.eup %4882  ;;  %v1506_v30 = vand.u32 2147483648, %v6721_v0  ;;  %vm1486_vm12 = vweird.f32 %v6728_v16 }
 0x2b7   :  { %v6734_v37 = vpop.eup %4884  ;;  %v1496_v36 = vmul.f32 %v6730_v42, %v6721_v0  ;;  %vm1501_vm11 = vweird.f32 %v6730_v42  ;;  %vm6803_vm5 = vmor %vm1485_vm10, %vm1486_vm12  ;;  %vm1530_vm8 = vweird.f32 %v6732_v35 }
 0x2b8   :  { %v1511_v7 = vmul.f32 %v6734_v37, %v6723_v43  ;;  %vm6792_vm14 = vmor %vm1500_vm13, %vm1501_vm11  ;;  %vm1516_vm0 = vweird.f32 %v6734_v37 }
 0x2b9   :  { %v1383_v50 = vpop.f32.mrf.mxu2  ;;  %v1497_v2 = vsub.f32 1.0, %v1496_v36  ;;  %vm6835_vm6 = vmor %vm1515_vm3, %vm1516_vm0 }
 0x2ba   :  { %v1421_v49 = vadd.f32 %v1383_v50, %v1340_v9  ;;  %v1481_v50 = vmul.f32 %v6728_v16, %v6719_v33  ;;  %v1512_v14 = vsub.f32 1.0, %v1511_v7 }
 0x2bc   :  { %v4601_v55 = vmul.f32 -1.442695, %v1421_v49  ;;  %v4887_v8 = vpop.eup %4886  ;;  %v1482_v23 = vsub.f32 1.0, %v1481_v50 }
 0x2c1   :  { %v1386_v31 = vpop.f32.mrf.mxu2 }
 0x2c2   :  { %v1422_v44 = vadd.f32 %v1386_v31, %v1341_v11  ;;  %v6741_v31 = vadd.f32 1.0, %v4887_v8  ;;  %v1498_v11 = vmul.f32 %v6730_v42, %v1497_v2 }
 0x2c4   :  { %v4602_v62 = vmul.f32 -1.442695, %v1422_v44  ;;  %v1483_v44 = vmul.f32 %v6728_v16, %v1482_v23  ;;  %vm1545_vm9 = vweird.f32 %v6741_v31 }
 0x2c6   :  { %4888 = vpow2.f32 %v4602_v62  ;;  %v6778_v8 = vadd.f32 %v6728_v16, %v1483_v44 }
 0x2c7   :  { %4890 = vpow2.f32 %v4601_v55  ;;  %v1499_v55 = vadd.f32 %v6730_v42, %v1498_v11 }
 0x2c9   :  { %v1389_v38 = vpop.f32.mrf.mxu2  ;;  %v1503_v2 = vsel %vm6792_vm14, %v6730_v42, %v1499_v55  ;;  %v1534_v55 = vand.u32 2147483647, %v6732_v35 }
 0x2ca   :  { %v1423_v24 = vadd.f32 %v1389_v38, %v1342_v10 }
 0x2cb   :  { %vm6901_vm3 = vcmp.eq.f32.partialorder %v1534_v55, 8.507059e+37 }
 0x2cc   :  { %v4603_v60 = vmul.f32 -1.442695, %v1423_v24  ;;  %v4889_v40 = vpop.eup %4888  ;;  %v1504_v24 = vand.u32 2147483647, %v6721_v0 }
 0x2cd   :  { %v4891_v20 = vpop.eup %4890  ;;  %v6743_v12 = vadd.f32 1.0, %v4889_v40 }
 0x2ce   :  { %4892 = vpow2.f32 %v4603_v60  ;;  %v6745_v39 = vadd.f32 1.0, %v4891_v20  ;;  %vm6796_vm15 = vcmp.eq.f32.partialorder %v1504_v24, 8.507059e+37 }
 0x2cf   :  { %4894 = vrcp.f32 %v6732_v35 }
 0x2d0   :  { %4896 = vrcp.f32 %v6741_v31  ;;  %vm1560_vm12 = vweird.f32 %v6745_v39 }
 0x2d1   :  { %v6717_v18 = vpop.f32.mrf.mxu2  ;;  %4898 = vrcp.f32 %v6743_v12 }
 0x2d2   :  { %v1424_v58 = vadd.f32 %v6717_v18, %v1343_v45  ;;  %4900 = vrcp.f32 %v6745_v39  ;;  %v1491_v18 = vand.u32 2147483648, %v6719_v33 }
 0x2d4   :  { %v4893_v53 = vpop.eup %4892  ;;  %v4604_v49 = vmul.f32 -1.442695, %v1424_v58  ;;  %v6784_v20 = vor.u32 1.1754944e-38, %v1491_v18 }
 0x2d5   :  { %v6749_v25 = vadd.f32 1.0, %v4893_v53  ;;  %v6752_v51 = vpop.eup %4894 }
 0x2d6   :  { %v1526_v9 = vmul.f32 %v6752_v51, %v6732_v35  ;;  %v6765_v10 = vpop.eup %4896  ;;  %vm1531_vm7 = vweird.f32 %v6752_v51 }
 0x2d7   :  { %4902 = vrcp.f32 %v6749_v25  ;;  %v6770_v62 = vpop.eup %4898  ;;  %vm1546_vm10 = vweird.f32 %v6765_v10  ;;  %vm6869_vm11 = vmor %vm1530_vm8, %vm1531_vm7 }
 0x2d8   :  { %v6775_v60 = vpop.eup %4900  ;;  %v1527_v4 = vsub.f32 1.0, %v1526_v9  ;;  %v1571_v50 = vmul.f32 %v6770_v62, %v6743_v12  ;;  %vm1576_vm13 = vweird.f32 %v6770_v62  ;;  %vm6923_vm8 = vmor %vm1545_vm9, %vm1546_vm10  ;;  %vm1590_vm9 = vweird.f32 %v6749_v25 }
 0x2d9   :  { %v1395_v27 = vpop.f32.mrf.mxu2  ;;  %v1556_v45 = vmul.f32 %v6775_v60, %v6745_v39  ;;  %vm1561_vm14 = vweird.f32 %v6775_v60 }
 0x2da   :  { %v1425_v3 = vadd.f32 %v1395_v27, %v1344_v59  ;;  %v1507_v59 = vor.u32 1.1754944e-38, %v1506_v30  ;;  %v1528_v58 = vmul.f32 %v6752_v51, %v1527_v4  ;;  %v1572_v9 = vsub.f32 1.0, %v1571_v50  ;;  %vm6936_vm7 = vmor %vm1560_vm12, %vm1561_vm14 }
 0x2db   :  { %v1557_v4 = vsub.f32 1.0, %v1556_v45 }
 0x2dc   :  { %v4605_v27 = vmul.f32 -1.442695, %v1425_v3  ;;  %v1536_v3 = vand.u32 2147483648, %v6732_v35  ;;  %v6833_v44 = vsel %vm6796_vm15, %v1507_v59, %v1503_v2  ;;  %vm1575_vm15 = vweird.f32 %v6743_v12 }
 0x2dd   :  { %v6782_v40 = vpop.eup %4902 }
 0x2e1   :  { %v1398_v13 = vpop.f32.mrf.mxu2 }
 0x2e2   :  { %v1426_v1 = vadd.f32 %v1398_v13, %v1345_v47  ;;  %v1513_v13 = vmul.f32 %v6734_v37, %v1512_v14  ;;  %v1586_v14 = vmul.f32 %v6782_v40, %v6749_v25  ;;  %v1349_v47 = vld [vmem:[#allocation2 + $0xf0] sm:$0xff] }
 0x2e4   :  { %v4606_v19 = vmul.f32 -1.442695, %v1426_v1  ;;  %v1521_v1 = vand.u32 2147483648, %v6723_v43  ;;  %v1514_v7 = vadd.f32 %v6734_v37, %v1513_v13  ;;  %v6846_v13 = vor.u32 1.1754944e-38, %v1536_v3 }
 0x2e6   :  { %v1518_v30 = vsel %vm6835_vm6, %v6734_v37, %v1514_v7  ;;  %vm1591_vm6 = vweird.f32 %v6782_v40 }
 0x2e9   :  { %v1401_v21 = vpop.f32.mrf.mxu2 }
 0x2ea   :  { %v1427_v38 = vadd.f32 %v1401_v21, %v1346_v63  ;;  %v1489_v21 = vand.u32 2147483647, %v6719_v33  ;;  %v1519_v63 = vand.u32 2147483647, %v6723_v43 }
 0x2ec   :  { %v4607_v28 = vmul.f32 -1.442695, %v1427_v38  ;;  %vm6827_vm4 = vcmp.eq.f32.partialorder %v1519_v63, 8.507059e+37  ;;  %v1587_v38 = vsub.f32 1.0, %v1586_v14  ;;  %vm6895_vm0 = vcmp.eq.f32.partialorder %v1489_v21, 8.507059e+37  ;;  %v1350_v21 = vld [vmem:[#allocation2 + $0xf8] sm:$0xff] }
 0x2ee   :  { %4904 = vpow2.f32 %v4607_v28  ;;  %v1588_v35 = vmul.f32 %v6782_v40, %v1587_v38  ;;  %v1579_v38 = vand.u32 2147483647, %v6743_v12 }
 0x2ef   :  { %4906 = vpow2.f32 %v4606_v19  ;;  %v1541_v19 = vmul.f32 %v6765_v10, %v6741_v31 }
 0x2f0   :  { %4908 = vpow2.f32 %v4605_v27  ;;  %vm1580_vm10 = vcmp.eq.f32.partialorder %v1579_v38, 8.507059e+37 }
 0x2f1   :  { %v6756_v48 = vpop.f32.mrf.mxu2  ;;  %4910 = vpow2.f32 %v4604_v49  ;;  %v1522_v49 = vor.u32 1.1754944e-38, %v1521_v1  ;;  %v1542_v50 = vsub.f32 1.0, %v1541_v19  ;;  %v1573_v1 = vmul.f32 %v6770_v62, %v1572_v9  ;;  %v1347_v9 = vld [vmem:[#allocation2 + $0xe0] sm:$0xff] }
 0x2f2   :  { %v1428_v43 = vadd.f32 %v6756_v48, %v1347_v9 }
 0x2f3   :  { %v1523_v45 = vsel %vm6827_vm4, %v1522_v49, %v1518_v30  ;;  %v1543_v11 = vmul.f32 %v6765_v10, %v1542_v50  ;;  %v1574_v49 = vadd.f32 %v6770_v62, %v1573_v1  ;;  %v1581_v30 = vand.u32 2147483648, %v6743_v12  ;;  %vm6911_vm4 = vmor %vm1575_vm15, %vm1576_vm13 }
 0x2f4   :  { %v4905_v53 = vpop.eup %4904  ;;  %v1596_v1 = vand.u32 2147483648, %v6749_v25  ;;  %v1589_v12 = vadd.f32 %v6782_v40, %v1588_v35  ;;  %vm6949_vm13 = vmor %vm1590_vm9, %vm1591_vm6 }
 0x2f5   :  { %v4907_v23 = vpop.eup %4906  ;;  %v6825_v27 = vadd.f32 1.0, %v4905_v53  ;;  %v6851_v53 = vadd.f32 %v6752_v51, %v1528_v58  ;;  %v1582_v3 = vor.u32 1.1754944e-38, %v1581_v30 }
 0x2f6   :  { %v4909_v42 = vpop.eup %4908  ;;  %v6840_v24 = vadd.f32 1.0, %v4907_v23  ;;  %v1348_v23 = vld [vmem:[#allocation2 + $0xe8] sm:$0xff]  ;;  %v1597_v38 = vor.u32 1.1754944e-38, %v1596_v1  ;;  %v9593_v1 = vsel %vm6803_vm5, %v6728_v16, %v6778_v8 }
 0x2f7   :  { %v4911_v18 = vpop.eup %4910  ;;  %v6848_v63 = vadd.f32 1.0, %v4909_v42  ;;  %4912 = vrcp.f32 %v6825_v27  ;;  %v1558_v42 = vmul.f32 %v6775_v60, %v1557_v4  ;;  %v1564_v4 = vand.u32 2147483647, %v6745_v39 }
 0x2f8   :  { %v6858_v2 = vadd.f32 1.0, %v4911_v18  ;;  %4914 = vrcp.f32 %v6840_v24  ;;  %v1566_v18 = vand.u32 2147483648, %v6745_v39 }
 0x2f9   :  { %v1407_v36 = vpop.f32.mrf.mxu2  ;;  %4916 = vrcp.f32 %v6848_v63  ;;  %v1559_v50 = vadd.f32 %v6775_v60, %v1558_v42  ;;  %vm1565_vm12 = vcmp.eq.f32.partialorder %v1564_v4, 8.507059e+37  ;;  %v9592_v4 = vand.u32 2147483647, %v6741_v31 }
 0x2fa   :  { %v1429_v19 = vadd.f32 %v1407_v36, %v1348_v23  ;;  %v1567_v28 = vor.u32 1.1754944e-38, %v1566_v18  ;;  %vm1620_vm9 = vweird.f32 %v6848_v63 }
 0x2fb   :  { %vm1550_vm15 = vcmp.eq.f32.partialorder %v9592_v4, 8.507059e+37 }
 0x2fd   :  { %v6886_v36 = vpop.eup %4912 }
 0x2fe   :  { %vm1651_vm5 = vweird.f32 %v6886_v36 }
 0x301   :  { %v1410_v37 = vpop.f32.mrf.mxu2 }
 0x302   :  { %v1430_v7 = vadd.f32 %v1410_v37, %v1349_v47  ;;  %v6905_v37 = vpop.eup %4914 }
 0x303   :  { %v6917_v55 = vpop.eup %4916 }
 0x304   :  { %4918 = vtanh.f32 %v1430_v7  ;;  %v1544_v7 = vadd.f32 %v6765_v10, %v1543_v11  ;;  %v1578_v11 = vsel %vm6911_vm4, %v6770_v62, %v1574_v49  ;;  %v1563_v62 = vsel %vm6936_vm7, %v6775_v60, %v1559_v50 }
 0x305   :  { %4920 = vrcp.f32 %v6858_v2  ;;  %v1631_v49 = vmul.f32 %v6905_v37, %v6840_v24  ;;  %v1583_v18 = vsel %vm1580_vm10, %v1582_v3, %v1578_v11  ;;  %v1593_v60 = vsel %vm6949_vm13, %v6782_v40, %v1589_v12 }
 0x306   :  { %4922 = vtanh.f32 %v1429_v19  ;;  %v1646_v19 = vmul.f32 %v6886_v36, %v6825_v27  ;;  %v1616_v33 = vmul.f32 %v6917_v55, %v6848_v63  ;;  %v1666_v40 = vmul.f32 %v1583_v18, %v6561_v54 }
 0x307   :  { %4924 = vtanh.f32 %v1428_v43  ;;  %v1594_v43 = vand.u32 2147483647, %v6749_v25  ;;  %v1548_v25 = vsel %vm6923_vm8, %v6765_v10, %v1544_v7  ;;  %vm1621_vm4 = vweird.f32 %v6917_v55 }
 0x308   :  { %v1647_v30 = vsub.f32 1.0, %v1646_v19  ;;  %vm1635_vm8 = vweird.f32 %v6840_v24  ;;  %v1639_v18 = vand.u32 2147483647, %v6840_v24  ;;  %vm7039_vm13 = vmor %vm1620_vm9, %vm1621_vm4 }
 0x309   :  { %v1413_v23 = vpop.f32.mrf.mxu2  ;;  %vm1595_vm14 = vcmp.eq.f32.partialorder %v1594_v43, 8.507059e+37 }
 0x30a   :  { %v1431_v35 = vadd.f32 %v1413_v23, %v1350_v21  ;;  %v4919_v9 = vpop.eup %4918  ;;  %v9591_v21 = vand.u32 2147483648, %v6741_v31  ;;  %v1598_v7 = vsel %vm1595_vm14, %v1597_v38, %v1593_v60  ;;  %v9594_v31 = vsel %vm6869_vm11, %v6752_v51, %v6851_v53 }
 0x30b   :  { %v6942_v59 = vpop.eup %4920  ;;  %v1670_v50 = vmul.f32 %v4919_v9, %v1523_v45  ;;  %v1632_v45 = vsub.f32 1.0, %v1631_v49  ;;  %v1538_v54 = vsel %vm6901_vm3, %v6846_v13, %v9594_v31  ;;  %v1648_v8 = vmul.f32 %v6886_v36, %v1647_v30 }
 0x30c   :  { %4926 = vtanh.f32 %v1431_v35  ;;  %v4923_v14 = vpop.eup %4922  ;;  %v1552_v23 = vor.u32 1.1754944e-38, %v9591_v21  ;;  %v1568_v35 = vsel %vm1565_vm12, %v1567_v28, %v1563_v62  ;;  %v1601_v10 = vmul.f32 %v6942_v59, %v6858_v2 }
 0x30d   :  { %v4925_v3 = vpop.eup %4924  ;;  %v1493_v28 = vsel %vm6895_vm0, %v6784_v20, %v9593_v1  ;;  %v1669_v42 = vmul.f32 %v4923_v14, %v6833_v44  ;;  %v1665_v19 = vmul.f32 %v1568_v35, %v6565_v29  ;;  %v6988_v16 = vadd.f32 %v1670_v50, %v1666_v40 }
 0x30e   :  { %v1553_v12 = vsel %vm1550_vm15, %v1552_v23, %v1548_v25  ;;  %v1617_v20 = vsub.f32 1.0, %v1616_v33  ;;  %v1668_v48 = vmul.f32 %v4925_v3, %v1493_v28  ;;  %v1667_v44 = vmul.f32 %v1598_v7, %v6567_v61 }
 0x30f   :  { %v1602_v58 = vsub.f32 1.0, %v1601_v10  ;;  %v1633_v9 = vmul.f32 %v6905_v37, %v1632_v45  ;;  %v1664_v51 = vmul.f32 %v1553_v12, %v6573_v56  ;;  %v6994_v53 = vadd.f32 %v1669_v42, %v1665_v19 }
 0x310   :  { %v1649_v29 = vadd.f32 %v6886_v36, %v1648_v8  ;;  %4928 = vtanh.f32 %v6988_v16  ;;  %v1618_v47 = vmul.f32 %v6917_v55, %v1617_v20  ;;  %v1656_v61 = vand.u32 2147483648, %v6825_v27 }
 0x311   :  { %v7002_v43 = vadd.f32 %v1668_v48, %v1664_v51  ;;  %v1603_v56 = vmul.f32 %v6942_v59, %v1602_v58  ;;  %vm1650_vm11 = vweird.f32 %v6825_v27  ;;  %v1654_v62 = vand.u32 2147483647, %v6825_v27  ;;  %v1710_v51 = vld [vmem:[#allocation2 + $0x100] sm:$0xff] }
 0x312   :  { %v4927_v0 = vpop.eup %4926  ;;  %v1634_v39 = vadd.f32 %v6905_v37, %v1633_v9  ;;  %vm1636_vm0 = vweird.f32 %v6905_v37  ;;  %vm7011_vm3 = vmor %vm1650_vm11, %vm1651_vm5  ;;  %v1641_v25 = vand.u32 2147483648, %v6840_v24  ;;  %vm1606_vm6 = vweird.f32 %v6942_v59 }
 0x313   :  { %v1671_v11 = vmul.f32 %v4927_v0, %v1538_v54  ;;  %v1653_v27 = vsel %vm7011_vm3, %v6886_v36, %v1649_v29  ;;  %v1619_v60 = vadd.f32 %v6917_v55, %v1618_v47  ;;  %v1657_v14 = vor.u32 1.1754944e-38, %v1656_v61  ;;  %vm7025_vm7 = vmor %vm1635_vm8, %vm1636_vm0  ;;  %v1711_v47 = vld [vmem:[#allocation2 + $0x108] sm:$0xff] }
 0x314   :  { %v1626_v50 = vand.u32 2147483648, %v6848_v63  ;;  %vm1655_vm10 = vcmp.eq.f32.partialorder %v1654_v62, 8.507059e+37  ;;  %v1638_v36 = vsel %vm7025_vm7, %v6905_v37, %v1634_v39  ;;  %v1624_v24 = vand.u32 2147483647, %v6848_v63 }
 0x315   :  { %v6996_v13 = vadd.f32 %v1671_v11, %v1667_v44  ;;  %v1604_v33 = vadd.f32 %v6942_v59, %v1603_v56  ;;  %v1658_v23 = vsel %vm1655_vm10, %v1657_v14, %v1653_v27  ;;  %v1642_v35 = vor.u32 1.1754944e-38, %v1641_v25  ;;  %v1712_v56 = vld [vmem:[#allocation2 + $0x110] sm:$0xff] }
 0x316   :  { %v4929_v38 = vpop.eup %4928  ;;  %vm1605_vm12 = vweird.f32 %v6858_v2  ;;  %v1611_v3 = vand.u32 2147483648, %v6858_v2  ;;  %vm1640_vm14 = vcmp.eq.f32.partialorder %v1639_v18, 8.507059e+37  ;;  %v1623_v63 = vsel %vm7039_vm13, %v6917_v55, %v1619_v60  ;;  %v1713_v18 = vld [vmem:[#allocation2 + $0x118] sm:$0xff] }
 0x317   :  { %4930 = vtanh.f32 %v6996_v13  ;;  %v1609_v37 = vand.u32 2147483647, %v6858_v2  ;;  %v1643_v7 = vsel %vm1640_vm14, %v1642_v35, %v1638_v36  ;;  %v1627_v45 = vor.u32 1.1754944e-38, %v1626_v50  ;;  %vm1607_vm15 = vmor %vm1605_vm12, %vm1606_vm6  ;;  %v1714_v36 = vld [vmem:[#allocation2 + $0x120] sm:$0xff]  ;;  %v1715_v35 = vld [vmem:[#allocation2 + $0x128] sm:$0xff] }
 0x318   :  { %4932 = vtanh.f32 %v6994_v53  ;;  %v1682_v1 = vmul.f32 %v4929_v38, %v1643_v7  ;;  %vm1625_vm5 = vcmp.eq.f32.partialorder %v1624_v24, 8.507059e+37  ;;  %v1608_v28 = vsel %vm1607_vm15, %v6942_v59, %v1604_v33 }
 0x319   :  { %4934 = vtanh.f32 %v7002_v43  ;;  %v1628_v42 = vsel %vm1625_vm5, %v1627_v45, %v1623_v63  ;;  %v1612_v31 = vor.u32 1.1754944e-38, %v1611_v3  ;;  %vm1610_vm11 = vcmp.eq.f32.partialorder %v1609_v37, 8.507059e+37  ;;  %v1717_v63 = vld [vmem:[#allocation2 + $0x138] sm:$0xff] }
 0x31b   :  { %v1613_v2 = vsel %vm1610_vm11, %v1612_v31, %v1608_v28 }
 0x31d   :  { %v4931_v21 = vpop.eup %4930 }
 0x31e   :  { %v1683_v4 = vmul.f32 %v4931_v21, %v1658_v23  ;;  %v4933_v40 = vpop.eup %4932  ;;  %v1716_v21 = vld [vmem:[#allocation2 + $0x130] sm:$0xff] }
 0x31f   :  { %v4935_v12 = vpop.eup %4934  ;;  %v1681_v55 = vmul.f32 %v4933_v40, %v1628_v42 }
 0x320   :  { %1696 = vmatpush.msrb.mxu3 %v1683_v4  ;;  %1738 = vmatpush.msrb.mxu1 %v1683_v4  ;;  %v1680_v54 = vmul.f32 %v4935_v12, %v1613_v2 }
 0x322   :  { %1697 = vmatpush.msrb.mxu3 %v1682_v1  ;;  %1739 = vmatpush.msrb.mxu1 %v1682_v1 }
 0x324   :  { %1698 = vmatpush.msrb.mxu3 %v1681_v55  ;;  %1740 = vmatpush.msrb.mxu1 %v1681_v55 }
 0x326   :  { %1699 = vmatpush.msrb.mxu3 %v1680_v54  ;;  %1741 = vmatpush.msrb.mxu1 %v1680_v54 }
 0x327   :  { %4608 = vmatmul.msk.f32.vlgmr.msrb.gmra.mxu3 %vm912_vm2, %v6626_v57  ;;  %4610 = vmatmul.msk.f32.vlgmr.msrb.gmra.mxu1 %vm912_vm2, %v6633_v41  ;;  %v7075_v57 = vld [vmem:[%s9526_s2 + $0x40] sm:$0xff]  ;;  %v7082_v41 = vld [vmem:[%s9526_s2 + $0x48] sm:$0xff] }
 0x32f   :  { %4609 = vmatmul.msk.f32.gmra.mxu3 %vm912_vm2, %v6640_v32  ;;  %4611 = vmatmul.msk.f32.gmra.mxu1 %vm912_vm2, %v6647_v46  ;;  %v7089_v32 = vld [vmem:[%s9526_s2 + $0x50] sm:$0xff]  ;;  %v7096_v46 = vld [vmem:[%s9526_s2 + $0x58] sm:$0xff] }
 0x337   :  { %4612 = vmatmul.msk.f32.gmra.mxu1 %vm912_vm2, %v6654_v22  ;;  %v7103_v22 = vld [vmem:[%s9526_s2 + $0x60] sm:$0xff] }
 0x33f   :  { %4613 = vmatmul.msk.f32.gmra.mxu1 %vm912_vm2, %v6661_v17  ;;  %v7110_v17 = vld [vmem:[%s9526_s2 + $0x68] sm:$0xff] }
 0x347   :  { %4614 = vmatmul.msk.f32.gmra.mxu1 %vm912_vm2, %v6668_v15  ;;  %v7117_v15 = vld [vmem:[%s9526_s2 + $0x70] sm:$0xff] }
 0x34f   :  { %4615 = vmatmul.msk.f32.gmra.mxu1 %vm912_vm2, %v6675_v6  ;;  %v7124_v6 = vld [vmem:[%s9526_s2 + $0x78] sm:$0xff] }
 0x357   :  { %4616 = vmatmul.msk.f32.gmra.mxu1 %vm912_vm2, %v6682_v5 }
 0x35f   :  { %4617 = vmatmul.msk.f32.gmra.mxu1 %vm912_vm2, %v6689_v52 }
 0x367   :  { %4618 = vmatmul.msk.f32.gmra.mxu1 %vm912_vm2, %v7075_v57 }
 0x36f   :  { %4619 = vmatmul.msk.f32.gmra.mxu1 %vm912_vm2, %v7082_v41 }
 0x377   :  { %4620 = vmatmul.msk.f32.gmra.mxu1 %vm912_vm2, %v7089_v32 }
 0x37f   :  { %4621 = vmatmul.msk.f32.gmra.mxu1 %vm912_vm2, %v7096_v46 }
 0x387   :  { %4622 = vmatmul.msk.f32.gmra.mxu1 %vm912_vm2, %v7103_v22 }
 0x38f   :  { %4623 = vmatmul.msk.f32.gmra.mxu1 %vm912_vm2, %v7110_v17 }
 0x397   :  { %4624 = vmatmul.msk.f32.gmra.mxu1 %vm912_vm2, %v7117_v15 }
 0x39f   :  { %4625 = vmatmul.msk.f32.gmra.mxu1 %vm912_vm2, %v7124_v6 }
 0x3a4   :  { %v1743_v5 = vpop.f32.mrf.mxu1 }
 0x3a5   :  { %v1791_v29 = vadd.f32 %v1743_v5, %v1710_v51 }
 0x3a7   :  { %v4626_v39 = vmul.f32 -1.442695, %v1791_v29  ;;  %v1719_v29 = vld [vmem:[#allocation2 + $0x148] sm:$0xff] }
 0x3a9   :  { %4936 = vpow2.f32 %v4626_v39 }
 0x3aa   :  { %v1701_v52 = vpop.f32.mrf.mxu3 }
 0x3ab   :  { %v1702_v59 = vadd.f32 %v1701_v52, %v6709_v34 }
 0x3ac   :  { %v1746_v0 = vpop.f32.mrf.mxu1 }
 0x3ad   :  { %1708 = vst.msk [vmem:[#allocation3 + $0x10] sm:$0xff] %vm271_vm1, %v1702_v59  ;;  %v1792_v61 = vadd.f32 %v1746_v0, %v1711_v47 }
 0x3af   :  { %v4627_v49 = vmul.f32 -1.442695, %v1792_v61  ;;  %v4937_v14 = vpop.eup %4936 }
 0x3b0   :  { %v7134_v23 = vadd.f32 1.0, %v4937_v14 }
 0x3b1   :  { %4938 = vpow2.f32 %v4627_v49 }
 0x3b2   :  { %v1704_v19 = vpop.f32.mrf.mxu3  ;;  %vm1860_vm0 = vweird.f32 %v7134_v23 }
 0x3b3   :  { %v1705_v8 = vadd.f32 %v1704_v19, %v6713_v26 }
 0x3b4   :  { %v1749_v20 = vpop.f32.mrf.mxu1 }
 0x3b5   :  { %1709 = vst.msk [vmem:[#allocation3 + $0x18] sm:$0xff] %vm271_vm1, %v1705_v8  ;;  %v1793_v62 = vadd.f32 %v1749_v20, %v1712_v56  ;;  %v1721_v8 = vld [vmem:[#allocation2 + $0x158] sm:$0xff] }
 0x3b7   :  { %v4628_v25 = vmul.f32 -1.442695, %v1793_v62  ;;  %v4939_v50 = vpop.eup %4938 }
 0x3b8   :  { %v7136_v3 = vadd.f32 1.0, %v4939_v50 }
 0x3b9   :  { %4940 = vpow2.f32 %v4628_v25  ;;  %v1718_v25 = vld [vmem:[#allocation2 + $0x140] sm:$0xff] }
 0x3ba   :  { %vm1875_vm6 = vweird.f32 %v7136_v3 }
 0x3bc   :  { %v1752_v48 = vpop.f32.mrf.mxu1 }
 0x3bd   :  { %v1794_v60 = vadd.f32 %v1752_v48, %v1713_v18 }
 0x3bf   :  { %v4629_v38 = vmul.f32 -1.442695, %v1794_v60  ;;  %v4941_v24 = vpop.eup %4940 }
 0x3c0   :  { %v7138_v37 = vadd.f32 1.0, %v4941_v24 }
 0x3c1   :  { %4942 = vpow2.f32 %v4629_v38 }
 0x3c2   :  { %4944 = vrcp.f32 %v7134_v23  ;;  %vm1890_vm13 = vweird.f32 %v7138_v37 }
 0x3c3   :  { %4946 = vrcp.f32 %v7136_v3 }
 0x3c4   :  { %v1755_v44 = vpop.f32.mrf.mxu1  ;;  %4948 = vrcp.f32 %v7138_v37 }
 0x3c5   :  { %v1795_v33 = vadd.f32 %v1755_v44, %v1714_v36 }
 0x3c7   :  { %v4630_v7 = vmul.f32 -1.442695, %v1795_v33  ;;  %v4943_v42 = vpop.eup %4942 }
 0x3c8   :  { %v7143_v31 = vpop.eup %4944  ;;  %v7147_v2 = vadd.f32 1.0, %v4943_v42  ;;  %v1864_v42 = vand.u32 2147483647, %v7134_v23 }
 0x3c9   :  { %4950 = vpow2.f32 %v4630_v7  ;;  %v7145_v55 = vpop.eup %4946  ;;  %v1856_v48 = vmul.f32 %v7143_v31, %v7134_v23  ;;  %vm1861_vm4 = vweird.f32 %v7143_v31 }
 0x3ca   :  { %v7149_v54 = vpop.eup %4948  ;;  %v1871_v19 = vmul.f32 %v7145_v55, %v7136_v3  ;;  %vm1876_vm3 = vweird.f32 %v7145_v55  ;;  %vm7218_vm9 = vmor %vm1860_vm0, %vm1861_vm4  ;;  %vm1905_vm15 = vweird.f32 %v7147_v2 }
 0x3cb   :  { %v1886_v56 = vmul.f32 %v7149_v54, %v7138_v37  ;;  %v1857_v49 = vsub.f32 1.0, %v1856_v48  ;;  %vm7207_vm8 = vmor %vm1875_vm6, %vm1876_vm3  ;;  %vm1891_vm10 = vweird.f32 %v7149_v54 }
 0x3cc   :  { %v1758_v11 = vpop.f32.mrf.mxu1  ;;  %v1872_v61 = vsub.f32 1.0, %v1871_v19  ;;  %vm7250_vm14 = vmor %vm1890_vm13, %vm1891_vm10  ;;  %vm7310_vm10 = vcmp.eq.f32.partialorder %v1864_v42, 8.507059e+37  ;;  %v1725_v42 = vld [vmem:[#allocation2 + $0x178] sm:$0xff] }
 0x3cd   :  { %v1796_v4 = vadd.f32 %v1758_v11, %v1715_v35  ;;  %v1887_v36 = vsub.f32 1.0, %v1886_v56 }
 0x3ce   :  { %v1873_v24 = vmul.f32 %v7145_v55, %v1872_v61  ;;  %v1911_v61 = vand.u32 2147483648, %v7147_v2 }
 0x3cf   :  { %v4631_v1 = vmul.f32 -1.442695, %v1796_v4  ;;  %v4951_v5 = vpop.eup %4950  ;;  %v1879_v4 = vand.u32 2147483647, %v7136_v3 }
 0x3d0   :  { %v7156_v44 = vadd.f32 1.0, %v4951_v5  ;;  %v1874_v7 = vadd.f32 %v7145_v55, %v1873_v24 }
 0x3d1   :  { %vm7211_vm7 = vcmp.eq.f32.partialorder %v1879_v4, 8.507059e+37  ;;  %v1909_v4 = vand.u32 2147483647, %v7147_v2 }
 0x3d2   :  { %vm1920_vm11 = vweird.f32 %v7156_v44 }
 0x3d3   :  { %vm7316_vm13 = vcmp.eq.f32.partialorder %v1909_v4, 8.507059e+37 }
 0x3d4   :  { %v1761_v58 = vpop.f32.mrf.mxu1 }
 0x3d5   :  { %v1797_v10 = vadd.f32 %v1761_v58, %v1716_v21  ;;  %v1858_v21 = vmul.f32 %v7143_v31, %v1857_v49 }
 0x3d7   :  { %v4632_v45 = vmul.f32 -1.442695, %v1797_v10 }
 0x3d9   :  { %4952 = vpow2.f32 %v4632_v45  ;;  %v1888_v45 = vmul.f32 %v7149_v54, %v1887_v36 }
 0x3da   :  { %4954 = vpow2.f32 %v4631_v1 }
 0x3dc   :  { %v1764_v9 = vpop.f32.mrf.mxu1 }
 0x3dd   :  { %v1798_v40 = vadd.f32 %v1764_v9, %v1717_v63  ;;  %v1720_v9 = vld [vmem:[#allocation2 + $0x150] sm:$0xff]  ;;  %v1881_v63 = vand.u32 2147483648, %v7136_v3 }
 0x3df   :  { %v4633_v12 = vmul.f32 -1.442695, %v1798_v40  ;;  %v4953_v59 = vpop.eup %4952 }
 0x3e0   :  { %v4955_v0 = vpop.eup %4954  ;;  %v7158_v58 = vadd.f32 1.0, %v4953_v59 }
 0x3e1   :  { %4956 = vpow2.f32 %v4633_v12  ;;  %v7160_v51 = vadd.f32 1.0, %v4955_v0  ;;  %v7193_v12 = vadd.f32 %v7143_v31, %v1858_v21  ;;  %v1894_v0 = vand.u32 2147483647, %v7138_v37 }
 0x3e2   :  { %4958 = vrcp.f32 %v7147_v2 }
 0x3e3   :  { %4960 = vrcp.f32 %v7156_v44  ;;  %vm7242_vm12 = vcmp.eq.f32.partialorder %v1894_v0, 8.507059e+37  ;;  %vm1935_vm4 = vweird.f32 %v7160_v51 }
 0x3e4   :  { %v7132_v27 = vpop.f32.mrf.mxu1  ;;  %4962 = vrcp.f32 %v7158_v58 }
 0x3e5   :  { %v1799_v14 = vadd.f32 %v7132_v27, %v1718_v25  ;;  %4964 = vrcp.f32 %v7160_v51  ;;  %v1866_v27 = vand.u32 2147483648, %v7134_v23 }
 0x3e7   :  { %v4957_v20 = vpop.eup %4956  ;;  %v4634_v35 = vmul.f32 -1.442695, %v1799_v14 }
 0x3e8   :  { %v7164_v62 = vadd.f32 1.0, %v4957_v20  ;;  %v7167_v60 = vpop.eup %4958  ;;  %v1926_v20 = vand.u32 2147483648, %v7156_v44 }
 0x3e9   :  { %v1901_v33 = vmul.f32 %v7167_v60, %v7147_v2  ;;  %v7180_v10 = vpop.eup %4960  ;;  %vm1906_vm5 = vweird.f32 %v7167_v60 }
 0x3ea   :  { %4966 = vrcp.f32 %v7164_v62  ;;  %v7185_v40 = vpop.eup %4962  ;;  %vm1921_vm0 = vweird.f32 %v7180_v10  ;;  %vm7284_vm3 = vmor %vm1905_vm15, %vm1906_vm5 }
 0x3eb   :  { %v7190_v1 = vpop.eup %4964  ;;  %vm1951_vm6 = vweird.f32 %v7185_v40  ;;  %vm7338_vm15 = vmor %vm1920_vm11, %vm1921_vm0  ;;  %vm1965_vm11 = vweird.f32 %v7164_v62 }
 0x3ec   :  { %v1770_v30 = vpop.f32.mrf.mxu1 }
 0x3ed   :  { %v1800_v39 = vadd.f32 %v1770_v30, %v1719_v29  ;;  %v1878_v29 = vsel %vm7207_vm8, %v7145_v55, %v1874_v7  ;;  %vm1936_vm8 = vweird.f32 %v7190_v1 }
 0x3ee   :  { %vm7351_vm5 = vmor %vm1935_vm4, %vm1936_vm8 }
 0x3ef   :  { %v4635_v30 = vmul.f32 -1.442695, %v1800_v39  ;;  %v1931_v39 = vmul.f32 %v7190_v1, %v7160_v51 }
 0x3f0   :  { %v7197_v5 = vpop.eup %4966 }
 0x3f1   :  { %v1961_v14 = vmul.f32 %v7197_v5, %v7164_v62  ;;  %v1932_v7 = vsub.f32 1.0, %v1931_v39 }
 0x3f3   :  { %v1933_v39 = vmul.f32 %v7190_v1, %v1932_v7  ;;  %v1954_v7 = vand.u32 2147483647, %v7158_v58 }
 0x3f4   :  { %v1773_v28 = vpop.f32.mrf.mxu1 }
 0x3f5   :  { %v1801_v47 = vadd.f32 %v1773_v28, %v1720_v9  ;;  %v1902_v28 = vsub.f32 1.0, %v1901_v33  ;;  %v1896_v9 = vand.u32 2147483648, %v7138_v37  ;;  %v1941_v37 = vand.u32 2147483648, %v7160_v51 }
 0x3f6   :  { %vm1955_vm0 = vcmp.eq.f32.partialorder %v1954_v7, 8.507059e+37 }
 0x3f7   :  { %v4636_v38 = vmul.f32 -1.442695, %v1801_v47  ;;  %v1889_v47 = vadd.f32 %v7149_v54, %v1888_v45  ;;  %v1903_v25 = vmul.f32 %v7167_v60, %v1902_v28  ;;  %v1897_v33 = vor.u32 1.1754944e-38, %v1896_v9 }
 0x3f9   :  { %v7266_v28 = vadd.f32 %v7167_v60, %v1903_v25 }
 0x3fc   :  { %v1776_v52 = vpop.f32.mrf.mxu1 }
 0x3fd   :  { %v1802_v11 = vadd.f32 %v1776_v52, %v1721_v8  ;;  %v7199_v52 = vor.u32 1.1754944e-38, %v1866_v27  ;;  %v1946_v8 = vmul.f32 %v7185_v40, %v7158_v58  ;;  %v1893_v27 = vsel %vm7250_vm14, %v7149_v54, %v1889_v47  ;;  %v1723_v47 = vld [vmem:[#allocation2 + $0x168] sm:$0xff] }
 0x3fe   :  { %vm1966_vm14 = vweird.f32 %v7197_v5 }
 0x3ff   :  { %v4637_v18 = vmul.f32 -1.442695, %v1802_v11  ;;  %v1882_v11 = vor.u32 1.1754944e-38, %v1881_v63  ;;  %v7261_v63 = vor.u32 1.1754944e-38, %v1911_v61  ;;  %v1898_v61 = vsel %vm7242_vm12, %v1897_v33, %v1893_v27 }
 0x400   :  { %v1956_v33 = vand.u32 2147483648, %v7158_v58  ;;  %v1934_v27 = vadd.f32 %v7190_v1, %v1933_v39 }
 0x401   :  { %4968 = vpow2.f32 %v4637_v18  ;;  %v1916_v18 = vmul.f32 %v7180_v10, %v7156_v44  ;;  %v7248_v24 = vsel %vm7211_vm7, %v1882_v11, %v1878_v29  ;;  %v1924_v29 = vand.u32 2147483647, %v7156_v44 }
 0x402   :  { %4970 = vpow2.f32 %v4636_v38  ;;  %vm1950_vm7 = vweird.f32 %v7158_v58  ;;  %v9626_v44 = vsel %vm7284_vm3, %v7167_v60, %v7266_v28 }
 0x403   :  { %4972 = vpow2.f32 %v4635_v30  ;;  %v1947_v30 = vsub.f32 1.0, %v1946_v8  ;;  %v1917_v0 = vsub.f32 1.0, %v1916_v18  ;;  %v1724_v8 = vld [vmem:[#allocation2 + $0x170] sm:$0xff]  ;;  %vm7326_vm12 = vmor %vm1950_vm7, %vm1951_vm6  ;;  %vm1925_vm7 = vcmp.eq.f32.partialorder %v1924_v29, 8.507059e+37 }
 0x404   :  { %v7171_v50 = vpop.f32.mrf.mxu1  ;;  %4974 = vpow2.f32 %v4634_v35  ;;  %vm7364_vm6 = vmor %vm1965_vm11, %vm1966_vm14 }
 0x405   :  { %v1948_v48 = vmul.f32 %v7185_v40, %v1947_v30  ;;  %v1918_v18 = vmul.f32 %v7180_v10, %v1917_v0 }
 0x407   :  { %v4969_v19 = vpop.eup %4968  ;;  %v1949_v30 = vadd.f32 %v7185_v40, %v1948_v48 }
 0x408   :  { %v4971_v56 = vpop.eup %4970  ;;  %v7240_v38 = vadd.f32 1.0, %v4969_v19  ;;  %v1962_v19 = vsub.f32 1.0, %v1961_v14  ;;  %v1722_v14 = vld [vmem:[#allocation2 + $0x160] sm:$0xff] }
 0x409   :  { %v4973_v55 = vpop.eup %4972  ;;  %v7255_v35 = vadd.f32 1.0, %v4971_v56  ;;  %v1803_v36 = vadd.f32 %v7171_v50, %v1722_v14  ;;  %v1953_v39 = vsel %vm7326_vm12, %v7185_v40, %v1949_v30  ;;  %v1942_v14 = vor.u32 1.1754944e-38, %v1941_v37 }
 0x40a   :  { %v4975_v21 = vpop.eup %4974  ;;  %v7263_v45 = vadd.f32 1.0, %v4973_v55  ;;  %4976 = vrcp.f32 %v7240_v38  ;;  %v1963_v2 = vmul.f32 %v7197_v5, %v1962_v19  ;;  %v1957_v55 = vor.u32 1.1754944e-38, %v1956_v33 }
 0x40b   :  { %v7273_v11 = vadd.f32 1.0, %v4975_v21  ;;  %4978 = vrcp.f32 %v7255_v35  ;;  %v1939_v21 = vand.u32 2147483647, %v7160_v51  ;;  %v1938_v40 = vsel %vm7351_vm5, %v7190_v1, %v1934_v27 }
 0x40c   :  { %v1782_v59 = vpop.f32.mrf.mxu1  ;;  %4980 = vrcp.f32 %v7263_v45  ;;  %v1964_v58 = vadd.f32 %v7197_v5, %v1963_v2  ;;  %v1958_v37 = vsel %vm1955_vm0, %v1957_v55, %v1953_v39  ;;  %vm2025_vm3 = vweird.f32 %v7240_v38 }
 0x40d   :  { %v1804_v25 = vadd.f32 %v1782_v59, %v1723_v47  ;;  %vm1940_vm4 = vcmp.eq.f32.partialorder %v1939_v21, 8.507059e+37  ;;  %vm1995_vm11 = vweird.f32 %v7263_v45 }
 0x40e   :  { %v1968_v1 = vsel %vm7364_vm6, %v7197_v5, %v1964_v58  ;;  %v2041_v5 = vmul.f32 %v1958_v37, %v6988_v16  ;;  %v1913_v16 = vsel %vm7316_vm13, %v7261_v63, %v9626_v44  ;;  %v2001_v37 = vand.u32 2147483648, %v7263_v45  ;;  %v7470_v44 = vld [vmem:[%s9531_s4] sm:$0xff] }
 0x410   :  { %v7301_v59 = vpop.eup %4976 }
 0x411   :  { %v7320_v19 = vpop.eup %4978  ;;  %v2021_v47 = vmul.f32 %v7301_v59, %v7240_v38 }
 0x412   :  { %v7332_v4 = vpop.eup %4980  ;;  %v2006_v30 = vmul.f32 %v7320_v19, %v7255_v35 }
 0x413   :  { %v2022_v27 = vsub.f32 1.0, %v2021_v47  ;;  %vm1996_vm12 = vweird.f32 %v7332_v4 }
 0x414   :  { %v1785_v54 = vpop.f32.mrf.mxu1  ;;  %vm7454_vm6 = vmor %vm1995_vm11, %vm1996_vm12 }
 0x415   :  { %v1805_v9 = vadd.f32 %v1785_v54, %v1724_v8  ;;  %v1971_v8 = vand.u32 2147483648, %v7164_v62  ;;  %v1919_v54 = vadd.f32 %v7180_v10, %v1918_v18 }
 0x417   :  { %4982 = vtanh.f32 %v1805_v9  ;;  %v1972_v23 = vor.u32 1.1754944e-38, %v1971_v8  ;;  %v9625_v8 = vsel %vm7218_vm9, %v7143_v31, %v7193_v12  ;;  %v2023_v12 = vmul.f32 %v7301_v59, %v2022_v27 }
 0x418   :  { %4984 = vrcp.f32 %v7273_v11  ;;  %vm2026_vm9 = vweird.f32 %v7301_v59 }
 0x419   :  { %4986 = vtanh.f32 %v1804_v25  ;;  %vm7426_vm13 = vmor %vm2025_vm3, %vm2026_vm9 }
 0x41a   :  { %4988 = vtanh.f32 %v1803_v36  ;;  %v1969_v36 = vand.u32 2147483647, %v7164_v62  ;;  %v1923_v62 = vsel %vm7338_vm15, %v7180_v10, %v1919_v54  ;;  %vm2010_vm15 = vweird.f32 %v7255_v35 }
 0x41c   :  { %v1788_v48 = vpop.f32.mrf.mxu1  ;;  %vm1970_vm8 = vcmp.eq.f32.partialorder %v1969_v36, 8.507059e+37  ;;  %v2016_v36 = vand.u32 2147483648, %v7255_v35 }
 0x41d   :  { %v1806_v25 = vadd.f32 %v1788_v48, %v1725_v42  ;;  %v4983_v18 = vpop.eup %4982  ;;  %v1991_v42 = vmul.f32 %v7332_v4, %v7263_v45  ;;  %v1927_v48 = vor.u32 1.1754944e-38, %v1926_v20  ;;  %v1973_v21 = vsel %vm1970_vm8, %v1972_v23, %v1968_v1 }
 0x41e   :  { %v7357_v49 = vpop.eup %4984  ;;  %v2045_v7 = vmul.f32 %v4983_v18, %v1898_v61  ;;  %v2007_v61 = vsub.f32 1.0, %v2006_v30  ;;  %v1868_v20 = vsel %vm7310_vm10, %v7199_v52, %v9625_v8  ;;  %v2029_v18 = vand.u32 2147483647, %v7240_v38 }
 0x41f   :  { %4990 = vtanh.f32 %v1806_v25  ;;  %v4987_v33 = vpop.eup %4986  ;;  %v1943_v25 = vsel %vm1940_vm4, %v1942_v14, %v1938_v40  ;;  %v1976_v10 = vmul.f32 %v7357_v49, %v7273_v11  ;;  %v1928_v54 = vsel %vm1925_vm7, %v1927_v48, %v1923_v62  ;;  %v2087_v14 = vld [vmem:[#allocation2 + $0x190] sm:$0xff] }
 0x420   :  { %v4989_v55 = vpop.eup %4988  ;;  %v2044_v58 = vmul.f32 %v4987_v33, %v7248_v24  ;;  %v2040_v29 = vmul.f32 %v1943_v25, %v6994_v53  ;;  %v7403_v31 = vadd.f32 %v2045_v7, %v2041_v5  ;;  %v1992_v52 = vsub.f32 1.0, %v1991_v42 }
 0x421   :  { %v2043_v50 = vmul.f32 %v4989_v55, %v1868_v20  ;;  %v2042_v24 = vmul.f32 %v1973_v21, %v6996_v13  ;;  %v1977_v56 = vsub.f32 1.0, %v1976_v10  ;;  %v2008_v47 = vmul.f32 %v7320_v19, %v2007_v61 }
 0x422   :  { %v2039_v60 = vmul.f32 %v1928_v54, %v7002_v43  ;;  %v7409_v28 = vadd.f32 %v2044_v58, %v2040_v29  ;;  %v2024_v53 = vadd.f32 %v7301_v59, %v2023_v12  ;;  %4992 = vtanh.f32 %v7403_v31  ;;  %v7498_v29 = vld [vmem:[%s9526_s2 + $0x10] sm:$0xff]  ;;  %v7505_v12 = vld [vmem:[%s9526_s2 + $0x18] sm:$0xff] }
 0x423   :  { %v1993_v0 = vmul.f32 %v7332_v4, %v1992_v52  ;;  %v2031_v13 = vand.u32 2147483648, %v7240_v38  ;;  %v1978_v43 = vmul.f32 %v7357_v49, %v1977_v56  ;;  %v2009_v2 = vadd.f32 %v7320_v19, %v2008_v47  ;;  %v7512_v52 = vld [vmem:[%s9526_s2 + $0x20] sm:$0xff] }
 0x424   :  { %v7417_v39 = vadd.f32 %v2043_v50, %v2039_v60  ;;  %vm2011_vm10 = vweird.f32 %v7320_v19  ;;  %vm1981_vm14 = vweird.f32 %v7357_v49  ;;  %v2028_v38 = vsel %vm7426_vm13, %v7301_v59, %v2024_v53  ;;  %v7519_v50 = vld [vmem:[%s9526_s2 + $0x28] sm:$0xff] }
 0x425   :  { %v4991_v3 = vpop.eup %4990  ;;  %v2014_v40 = vand.u32 2147483647, %v7255_v35  ;;  %v1994_v51 = vadd.f32 %v7332_v4, %v1993_v0  ;;  %v2032_v30 = vor.u32 1.1754944e-38, %v2031_v13  ;;  %vm7440_vm5 = vmor %vm2010_vm15, %vm2011_vm10  ;;  %vm2030_vm0 = vcmp.eq.f32.partialorder %v2029_v18, 8.507059e+37  ;;  %v2085_v13 = vld [vmem:[#allocation2 + $0x180] sm:$0xff]  ;;  %v2086_v18 = vld [vmem:[#allocation2 + $0x188] sm:$0xff] }
 0x426   :  { %v2046_v9 = vmul.f32 %v4991_v3, %v1913_v16  ;;  %v2013_v59 = vsel %vm7440_vm5, %v7320_v19, %v2009_v2  ;;  %v1999_v35 = vand.u32 2147483647, %v7263_v45  ;;  %v1979_v33 = vadd.f32 %v7357_v49, %v1978_v43  ;;  %v7484_v16 = vld [vmem:[%s9526_s2] sm:$0xff]  ;;  %v7491_v3 = vld [vmem:[%s9526_s2 + $0x8] sm:$0xff] }
 0x427   :  { %v2033_v7 = vsel %vm2030_vm0, %v2032_v30, %v2028_v38  ;;  %v2017_v23 = vor.u32 1.1754944e-38, %v2016_v36  ;;  %vm1980_vm4 = vweird.f32 %v7273_v11  ;;  %v1986_v48 = vand.u32 2147483648, %v7273_v11  ;;  %v2088_v30 = vld [vmem:[#allocation2 + $0x198] sm:$0xff] }
 0x428   :  { %v7411_v63 = vadd.f32 %v2046_v9, %v2042_v24  ;;  %v4993_v1 = vpop.eup %4992  ;;  %vm2015_vm8 = vcmp.eq.f32.partialorder %v2014_v40, 8.507059e+37  ;;  %v1998_v45 = vsel %vm7454_vm6, %v7332_v4, %v1994_v51  ;;  %v1984_v19 = vand.u32 2147483647, %v7273_v11  ;;  %vm1982_vm7 = vmor %vm1980_vm4, %vm1981_vm14  ;;  %v7526_v24 = vld [vmem:[%s9526_s2 + $0x30] sm:$0xff]  ;;  %v7533_v9 = vld [vmem:[%s9526_s2 + $0x38] sm:$0xff] }
 0x429   :  { %v2018_v55 = vsel %vm2015_vm8, %v2017_v23, %v2013_v59  ;;  %v2002_v5 = vor.u32 1.1754944e-38, %v2001_v37  ;;  %vm2000_vm9 = vcmp.eq.f32.partialorder %v1999_v35, 8.507059e+37  ;;  %v1983_v61 = vsel %vm1982_vm7, %v7357_v49, %v1979_v33  ;;  %v7477_v49 = vld [vmem:[%s9531_s4 + $0x8] sm:$0xff]  ;;  %v2089_v33 = vld [vmem:[#allocation2 + $0x1a0] sm:$0xff]  ;;  %v2091_v23 = vld [vmem:[#allocation2 + $0x1b0] sm:$0xff] }
 0x42a   :  { %4994 = vtanh.f32 %v7411_v63  ;;  %v2057_v21 = vmul.f32 %v4993_v1, %v2018_v55  ;;  %v1987_v54 = vor.u32 1.1754944e-38, %v1986_v48  ;;  %vm1985_vm3 = vcmp.eq.f32.partialorder %v1984_v19, 8.507059e+37  ;;  %v2090_v48 = vld [vmem:[#allocation2 + $0x1a8] sm:$0xff] }
 0x42b   :  { %4996 = vtanh.f32 %v7409_v28  ;;  %v2003_v20 = vsel %vm2000_vm9, %v2002_v5, %v1998_v45 }
 0x42c   :  { %4998 = vtanh.f32 %v7417_v39  ;;  %v1988_v4 = vsel %vm1985_vm3, %v1987_v54, %v1983_v61 }
 0x430   :  { %v4995_v27 = vpop.eup %4994 }
 0x431   :  { %v2058_v25 = vmul.f32 %v4995_v27, %v2033_v7  ;;  %v4997_v10 = vpop.eup %4996 }
 0x432   :  { %v4999_v8 = vpop.eup %4998  ;;  %v2056_v58 = vmul.f32 %v4997_v10, %v2003_v20  ;;  %v2092_v10 = vld [vmem:[#allocation2 + $0x1b8] sm:$0xff] }
 0x433   :  { %2071 = vmatpush.msra.mxu3 %v2058_v25  ;;  %v2055_v11 = vmul.f32 %v4999_v8, %v1988_v4 }
 0x435   :  { %2072 = vmatpush.msra.mxu3 %v2057_v21 }
 0x437   :  { %2073 = vmatpush.msra.mxu3 %v2056_v58 }
 0x439   :  { %2074 = vmatpush.msra.mxu3 %v2055_v11 }
 0x43a   :  { %4638 = vmatmul.msk.f32.vlgmr.msra.gmra.mxu3 %vm912_vm2, %v7470_v44 }
 0x43b   :  { %2113 = vmatpush.msrb.mxu3 %v2058_v25 }
 0x43d   :  { %2114 = vmatpush.msrb.mxu3 %v2057_v21 }
 0x43f   :  { %2115 = vmatpush.msrb.mxu3 %v2056_v58 }
 0x441   :  { %2116 = vmatpush.msrb.mxu3 %v2055_v11 }
 0x442   :  { %4639 = vmatmul.msk.f32.gmra.mxu3 %vm912_vm2, %v7477_v49 }
 0x44a   :  { %4640 = vmatmul.msk.f32.vlgmr.msrb.gmra.mxu3 %vm912_vm2, %v7484_v16 }
 0x452   :  { %4641 = vmatmul.msk.f32.gmra.mxu3 %vm912_vm2, %v7491_v3 }
 0x45a   :  { %4642 = vmatmul.msk.f32.gmra.mxu3 %vm912_vm2, %v7498_v29 }
 0x462   :  { %4643 = vmatmul.msk.f32.gmra.mxu3 %vm912_vm2, %v7505_v12 }
 0x46a   :  { %4644 = vmatmul.msk.f32.gmra.mxu3 %vm912_vm2, %v7512_v52 }
 0x472   :  { %4645 = vmatmul.msk.f32.gmra.mxu3 %vm912_vm2, %v7519_v50 }
 0x47a   :  { %4646 = vmatmul.msk.f32.gmra.mxu3 %vm912_vm2, %v7526_v24 }
 0x482   :  { %4647 = vmatmul.msk.f32.gmra.mxu3 %vm912_vm2, %v7533_v9 }
 0x48a   :  { %4648 = vmatmul.msk.f32.gmra.mxu3 %vm912_vm2, %v7075_v57 }
 0x492   :  { %4649 = vmatmul.msk.f32.gmra.mxu3 %vm912_vm2, %v7082_v41 }
 0x49a   :  { %4650 = vmatmul.msk.f32.gmra.mxu3 %vm912_vm2, %v7089_v32 }
 0x4a2   :  { %4651 = vmatmul.msk.f32.gmra.mxu3 %vm912_vm2, %v7096_v46 }
 0x4aa   :  { %4652 = vmatmul.msk.f32.gmra.mxu3 %vm912_vm2, %v7103_v22 }
 0x4b2   :  { %4653 = vmatmul.msk.f32.gmra.mxu3 %vm912_vm2, %v7110_v17 }
 0x4ba   :  { %4654 = vmatmul.msk.f32.gmra.mxu3 %vm912_vm2, %v7117_v15 }
 0x4bd   :  { %v2076_v56 = vpop.f32.mrf.mxu3 }
 0x4be   :  { %v2077_v57 = vadd.f32 %v2076_v56, %v6709_v34 }
 0x4c0   :  { %2083 = vst.msk [vmem:[#allocation3 + $0x20] sm:$0xff] %vm271_vm1, %v2077_v57 }
 0x4c2   :  { %4655 = vmatmul.msk.f32.gmra.mxu3 %vm912_vm2, %v7124_v6 }
 0x4c5   :  { %v2079_v41 = vpop.f32.mrf.mxu3 }
 0x4c6   :  { %v2080_v32 = vadd.f32 %v2079_v41, %v6713_v26 }
 0x4c8   :  { %2084 = vst.msk [vmem:[#allocation3 + $0x28] sm:$0xff] %vm271_vm1, %v2080_v32 }
 0x4cd   :  { %v2118_v46 = vpop.f32.mrf.mxu3 }
 0x4ce   :  { %v2166_v43 = vadd.f32 %v2118_v46, %v2085_v13 }
 0x4d0   :  { %v4656_v6 = vmul.f32 -1.442695, %v2166_v43  ;;  %v2095_v43 = vld [vmem:[#allocation2 + $0x1d0] sm:$0xff] }
 0x4d2   :  { %5000 = vpow2.f32 %v4656_v6 }
 0x4d5   :  { %v2121_v22 = vpop.f32.mrf.mxu3 }
 0x4d6   :  { %v2167_v2 = vadd.f32 %v2121_v22, %v2086_v18 }
 0x4d8   :  { %v4657_v38 = vmul.f32 -1.442695, %v2167_v2  ;;  %v5001_v37 = vpop.eup %5000  ;;  %v2094_v2 = vld [vmem:[#allocation2 + $0x1c8] sm:$0xff] }
 0x4d9   :  { %v7559_v42 = vadd.f32 1.0, %v5001_v37 }
 0x4da   :  { %5002 = vpow2.f32 %v4657_v38 }
 0x4db   :  { %vm2235_vm10 = vweird.f32 %v7559_v42 }
 0x4dd   :  { %v2124_v47 = vpop.f32.mrf.mxu3 }
 0x4de   :  { %v2168_v36 = vadd.f32 %v2124_v47, %v2087_v14 }
 0x4e0   :  { %v4658_v40 = vmul.f32 -1.442695, %v2168_v36  ;;  %v5003_v59 = vpop.eup %5002 }
 0x4e1   :  { %v7561_v45 = vadd.f32 1.0, %v5003_v59 }
 0x4e2   :  { %5004 = vpow2.f32 %v4658_v40 }
 0x4e3   :  { %vm2250_vm14 = vweird.f32 %v7561_v45 }
 0x4e5   :  { %v2127_v17 = vpop.f32.mrf.mxu3 }
 0x4e6   :  { %v2169_v62 = vadd.f32 %v2127_v17, %v2088_v30  ;;  %v2096_v17 = vld [vmem:[#allocation2 + $0x1d8] sm:$0xff] }
 0x4e8   :  { %v4659_v35 = vmul.f32 -1.442695, %v2169_v62  ;;  %v5005_v27 = vpop.eup %5004  ;;  %v2093_v62 = vld [vmem:[#allocation2 + $0x1c0] sm:$0xff] }
 0x4e9   :  { %v7563_v55 = vadd.f32 1.0, %v5005_v27 }
 0x4ea   :  { %5006 = vpow2.f32 %v4659_v35 }
 0x4eb   :  { %5008 = vrcp.f32 %v7559_v42  ;;  %vm2265_vm6 = vweird.f32 %v7563_v55 }
 0x4ec   :  { %5010 = vrcp.f32 %v7561_v45 }
 0x4ed   :  { %v2130_v60 = vpop.f32.mrf.mxu3  ;;  %5012 = vrcp.f32 %v7563_v55 }
 0x4ee   :  { %v2170_v7 = vadd.f32 %v2130_v60, %v2089_v33 }
 0x4f0   :  { %v4660_v21 = vmul.f32 -1.442695, %v2170_v7  ;;  %v5007_v58 = vpop.eup %5006 }
 0x4f1   :  { %v7568_v4 = vpop.eup %5008  ;;  %v7572_v56 = vadd.f32 1.0, %v5007_v58 }
 0x4f2   :  { %5014 = vpow2.f32 %v4660_v21  ;;  %v7570_v11 = vpop.eup %5010  ;;  %v2256_v21 = vand.u32 2147483648, %v7561_v45  ;;  %vm2236_vm12 = vweird.f32 %v7568_v4 }
 0x4f3   :  { %v7574_v57 = vpop.eup %5012  ;;  %v2246_v47 = vmul.f32 %v7570_v11, %v7561_v45  ;;  %vm2251_vm13 = vweird.f32 %v7570_v11  ;;  %vm7643_vm11 = vmor %vm2235_vm10, %vm2236_vm12  ;;  %vm2280_vm7 = vweird.f32 %v7572_v56 }
 0x4f4   :  { %v2261_v6 = vmul.f32 %v7574_v57, %v7563_v55  ;;  %vm7632_vm15 = vmor %vm2250_vm14, %vm2251_vm13  ;;  %vm2266_vm0 = vweird.f32 %v7574_v57 }
 0x4f5   :  { %v2133_v53 = vpop.f32.mrf.mxu3  ;;  %v2247_v36 = vsub.f32 1.0, %v2246_v47  ;;  %vm7675_vm8 = vmor %vm2265_vm6, %vm2266_vm0 }
 0x4f6   :  { %v2171_v19 = vadd.f32 %v2133_v53, %v2090_v48  ;;  %v2231_v53 = vmul.f32 %v7568_v4, %v7559_v42  ;;  %v2262_v7 = vsub.f32 1.0, %v2261_v6 }
 0x4f8   :  { %v4661_v8 = vmul.f32 -1.442695, %v2171_v19  ;;  %v5015_v41 = vpop.eup %5014  ;;  %v2232_v30 = vsub.f32 1.0, %v2231_v53 }
 0x4fd   :  { %v2136_v15 = vpop.f32.mrf.mxu3 }
 0x4fe   :  { %v2172_v25 = vadd.f32 %v2136_v15, %v2091_v23  ;;  %v7581_v15 = vadd.f32 1.0, %v5015_v41  ;;  %v2248_v23 = vmul.f32 %v7570_v11, %v2247_v36 }
 0x500   :  { %v4662_v61 = vmul.f32 -1.442695, %v2172_v25  ;;  %v2233_v25 = vmul.f32 %v7568_v4, %v2232_v30  ;;  %vm2295_vm3 = vweird.f32 %v7581_v15 }
 0x502   :  { %5016 = vpow2.f32 %v4662_v61  ;;  %v7618_v41 = vadd.f32 %v7568_v4, %v2233_v25 }
 0x503   :  { %5018 = vpow2.f32 %v4661_v8  ;;  %v2249_v8 = vadd.f32 %v7570_v11, %v2248_v23 }
 0x505   :  { %v2139_v0 = vpop.f32.mrf.mxu3  ;;  %v2253_v36 = vsel %vm7632_vm15, %v7570_v11, %v2249_v8  ;;  %v2284_v8 = vand.u32 2147483647, %v7572_v56 }
 0x506   :  { %v2173_v5 = vadd.f32 %v2139_v0, %v2092_v10 }
 0x507   :  { %vm7741_vm6 = vcmp.eq.f32.partialorder %v2284_v8, 8.507059e+37 }
 0x508   :  { %v4663_v54 = vmul.f32 -1.442695, %v2173_v5  ;;  %v5017_v46 = vpop.eup %5016  ;;  %v2254_v5 = vand.u32 2147483647, %v7561_v45 }
 0x509   :  { %v5019_v22 = vpop.eup %5018  ;;  %v7583_v13 = vadd.f32 1.0, %v5017_v46 }
 0x50a   :  { %5020 = vpow2.f32 %v4663_v54  ;;  %v7585_v18 = vadd.f32 1.0, %v5019_v22  ;;  %vm7636_vm5 = vcmp.eq.f32.partialorder %v2254_v5, 8.507059e+37 }
 0x50b   :  { %5022 = vrcp.f32 %v7572_v56 }
 0x50c   :  { %5024 = vrcp.f32 %v7581_v15  ;;  %vm2310_vm12 = vweird.f32 %v7585_v18 }
 0x50d   :  { %v7557_v51 = vpop.f32.mrf.mxu3  ;;  %5026 = vrcp.f32 %v7583_v13 }
 0x50e   :  { %v2174_v35 = vadd.f32 %v7557_v51, %v2093_v62  ;;  %5028 = vrcp.f32 %v7585_v18  ;;  %v2241_v51 = vand.u32 2147483648, %v7559_v42 }
 0x510   :  { %v5021_v60 = vpop.eup %5020  ;;  %v4664_v19 = vmul.f32 -1.442695, %v2174_v35  ;;  %v7624_v22 = vor.u32 1.1754944e-38, %v2241_v51 }
 0x511   :  { %v7589_v38 = vadd.f32 1.0, %v5021_v60  ;;  %v7592_v59 = vpop.eup %5022 }
 0x512   :  { %v2276_v48 = vmul.f32 %v7592_v59, %v7572_v56  ;;  %v7605_v10 = vpop.eup %5024  ;;  %vm2281_vm9 = vweird.f32 %v7592_v59 }
 0x513   :  { %5030 = vrcp.f32 %v7589_v38  ;;  %v7610_v61 = vpop.eup %5026  ;;  %vm2296_vm10 = vweird.f32 %v7605_v10  ;;  %vm7709_vm13 = vmor %vm2280_vm7, %vm2281_vm9  ;;  %vm2340_vm9 = vweird.f32 %v7589_v38 }
 0x514   :  { %v7615_v54 = vpop.eup %5028  ;;  %v2277_v58 = vsub.f32 1.0, %v2276_v48  ;;  %v2321_v53 = vmul.f32 %v7610_v61, %v7583_v13  ;;  %vm2326_vm14 = vweird.f32 %v7610_v61  ;;  %vm7765_vm7 = vmor %vm2295_vm3, %vm2296_vm10 }
 0x515   :  { %v2145_v1 = vpop.f32.mrf.mxu3  ;;  %v2306_v62 = vmul.f32 %v7615_v54, %v7585_v18  ;;  %vm2311_vm15 = vweird.f32 %v7615_v54 }
 0x516   :  { %v2175_v40 = vadd.f32 %v2145_v1, %v2094_v2  ;;  %v2257_v2 = vor.u32 1.1754944e-38, %v2256_v21  ;;  %v2278_v35 = vmul.f32 %v7592_v59, %v2277_v58  ;;  %v2322_v48 = vsub.f32 1.0, %v2321_v53 }
 0x517   :  { %v2307_v58 = vsub.f32 1.0, %v2306_v62 }
 0x518   :  { %v4665_v1 = vmul.f32 -1.442695, %v2175_v40  ;;  %v2286_v40 = vand.u32 2147483648, %v7572_v56  ;;  %v7673_v25 = vsel %vm7636_vm5, %v2257_v2, %v2253_v36  ;;  %v2301_v2 = vand.u32 2147483648, %v7581_v15 }
 0x519   :  { %v7622_v46 = vpop.eup %5030  ;;  %vm2325_vm5 = vweird.f32 %v7583_v13 }
 0x51d   :  { %v2148_v20 = vpop.f32.mrf.mxu3 }
 0x51e   :  { %v2176_v14 = vadd.f32 %v2148_v20, %v2095_v43  ;;  %v2263_v20 = vmul.f32 %v7574_v57, %v2262_v7  ;;  %v2336_v7 = vmul.f32 %v7622_v46, %v7589_v38  ;;  %v2099_v43 = vld [vmem:[#allocation2 + $0x1f0] sm:$0xff] }
 0x520   :  { %v4666_v27 = vmul.f32 -1.442695, %v2176_v14  ;;  %v2271_v14 = vand.u32 2147483648, %v7563_v55  ;;  %v2264_v6 = vadd.f32 %v7574_v57, %v2263_v20  ;;  %v7686_v20 = vor.u32 1.1754944e-38, %v2286_v40 }
 0x522   :  { %v2268_v21 = vsel %vm7675_vm8, %v7574_v57, %v2264_v6  ;;  %vm2341_vm8 = vweird.f32 %v7622_v46 }
 0x525   :  { %v2151_v32 = vpop.f32.mrf.mxu3 }
 0x526   :  { %v2177_v0 = vadd.f32 %v2151_v32, %v2096_v17  ;;  %v2239_v32 = vand.u32 2147483647, %v7559_v42  ;;  %v2269_v17 = vand.u32 2147483647, %v7563_v55  ;;  %v2344_v42 = vand.u32 2147483647, %v7589_v38 }
 0x528   :  { %v4667_v37 = vmul.f32 -1.442695, %v2177_v0  ;;  %vm7667_vm4 = vcmp.eq.f32.partialorder %v2269_v17, 8.507059e+37  ;;  %v2337_v0 = vsub.f32 1.0, %v2336_v7  ;;  %vm7735_vm0 = vcmp.eq.f32.partialorder %v2239_v32, 8.507059e+37  ;;  %v2100_v32 = vld [vmem:[#allocation2 + $0x1f8] sm:$0xff] }
 0x52a   :  { %5032 = vpow2.f32 %v4667_v37  ;;  %v2338_v56 = vmul.f32 %v7622_v46, %v2337_v0  ;;  %v2329_v0 = vand.u32 2147483647, %v7583_v13 }
 0x52b   :  { %5034 = vpow2.f32 %v4666_v27  ;;  %v2291_v27 = vmul.f32 %v7605_v10, %v7581_v15 }
 0x52c   :  { %5036 = vpow2.f32 %v4665_v1  ;;  %vm2330_vm10 = vcmp.eq.f32.partialorder %v2329_v0, 8.507059e+37 }
 0x52d   :  { %v7596_v33 = vpop.f32.mrf.mxu3  ;;  %5038 = vpow2.f32 %v4664_v19  ;;  %v2272_v19 = vor.u32 1.1754944e-38, %v2271_v14  ;;  %v2292_v53 = vsub.f32 1.0, %v2291_v27  ;;  %v2323_v14 = vmul.f32 %v7610_v61, %v2322_v48  ;;  %v2097_v48 = vld [vmem:[#allocation2 + $0x1e0] sm:$0xff] }
 0x52e   :  { %v2178_v55 = vadd.f32 %v7596_v33, %v2097_v48 }
 0x52f   :  { %v2273_v62 = vsel %vm7667_vm4, %v2272_v19, %v2268_v21  ;;  %v2293_v23 = vmul.f32 %v7605_v10, %v2292_v53  ;;  %v2324_v19 = vadd.f32 %v7610_v61, %v2323_v14  ;;  %v2331_v21 = vand.u32 2147483648, %v7583_v13  ;;  %vm7751_vm4 = vmor %vm2325_vm5, %vm2326_vm14 }
 0x530   :  { %v5033_v60 = vpop.eup %5032  ;;  %v2346_v14 = vand.u32 2147483648, %v7589_v38  ;;  %v2339_v13 = vadd.f32 %v7622_v46, %v2338_v56  ;;  %vm7777_vm14 = vmor %vm2310_vm12, %vm2311_vm15  ;;  %vm2345_vm15 = vcmp.eq.f32.partialorder %v2344_v42, 8.507059e+37 }
 0x531   :  { %v5035_v30 = vpop.eup %5034  ;;  %v7665_v1 = vadd.f32 1.0, %v5033_v60  ;;  %v7691_v60 = vadd.f32 %v7592_v59, %v2278_v35  ;;  %vm7795_vm12 = vmor %vm2340_vm9, %vm2341_vm8 }
 0x532   :  { %v5037_v11 = vpop.eup %5036  ;;  %v7680_v5 = vadd.f32 1.0, %v5035_v30  ;;  %v2098_v30 = vld [vmem:[#allocation2 + $0x1e8] sm:$0xff]  ;;  %v2347_v40 = vor.u32 1.1754944e-38, %v2346_v14 }
 0x533   :  { %v5039_v51 = vpop.eup %5038  ;;  %v7688_v17 = vadd.f32 1.0, %v5037_v11  ;;  %5040 = vrcp.f32 %v7665_v1  ;;  %v2308_v11 = vmul.f32 %v7615_v54, %v2307_v58  ;;  %v2314_v58 = vand.u32 2147483647, %v7585_v18 }
 0x534   :  { %v7698_v36 = vadd.f32 1.0, %v5039_v51  ;;  %5042 = vrcp.f32 %v7680_v5  ;;  %v2316_v51 = vand.u32 2147483648, %v7585_v18  ;;  %v2404_v42 = vand.u32 2147483647, %v7665_v1 }
 0x535   :  { %v2157_v47 = vpop.f32.mrf.mxu3  ;;  %5044 = vrcp.f32 %v7688_v17  ;;  %v2309_v53 = vadd.f32 %v7615_v54, %v2308_v11  ;;  %vm7781_vm3 = vcmp.eq.f32.partialorder %v2314_v58, 8.507059e+37  ;;  %v2391_v58 = vand.u32 2147483648, %v7680_v5 }
 0x536   :  { %v2179_v27 = vadd.f32 %v2157_v47, %v2098_v30 }
 0x537   :  { %v2313_v18 = vsel %vm7777_vm14, %v7615_v54, %v2309_v53  ;;  %vm2370_vm14 = vweird.f32 %v7688_v17 }
 0x539   :  { %v7726_v47 = vpop.eup %5040 }
 0x53a   :  { %v2396_v11 = vmul.f32 %v7726_v47, %v7665_v1 }
 0x53c   :  { %v2397_v53 = vsub.f32 1.0, %v2396_v11 }
 0x53d   :  { %v2160_v57 = vpop.f32.mrf.mxu3 }
 0x53e   :  { %v2180_v6 = vadd.f32 %v2160_v57, %v2099_v43  ;;  %v7745_v57 = vpop.eup %5042 }
 0x53f   :  { %v7757_v8 = vpop.eup %5044 }
 0x540   :  { %5046 = vtanh.f32 %v2180_v6  ;;  %v2294_v6 = vadd.f32 %v7605_v10, %v2293_v23  ;;  %v2328_v23 = vsel %vm7751_vm4, %v7610_v61, %v2324_v19  ;;  %v2381_v19 = vmul.f32 %v7745_v57, %v7680_v5 }
 0x541   :  { %5048 = vrcp.f32 %v7698_v36  ;;  %v2366_v54 = vmul.f32 %v7757_v8, %v7688_v17  ;;  %vm2371_vm4 = vweird.f32 %v7757_v8 }
 0x542   :  { %5050 = vtanh.f32 %v2179_v27  ;;  %v2298_v38 = vsel %vm7765_vm7, %v7605_v10, %v2294_v6  ;;  %v2382_v11 = vsub.f32 1.0, %v2381_v19  ;;  %vm2385_vm7 = vweird.f32 %v7680_v5 }
 0x543   :  { %5052 = vtanh.f32 %v2178_v55  ;;  %v2332_v55 = vor.u32 1.1754944e-38, %v2331_v21  ;;  %v2317_v21 = vor.u32 1.1754944e-38, %v2316_v51 }
 0x545   :  { %v2163_v30 = vpop.f32.mrf.mxu3  ;;  %v2318_v27 = vsel %vm7781_vm3, %v2317_v21, %v2313_v18  ;;  %vm2405_vm3 = vcmp.eq.f32.partialorder %v2404_v42, 8.507059e+37 }
 0x546   :  { %v2181_v56 = vadd.f32 %v2163_v30, %v2100_v32  ;;  %v5047_v48 = vpop.eup %5046  ;;  %v2333_v32 = vsel %vm2330_vm10, %v2332_v55, %v2328_v23  ;;  %v2343_v30 = vsel %vm7795_vm12, %v7622_v46, %v2339_v13  ;;  %v9659_v46 = vand.u32 2147483647, %v7581_v15  ;;  %vm7885_vm10 = vmor %vm2370_vm14, %vm2371_vm4 }
 0x547   :  { %v7786_v61 = vpop.eup %5048  ;;  %v2420_v0 = vmul.f32 %v5047_v48, %v2273_v62  ;;  %v2416_v6 = vmul.f32 %v2333_v32, %v7403_v31  ;;  %v2348_v13 = vsel %vm2345_vm15, %v2347_v40, %v2343_v30  ;;  %v9661_v15 = vsel %vm7709_vm13, %v7592_v59, %v7691_v60  ;;  %v2462_v30 = vld [vmem:[#allocation2 + $0x210] sm:$0xff] }
 0x548   :  { %5054 = vtanh.f32 %v2181_v56  ;;  %v5051_v7 = vpop.eup %5050  ;;  %v2302_v56 = vor.u32 1.1754944e-38, %v2301_v2  ;;  %v2351_v10 = vmul.f32 %v7786_v61, %v7698_v36  ;;  %vm2300_vm5 = vcmp.eq.f32.partialorder %v9659_v46, 8.507059e+37 }
 0x549   :  { %v5053_v51 = vpop.eup %5052  ;;  %v9660_v2 = vsel %vm7643_vm11, %v7568_v4, %v7618_v41  ;;  %v2419_v14 = vmul.f32 %v5051_v7, %v7673_v25  ;;  %v2288_v31 = vsel %vm7741_vm6, %v7686_v20, %v9661_v15  ;;  %v2415_v40 = vmul.f32 %v2318_v27, %v7409_v28 }
 0x54a   :  { %v2243_v37 = vsel %vm7735_vm0, %v7624_v22, %v9660_v2  ;;  %v2303_v62 = vsel %vm2300_vm5, %v2302_v56, %v2298_v38  ;;  %v7834_v4 = vadd.f32 %v2420_v0, %v2416_v6  ;;  %v2398_v41 = vmul.f32 %v7726_v47, %v2397_v53 }
 0x54b   :  { %v2367_v22 = vsub.f32 1.0, %v2366_v54  ;;  %v2418_v33 = vmul.f32 %v5053_v51, %v2243_v37  ;;  %v2417_v25 = vmul.f32 %v2348_v13, %v7411_v63  ;;  %v2352_v35 = vsub.f32 1.0, %v2351_v10 }
 0x54c   :  { %v2383_v48 = vmul.f32 %v7745_v57, %v2382_v11  ;;  %v2414_v59 = vmul.f32 %v2303_v62, %v7417_v39  ;;  %v7840_v60 = vadd.f32 %v2419_v14, %v2415_v40  ;;  %v2399_v28 = vadd.f32 %v7726_v47, %v2398_v41 }
 0x54d   :  { %vm2401_vm11 = vweird.f32 %v7726_v47  ;;  %5056 = vtanh.f32 %v7834_v4  ;;  %v2368_v43 = vmul.f32 %v7757_v8, %v2367_v22  ;;  %v2406_v63 = vand.u32 2147483648, %v7665_v1 }
 0x54e   :  { %v5055_v45 = vpop.eup %5054  ;;  %v7848_v55 = vadd.f32 %v2418_v33, %v2414_v59  ;;  %v2353_v39 = vmul.f32 %v7786_v61, %v2352_v35  ;;  %vm2400_vm13 = vweird.f32 %v7665_v1  ;;  %v2384_v19 = vadd.f32 %v7745_v57, %v2383_v48  ;;  %v2460_v48 = vld [vmem:[#allocation2 + $0x200] sm:$0xff] }
 0x54f   :  { %v2421_v23 = vmul.f32 %v5055_v45, %v2288_v31  ;;  %vm2386_vm0 = vweird.f32 %v7745_v57  ;;  %vm7857_vm6 = vmor %vm2400_vm13, %vm2401_vm11  ;;  %vm2356_vm8 = vweird.f32 %v7786_v61  ;;  %v2389_v38 = vand.u32 2147483647, %v7680_v5 }
 0x550   :  { %v2403_v1 = vsel %vm7857_vm6, %v7726_v47, %v2399_v28  ;;  %v2369_v21 = vadd.f32 %v7757_v8, %v2368_v43  ;;  %v2407_v32 = vor.u32 1.1754944e-38, %v2406_v63  ;;  %vm7871_vm9 = vmor %vm2385_vm7, %vm2386_vm0  ;;  %v2376_v7 = vand.u32 2147483648, %v7688_v17  ;;  %v2464_v28 = vld [vmem:[#allocation2 + $0x220] sm:$0xff] }
 0x551   :  { %v7842_v20 = vadd.f32 %v2421_v23, %v2417_v25  ;;  %v2388_v47 = vsel %vm7871_vm9, %v7745_v57, %v2384_v19  ;;  %v2374_v5 = vand.u32 2147483647, %v7688_v17  ;;  %v2354_v53 = vadd.f32 %v7786_v61, %v2353_v39  ;;  %v2461_v19 = vld [vmem:[#allocation2 + $0x208] sm:$0xff] }
 0x552   :  { %v2408_v56 = vsel %vm2405_vm3, %v2407_v32, %v2403_v1  ;;  %v2392_v27 = vor.u32 1.1754944e-38, %v2391_v58  ;;  %vm2355_vm12 = vweird.f32 %v7698_v36  ;;  %v2361_v51 = vand.u32 2147483648, %v7698_v36 }
 0x553   :  { %5058 = vtanh.f32 %v7842_v20  ;;  %v5057_v54 = vpop.eup %5056  ;;  %vm2390_vm15 = vcmp.eq.f32.partialorder %v2389_v38, 8.507059e+37  ;;  %v2373_v17 = vsel %vm7885_vm10, %v7757_v8, %v2369_v21  ;;  %v2359_v57 = vand.u32 2147483647, %v7698_v36  ;;  %vm2357_vm5 = vmor %vm2355_vm12, %vm2356_vm8 }
 0x554   :  { %5060 = vtanh.f32 %v7840_v60  ;;  %v2393_v13 = vsel %vm2390_vm15, %v2392_v27, %v2388_v47  ;;  %v2377_v11 = vor.u32 1.1754944e-38, %v2376_v7  ;;  %vm2375_vm11 = vcmp.eq.f32.partialorder %v2374_v5, 8.507059e+37  ;;  %v2463_v47 = vld [vmem:[#allocation2 + $0x218] sm:$0xff]  ;;  %v2466_v27 = vld [vmem:[#allocation2 + $0x230] sm:$0xff] }
 0x555   :  { %5062 = vtanh.f32 %v7848_v55  ;;  %v2432_v2 = vmul.f32 %v5057_v54, %v2393_v13  ;;  %v2358_v37 = vsel %vm2357_vm5, %v7786_v61, %v2354_v53  ;;  %v2362_v15 = vor.u32 1.1754944e-38, %v2361_v51 }
 0x556   :  { %v2378_v14 = vsel %vm2375_vm11, %v2377_v11, %v2373_v17  ;;  %vm2360_vm13 = vcmp.eq.f32.partialorder %v2359_v57, 8.507059e+37 }
 0x557   :  { %v2363_v36 = vsel %vm2360_vm13, %v2362_v15, %v2358_v37 }
 0x559   :  { %v5059_v0 = vpop.eup %5058 }
 0x55a   :  { %v2433_v46 = vmul.f32 %v5059_v0, %v2408_v56  ;;  %v5061_v6 = vpop.eup %5060  ;;  %v2465_v0 = vld [vmem:[#allocation2 + $0x228] sm:$0xff] }
 0x55b   :  { %v5063_v62 = vpop.eup %5062  ;;  %v2431_v8 = vmul.f32 %v5061_v6, %v2378_v14 }
 0x55c   :  { %2446 = vmatpush.msrb.mxu0 %v2433_v46  ;;  %2488 = vmatpush.msra.mxu2 %v2433_v46  ;;  %v2430_v31 = vmul.f32 %v5063_v62, %v2363_v36  ;;  %v2467_v46 = vld [vmem:[#allocation2 + $0x238] sm:$0xff] }
 0x55e   :  { %2447 = vmatpush.msrb.mxu0 %v2432_v2  ;;  %2489 = vmatpush.msra.mxu2 %v2432_v2 }
 0x560   :  { %2448 = vmatpush.msrb.mxu0 %v2431_v8  ;;  %2490 = vmatpush.msra.mxu2 %v2431_v8 }
 0x562   :  { %2449 = vmatpush.msrb.mxu0 %v2430_v31  ;;  %2491 = vmatpush.msra.mxu2 %v2430_v31 }
 0x563   :  { %4668 = vmatmul.msk.f32.vlgmr.msrb.gmra.mxu0 %vm912_vm2, %v7470_v44  ;;  %4670 = vmatmul.msk.f32.vlgmr.msra.gmra.mxu2 %vm912_vm2, %v7484_v16  ;;  %v7921_v44 = vld [vmem:[%s9526_s2 + $0x40] sm:$0xff]  ;;  %v7935_v16 = vld [vmem:[%s9526_s2 + $0x50] sm:$0xff] }
 0x56b   :  { %4669 = vmatmul.msk.f32.gmra.mxu0 %vm912_vm2, %v7477_v49  ;;  %4671 = vmatmul.msk.f32.gmra.mxu2 %vm912_vm2, %v7491_v3  ;;  %v7928_v49 = vld [vmem:[%s9526_s2 + $0x48] sm:$0xff]  ;;  %v7942_v3 = vld [vmem:[%s9526_s2 + $0x58] sm:$0xff] }
 0x573   :  { %4672 = vmatmul.msk.f32.gmra.mxu2 %vm912_vm2, %v7498_v29  ;;  %v7949_v29 = vld [vmem:[%s9526_s2 + $0x60] sm:$0xff] }
 0x57b   :  { %4673 = vmatmul.msk.f32.gmra.mxu2 %vm912_vm2, %v7505_v12  ;;  %v7956_v12 = vld [vmem:[%s9526_s2 + $0x68] sm:$0xff] }
 0x583   :  { %4674 = vmatmul.msk.f32.gmra.mxu2 %vm912_vm2, %v7512_v52  ;;  %v7963_v52 = vld [vmem:[%s9526_s2 + $0x70] sm:$0xff] }
 0x58b   :  { %4675 = vmatmul.msk.f32.gmra.mxu2 %vm912_vm2, %v7519_v50  ;;  %v7970_v50 = vld [vmem:[%s9526_s2 + $0x78] sm:$0xff] }
 0x593   :  { %4676 = vmatmul.msk.f32.gmra.mxu2 %vm912_vm2, %v7526_v24 }
 0x59b   :  { %4677 = vmatmul.msk.f32.gmra.mxu2 %vm912_vm2, %v7533_v9 }
 0x5a3   :  { %4678 = vmatmul.msk.f32.gmra.mxu2 %vm912_vm2, %v7921_v44 }
 0x5ab   :  { %4679 = vmatmul.msk.f32.gmra.mxu2 %vm912_vm2, %v7928_v49 }
 0x5b3   :  { %4680 = vmatmul.msk.f32.gmra.mxu2 %vm912_vm2, %v7935_v16 }
 0x5bb   :  { %4681 = vmatmul.msk.f32.gmra.mxu2 %vm912_vm2, %v7942_v3 }
 0x5c3   :  { %4682 = vmatmul.msk.f32.gmra.mxu2 %vm912_vm2, %v7949_v29 }
 0x5cb   :  { %4683 = vmatmul.msk.f32.gmra.mxu2 %vm912_vm2, %v7956_v12 }
 0x5d3   :  { %4684 = vmatmul.msk.f32.gmra.mxu2 %vm912_vm2, %v7963_v52 }
 0x5db   :  { %4685 = vmatmul.msk.f32.gmra.mxu2 %vm912_vm2, %v7970_v50 }
 0x5e0   :  { %v2451_v24 = vpop.f32.mrf.mxu0 }
 0x5e1   :  { %v2452_v9 = vadd.f32 %v2451_v24, %v6709_v34 }
 0x5e3   :  { %2458 = vst.msk [vmem:[#allocation3 + $0x30] sm:$0xff] %vm271_vm1, %v2452_v9 }
 0x5e6   :  { %v2493_v61 = vpop.f32.mrf.mxu2 }
 0x5e7   :  { %v2541_v59 = vadd.f32 %v2493_v61, %v2460_v48 }
 0x5e8   :  { %v2454_v45 = vpop.f32.mrf.mxu0 }
 0x5e9   :  { %v2455_v40 = vadd.f32 %v2454_v45, %v6713_v26  ;;  %v4686_v39 = vmul.f32 -1.442695, %v2541_v59 }
 0x5eb   :  { %2459 = vst.msk [vmem:[#allocation3 + $0x38] sm:$0xff] %vm271_vm1, %v2455_v40  ;;  %5064 = vpow2.f32 %v4686_v39  ;;  %v2470_v39 = vld [vmem:[#allocation2 + $0x250] sm:$0xff] }
 0x5ee   :  { %v2496_v41 = vpop.f32.mrf.mxu2 }
 0x5ef   :  { %v2542_v58 = vadd.f32 %v2496_v41, %v2461_v19  ;;  %v2469_v19 = vld [vmem:[#allocation2 + $0x248] sm:$0xff] }
 0x5f1   :  { %v5065_v1 = vpop.eup %5064  ;;  %v4687_v21 = vmul.f32 -1.442695, %v2542_v58 }
 0x5f2   :  { %v7980_v32 = vadd.f32 1.0, %v5065_v1 }
 0x5f4   :  { %vm2610_vm7 = vweird.f32 %v7980_v32 }
 0x5f6   :  { %v2499_v22 = vpop.f32.mrf.mxu2 }
 0x5f7   :  { %v2543_v7 = vadd.f32 %v2499_v22, %v2462_v30  ;;  %v2468_v30 = vld [vmem:[#allocation2 + $0x240] sm:$0xff] }
 0x5f9   :  { %v4688_v10 = vmul.f32 -1.442695, %v2543_v7 }
 0x5fe   :  { %v2502_v33 = vpop.f32.mrf.mxu2 }
 0x5ff   :  { %v2544_v53 = vadd.f32 %v2502_v33, %v2463_v47  ;;  %v2471_v33 = vld [vmem:[#allocation2 + $0x258] sm:$0xff] }
 0x601   :  { %v4689_v57 = vmul.f32 -1.442695, %v2544_v53  ;;  %v2472_v53 = vld [vmem:[#allocation2 + $0x260] sm:$0xff] }
 0x606   :  { %v2505_v25 = vpop.f32.mrf.mxu2 }
 0x607   :  { %v2545_v43 = vadd.f32 %v2505_v25, %v2464_v28 }
 0x609   :  { %v4690_v42 = vmul.f32 -1.442695, %v2545_v43 }
 0x60b   :  { %5066 = vpow2.f32 %v4690_v42 }
 0x60c   :  { %5068 = vpow2.f32 %v4687_v21 }
 0x60d   :  { %5070 = vrcp.f32 %v7980_v32 }
 0x60e   :  { %v2508_v23 = vpop.f32.mrf.mxu2 }
 0x60f   :  { %v2546_v56 = vadd.f32 %v2508_v23, %v2465_v0 }
 0x611   :  { %v5067_v38 = vpop.eup %5066  ;;  %v4691_v6 = vmul.f32 -1.442695, %v2546_v56 }
 0x612   :  { %v7982_v54 = vadd.f32 1.0, %v5067_v38  ;;  %v5069_v13 = vpop.eup %5068 }
 0x613   :  { %v7986_v2 = vpop.eup %5070  ;;  %v7990_v15 = vadd.f32 1.0, %v5069_v13 }
 0x614   :  { %5072 = vrcp.f32 %v7982_v54  ;;  %v2606_v8 = vmul.f32 %v7986_v2, %v7980_v32  ;;  %vm2611_vm0 = vweird.f32 %v7986_v2  ;;  %v2676_v56 = vand.u32 2147483648, %v7982_v54 }
 0x615   :  { %5074 = vpow2.f32 %v4688_v10  ;;  %vm2670_vm4 = vweird.f32 %v7982_v54  ;;  %vm8048_vm9 = vmor %vm2610_vm7, %vm2611_vm0  ;;  %vm2625_vm10 = vweird.f32 %v7990_v15 }
 0x616   :  { %v2511_v35 = vpop.f32.mrf.mxu2  ;;  %5076 = vpow2.f32 %v4689_v57  ;;  %v2607_v9 = vsub.f32 1.0, %v2606_v8 }
 0x617   :  { %v2547_v51 = vadd.f32 %v2511_v35, %v2466_v27  ;;  %5078 = vpow2.f32 %v4691_v6  ;;  %v2616_v6 = vand.u32 2147483648, %v7980_v32 }
 0x618   :  { %v2608_v59 = vmul.f32 %v7986_v2, %v2607_v9 }
 0x619   :  { %v4692_v11 = vmul.f32 -1.442695, %v2547_v51  ;;  %v2617_v9 = vor.u32 1.1754944e-38, %v2616_v6 }
 0x61a   :  { %v7988_v14 = vpop.eup %5072  ;;  %v2609_v7 = vadd.f32 %v7986_v2, %v2608_v59 }
 0x61b   :  { %5080 = vpow2.f32 %v4692_v11  ;;  %v2666_v36 = vmul.f32 %v7988_v14, %v7982_v54  ;;  %v5075_v31 = vpop.eup %5074  ;;  %vm2671_vm6 = vweird.f32 %v7988_v14 }
 0x61c   :  { %v5077_v24 = vpop.eup %5076  ;;  %v7997_v45 = vadd.f32 1.0, %v5075_v31  ;;  %vm8030_vm8 = vmor %vm2670_vm4, %vm2671_vm6 }
 0x61d   :  { %v5079_v61 = vpop.eup %5078  ;;  %v2667_v40 = vsub.f32 1.0, %v2666_v36  ;;  %v7999_v23 = vadd.f32 1.0, %v5077_v24  ;;  %v2677_v36 = vor.u32 1.1754944e-38, %v2676_v56 }
 0x61e   :  { %v2514_v63 = vpop.f32.mrf.mxu2  ;;  %v8001_v48 = vadd.f32 1.0, %v5079_v61  ;;  %vm2640_vm11 = vweird.f32 %v7997_v45 }
 0x61f   :  { %v2548_v17 = vadd.f32 %v2514_v63, %v2467_v46  ;;  %v2668_v43 = vmul.f32 %v7988_v14, %v2667_v40  ;;  %vm2655_vm4 = vweird.f32 %v7999_v23 }
 0x620   :  { %vm2685_vm7 = vweird.f32 %v8001_v48 }
 0x621   :  { %v4693_v37 = vmul.f32 -1.442695, %v2548_v17  ;;  %v5081_v22 = vpop.eup %5080  ;;  %v2674_v17 = vand.u32 2147483647, %v7982_v54 }
 0x622   :  { %v8008_v63 = vadd.f32 1.0, %v5081_v22 }
 0x623   :  { %5082 = vpow2.f32 %v4693_v37  ;;  %v2614_v37 = vand.u32 2147483647, %v7980_v32  ;;  %v2613_v32 = vsel %vm8048_vm9, %v7986_v2, %v2609_v7  ;;  %vm2675_vm14 = vcmp.eq.f32.partialorder %v2674_v17, 8.507059e+37 }
 0x624   :  { %5084 = vrcp.f32 %v7990_v15  ;;  %v2631_v2 = vand.u32 2147483648, %v7990_v15  ;;  %v2644_v17 = vand.u32 2147483647, %v7997_v45 }
 0x625   :  { %5086 = vrcp.f32 %v7997_v45  ;;  %vm2615_vm3 = vcmp.eq.f32.partialorder %v2614_v37, 8.507059e+37 }
 0x626   :  { %v7978_v18 = vpop.f32.mrf.mxu2  ;;  %5088 = vrcp.f32 %v7999_v23  ;;  %vm8105_vm0 = vcmp.eq.f32.partialorder %v2644_v17, 8.507059e+37 }
 0x627   :  { %5090 = vrcp.f32 %v8001_v48  ;;  %v2549_v47 = vadd.f32 %v7978_v18, %v2468_v30 }
 0x628   :  { %5092 = vrcp.f32 %v8008_v63 }
 0x629   :  { %v5083_v25 = vpop.eup %5082  ;;  %v4694_v11 = vmul.f32 -1.442695, %v2549_v47 }
 0x62a   :  { %v8004_v28 = vpop.eup %5084  ;;  %v8010_v42 = vadd.f32 1.0, %v5083_v25 }
 0x62b   :  { %v2621_v21 = vmul.f32 %v8004_v28, %v7990_v15  ;;  %v8024_v51 = vpop.eup %5086  ;;  %vm2626_vm12 = vweird.f32 %v8004_v28 }
 0x62c   :  { %5094 = vrcp.f32 %v8010_v42  ;;  %v8035_v13 = vpop.eup %5088  ;;  %v2636_v8 = vmul.f32 %v8024_v51, %v7997_v45  ;;  %vm8085_vm5 = vmor %vm2625_vm10, %vm2626_vm12  ;;  %vm2641_vm13 = vweird.f32 %v8024_v51 }
 0x62d   :  { %v2622_v57 = vsub.f32 1.0, %v2621_v21  ;;  %vm8122_vm6 = vmor %vm2640_vm11, %vm2641_vm13  ;;  %vm2656_vm9 = vweird.f32 %v8035_v13 }
 0x62e   :  { %v2520_v5 = vpop.f32.mrf.mxu2 }
 0x62f   :  { %v2550_v1 = vadd.f32 %v2520_v5, %v2469_v19  ;;  %v2669_v5 = vadd.f32 %v7988_v14, %v2668_v43  ;;  %v2623_v40 = vmul.f32 %v8004_v28, %v2622_v57  ;;  %v2618_v43 = vsel %vm2615_vm3, %v2617_v9, %v2613_v32 }
 0x630   :  { %v2646_v57 = vand.u32 2147483648, %v7997_v45  ;;  %v2706_v45 = vand.u32 2147483648, %v8008_v63  ;;  %vm2700_vm3 = vweird.f32 %v8008_v63 }
 0x631   :  { %v4695_v46 = vmul.f32 -1.442695, %v2550_v1  ;;  %v2673_v54 = vsel %vm8030_vm8, %v7988_v14, %v2669_v5  ;;  %v2632_v5 = vor.u32 1.1754944e-38, %v2631_v2 }
 0x632   :  { %v2678_v61 = vsel %vm2675_vm14, %v2677_v36, %v2673_v54  ;;  %v2474_v54 = vld [vmem:[#allocation2 + $0x270] sm:$0xff]  ;;  %v2661_v36 = vand.u32 2147483648, %v7999_v23 }
 0x633   :  { %v2789_v19 = vmul.f32 %v2678_v61, %v7848_v55 }
 0x636   :  { %v2523_v62 = vpop.f32.mrf.mxu2 }
 0x637   :  { %v2551_v58 = vadd.f32 %v2523_v62, %v2470_v39  ;;  %v8042_v62 = vpop.eup %5090  ;;  %v2651_v39 = vmul.f32 %v8035_v13, %v7999_v23 }
 0x638   :  { %v8052_v24 = vpop.eup %5092  ;;  %v2681_v30 = vmul.f32 %v8042_v62, %v8001_v48  ;;  %vm2686_vm14 = vweird.f32 %v8042_v62 }
 0x639   :  { %v4696_v27 = vmul.f32 -1.442695, %v2551_v58  ;;  %v8057_v14 = vpop.eup %5094  ;;  %v2696_v59 = vmul.f32 %v8052_v24, %v8008_v63  ;;  %vm2701_vm8 = vweird.f32 %v8052_v24 }
 0x63a   :  { %v2711_v7 = vmul.f32 %v8057_v14, %v8010_v42  ;;  %vm8147_vm10 = vmor %vm2700_vm3, %vm2701_vm8  ;;  %vm2716_vm12 = vweird.f32 %v8057_v14 }
 0x63b   :  { %v2697_v55 = vsub.f32 1.0, %v2696_v59  ;;  %v2659_v59 = vand.u32 2147483647, %v7999_v23 }
 0x63c   :  { %v2712_v37 = vsub.f32 1.0, %v2711_v7 }
 0x63d   :  { %v2698_v31 = vmul.f32 %v8052_v24, %v2697_v55 }
 0x63e   :  { %v2526_v41 = vpop.f32.mrf.mxu2  ;;  %v2713_v2 = vmul.f32 %v8057_v14, %v2712_v37  ;;  %v2689_v37 = vand.u32 2147483647, %v8001_v48 }
 0x63f   :  { %v2552_v35 = vadd.f32 %v2526_v41, %v2471_v33  ;;  %v2629_v33 = vand.u32 2147483647, %v7990_v15 }
 0x641   :  { %v4697_v38 = vmul.f32 -1.442695, %v2552_v35  ;;  %v2637_v35 = vsub.f32 1.0, %v2636_v8  ;;  %vm8078_vm15 = vcmp.eq.f32.partialorder %v2629_v33, 8.507059e+37 }
 0x643   :  { %5096 = vpow2.f32 %v4697_v38  ;;  %v2624_v38 = vadd.f32 %v8004_v28, %v2623_v40  ;;  %v2638_v15 = vmul.f32 %v8024_v51, %v2637_v35 }
 0x645   :  { %v2628_v6 = vsel %vm8085_vm5, %v8004_v28, %v2624_v38  ;;  %v2639_v61 = vadd.f32 %v8024_v51, %v2638_v15  ;;  %v2473_v28 = vld [vmem:[#allocation2 + $0x268] sm:$0xff]  ;;  %v2714_v15 = vadd.f32 %v8057_v14, %v2713_v2  ;;  %vm2715_vm5 = vweird.f32 %v8010_v42 }
 0x646   :  { %v2529_v0 = vpop.f32.mrf.mxu2  ;;  %v8113_v35 = vsel %vm8078_vm15, %v2632_v5, %v2628_v6  ;;  %vm8166_vm15 = vmor %vm2685_vm7, %vm2686_vm14  ;;  %vm2660_vm7 = vcmp.eq.f32.partialorder %v2659_v59, 8.507059e+37 }
 0x647   :  { %v2553_v10 = vadd.f32 %v2529_v0, %v2472_v53  ;;  %v2475_v0 = vld [vmem:[#allocation2 + $0x278] sm:$0xff]  ;;  %vm8177_vm11 = vmor %vm2715_vm5, %vm2716_vm12 }
 0x649   :  { %5098 = vtanh.f32 %v2553_v10  ;;  %v5097_v41 = vpop.eup %5096 }
 0x64a   :  { %5100 = vpow2.f32 %v4696_v27  ;;  %v8074_v47 = vadd.f32 1.0, %v5097_v41  ;;  %v2652_v27 = vsub.f32 1.0, %v2651_v39  ;;  %v2647_v41 = vor.u32 1.1754944e-38, %v2646_v57 }
 0x64b   :  { %5102 = vpow2.f32 %v4695_v46 }
 0x64c   :  { %5104 = vpow2.f32 %v4694_v11  ;;  %v2682_v11 = vsub.f32 1.0, %v2681_v30  ;;  %v2653_v33 = vmul.f32 %v8035_v13, %v2652_v27  ;;  %v2691_v30 = vand.u32 2147483648, %v8001_v48 }
 0x64d   :  { %5106 = vrcp.f32 %v8074_v47 }
 0x64e   :  { %v2532_v22 = vpop.f32.mrf.mxu2  ;;  %v2654_v38 = vadd.f32 %v8035_v13, %v2653_v33 }
 0x64f   :  { %v5099_v25 = vpop.eup %5098 }
 0x650   :  { %v2793_v58 = vmul.f32 %v5099_v25, %v2618_v43  ;;  %v5101_v1 = vpop.eup %5100  ;;  %v2554_v25 = vadd.f32 %v2532_v22, %v2473_v28  ;;  %v2683_v43 = vmul.f32 %v8042_v62, %v2682_v11  ;;  %v2662_v22 = vor.u32 1.1754944e-38, %v2661_v36 }
 0x651   :  { %v5103_v21 = vpop.eup %5102  ;;  %v8083_v10 = vadd.f32 1.0, %v5101_v1  ;;  %v2707_v11 = vor.u32 1.1754944e-38, %v2706_v45 }
 0x652   :  { %v8076_v53 = vadd.f32 %v2793_v58, %v2789_v19  ;;  %v5105_v56 = vpop.eup %5104  ;;  %v8091_v18 = vadd.f32 1.0, %v5103_v21  ;;  %v2643_v19 = vsel %vm8122_vm6, %v8024_v51, %v2639_v61  ;;  %v2699_v58 = vadd.f32 %v8052_v24, %v2698_v31 }
 0x653   :  { %v8101_v32 = vadd.f32 1.0, %v5105_v56  ;;  %5108 = vrcp.f32 %v8083_v10  ;;  %v8133_v1 = vpop.eup %5106  ;;  %v2704_v21 = vand.u32 2147483647, %v8008_v63  ;;  %v2684_v55 = vadd.f32 %v8042_v62, %v2683_v43 }
 0x654   :  { %5110 = vrcp.f32 %v8091_v18  ;;  %v2721_v63 = vand.u32 2147483648, %v8010_v42  ;;  %v2771_v27 = vmul.f32 %v8133_v1, %v8074_v47  ;;  %v2703_v46 = vsel %vm8147_vm10, %v8052_v24, %v2699_v58 }
 0x655   :  { %v2648_v31 = vsel %vm8105_vm0, %v2647_v41, %v2643_v19  ;;  %vm2705_vm13 = vcmp.eq.f32.partialorder %v2704_v21, 8.507059e+37  ;;  %v2688_v48 = vsel %vm8166_vm15, %v8042_v62, %v2684_v55  ;;  %v2718_v61 = vsel %vm8177_vm11, %v8057_v14, %v2714_v15  ;;  %vm2657_vm0 = vmor %vm2655_vm4, %vm2656_vm9 }
 0x656   :  { %v2535_v8 = vpop.f32.mrf.mxu2  ;;  %v2722_v33 = vor.u32 1.1754944e-38, %v2721_v63  ;;  %v2772_v43 = vsub.f32 1.0, %v2771_v27  ;;  %vm2690_vm6 = vcmp.eq.f32.partialorder %v2689_v37, 8.507059e+37  ;;  %v2658_v41 = vsel %vm2657_vm0, %v8035_v13, %v2654_v38 }
 0x657   :  { %v2555_v9 = vadd.f32 %v2535_v8, %v2474_v54  ;;  %v2719_v54 = vand.u32 2147483647, %v8010_v42  ;;  %v2708_v42 = vsel %vm2705_vm13, %v2707_v11, %v2703_v46  ;;  %vm2776_vm4 = vweird.f32 %v8133_v1 }
 0x658   :  { %v2791_v2 = vmul.f32 %v2708_v42, %v7834_v4  ;;  %v2773_v7 = vmul.f32 %v8133_v1, %v2772_v43  ;;  %vm2775_vm9 = vweird.f32 %v8074_v47  ;;  %v2766_v46 = vand.u32 2147483648, %v8083_v10 }
 0x659   :  { %5112 = vtanh.f32 %v2555_v9  ;;  %v8142_v51 = vpop.eup %5108  ;;  %v2692_v9 = vor.u32 1.1754944e-38, %v2691_v30  ;;  %vm2720_vm8 = vcmp.eq.f32.partialorder %v2719_v54, 8.507059e+37  ;;  %v2663_v30 = vsel %vm2660_vm7, %v2662_v22, %v2658_v41  ;;  %vm8225_vm3 = vmor %vm2775_vm9, %vm2776_vm4 }
 0x65a   :  { %5114 = vrcp.f32 %v8101_v32  ;;  %v8154_v56 = vpop.eup %5110  ;;  %v2756_v36 = vmul.f32 %v8142_v51, %v8083_v10  ;;  %v2723_v39 = vsel %vm2720_vm8, %v2722_v33, %v2718_v61  ;;  %v2774_v23 = vadd.f32 %v8133_v1, %v2773_v7  ;;  %v8311_v7 = vld [vmem:[%s9526_s2 + $0x20] sm:$0xff] }
 0x65b   :  { %5116 = vtanh.f32 %v2554_v25  ;;  %v2741_v25 = vmul.f32 %v8154_v56, %v8091_v18  ;;  %v2693_v14 = vsel %vm2690_vm6, %v2692_v9, %v2688_v48  ;;  %v2792_v38 = vmul.f32 %v2723_v39, %v7842_v20  ;;  %v8269_v39 = vld [vmem:[%s9531_s4] sm:$0xff] }
 0x65c   :  { %v2757_v19 = vsub.f32 1.0, %v2756_v36  ;;  %v2790_v13 = vmul.f32 %v2693_v14, %v7840_v60  ;;  %v2781_v60 = vand.u32 2147483648, %v8074_v47  ;;  %v2779_v22 = vand.u32 2147483647, %v8074_v47 }
 0x65d   :  { %v2742_v55 = vsub.f32 1.0, %v2741_v25  ;;  %vm2761_vm14 = vweird.f32 %v8142_v51  ;;  %vm2746_vm10 = vweird.f32 %v8154_v56  ;;  %v2778_v47 = vsel %vm8225_vm3, %v8133_v1, %v2774_v23 }
 0x65e   :  { %v2538_v5 = vpop.f32.mrf.mxu2  ;;  %vm2760_vm15 = vweird.f32 %v8083_v10  ;;  %v2782_v6 = vor.u32 1.1754944e-38, %v2781_v60  ;;  %vm2745_vm11 = vweird.f32 %v8091_v18  ;;  %v2751_v37 = vand.u32 2147483648, %v8091_v18 }
 0x65f   :  { %v2556_v17 = vadd.f32 %v2538_v5, %v2475_v0  ;;  %v5113_v57 = vpop.eup %5112  ;;  %v2758_v5 = vmul.f32 %v8142_v51, %v2757_v19  ;;  %v2743_v59 = vmul.f32 %v8154_v56, %v2742_v55  ;;  %vm8239_vm5 = vmor %vm2760_vm15, %vm2761_vm14  ;;  %vm2780_vm13 = vcmp.eq.f32.partialorder %v2779_v22, 8.507059e+37  ;;  %v8283_v19 = vld [vmem:[%s9531_s4 + $0x8] sm:$0xff] }
 0x660   :  { %v8173_v8 = vpop.eup %5114  ;;  %v2795_v40 = vmul.f32 %v5113_v57, %v2648_v31  ;;  %v2783_v31 = vsel %vm2780_vm13, %v2782_v6, %v2778_v47  ;;  %v2767_v9 = vor.u32 1.1754944e-38, %v2766_v46  ;;  %vm8253_vm0 = vmor %vm2745_vm11, %vm2746_vm10  ;;  %vm2730_vm6 = vweird.f32 %v8101_v32  ;;  %v8318_v55 = vld [vmem:[%s9526_s2 + $0x28] sm:$0xff] }
 0x661   :  { %5118 = vtanh.f32 %v2556_v17  ;;  %v5117_v28 = vpop.eup %5116  ;;  %v2726_v62 = vmul.f32 %v8173_v8, %v8101_v32  ;;  %v2759_v63 = vadd.f32 %v8142_v51, %v2758_v5  ;;  %vm2731_vm12 = vweird.f32 %v8173_v8  ;;  %v2836_v46 = vld [vmem:[#allocation2 + $0x288] sm:$0xff] }
 0x662   :  { %v2794_v58 = vmul.f32 %v5117_v28, %v8113_v35  ;;  %v8204_v21 = vadd.f32 %v2795_v40, %v2791_v2  ;;  %v2764_v17 = vand.u32 2147483647, %v8083_v10  ;;  %v2744_v57 = vadd.f32 %v8154_v56, %v2743_v59  ;;  %vm2732_vm7 = vmor %vm2730_vm6, %vm2731_vm12  ;;  %v2835_v59 = vld [vmem:[#allocation2 + $0x280] sm:$0xff] }
 0x663   :  { %v2727_v4 = vsub.f32 1.0, %v2726_v62  ;;  %v2763_v1 = vsel %vm8239_vm5, %v8142_v51, %v2759_v63  ;;  %v2749_v10 = vand.u32 2147483647, %v8091_v18  ;;  %v2736_v42 = vand.u32 2147483648, %v8101_v32 }
 0x664   :  { %v8210_v15 = vadd.f32 %v2794_v58, %v2790_v13  ;;  %5120 = vtanh.f32 %v8204_v21  ;;  %vm2765_vm8 = vcmp.eq.f32.partialorder %v2764_v17, 8.507059e+37  ;;  %v2748_v18 = vsel %vm8253_vm0, %v8154_v56, %v2744_v57  ;;  %v8290_v58 = vld [vmem:[%s9526_s2 + $0x8] sm:$0xff]  ;;  %v8325_v13 = vld [vmem:[%s9526_s2 + $0x30] sm:$0xff] }
 0x665   :  { %v2728_v20 = vmul.f32 %v8173_v8, %v2727_v4  ;;  %v2734_v51 = vand.u32 2147483647, %v8101_v32  ;;  %v2768_v33 = vsel %vm2765_vm8, %v2767_v9, %v2763_v1  ;;  %v2752_v25 = vor.u32 1.1754944e-38, %v2751_v37  ;;  %v2840_v9 = vld [vmem:[#allocation2 + $0x2a8] sm:$0xff] }
 0x666   :  { %vm2750_vm4 = vcmp.eq.f32.partialorder %v2749_v10, 8.507059e+37  ;;  %v2737_v14 = vor.u32 1.1754944e-38, %v2736_v42  ;;  %v2841_v42 = vld [vmem:[#allocation2 + $0x2b0] sm:$0xff] }
 0x667   :  { %v5119_v45 = vpop.eup %5118  ;;  %v2729_v24 = vadd.f32 %v8173_v8, %v2728_v20  ;;  %v2753_v41 = vsel %vm2750_vm4, %v2752_v25, %v2748_v18  ;;  %vm2735_vm9 = vcmp.eq.f32.partialorder %v2734_v51, 8.507059e+37  ;;  %v2842_v51 = vld [vmem:[#allocation2 + $0x2b8] sm:$0xff] }
 0x668   :  { %v2796_v0 = vmul.f32 %v5119_v45, %v2663_v30  ;;  %v8297_v45 = vld [vmem:[%s9526_s2 + $0x10] sm:$0xff]  ;;  %v8304_v30 = vld [vmem:[%s9526_s2 + $0x18] sm:$0xff] }
 0x669   :  { %v2733_v40 = vsel %vm2732_vm7, %v8173_v8, %v2729_v24  ;;  %v8276_v8 = vld [vmem:[%s9526_s2] sm:$0xff]  ;;  %v2838_v24 = vld [vmem:[#allocation2 + $0x298] sm:$0xff] }
 0x66a   :  { %v8212_v35 = vadd.f32 %v2796_v0, %v2792_v38  ;;  %v5121_v54 = vpop.eup %5120  ;;  %v2738_v32 = vsel %vm2735_vm9, %v2737_v14, %v2733_v40  ;;  %v8332_v38 = vld [vmem:[%s9526_s2 + $0x38] sm:$0xff] }
 0x66b   :  { %v2807_v43 = vmul.f32 %v5121_v54, %v2768_v33  ;;  %v2837_v54 = vld [vmem:[#allocation2 + $0x290] sm:$0xff] }
 0x66c   :  { %5122 = vtanh.f32 %v8212_v35 }
 0x66d   :  { %5124 = vtanh.f32 %v8210_v15 }
 0x66e   :  { %5126 = vtanh.f32 %v8076_v53 }
 0x672   :  { %v5123_v36 = vpop.eup %5122 }
 0x673   :  { %v2808_v61 = vmul.f32 %v5123_v36, %v2783_v31  ;;  %v5125_v28 = vpop.eup %5124 }
 0x674   :  { %v5127_v62 = vpop.eup %5126  ;;  %v2806_v56 = vmul.f32 %v5125_v28, %v2753_v41 }
 0x675   :  { %2821 = vmatpush.msra.mxu0 %v2808_v61  ;;  %2863 = vmatpush.msra.mxu1 %v2808_v61  ;;  %v2805_v2 = vmul.f32 %v5127_v62, %v2738_v32 }
 0x677   :  { %2822 = vmatpush.msra.mxu0 %v2807_v43  ;;  %2864 = vmatpush.msra.mxu1 %v2807_v43 }
 0x679   :  { %2823 = vmatpush.msra.mxu0 %v2806_v56  ;;  %2865 = vmatpush.msra.mxu1 %v2806_v56 }
 0x67b   :  { %2824 = vmatpush.msra.mxu0 %v2805_v2  ;;  %2866 = vmatpush.msra.mxu1 %v2805_v2 }
 0x67c   :  { %4698 = vmatmul.msk.f32.vlgmr.msra.gmra.mxu0 %vm912_vm2, %v8269_v39  ;;  %4700 = vmatmul.msk.f32.vlgmr.msra.gmra.mxu1 %vm912_vm2, %v8276_v8 }
 0x684   :  { %4699 = vmatmul.msk.f32.gmra.mxu0 %vm912_vm2, %v8283_v19  ;;  %4701 = vmatmul.msk.f32.gmra.mxu1 %vm912_vm2, %v8290_v58 }
 0x68c   :  { %4702 = vmatmul.msk.f32.gmra.mxu1 %vm912_vm2, %v8297_v45 }
 0x694   :  { %4703 = vmatmul.msk.f32.gmra.mxu1 %vm912_vm2, %v8304_v30 }
 0x69c   :  { %4704 = vmatmul.msk.f32.gmra.mxu1 %vm912_vm2, %v8311_v7 }
 0x6a4   :  { %4705 = vmatmul.msk.f32.gmra.mxu1 %vm912_vm2, %v8318_v55 }
 0x6ac   :  { %4706 = vmatmul.msk.f32.gmra.mxu1 %vm912_vm2, %v8325_v13 }
 0x6b4   :  { %4707 = vmatmul.msk.f32.gmra.mxu1 %vm912_vm2, %v8332_v38 }
 0x6bc   :  { %4708 = vmatmul.msk.f32.gmra.mxu1 %vm912_vm2, %v7921_v44 }
 0x6c4   :  { %4709 = vmatmul.msk.f32.gmra.mxu1 %vm912_vm2, %v7928_v49 }
 0x6cc   :  { %4710 = vmatmul.msk.f32.gmra.mxu1 %vm912_vm2, %v7935_v16 }
 0x6d4   :  { %4711 = vmatmul.msk.f32.gmra.mxu1 %vm912_vm2, %v7942_v3 }
 0x6dc   :  { %4712 = vmatmul.msk.f32.gmra.mxu1 %vm912_vm2, %v7949_v29 }
 0x6e4   :  { %4713 = vmatmul.msk.f32.gmra.mxu1 %vm912_vm2, %v7956_v12 }
 0x6ec   :  { %4714 = vmatmul.msk.f32.gmra.mxu1 %vm912_vm2, %v7963_v52 }
 0x6f4   :  { %4715 = vmatmul.msk.f32.gmra.mxu1 %vm912_vm2, %v7970_v50  ;;  %v2839_v50 = vld [vmem:[#allocation2 + $0x2a0] sm:$0xff] }
 0x6f9   :  { %v2826_v44 = vpop.f32.mrf.mxu0  ;;  %v2868_v49 = vpop.f32.mrf.mxu1 }
 0x6fa   :  { %v2827_v0 = vadd.f32 %v2826_v44, %v6709_v34  ;;  %v2916_v60 = vadd.f32 %v2868_v49, %v2835_v59 }
 0x6fc   :  { %2833 = vst.msk [vmem:[#allocation3 + $0x40] sm:$0xff] %vm271_vm1, %v2827_v0  ;;  %v4716_v63 = vmul.f32 -1.442695, %v2916_v60 }
 0x6fe   :  { %5128 = vpow2.f32 %v4716_v63 }
 0x701   :  { %v2829_v16 = vpop.f32.mrf.mxu0  ;;  %v2871_v3 = vpop.f32.mrf.mxu1 }
 0x702   :  { %v2830_v4 = vadd.f32 %v2829_v16, %v6713_v26  ;;  %v2917_v17 = vadd.f32 %v2871_v3, %v2836_v46  ;;  %v2845_v46 = vld [vmem:[#allocation2 + $0x2d0] sm:$0xff] }
 0x704   :  { %2834 = vst.msk [vmem:[#allocation3 + $0x48] sm:$0xff] %vm271_vm1, %v2830_v4  ;;  %v5129_v57 = vpop.eup %5128  ;;  %v4717_v11 = vmul.f32 -1.442695, %v2917_v17 }
 0x705   :  { %v8358_v37 = vadd.f32 1.0, %v5129_v57  ;;  %v2844_v57 = vld [vmem:[#allocation2 + $0x2c8] sm:$0xff] }
 0x707   :  { %vm2985_vm15 = vweird.f32 %v8358_v37 }
 0x709   :  { %v2874_v29 = vpop.f32.mrf.mxu1 }
 0x70a   :  { %v2918_v1 = vadd.f32 %v2874_v29, %v2837_v54 }
 0x70c   :  { %v4718_v61 = vmul.f32 -1.442695, %v2918_v1 }
 0x711   :  { %v2877_v12 = vpop.f32.mrf.mxu1 }
 0x712   :  { %v2919_v31 = vadd.f32 %v2877_v12, %v2838_v24  ;;  %v2843_v24 = vld [vmem:[#allocation2 + $0x2c0] sm:$0xff] }
 0x714   :  { %v4719_v33 = vmul.f32 -1.442695, %v2919_v31 }
 0x719   :  { %v2880_v5 = vpop.f32.mrf.mxu1 }
 0x71a   :  { %v2920_v20 = vadd.f32 %v2880_v5, %v2839_v50 }
 0x71c   :  { %v4720_v27 = vmul.f32 -1.442695, %v2920_v20 }
 0x71e   :  { %5130 = vpow2.f32 %v4720_v27 }
 0x71f   :  { %5132 = vpow2.f32 %v4717_v11 }
 0x720   :  { %5134 = vrcp.f32 %v8358_v37 }
 0x721   :  { %v2883_v23 = vpop.f32.mrf.mxu1 }
 0x722   :  { %v2921_v48 = vadd.f32 %v2883_v23, %v2840_v9  ;;  %v2846_v23 = vld [vmem:[#allocation2 + $0x2d8] sm:$0xff] }
 0x724   :  { %v5131_v6 = vpop.eup %5130  ;;  %v4721_v25 = vmul.f32 -1.442695, %v2921_v48  ;;  %v2847_v48 = vld [vmem:[#allocation2 + $0x2e0] sm:$0xff] }
 0x725   :  { %v8360_v10 = vadd.f32 1.0, %v5131_v6  ;;  %v5133_v43 = vpop.eup %5132 }
 0x726   :  { %v8364_v62 = vpop.eup %5134  ;;  %v8368_v32 = vadd.f32 1.0, %v5133_v43 }
 0x727   :  { %5136 = vrcp.f32 %v8360_v10  ;;  %v2981_v2 = vmul.f32 %v8364_v62, %v8358_v37  ;;  %vm2986_vm14 = vweird.f32 %v8364_v62  ;;  %vm3045_vm10 = vweird.f32 %v8360_v10 }
 0x728   :  { %5138 = vpow2.f32 %v4718_v61  ;;  %v3051_v61 = vand.u32 2147483648, %v8360_v10  ;;  %vm8426_vm5 = vmor %vm2985_vm15, %vm2986_vm14  ;;  %vm3000_vm0 = vweird.f32 %v8368_v32 }
 0x729   :  { %v2886_v52 = vpop.f32.mrf.mxu1  ;;  %5140 = vpow2.f32 %v4719_v33  ;;  %v2982_v16 = vsub.f32 1.0, %v2981_v2  ;;  %v2989_v2 = vand.u32 2147483647, %v8358_v37 }
 0x72a   :  { %v2922_v18 = vadd.f32 %v2886_v52, %v2841_v42  ;;  %5142 = vpow2.f32 %v4721_v25  ;;  %v3049_v25 = vand.u32 2147483647, %v8360_v10 }
 0x72b   :  { %v2983_v20 = vmul.f32 %v8364_v62, %v2982_v16  ;;  %vm2990_vm13 = vcmp.eq.f32.partialorder %v2989_v2, 8.507059e+37 }
 0x72c   :  { %v4722_v40 = vmul.f32 -1.442695, %v2922_v18  ;;  %vm3050_vm11 = vcmp.eq.f32.partialorder %v3049_v25, 8.507059e+37 }
 0x72d   :  { %v8366_v56 = vpop.eup %5136  ;;  %v2984_v31 = vadd.f32 %v8364_v62, %v2983_v20 }
 0x72e   :  { %5144 = vpow2.f32 %v4722_v40  ;;  %v3041_v44 = vmul.f32 %v8366_v56, %v8360_v10  ;;  %v5139_v49 = vpop.eup %5138  ;;  %vm3046_vm3 = vweird.f32 %v8366_v56  ;;  %v2991_v40 = vand.u32 2147483648, %v8358_v37 }
 0x72f   :  { %v5141_v0 = vpop.eup %5140  ;;  %v8375_v4 = vadd.f32 1.0, %v5139_v49  ;;  %vm8408_vm12 = vmor %vm3045_vm10, %vm3046_vm3  ;;  %v2988_v37 = vsel %vm8426_vm5, %v8364_v62, %v2984_v31  ;;  %v3006_v62 = vand.u32 2147483648, %v8368_v32 }
 0x730   :  { %v5143_v3 = vpop.eup %5142  ;;  %v3042_v29 = vsub.f32 1.0, %v3041_v44  ;;  %v8377_v59 = vadd.f32 1.0, %v5141_v0  ;;  %v3052_v0 = vor.u32 1.1754944e-38, %v3051_v61 }
 0x731   :  { %v2889_v22 = vpop.f32.mrf.mxu1  ;;  %v8379_v50 = vadd.f32 1.0, %v5143_v3  ;;  %vm3015_vm4 = vweird.f32 %v8375_v4 }
 0x732   :  { %v2923_v28 = vadd.f32 %v2889_v22, %v2842_v51  ;;  %v3043_v63 = vmul.f32 %v8366_v56, %v3042_v29  ;;  %v2992_v29 = vor.u32 1.1754944e-38, %v2991_v40  ;;  %v3021_v40 = vand.u32 2147483648, %v8375_v4 }
 0x733   :  { %vm3030_vm10 = vweird.f32 %v8377_v59  ;;  %vm3060_vm15 = vweird.f32 %v8379_v50 }
 0x734   :  { %v4723_v41 = vmul.f32 -1.442695, %v2923_v28  ;;  %v5145_v5 = vpop.eup %5144 }
 0x735   :  { %v8386_v27 = vadd.f32 1.0, %v5145_v5 }
 0x736   :  { %5146 = vpow2.f32 %v4723_v41 }
 0x737   :  { %5148 = vrcp.f32 %v8368_v32 }
 0x738   :  { %5150 = vrcp.f32 %v8375_v4 }
 0x739   :  { %v8356_v47 = vpop.f32.mrf.mxu1  ;;  %5152 = vrcp.f32 %v8377_v59 }
 0x73a   :  { %5154 = vrcp.f32 %v8379_v50  ;;  %v2924_v9 = vadd.f32 %v8356_v47, %v2843_v24  ;;  %v3019_v47 = vand.u32 2147483647, %v8375_v4 }
 0x73b   :  { %5156 = vrcp.f32 %v8386_v27 }
 0x73c   :  { %v5147_v52 = vpop.eup %5146  ;;  %vm8483_vm14 = vcmp.eq.f32.partialorder %v3019_v47, 8.507059e+37 }
 0x73d   :  { %v8382_v22 = vpop.eup %5148  ;;  %v8388_v17 = vadd.f32 1.0, %v5147_v52 }
 0x73e   :  { %v2996_v1 = vmul.f32 %v8382_v22, %v8368_v32  ;;  %v8402_v28 = vpop.eup %5150  ;;  %vm3001_vm6 = vweird.f32 %v8382_v22 }
 0x73f   :  { %5158 = vrcp.f32 %v8388_v17  ;;  %v8413_v41 = vpop.eup %5152  ;;  %v3011_v49 = vmul.f32 %v8402_v28, %v8375_v4  ;;  %vm8463_vm7 = vmor %vm3000_vm0, %vm3001_vm6  ;;  %vm3016_vm9 = vweird.f32 %v8402_v28  ;;  %v3081_v4 = vand.u32 2147483648, %v8386_v27 }
 0x740   :  { %v2997_v43 = vsub.f32 1.0, %v2996_v1  ;;  %v8420_v44 = vpop.eup %5154  ;;  %vm8500_vm3 = vmor %vm3015_vm4, %vm3016_vm9  ;;  %vm3031_vm5 = vweird.f32 %v8413_v41 }
 0x741   :  { %v2895_v36 = vpop.f32.mrf.mxu1  ;;  %v8430_v3 = vpop.eup %5156 }
 0x742   :  { %v2925_v11 = vadd.f32 %v2895_v36, %v2844_v57  ;;  %v3044_v36 = vadd.f32 %v8366_v56, %v3043_v63  ;;  %v2998_v5 = vmul.f32 %v8382_v22, %v2997_v43  ;;  %v3012_v63 = vsub.f32 1.0, %v3011_v49 }
 0x743   :  { %v2993_v57 = vsel %vm2990_vm13, %v2992_v29, %v2988_v37  ;;  %v3036_v37 = vand.u32 2147483648, %v8377_v59  ;;  %vm3075_vm13 = vweird.f32 %v8386_v27 }
 0x744   :  { %v4725_v33 = vmul.f32 -1.442695, %v2925_v11  ;;  %v3048_v10 = vsel %vm8408_vm12, %v8366_v56, %v3044_v36  ;;  %v2999_v24 = vadd.f32 %v8382_v22, %v2998_v5  ;;  %vm3076_vm12 = vweird.f32 %v8430_v3 }
 0x745   :  { %v8435_v56 = vpop.eup %5158  ;;  %vm8525_vm0 = vmor %vm3075_vm13, %vm3076_vm12 }
 0x746   :  { %v3003_v2 = vsel %vm8463_vm7, %v8382_v22, %v2999_v24  ;;  %v2848_v22 = vld [vmem:[#allocation2 + $0x2e8] sm:$0xff]  ;;  %vm3091_vm6 = vweird.f32 %v8435_v56  ;;  %vm3090_vm7 = vweird.f32 %v8388_v17 }
 0x747   :  { %vm8555_vm4 = vmor %vm3090_vm7, %vm3091_vm6 }
 0x749   :  { %v2898_v14 = vpop.f32.mrf.mxu1 }
 0x74a   :  { %v2926_v6 = vadd.f32 %v2898_v14, %v2845_v46  ;;  %v4724_v14 = vmul.f32 -1.442695, %v2924_v9  ;;  %v3071_v46 = vmul.f32 %v8430_v3, %v8386_v27  ;;  %v3056_v9 = vmul.f32 %v8420_v44, %v8379_v50 }
 0x74c   :  { %v4726_v18 = vmul.f32 -1.442695, %v2926_v6  ;;  %v3026_v6 = vmul.f32 %v8413_v41, %v8377_v59 }
 0x751   :  { %v2901_v12 = vpop.f32.mrf.mxu1 }
 0x752   :  { %v2927_v60 = vadd.f32 %v2901_v12, %v2846_v23  ;;  %v3053_v12 = vsel %vm3050_vm11, %v3052_v0, %v3048_v10  ;;  %v3057_v10 = vsub.f32 1.0, %v3056_v9  ;;  %v2849_v0 = vld [vmem:[#allocation2 + $0x2f0] sm:$0xff]  ;;  %vm3061_vm11 = vweird.f32 %v8420_v44 }
 0x753   :  { %v3164_v11 = vmul.f32 %v3053_v12, %v8076_v53  ;;  %v3072_v53 = vsub.f32 1.0, %v3071_v46 }
 0x754   :  { %v4727_v54 = vmul.f32 -1.442695, %v2927_v60  ;;  %v3004_v60 = vand.u32 2147483647, %v8368_v32  ;;  %v3013_v32 = vmul.f32 %v8402_v28, %v3012_v63 }
 0x755   :  { %v3073_v29 = vmul.f32 %v8430_v3, %v3072_v53  ;;  %v3066_v53 = vand.u32 2147483648, %v8379_v50 }
 0x756   :  { %5160 = vpow2.f32 %v4727_v54  ;;  %vm8456_vm8 = vcmp.eq.f32.partialorder %v3004_v60, 8.507059e+37 }
 0x757   :  { %v3074_v24 = vadd.f32 %v8430_v3, %v3073_v29 }
 0x759   :  { %v2904_v42 = vpop.f32.mrf.mxu1 }
 0x75a   :  { %v2928_v51 = vadd.f32 %v2904_v42, %v2847_v48  ;;  %v3086_v48 = vmul.f32 %v8435_v56, %v8388_v17 }
 0x75c   :  { %5162 = vtanh.f32 %v2928_v51  ;;  %v5161_v23 = vpop.eup %5160  ;;  %v3087_v49 = vsub.f32 1.0, %v3086_v48  ;;  %v3079_v48 = vand.u32 2147483647, %v8386_v27  ;;  %v3096_v27 = vand.u32 2147483648, %v8388_v17 }
 0x75d   :  { %5164 = vpow2.f32 %v4726_v18  ;;  %v8452_v42 = vadd.f32 1.0, %v5161_v23  ;;  %v3007_v18 = vor.u32 1.1754944e-38, %v3006_v62  ;;  %v3014_v23 = vadd.f32 %v8402_v28, %v3013_v32  ;;  %v2850_v32 = vld [vmem:[#allocation2 + $0x2f8] sm:$0xff] }
 0x75e   :  { %5166 = vpow2.f32 %v4725_v33  ;;  %v3027_v33 = vsub.f32 1.0, %v3026_v6  ;;  %v3034_v62 = vand.u32 2147483647, %v8377_v59  ;;  %v3058_v6 = vmul.f32 %v8420_v44, %v3057_v10 }
 0x75f   :  { %5168 = vpow2.f32 %v4724_v14  ;;  %vm3080_vm9 = vcmp.eq.f32.partialorder %v3079_v48, 8.507059e+37 }
 0x760   :  { %5170 = vrcp.f32 %v8452_v42  ;;  %v3028_v63 = vmul.f32 %v8413_v41, %v3027_v33 }
 0x761   :  { %v2907_v52 = vpop.f32.mrf.mxu1 }
 0x762   :  { %v5163_v20 = vpop.eup %5162  ;;  %v2929_v46 = vadd.f32 %v2907_v52, %v2848_v22  ;;  %v3037_v52 = vor.u32 1.1754944e-38, %v3036_v37  ;;  %v3029_v9 = vadd.f32 %v8413_v41, %v3028_v63  ;;  %v3094_v37 = vand.u32 2147483647, %v8388_v17 }
 0x763   :  { %v3168_v54 = vmul.f32 %v5163_v20, %v2993_v57  ;;  %v5165_v1 = vpop.eup %5164  ;;  %v3022_v20 = vor.u32 1.1754944e-38, %v3021_v40  ;;  %v8491_v57 = vsel %vm8456_vm8, %v3007_v18, %v3003_v2  ;;  %v3059_v18 = vadd.f32 %v8420_v44, %v3058_v6  ;;  %vm8544_vm8 = vmor %vm3060_vm15, %vm3061_vm11 }
 0x764   :  { %v5167_v31 = vpop.eup %5166  ;;  %v8461_v25 = vadd.f32 1.0, %v5165_v1  ;;  %v3018_v1 = vsel %vm8500_vm3, %v8402_v28, %v3014_v23  ;;  %v3078_v40 = vsel %vm8525_vm0, %v8430_v3, %v3074_v24  ;;  %v3067_v22 = vor.u32 1.1754944e-38, %v3066_v53 }
 0x765   :  { %v8454_v36 = vadd.f32 %v3168_v54, %v3164_v11  ;;  %v5169_v51 = vpop.eup %5168  ;;  %v8469_v14 = vadd.f32 1.0, %v5167_v31  ;;  %v3088_v11 = vmul.f32 %v8435_v56, %v3087_v49  ;;  %v3023_v23 = vsel %vm8483_vm14, %v3022_v20, %v3018_v1  ;;  %vm3032_vm14 = vmor %vm3030_vm10, %vm3031_vm5 }
 0x766   :  { %v8479_v12 = vadd.f32 1.0, %v5169_v51  ;;  %5172 = vrcp.f32 %v8461_v25  ;;  %v8511_v31 = vpop.eup %5170  ;;  %v3097_v6 = vor.u32 1.1754944e-38, %v3096_v27  ;;  %v3033_v20 = vsel %vm3032_vm14, %v8413_v41, %v3029_v9 }
 0x767   :  { %5174 = vrcp.f32 %v8469_v14  ;;  %v3089_v33 = vadd.f32 %v8435_v56, %v3088_v11  ;;  %v3146_v47 = vmul.f32 %v8511_v31, %v8452_v42  ;;  %vm3095_vm12 = vcmp.eq.f32.partialorder %v3094_v37, 8.507059e+37  ;;  %v3212_v37 = vld [vmem:[#allocation2 + $0x310] sm:$0xff] }
 0x768   :  { %vm3035_vm15 = vcmp.eq.f32.partialorder %v3034_v62, 8.507059e+37  ;;  %vm3151_vm10 = vweird.f32 %v8511_v31  ;;  %vm3150_vm5 = vweird.f32 %v8452_v42  ;;  %v3139_v49 = vand.u32 2147483647, %v8461_v25 }
 0x769   :  { %v2910_v16 = vpop.f32.mrf.mxu1  ;;  %v3093_v63 = vsel %vm8555_vm4, %v8435_v56, %v3089_v33  ;;  %v3147_v54 = vsub.f32 1.0, %v3146_v47  ;;  %vm8603_vm13 = vmor %vm3150_vm5, %vm3151_vm10  ;;  %vm3120_vm4 = vweird.f32 %v8469_v14  ;;  %v3126_v3 = vand.u32 2147483648, %v8469_v14 }
 0x76a   :  { %v2930_v5 = vadd.f32 %v2910_v16, %v2849_v0  ;;  %v3082_v0 = vor.u32 1.1754944e-38, %v3081_v4  ;;  %v3064_v16 = vand.u32 2147483647, %v8379_v50  ;;  %v3063_v50 = vsel %vm8544_vm8, %v8420_v44, %v3059_v18 }
 0x76b   :  { %v3098_v24 = vsel %vm3095_vm12, %v3097_v6, %v3093_v63  ;;  %v3038_v18 = vsel %vm3035_vm15, %v3037_v52, %v3033_v20  ;;  %v3154_v52 = vand.u32 2147483647, %v8452_v42  ;;  %vm3135_vm8 = vweird.f32 %v8461_v25 }
 0x76c   :  { %5176 = vtanh.f32 %v2930_v5  ;;  %v8520_v28 = vpop.eup %5172  ;;  %v3083_v17 = vsel %vm3080_vm9, %v3082_v0, %v3078_v40  ;;  %vm3065_vm3 = vcmp.eq.f32.partialorder %v3064_v16, 8.507059e+37  ;;  %v3167_v9 = vmul.f32 %v3098_v24, %v8212_v35 }
 0x76d   :  { %5178 = vrcp.f32 %v8479_v12  ;;  %v8532_v43 = vpop.eup %5174  ;;  %v3131_v5 = vmul.f32 %v8520_v28, %v8461_v25  ;;  %v3068_v56 = vsel %vm3065_vm3, %v3067_v22, %v3063_v50  ;;  %v3166_v1 = vmul.f32 %v3083_v17, %v8204_v21 }
 0x76e   :  { %5180 = vtanh.f32 %v2929_v46  ;;  %v3116_v11 = vmul.f32 %v8532_v43, %v8469_v14  ;;  %v3165_v41 = vmul.f32 %v3068_v56, %v8210_v15  ;;  %v3156_v15 = vand.u32 2147483648, %v8452_v42 }
 0x76f   :  { %v3132_v4 = vsub.f32 1.0, %v3131_v5  ;;  %vm3136_vm11 = vweird.f32 %v8520_v28  ;;  %vm3121_vm0 = vweird.f32 %v8532_v43  ;;  %vm3155_vm9 = vcmp.eq.f32.partialorder %v3154_v52, 8.507059e+37 }
 0x770   :  { %v3157_v16 = vor.u32 1.1754944e-38, %v3156_v15  ;;  %vm8617_vm7 = vmor %vm3135_vm8, %vm3136_vm11  ;;  %vm3105_vm3 = vweird.f32 %v8479_v12  ;;  %vm3140_vm12 = vcmp.eq.f32.partialorder %v3139_v49, 8.507059e+37 }
 0x771   :  { %v2913_v51 = vpop.f32.mrf.mxu1  ;;  %v3133_v27 = vmul.f32 %v8520_v28, %v3132_v4  ;;  %vm8631_vm14 = vmor %vm3120_vm4, %vm3121_vm0 }
 0x772   :  { %v2931_v2 = vadd.f32 %v2913_v51, %v2850_v32  ;;  %v5177_v10 = vpop.eup %5176  ;;  %v3148_v32 = vmul.f32 %v8511_v31, %v3147_v54  ;;  %v3117_v51 = vsub.f32 1.0, %v3116_v11 }
 0x773   :  { %v8551_v29 = vpop.eup %5178  ;;  %v3170_v60 = vmul.f32 %v5177_v10, %v3023_v23  ;;  %v3134_v40 = vadd.f32 %v8520_v28, %v3133_v27  ;;  %v3141_v10 = vand.u32 2147483648, %v8461_v25  ;;  %v3124_v25 = vand.u32 2147483647, %v8469_v14 }
 0x774   :  { %5182 = vtanh.f32 %v2931_v2  ;;  %v5181_v46 = vpop.eup %5180  ;;  %v3101_v44 = vmul.f32 %v8551_v29, %v8479_v12  ;;  %v3149_v59 = vadd.f32 %v8511_v31, %v3148_v32  ;;  %v3118_v62 = vmul.f32 %v8532_v43, %v3117_v51 }
 0x775   :  { %v3169_v48 = vmul.f32 %v5181_v46, %v8491_v57  ;;  %v8582_v61 = vadd.f32 %v3170_v60, %v3166_v1  ;;  %vm3106_vm6 = vweird.f32 %v8551_v29  ;;  %v3142_v17 = vor.u32 1.1754944e-38, %v3141_v10 }
 0x776   :  { %v3102_v21 = vsub.f32 1.0, %v3101_v44  ;;  %v3153_v42 = vsel %vm8603_vm13, %v8511_v31, %v3149_v59  ;;  %v3119_v0 = vadd.f32 %v8532_v43, %v3118_v62  ;;  %v3138_v31 = vsel %vm8617_vm7, %v8520_v28, %v3134_v40  ;;  %vm3107_vm15 = vmor %vm3105_vm3, %vm3106_vm6  ;;  %v3214_v59 = vld [vmem:[#allocation2 + $0x320] sm:$0xff]  ;;  %v3211_v40 = vld [vmem:[#allocation2 + $0x308] sm:$0xff] }
 0x777   :  { %v8588_v47 = vadd.f32 %v3169_v48, %v3165_v41  ;;  %5184 = vtanh.f32 %v8582_v61  ;;  %v3158_v50 = vsel %vm3155_vm9, %v3157_v16, %v3153_v42  ;;  %v3111_v46 = vand.u32 2147483648, %v8479_v12 }
 0x778   :  { %v3103_v35 = vmul.f32 %v8551_v29, %v3102_v21  ;;  %v3123_v14 = vsel %vm8631_vm14, %v8532_v43, %v3119_v0  ;;  %v3109_v28 = vand.u32 2147483647, %v8479_v12  ;;  %v3143_v54 = vsel %vm3140_vm12, %v3142_v17, %v3138_v31  ;;  %v3210_v21 = vld [vmem:[#allocation2 + $0x300] sm:$0xff]  ;;  %v3213_v31 = vld [vmem:[#allocation2 + $0x318] sm:$0xff]  ;;  %v3216_v17 = vld [vmem:[#allocation2 + $0x330] sm:$0xff] }
 0x779   :  { %v3127_v60 = vor.u32 1.1754944e-38, %v3126_v3  ;;  %vm3125_vm10 = vcmp.eq.f32.partialorder %v3124_v25, 8.507059e+37  ;;  %v3112_v24 = vor.u32 1.1754944e-38, %v3111_v46 }
 0x77a   :  { %v5183_v53 = vpop.eup %5182  ;;  %v3104_v23 = vadd.f32 %v8551_v29, %v3103_v35  ;;  %vm3110_vm5 = vcmp.eq.f32.partialorder %v3109_v28, 8.507059e+37 }
 0x77b   :  { %v3171_v33 = vmul.f32 %v5183_v53, %v3038_v18  ;;  %v3128_v1 = vsel %vm3125_vm10, %v3127_v60, %v3123_v14 }
 0x77c   :  { %v3108_v20 = vsel %vm3107_vm15, %v8551_v29, %v3104_v23 }
 0x77d   :  { %v8590_v57 = vadd.f32 %v3171_v33, %v3167_v9  ;;  %v5185_v5 = vpop.eup %5184  ;;  %v3113_v12 = vsel %vm3110_vm5, %v3112_v24, %v3108_v20 }
 0x77e   :  { %v3182_v44 = vmul.f32 %v5185_v5, %v3143_v54 }
 0x77f   :  { %5186 = vtanh.f32 %v8590_v57 }
 0x780   :  { %5188 = vtanh.f32 %v8588_v47 }
 0x781   :  { %5190 = vtanh.f32 %v8454_v36 }
 0x785   :  { %v5187_v22 = vpop.eup %5186 }
 0x786   :  { %v3183_v6 = vmul.f32 %v5187_v22, %v3158_v50  ;;  %v5189_v11 = vpop.eup %5188  ;;  %v3215_v22 = vld [vmem:[#allocation2 + $0x328] sm:$0xff] }
 0x787   :  { %v5191_v56 = vpop.eup %5190  ;;  %v3181_v43 = vmul.f32 %v5189_v11, %v3128_v1 }
 0x788   :  { %3196 = vmatpush.msrb.mxu0 %v3183_v6  ;;  %3238 = vmatpush.msra.mxu3 %v3183_v6  ;;  %v3180_v4 = vmul.f32 %v5191_v56, %v3113_v12  ;;  %v3217_v6 = vld [vmem:[#allocation2 + $0x338] sm:$0xff] }
 0x78a   :  { %3197 = vmatpush.msrb.mxu0 %v3182_v44  ;;  %3239 = vmatpush.msra.mxu3 %v3182_v44 }
 0x78c   :  { %3198 = vmatpush.msrb.mxu0 %v3181_v43  ;;  %3240 = vmatpush.msra.mxu3 %v3181_v43 }
 0x78e   :  { %3199 = vmatpush.msrb.mxu0 %v3180_v4  ;;  %3241 = vmatpush.msra.mxu3 %v3180_v4 }
 0x78f   :  { %4728 = vmatmul.msk.f32.vlgmr.msrb.gmra.mxu0 %vm912_vm2, %v8269_v39  ;;  %4730 = vmatmul.msk.f32.vlgmr.msra.gmra.mxu3 %vm912_vm2, %v8276_v8  ;;  %v8667_v39 = vld [vmem:[%s9526_s2 + $0x40] sm:$0xff]  ;;  %v8674_v8 = vld [vmem:[%s9526_s2 + $0x48] sm:$0xff] }
 0x797   :  { %4729 = vmatmul.msk.f32.gmra.mxu0 %vm912_vm2, %v8283_v19  ;;  %4731 = vmatmul.msk.f32.gmra.mxu3 %vm912_vm2, %v8290_v58  ;;  %v8681_v19 = vld [vmem:[%s9526_s2 + $0x50] sm:$0xff]  ;;  %v8688_v58 = vld [vmem:[%s9526_s2 + $0x58] sm:$0xff] }
 0x79f   :  { %4732 = vmatmul.msk.f32.gmra.mxu3 %vm912_vm2, %v8297_v45  ;;  %v8695_v45 = vld [vmem:[%s9526_s2 + $0x60] sm:$0xff] }
 0x7a7   :  { %4733 = vmatmul.msk.f32.gmra.mxu3 %vm912_vm2, %v8304_v30  ;;  %v8702_v30 = vld [vmem:[%s9526_s2 + $0x68] sm:$0xff] }
 0x7af   :  { %4734 = vmatmul.msk.f32.gmra.mxu3 %vm912_vm2, %v8311_v7  ;;  %v8709_v7 = vld [vmem:[%s9526_s2 + $0x70] sm:$0xff] }
 0x7b7   :  { %4735 = vmatmul.msk.f32.gmra.mxu3 %vm912_vm2, %v8318_v55  ;;  %v8716_v55 = vld [vmem:[%s9526_s2 + $0x78] sm:$0xff] }
 0x7bf   :  { %4736 = vmatmul.msk.f32.gmra.mxu3 %vm912_vm2, %v8325_v13 }
 0x7c7   :  { %4737 = vmatmul.msk.f32.gmra.mxu3 %vm912_vm2, %v8332_v38 }
 0x7cf   :  { %4738 = vmatmul.msk.f32.gmra.mxu3 %vm912_vm2, %v8667_v39 }
 0x7d7   :  { %4739 = vmatmul.msk.f32.gmra.mxu3 %vm912_vm2, %v8674_v8 }
 0x7df   :  { %4740 = vmatmul.msk.f32.gmra.mxu3 %vm912_vm2, %v8681_v19 }
 0x7e7   :  { %4741 = vmatmul.msk.f32.gmra.mxu3 %vm912_vm2, %v8688_v58 }
 0x7ef   :  { %4742 = vmatmul.msk.f32.gmra.mxu3 %vm912_vm2, %v8695_v45 }
 0x7f7   :  { %4743 = vmatmul.msk.f32.gmra.mxu3 %vm912_vm2, %v8702_v30 }
 0x7ff   :  { %4744 = vmatmul.msk.f32.gmra.mxu3 %vm912_vm2, %v8709_v7 }
 0x807   :  { %4745 = vmatmul.msk.f32.gmra.mxu3 %vm912_vm2, %v8716_v55 }
 0x80c   :  { %v3201_v13 = vpop.f32.mrf.mxu0 }
 0x80d   :  { %v3202_v38 = vadd.f32 %v3201_v13, %v6709_v34 }
 0x80f   :  { %3208 = vst.msk [vmem:[#allocation3 + $0x50] sm:$0xff] %vm271_vm1, %v3202_v38 }
 0x812   :  { %v3243_v29 = vpop.f32.mrf.mxu3 }
 0x813   :  { %v3291_v27 = vadd.f32 %v3243_v29, %v3210_v21 }
 0x814   :  { %v3204_v48 = vpop.f32.mrf.mxu0 }
 0x815   :  { %v3205_v53 = vadd.f32 %v3204_v48, %v6713_v26  ;;  %v4746_v35 = vmul.f32 -1.442695, %v3291_v27 }
 0x817   :  { %3209 = vst.msk [vmem:[#allocation3 + $0x58] sm:$0xff] %vm271_vm1, %v3205_v53  ;;  %5192 = vpow2.f32 %v4746_v35  ;;  %v3220_v35 = vld [vmem:[#allocation2 + $0x350] sm:$0xff] }
 0x81a   :  { %v3246_v18 = vpop.f32.mrf.mxu3 }
 0x81b   :  { %v3292_v10 = vadd.f32 %v3246_v18, %v3211_v40  ;;  %v3219_v40 = vld [vmem:[#allocation2 + $0x348] sm:$0xff] }
 0x81d   :  { %v5193_v42 = vpop.eup %5192  ;;  %v4747_v0 = vmul.f32 -1.442695, %v3292_v10 }
 0x81e   :  { %v8726_v16 = vadd.f32 1.0, %v5193_v42 }
 0x820   :  { %vm3360_vm8 = vweird.f32 %v8726_v16 }
 0x822   :  { %v3249_v32 = vpop.f32.mrf.mxu3 }
 0x823   :  { %v3293_v3 = vadd.f32 %v3249_v32, %v3212_v37  ;;  %v3218_v37 = vld [vmem:[#allocation2 + $0x340] sm:$0xff] }
 0x825   :  { %v4748_v63 = vmul.f32 -1.442695, %v3293_v3 }
 0x82a   :  { %v3252_v51 = vpop.f32.mrf.mxu3 }
 0x82b   :  { %v3294_v23 = vadd.f32 %v3252_v51, %v3213_v31  ;;  %v3221_v51 = vld [vmem:[#allocation2 + $0x358] sm:$0xff] }
 0x82d   :  { %v4749_v28 = vmul.f32 -1.442695, %v3294_v23  ;;  %v3222_v23 = vld [vmem:[#allocation2 + $0x360] sm:$0xff] }
 0x832   :  { %v3255_v41 = vpop.f32.mrf.mxu3 }
 0x833   :  { %v3295_v62 = vadd.f32 %v3255_v41, %v3214_v59 }
 0x835   :  { %v4750_v52 = vmul.f32 -1.442695, %v3295_v62 }
 0x837   :  { %5194 = vpow2.f32 %v4750_v52 }
 0x838   :  { %5196 = vpow2.f32 %v4747_v0 }
 0x839   :  { %5198 = vrcp.f32 %v8726_v16 }
 0x83a   :  { %v3258_v9 = vpop.f32.mrf.mxu3 }
 0x83b   :  { %v3296_v50 = vadd.f32 %v3258_v9, %v3215_v22 }
 0x83d   :  { %v5195_v49 = vpop.eup %5194  ;;  %v4751_v11 = vmul.f32 -1.442695, %v3296_v50 }
 0x83e   :  { %v8728_v5 = vadd.f32 1.0, %v5195_v49  ;;  %v5197_v54 = vpop.eup %5196 }
 0x83f   :  { %v8732_v44 = vpop.eup %5198  ;;  %v8736_v24 = vadd.f32 1.0, %v5197_v54 }
 0x840   :  { %5200 = vrcp.f32 %v8728_v5  ;;  %v3356_v43 = vmul.f32 %v8732_v44, %v8726_v16  ;;  %vm3361_vm11 = vweird.f32 %v8732_v44  ;;  %v3426_v50 = vand.u32 2147483648, %v8728_v5 }
 0x841   :  { %5202 = vpow2.f32 %v4748_v63  ;;  %vm3420_vm0 = vweird.f32 %v8728_v5  ;;  %vm8794_vm7 = vmor %vm3360_vm8, %vm3361_vm11  ;;  %vm3375_vm14 = vweird.f32 %v8736_v24 }
 0x842   :  { %v3261_v33 = vpop.f32.mrf.mxu3  ;;  %5204 = vpow2.f32 %v4749_v28  ;;  %v3357_v38 = vsub.f32 1.0, %v3356_v43 }
 0x843   :  { %v3297_v46 = vadd.f32 %v3261_v33, %v3216_v17  ;;  %5206 = vpow2.f32 %v4751_v11  ;;  %v3366_v11 = vand.u32 2147483648, %v8726_v16 }
 0x844   :  { %v3358_v27 = vmul.f32 %v8732_v44, %v3357_v38 }
 0x845   :  { %v4752_v60 = vmul.f32 -1.442695, %v3297_v46  ;;  %v3367_v38 = vor.u32 1.1754944e-38, %v3366_v11 }
 0x846   :  { %v8734_v1 = vpop.eup %5200  ;;  %v3359_v3 = vadd.f32 %v8732_v44, %v3358_v27 }
 0x847   :  { %5208 = vpow2.f32 %v4752_v60  ;;  %v3416_v12 = vmul.f32 %v8734_v1, %v8728_v5  ;;  %v5203_v4 = vpop.eup %5202  ;;  %vm3421_vm13 = vweird.f32 %v8734_v1 }
 0x848   :  { %v5205_v13 = vpop.eup %5204  ;;  %v8743_v48 = vadd.f32 1.0, %v5203_v4  ;;  %vm8776_vm6 = vmor %vm3420_vm0, %vm3421_vm13 }
 0x849   :  { %v5207_v29 = vpop.eup %5206  ;;  %v3417_v53 = vsub.f32 1.0, %v3416_v12  ;;  %v8745_v9 = vadd.f32 1.0, %v5205_v13  ;;  %v3427_v12 = vor.u32 1.1754944e-38, %v3426_v50 }
 0x84a   :  { %v3264_v15 = vpop.f32.mrf.mxu3  ;;  %v8747_v21 = vadd.f32 1.0, %v5207_v29  ;;  %vm3390_vm10 = vweird.f32 %v8743_v48 }
 0x84b   :  { %v3298_v14 = vadd.f32 %v3264_v15, %v3217_v6  ;;  %v3418_v62 = vmul.f32 %v8734_v1, %v3417_v53  ;;  %vm3405_vm0 = vweird.f32 %v8745_v9 }
 0x84c   :  { %vm3435_vm8 = vweird.f32 %v8747_v21 }
 0x84d   :  { %v4753_v20 = vmul.f32 -1.442695, %v3298_v14  ;;  %v5209_v32 = vpop.eup %5208  ;;  %v3424_v14 = vand.u32 2147483647, %v8728_v5 }
 0x84e   :  { %v8754_v15 = vadd.f32 1.0, %v5209_v32 }
 0x84f   :  { %5210 = vpow2.f32 %v4753_v20  ;;  %v3364_v20 = vand.u32 2147483647, %v8726_v16  ;;  %v3363_v16 = vsel %vm8794_vm7, %v8732_v44, %v3359_v3  ;;  %vm3425_vm4 = vcmp.eq.f32.partialorder %v3424_v14, 8.507059e+37 }
 0x850   :  { %5212 = vrcp.f32 %v8736_v24  ;;  %v3381_v44 = vand.u32 2147483648, %v8736_v24  ;;  %v3394_v14 = vand.u32 2147483647, %v8743_v48 }
 0x851   :  { %5214 = vrcp.f32 %v8743_v48  ;;  %vm3365_vm9 = vcmp.eq.f32.partialorder %v3364_v20, 8.507059e+37 }
 0x852   :  { %v8724_v2 = vpop.f32.mrf.mxu3  ;;  %5216 = vrcp.f32 %v8745_v9  ;;  %vm8851_vm11 = vcmp.eq.f32.partialorder %v3394_v14, 8.507059e+37 }
 0x853   :  { %5218 = vrcp.f32 %v8747_v21  ;;  %v3299_v31 = vadd.f32 %v8724_v2, %v3218_v37 }
 0x854   :  { %5220 = vrcp.f32 %v8754_v15 }
 0x855   :  { %v5211_v41 = vpop.eup %5210  ;;  %v4754_v60 = vmul.f32 -1.442695, %v3299_v31 }
 0x856   :  { %v8750_v59 = vpop.eup %5212  ;;  %v8756_v52 = vadd.f32 1.0, %v5211_v41 }
 0x857   :  { %v3371_v0 = vmul.f32 %v8750_v59, %v8736_v24  ;;  %v8770_v46 = vpop.eup %5214  ;;  %vm3376_vm3 = vweird.f32 %v8750_v59 }
 0x858   :  { %5222 = vrcp.f32 %v8756_v52  ;;  %v8781_v54 = vpop.eup %5216  ;;  %v3386_v43 = vmul.f32 %v8770_v46, %v8743_v48  ;;  %vm8831_vm15 = vmor %vm3375_vm14, %vm3376_vm3  ;;  %vm3391_vm5 = vweird.f32 %v8770_v46 }
 0x859   :  { %v3372_v28 = vsub.f32 1.0, %v3371_v0  ;;  %vm8868_vm13 = vmor %vm3390_vm10, %vm3391_vm5  ;;  %vm3406_vm7 = vweird.f32 %v8781_v54 }
 0x85a   :  { %v3270_v25 = vpop.f32.mrf.mxu3 }
 0x85b   :  { %v3300_v42 = vadd.f32 %v3270_v25, %v3219_v40  ;;  %v3419_v25 = vadd.f32 %v8734_v1, %v3418_v62  ;;  %v3373_v53 = vmul.f32 %v8750_v59, %v3372_v28  ;;  %v3368_v62 = vsel %vm3365_vm9, %v3367_v38, %v3363_v16 }
 0x85c   :  { %v3396_v28 = vand.u32 2147483648, %v8743_v48  ;;  %v3456_v48 = vand.u32 2147483648, %v8754_v15  ;;  %vm3450_vm9 = vweird.f32 %v8754_v15 }
 0x85d   :  { %v4755_v6 = vmul.f32 -1.442695, %v3300_v42  ;;  %v3423_v5 = vsel %vm8776_vm6, %v8734_v1, %v3419_v25  ;;  %v3382_v25 = vor.u32 1.1754944e-38, %v3381_v44 }
 0x85e   :  { %v3428_v29 = vsel %vm3425_vm4, %v3427_v12, %v3423_v5  ;;  %v3224_v5 = vld [vmem:[#allocation2 + $0x370] sm:$0xff]  ;;  %v3411_v12 = vand.u32 2147483648, %v8745_v9 }
 0x85f   :  { %v3539_v40 = vmul.f32 %v3428_v29, %v8454_v36 }
 0x862   :  { %v3273_v56 = vpop.f32.mrf.mxu3 }
 0x863   :  { %v3301_v10 = vadd.f32 %v3273_v56, %v3220_v35  ;;  %v8788_v56 = vpop.eup %5218  ;;  %v3401_v35 = vmul.f32 %v8781_v54, %v8745_v9 }
 0x864   :  { %v8798_v13 = vpop.eup %5220  ;;  %v3431_v37 = vmul.f32 %v8788_v56, %v8747_v21  ;;  %vm3436_vm4 = vweird.f32 %v8788_v56 }
 0x865   :  { %v4756_v17 = vmul.f32 -1.442695, %v3301_v10  ;;  %v8803_v1 = vpop.eup %5222  ;;  %v3446_v27 = vmul.f32 %v8798_v13, %v8754_v15  ;;  %vm3451_vm6 = vweird.f32 %v8798_v13 }
 0x866   :  { %v3461_v3 = vmul.f32 %v8803_v1, %v8756_v52  ;;  %vm8893_vm14 = vmor %vm3450_vm9, %vm3451_vm6  ;;  %vm3466_vm3 = vweird.f32 %v8803_v1 }
 0x867   :  { %v3447_v36 = vsub.f32 1.0, %v3446_v27  ;;  %v3409_v27 = vand.u32 2147483647, %v8745_v9 }
 0x868   :  { %v3462_v20 = vsub.f32 1.0, %v3461_v3 }
 0x869   :  { %v3448_v4 = vmul.f32 %v8798_v13, %v3447_v36 }
 0x86a   :  { %v3276_v18 = vpop.f32.mrf.mxu3  ;;  %v3463_v44 = vmul.f32 %v8803_v1, %v3462_v20  ;;  %v3439_v20 = vand.u32 2147483647, %v8747_v21 }
 0x86b   :  { %v3302_v33 = vadd.f32 %v3276_v18, %v3221_v51  ;;  %v3379_v51 = vand.u32 2147483647, %v8736_v24 }
 0x86d   :  { %v4757_v49 = vmul.f32 -1.442695, %v3302_v33  ;;  %v3387_v33 = vsub.f32 1.0, %v3386_v43  ;;  %vm8824_vm12 = vcmp.eq.f32.partialorder %v3379_v51, 8.507059e+37 }
 0x86f   :  { %5224 = vpow2.f32 %v4757_v49  ;;  %v3374_v49 = vadd.f32 %v8750_v59, %v3373_v53  ;;  %v3388_v24 = vmul.f32 %v8770_v46, %v3387_v33 }
 0x871   :  { %v3378_v11 = vsel %vm8831_vm15, %v8750_v59, %v3374_v49  ;;  %v3389_v29 = vadd.f32 %v8770_v46, %v3388_v24  ;;  %v3223_v59 = vld [vmem:[#allocation2 + $0x368] sm:$0xff]  ;;  %v3464_v24 = vadd.f32 %v8803_v1, %v3463_v44  ;;  %vm3465_vm15 = vweird.f32 %v8756_v52 }
 0x872   :  { %v3279_v22 = vpop.f32.mrf.mxu3  ;;  %v8859_v33 = vsel %vm8824_vm12, %v3382_v25, %v3378_v11  ;;  %vm8912_vm12 = vmor %vm3435_vm8, %vm3436_vm4  ;;  %vm3410_vm8 = vcmp.eq.f32.partialorder %v3409_v27, 8.507059e+37 }
 0x873   :  { %v3303_v63 = vadd.f32 %v3279_v22, %v3222_v23  ;;  %v3225_v22 = vld [vmem:[#allocation2 + $0x378] sm:$0xff]  ;;  %vm8923_vm10 = vmor %vm3465_vm15, %vm3466_vm3 }
 0x875   :  { %5226 = vtanh.f32 %v3303_v63  ;;  %v5225_v18 = vpop.eup %5224 }
 0x876   :  { %5228 = vpow2.f32 %v4756_v17  ;;  %v8820_v31 = vadd.f32 1.0, %v5225_v18  ;;  %v3402_v17 = vsub.f32 1.0, %v3401_v35  ;;  %v3397_v18 = vor.u32 1.1754944e-38, %v3396_v28 }
 0x877   :  { %5230 = vpow2.f32 %v4755_v6 }
 0x878   :  { %5232 = vpow2.f32 %v4754_v60  ;;  %v3432_v60 = vsub.f32 1.0, %v3431_v37  ;;  %v3403_v51 = vmul.f32 %v8781_v54, %v3402_v17  ;;  %v3441_v37 = vand.u32 2147483648, %v8747_v21 }
 0x879   :  { %5234 = vrcp.f32 %v8820_v31 }
 0x87a   :  { %v3282_v32 = vpop.f32.mrf.mxu3  ;;  %v3404_v49 = vadd.f32 %v8781_v54, %v3403_v51 }
 0x87b   :  { %v5227_v41 = vpop.eup %5226 }
 0x87c   :  { %v3543_v10 = vmul.f32 %v5227_v41, %v3368_v62  ;;  %v5229_v42 = vpop.eup %5228  ;;  %v3304_v41 = vadd.f32 %v3282_v32, %v3223_v59  ;;  %v3433_v62 = vmul.f32 %v8788_v56, %v3432_v60  ;;  %v3412_v32 = vor.u32 1.1754944e-38, %v3411_v12 }
 0x87d   :  { %v5231_v0 = vpop.eup %5230  ;;  %v8829_v63 = vadd.f32 1.0, %v5229_v42  ;;  %v3457_v60 = vor.u32 1.1754944e-38, %v3456_v48 }
 0x87e   :  { %v8822_v23 = vadd.f32 %v3543_v10, %v3539_v40  ;;  %v5233_v50 = vpop.eup %5232  ;;  %v8837_v2 = vadd.f32 1.0, %v5231_v0  ;;  %v3393_v40 = vsel %vm8868_vm13, %v8770_v46, %v3389_v29  ;;  %v3449_v10 = vadd.f32 %v8798_v13, %v3448_v4 }
 0x87f   :  { %v8847_v16 = vadd.f32 1.0, %v5233_v50  ;;  %5236 = vrcp.f32 %v8829_v63  ;;  %v8879_v42 = vpop.eup %5234  ;;  %v3454_v0 = vand.u32 2147483647, %v8754_v15  ;;  %v3434_v36 = vadd.f32 %v8788_v56, %v3433_v62 }
 0x880   :  { %5238 = vrcp.f32 %v8837_v2  ;;  %v3471_v15 = vand.u32 2147483648, %v8756_v52  ;;  %v3521_v17 = vmul.f32 %v8879_v42, %v8820_v31  ;;  %v3453_v6 = vsel %vm8893_vm14, %v8798_v13, %v3449_v10 }
 0x881   :  { %v3398_v4 = vsel %vm8851_vm11, %v3397_v18, %v3393_v40  ;;  %vm3455_vm5 = vcmp.eq.f32.partialorder %v3454_v0, 8.507059e+37  ;;  %v3438_v21 = vsel %vm8912_vm12, %v8788_v56, %v3434_v36  ;;  %v3468_v29 = vsel %vm8923_vm10, %v8803_v1, %v3464_v24  ;;  %vm3407_vm11 = vmor %vm3405_vm0, %vm3406_vm7 }
 0x882   :  { %v3285_v43 = vpop.f32.mrf.mxu3  ;;  %v3472_v51 = vor.u32 1.1754944e-38, %v3471_v15  ;;  %v3522_v62 = vsub.f32 1.0, %v3521_v17  ;;  %vm3440_vm13 = vcmp.eq.f32.partialorder %v3439_v20, 8.507059e+37  ;;  %v3408_v18 = vsel %vm3407_vm11, %v8781_v54, %v3404_v49 }
 0x883   :  { %v3305_v38 = vadd.f32 %v3285_v43, %v3224_v5  ;;  %v3469_v5 = vand.u32 2147483647, %v8756_v52  ;;  %v3458_v52 = vsel %vm3455_vm5, %v3457_v60, %v3453_v6  ;;  %vm3526_vm0 = vweird.f32 %v8879_v42 }
 0x884   :  { %v3541_v44 = vmul.f32 %v3458_v52, %v8582_v61  ;;  %v3523_v3 = vmul.f32 %v8879_v42, %v3522_v62  ;;  %vm3525_vm7 = vweird.f32 %v8820_v31  ;;  %v3516_v6 = vand.u32 2147483648, %v8829_v63 }
 0x885   :  { %5240 = vtanh.f32 %v3305_v38  ;;  %v8888_v46 = vpop.eup %5236  ;;  %v3442_v38 = vor.u32 1.1754944e-38, %v3441_v37  ;;  %vm3470_vm6 = vcmp.eq.f32.partialorder %v3469_v5, 8.507059e+37  ;;  %v3413_v37 = vsel %vm3410_vm8, %v3412_v32, %v3408_v18  ;;  %vm8971_vm9 = vmor %vm3525_vm7, %vm3526_vm0 }
 0x886   :  { %5242 = vrcp.f32 %v8847_v16  ;;  %v8900_v50 = vpop.eup %5238  ;;  %v3506_v12 = vmul.f32 %v8888_v46, %v8829_v63  ;;  %v3473_v35 = vsel %vm3470_vm6, %v3472_v51, %v3468_v29  ;;  %v3524_v9 = vadd.f32 %v8879_v42, %v3523_v3  ;;  %v5396_v3 = vld [vmem:[%s9526_s2 + $0x20] sm:$0xff] }
 0x887   :  { %5244 = vtanh.f32 %v3304_v41  ;;  %v3491_v41 = vmul.f32 %v8900_v50, %v8837_v2  ;;  %v3443_v1 = vsel %vm3440_vm13, %v3442_v38, %v3438_v21  ;;  %v3542_v49 = vmul.f32 %v3473_v35, %v8590_v57  ;;  %v9015_v35 = vld [vmem:[%s9531_s4] sm:$0xff] }
 0x888   :  { %v3507_v40 = vsub.f32 1.0, %v3506_v12  ;;  %v3540_v54 = vmul.f32 %v3443_v1, %v8588_v47  ;;  %v3531_v47 = vand.u32 2147483648, %v8820_v31  ;;  %v3529_v32 = vand.u32 2147483647, %v8820_v31 }
 0x889   :  { %v3492_v36 = vsub.f32 1.0, %v3491_v41  ;;  %vm3511_vm4 = vweird.f32 %v8888_v46  ;;  %vm3496_vm14 = vweird.f32 %v8900_v50  ;;  %v3528_v31 = vsel %vm8971_vm9, %v8879_v42, %v3524_v9 }
 0x88a   :  { %v3288_v25 = vpop.f32.mrf.mxu3  ;;  %vm3510_vm12 = vweird.f32 %v8829_v63  ;;  %v3532_v11 = vor.u32 1.1754944e-38, %v3531_v47  ;;  %vm3495_vm10 = vweird.f32 %v8837_v2  ;;  %v3501_v20 = vand.u32 2147483648, %v8837_v2  ;;  %v3585_v47 = vld [vmem:[#allocation2 + $0x380] sm:$0xff] }
 0x88b   :  { %v3306_v14 = vadd.f32 %v3288_v25, %v3225_v22  ;;  %v5241_v28 = vpop.eup %5240  ;;  %v3508_v25 = vmul.f32 %v8888_v46, %v3507_v40  ;;  %v3493_v27 = vmul.f32 %v8900_v50, %v3492_v36  ;;  %vm8985_vm15 = vmor %vm3510_vm12, %vm3511_vm4  ;;  %vm3530_vm5 = vcmp.eq.f32.partialorder %v3529_v32, 8.507059e+37  ;;  %v5392_v40 = vld [vmem:[%s9526_s2] sm:$0xff]  ;;  %v5397_v36 = vld [vmem:[%s9526_s2 + $0x28] sm:$0xff] }
 0x88c   :  { %v8919_v43 = vpop.eup %5242  ;;  %v3545_v53 = vmul.f32 %v5241_v28, %v3398_v4  ;;  %v3533_v4 = vsel %vm3530_vm5, %v3532_v11, %v3528_v31  ;;  %v3517_v38 = vor.u32 1.1754944e-38, %v3516_v6  ;;  %vm8999_vm11 = vmor %vm3495_vm10, %vm3496_vm14  ;;  %vm3480_vm13 = vweird.f32 %v8847_v16  ;;  %v3589_v32 = vld [vmem:[#allocation2 + $0x3a0] sm:$0xff]  ;;  %v3586_v31 = vld [vmem:[#allocation2 + $0x388] sm:$0xff] }
 0x88d   :  { %5246 = vtanh.f32 %v3306_v14  ;;  %v5245_v59 = vpop.eup %5244  ;;  %v3476_v56 = vmul.f32 %v8919_v43, %v8847_v16  ;;  %v3509_v15 = vadd.f32 %v8888_v46, %v3508_v25  ;;  %vm3481_vm3 = vweird.f32 %v8919_v43 }
 0x88e   :  { %v3544_v10 = vmul.f32 %v5245_v59, %v8859_v33  ;;  %v8950_v0 = vadd.f32 %v3545_v53, %v3541_v44  ;;  %v3514_v14 = vand.u32 2147483647, %v8829_v63  ;;  %v3494_v28 = vadd.f32 %v8900_v50, %v3493_v27  ;;  %vm3482_vm8 = vmor %vm3480_vm13, %vm3481_vm3 }
 0x88f   :  { %v3477_v61 = vsub.f32 1.0, %v3476_v56  ;;  %v3513_v42 = vsel %vm8985_vm15, %v8888_v46, %v3509_v15  ;;  %v3499_v63 = vand.u32 2147483647, %v8837_v2  ;;  %v3486_v52 = vand.u32 2147483648, %v8847_v16 }
 0x890   :  { %v8956_v24 = vadd.f32 %v3544_v10, %v3540_v54  ;;  %5248 = vtanh.f32 %v8950_v0  ;;  %vm3515_vm6 = vcmp.eq.f32.partialorder %v3514_v14, 8.507059e+37  ;;  %v3498_v2 = vsel %vm8999_vm11, %v8900_v50, %v3494_v28  ;;  %v5393_v10 = vld [vmem:[%s9526_s2 + $0x8] sm:$0xff]  ;;  %v5398_v54 = vld [vmem:[%s9526_s2 + $0x30] sm:$0xff] }
 0x891   :  { %v3478_v57 = vmul.f32 %v8919_v43, %v3477_v61  ;;  %v3484_v46 = vand.u32 2147483647, %v8847_v16  ;;  %v3518_v51 = vsel %vm3515_vm6, %v3517_v38, %v3513_v42  ;;  %v3502_v41 = vor.u32 1.1754944e-38, %v3501_v20  ;;  %v3590_v38 = vld [vmem:[#allocation2 + $0x3a8] sm:$0xff] }
 0x892   :  { %vm3500_vm0 = vcmp.eq.f32.partialorder %v3499_v63, 8.507059e+37  ;;  %v3487_v1 = vor.u32 1.1754944e-38, %v3486_v52  ;;  %v3591_v52 = vld [vmem:[#allocation2 + $0x3b0] sm:$0xff] }
 0x893   :  { %v5247_v48 = vpop.eup %5246  ;;  %v3479_v13 = vadd.f32 %v8919_v43, %v3478_v57  ;;  %v3503_v18 = vsel %vm3500_vm0, %v3502_v41, %v3498_v2  ;;  %vm3485_vm7 = vcmp.eq.f32.partialorder %v3484_v46, 8.507059e+37  ;;  %v3592_v46 = vld [vmem:[#allocation2 + $0x3b8] sm:$0xff] }
 0x894   :  { %v3546_v22 = vmul.f32 %v5247_v48, %v3413_v37  ;;  %v5394_v48 = vld [vmem:[%s9526_s2 + $0x10] sm:$0xff]  ;;  %v5395_v37 = vld [vmem:[%s9526_s2 + $0x18] sm:$0xff] }
 0x895   :  { %v3483_v53 = vsel %vm3482_vm8, %v8919_v43, %v3479_v13  ;;  %v9022_v43 = vld [vmem:[%s9531_s4 + $0x8] sm:$0xff]  ;;  %v3588_v13 = vld [vmem:[#allocation2 + $0x398] sm:$0xff] }
 0x896   :  { %v8958_v33 = vadd.f32 %v3546_v22, %v3542_v49  ;;  %v5249_v5 = vpop.eup %5248  ;;  %v3488_v50 = vsel %vm3485_vm7, %v3487_v1, %v3483_v53  ;;  %v5399_v49 = vld [vmem:[%s9526_s2 + $0x38] sm:$0xff] }
 0x897   :  { %v3557_v62 = vmul.f32 %v5249_v5, %v3518_v51  ;;  %v3587_v5 = vld [vmem:[#allocation2 + $0x390] sm:$0xff] }
 0x898   :  { %5250 = vtanh.f32 %v8958_v33 }
 0x899   :  { %5252 = vtanh.f32 %v8956_v24 }
 0x89a   :  { %5254 = vtanh.f32 %v8822_v23 }
 0x89e   :  { %v5251_v12 = vpop.eup %5250 }
 0x89f   :  { %v3558_v29 = vmul.f32 %v5251_v12, %v3533_v4  ;;  %v5253_v59 = vpop.eup %5252 }
 0x8a0   :  { %v5255_v56 = vpop.eup %5254  ;;  %v3556_v44 = vmul.f32 %v5253_v59, %v3503_v18 }
 0x8a1   :  { %3571 = vmatpush.msra.mxu0 %v3558_v29  ;;  %v3555_v16 = vmul.f32 %v5255_v56, %v3488_v50 }
 0x8a3   :  { %3572 = vmatpush.msra.mxu0 %v3557_v62 }
 0x8a5   :  { %3573 = vmatpush.msra.mxu0 %v3556_v44 }
 0x8a7   :  { %3574 = vmatpush.msra.mxu0 %v3555_v16 }
 0x8a8   :  { %4758 = vmatmul.msk.f32.vlgmr.msra.gmra.mxu0 %vm912_vm2, %v9015_v35 }
 0x8a9   :  { %3613 = vmatpush.msrb.mxu0 %v3558_v29 }
 0x8ab   :  { %3614 = vmatpush.msrb.mxu0 %v3557_v62 }
 0x8ad   :  { %3615 = vmatpush.msrb.mxu0 %v3556_v44 }
 0x8af   :  { %3616 = vmatpush.msrb.mxu0 %v3555_v16 }
 0x8b0   :  { %4759 = vmatmul.msk.f32.gmra.mxu0 %vm912_vm2, %v9022_v43 }
 0x8b8   :  { %4760 = vmatmul.msk.f32.vlgmr.msrb.gmra.mxu0 %vm912_vm2, %v5392_v40 }
 0x8c0   :  { %4761 = vmatmul.msk.f32.gmra.mxu0 %vm912_vm2, %v5393_v10 }
 0x8c8   :  { %4762 = vmatmul.msk.f32.gmra.mxu0 %vm912_vm2, %v5394_v48 }
 0x8d0   :  { %4763 = vmatmul.msk.f32.gmra.mxu0 %vm912_vm2, %v5395_v37 }
 0x8d8   :  { %4764 = vmatmul.msk.f32.gmra.mxu0 %vm912_vm2, %v5396_v3 }
 0x8e0   :  { %4765 = vmatmul.msk.f32.gmra.mxu0 %vm912_vm2, %v5397_v36 }
 0x8e8   :  { %4766 = vmatmul.msk.f32.gmra.mxu0 %vm912_vm2, %v5398_v54 }
 0x8f0   :  { %4767 = vmatmul.msk.f32.gmra.mxu0 %vm912_vm2, %v5399_v49 }
 0x8f8   :  { %4768 = vmatmul.msk.f32.gmra.mxu0 %vm912_vm2, %v8667_v39 }
 0x900   :  { %4769 = vmatmul.msk.f32.gmra.mxu0 %vm912_vm2, %v8674_v8 }
 0x908   :  { %4770 = vmatmul.msk.f32.gmra.mxu0 %vm912_vm2, %v8681_v19 }
 0x910   :  { %4771 = vmatmul.msk.f32.gmra.mxu0 %vm912_vm2, %v8688_v58 }
 0x918   :  { %4772 = vmatmul.msk.f32.gmra.mxu0 %vm912_vm2, %v8695_v45 }
 0x920   :  { %4773 = vmatmul.msk.f32.gmra.mxu0 %vm912_vm2, %v8702_v30 }
 0x925   :  { %v3576_v22 = vpop.f32.mrf.mxu0 }
 0x926   :  { %v3577_v61 = vadd.f32 %v3576_v22, %v6709_v34 }
 0x928   :  { %3583 = vst.msk [vmem:[#allocation3 + $0x60] sm:$0xff] %vm271_vm1, %v3577_v61  ;;  %4774 = vmatmul.msk.f32.gmra.mxu0 %vm912_vm2, %v8709_v7  ;;  %v3596_v61 = vld [vmem:[#allocation2 + $0x3d8] sm:$0xff] }
 0x92d   :  { %v3579_v39 = vpop.f32.mrf.mxu0 }
 0x92e   :  { %v3580_v8 = vadd.f32 %v3579_v39, %v6713_v26 }
 0x930   :  { %3584 = vst.msk [vmem:[#allocation3 + $0x68] sm:$0xff] %vm271_vm1, %v3580_v8  ;;  %4775 = vmatmul.msk.f32.gmra.mxu0 %vm912_vm2, %v8716_v55 }
 0x935   :  { %v3618_v19 = vpop.f32.mrf.mxu0 }
 0x936   :  { %v3666_v57 = vadd.f32 %v3618_v19, %v3585_v47 }
 0x938   :  { %v4776_v17 = vmul.f32 -1.442695, %v3666_v57  ;;  %v3594_v57 = vld [vmem:[#allocation2 + $0x3c8] sm:$0xff] }
 0x93a   :  { %5256 = vpow2.f32 %v4776_v17 }
 0x93d   :  { %v3621_v58 = vpop.f32.mrf.mxu0 }
 0x93e   :  { %v3667_v55 = vadd.f32 %v3621_v58, %v3586_v31 }
 0x940   :  { %v5257_v28 = vpop.eup %5256  ;;  %v4777_v60 = vmul.f32 -1.442695, %v3667_v55 }
 0x941   :  { %v9080_v20 = vadd.f32 1.0, %v5257_v28  ;;  %v3597_v28 = vld [vmem:[#allocation2 + $0x3e0] sm:$0xff] }
 0x943   :  { %vm3735_vm12 = vweird.f32 %v9080_v20 }
 0x945   :  { %v3624_v45 = vpop.f32.mrf.mxu0 }
 0x946   :  { %v3668_v42 = vadd.f32 %v3624_v45, %v3587_v5 }
 0x948   :  { %v4778_v29 = vmul.f32 -1.442695, %v3668_v42 }
 0x94d   :  { %v3627_v30 = vpop.f32.mrf.mxu0 }
 0x94e   :  { %v3669_v4 = vadd.f32 %v3627_v30, %v3588_v13 }
 0x950   :  { %v4779_v51 = vmul.f32 -1.442695, %v3669_v4 }
 0x955   :  { %v3630_v25 = vpop.f32.mrf.mxu0 }
 0x956   :  { %v3670_v15 = vadd.f32 %v3630_v25, %v3589_v32 }
 0x958   :  { %v4780_v6 = vmul.f32 -1.442695, %v3670_v15 }
 0x95a   :  { %5258 = vpow2.f32 %v4780_v6  ;;  %v3593_v6 = vld [vmem:[#allocation2 + $0x3c0] sm:$0xff] }
 0x95b   :  { %5260 = vpow2.f32 %v4777_v60 }
 0x95c   :  { %5262 = vrcp.f32 %v9080_v20 }
 0x95d   :  { %v3633_v9 = vpop.f32.mrf.mxu0 }
 0x95e   :  { %v3671_v21 = vadd.f32 %v3633_v9, %v3590_v38 }
 0x960   :  { %v5259_v11 = vpop.eup %5258  ;;  %v4781_v41 = vmul.f32 -1.442695, %v3671_v21 }
 0x961   :  { %v9082_v63 = vadd.f32 1.0, %v5259_v11  ;;  %v5261_v62 = vpop.eup %5260 }
 0x962   :  { %v9086_v56 = vpop.eup %5262  ;;  %v9090_v50 = vadd.f32 1.0, %v5261_v62 }
 0x963   :  { %5264 = vrcp.f32 %v9082_v63  ;;  %v3731_v16 = vmul.f32 %v9086_v56, %v9080_v20  ;;  %vm3736_vm4 = vweird.f32 %v9086_v56  ;;  %v3801_v5 = vand.u32 2147483648, %v9082_v63 }
 0x964   :  { %5266 = vpow2.f32 %v4778_v29  ;;  %vm3795_vm14 = vweird.f32 %v9082_v63  ;;  %v3799_v38 = vand.u32 2147483647, %v9082_v63  ;;  %vm9148_vm15 = vmor %vm3735_vm12, %vm3736_vm4  ;;  %vm3750_vm11 = vweird.f32 %v9090_v50 }
 0x965   :  { %v3636_v27 = vpop.f32.mrf.mxu0  ;;  %5268 = vpow2.f32 %v4779_v51  ;;  %v3732_v37 = vsub.f32 1.0, %v3731_v16 }
 0x966   :  { %v3672_v2 = vadd.f32 %v3636_v27, %v3591_v52  ;;  %5270 = vpow2.f32 %v4781_v41  ;;  %v3595_v27 = vld [vmem:[#allocation2 + $0x3d0] sm:$0xff]  ;;  %v3741_v52 = vand.u32 2147483648, %v9080_v20  ;;  %v3802_v41 = vor.u32 1.1754944e-38, %v3801_v5 }
 0x967   :  { %v3733_v45 = vmul.f32 %v9086_v56, %v3732_v37  ;;  %vm3800_vm10 = vcmp.eq.f32.partialorder %v3799_v38, 8.507059e+37  ;;  %v3599_v38 = vld [vmem:[#allocation2 + $0x3f0] sm:$0xff] }
 0x968   :  { %v4782_v53 = vmul.f32 -1.442695, %v3672_v2 }
 0x969   :  { %v9088_v44 = vpop.eup %5264  ;;  %v3734_v31 = vadd.f32 %v9086_v56, %v3733_v45 }
 0x96a   :  { %5272 = vpow2.f32 %v4782_v53  ;;  %v3791_v40 = vmul.f32 %v9088_v44, %v9082_v63  ;;  %v5267_v10 = vpop.eup %5266  ;;  %vm3796_vm9 = vweird.f32 %v9088_v44 }
 0x96b   :  { %v5269_v48 = vpop.eup %5268  ;;  %v9097_v36 = vadd.f32 1.0, %v5267_v10  ;;  %vm9130_vm3 = vmor %vm3795_vm14, %vm3796_vm9 }
 0x96c   :  { %v5271_v3 = vpop.eup %5270  ;;  %v3792_v54 = vsub.f32 1.0, %v3791_v40  ;;  %v9099_v8 = vadd.f32 1.0, %v5269_v48  ;;  %v3754_v48 = vand.u32 2147483647, %v9090_v50 }
 0x96d   :  { %v3639_v7 = vpop.f32.mrf.mxu0  ;;  %v9101_v58 = vadd.f32 1.0, %v5271_v3  ;;  %vm3765_vm0 = vweird.f32 %v9097_v36 }
 0x96e   :  { %v3673_v59 = vadd.f32 %v3639_v7, %v3592_v46  ;;  %v3793_v25 = vmul.f32 %v9088_v44, %v3792_v54  ;;  %v3739_v46 = vand.u32 2147483647, %v9080_v20  ;;  %v3738_v20 = vsel %vm9148_vm15, %v9086_v56, %v3734_v31 }
 0x96f   :  { %v3756_v56 = vand.u32 2147483648, %v9090_v50  ;;  %vm9178_vm6 = vcmp.eq.f32.partialorder %v3754_v48, 8.507059e+37  ;;  %vm3780_vm14 = vweird.f32 %v9099_v8  ;;  %vm3810_vm12 = vweird.f32 %v9101_v58 }
 0x970   :  { %v4783_v18 = vmul.f32 -1.442695, %v3673_v59  ;;  %v5273_v22 = vpop.eup %5272  ;;  %v3794_v60 = vadd.f32 %v9088_v44, %v3793_v25  ;;  %vm3740_vm5 = vcmp.eq.f32.partialorder %v3739_v46, 8.507059e+37 }
 0x971   :  { %v9108_v9 = vadd.f32 1.0, %v5273_v22 }
 0x972   :  { %5274 = vpow2.f32 %v4783_v18  ;;  %v3798_v63 = vsel %vm9130_vm3, %v9088_v44, %v3794_v60  ;;  %v3771_v60 = vand.u32 2147483648, %v9097_v36 }
 0x973   :  { %5276 = vrcp.f32 %v9090_v50  ;;  %v3803_v44 = vsel %vm3800_vm10, %v3802_v41, %v3798_v63 }
 0x974   :  { %5278 = vrcp.f32 %v9097_v36  ;;  %v3772_v41 = vor.u32 1.1754944e-38, %v3771_v60 }
 0x975   :  { %v9078_v14 = vpop.f32.mrf.mxu0  ;;  %5280 = vrcp.f32 %v9099_v8 }
 0x976   :  { %5282 = vrcp.f32 %v9101_v58  ;;  %v3674_v55 = vadd.f32 %v9078_v14, %v3593_v6  ;;  %v3786_v14 = vand.u32 2147483648, %v9099_v8 }
 0x977   :  { %5284 = vrcp.f32 %v9108_v9 }
 0x978   :  { %v5275_v39 = vpop.eup %5274  ;;  %v4784_v2 = vmul.f32 -1.442695, %v3674_v55 }
 0x979   :  { %v9104_v30 = vpop.eup %5276  ;;  %v9110_v47 = vadd.f32 1.0, %v5275_v39 }
 0x97a   :  { %v3746_v17 = vmul.f32 %v9104_v30, %v9090_v50  ;;  %vm3751_vm13 = vweird.f32 %v9104_v30 }
 0x97b   :  { %5286 = vrcp.f32 %v9110_v47  ;;  %vm9185_vm8 = vmor %vm3750_vm11, %vm3751_vm13 }
 0x97c   :  { %v3747_v21 = vsub.f32 1.0, %v3746_v17  ;;  %v3757_v17 = vor.u32 1.1754944e-38, %v3756_v56  ;;  %v3829_v56 = vand.u32 2147483647, %v9108_v9 }
 0x97d   :  { %v3645_v12 = vpop.f32.mrf.mxu0 }
 0x97e   :  { %v3675_v15 = vadd.f32 %v3645_v12, %v3594_v57  ;;  %v9124_v12 = vpop.eup %5278  ;;  %v3748_v16 = vmul.f32 %v9104_v30, %v3747_v21 }
 0x97f   :  { %v9135_v29 = vpop.eup %5280  ;;  %v3761_v51 = vmul.f32 %v9124_v12, %v9097_v36  ;;  %vm3766_vm7 = vweird.f32 %v9124_v12 }
 0x980   :  { %v4785_v4 = vmul.f32 -1.442695, %v3675_v15  ;;  %v9142_v59 = vpop.eup %5282  ;;  %v3776_v22 = vmul.f32 %v9135_v29, %v9099_v8  ;;  %v3749_v45 = vadd.f32 %v9104_v30, %v3748_v16  ;;  %vm9222_vm9 = vmor %vm3765_vm0, %vm3766_vm7  ;;  %vm3781_vm15 = vweird.f32 %v9135_v29 }
 0x981   :  { %v9152_v53 = vpop.eup %5284  ;;  %v3762_v3 = vsub.f32 1.0, %v3761_v51  ;;  %vm3811_vm10 = vweird.f32 %v9142_v59  ;;  %vm3830_vm7 = vcmp.eq.f32.partialorder %v3829_v56, 8.507059e+37 }
 0x982   :  { %v9157_v18 = vpop.eup %5286  ;;  %v3821_v54 = vmul.f32 %v9152_v53, %v9108_v9  ;;  %v3777_v31 = vsub.f32 1.0, %v3776_v22  ;;  %vm3826_vm3 = vweird.f32 %v9152_v53  ;;  %v3816_v22 = vand.u32 2147483648, %v9101_v58 }
 0x983   :  { %v3836_v57 = vmul.f32 %v9157_v18, %v9110_v47  ;;  %v3763_v50 = vmul.f32 %v9124_v12, %v3762_v3  ;;  %vm3841_vm13 = vweird.f32 %v9157_v18 }
 0x984   :  { %v3778_v62 = vmul.f32 %v9135_v29, %v3777_v31  ;;  %v3814_v31 = vand.u32 2147483647, %v9101_v58 }
 0x985   :  { %v3648_v1 = vpop.f32.mrf.mxu0  ;;  %v3764_v63 = vadd.f32 %v9124_v12, %v3763_v50 }
 0x986   :  { %v3676_v32 = vadd.f32 %v3648_v1, %v3595_v27  ;;  %v3742_v1 = vor.u32 1.1754944e-38, %v3741_v52  ;;  %v3806_v27 = vmul.f32 %v9142_v59, %v9101_v58 }
 0x988   :  { %v4786_v42 = vmul.f32 -1.442695, %v3676_v32 }
 0x98d   :  { %v3651_v49 = vpop.f32.mrf.mxu0 }
 0x98e   :  { %v3677_v19 = vadd.f32 %v3651_v49, %v3596_v61  ;;  %v3743_v49 = vsel %vm3740_vm5, %v3742_v1, %v3738_v20  ;;  %v3914_v61 = vmul.f32 %v3803_v44, %v8822_v23  ;;  %v3822_v23 = vsub.f32 1.0, %v3821_v54 }
 0x98f   :  { %v3784_v44 = vand.u32 2147483647, %v9099_v8  ;;  %vm3825_vm5 = vweird.f32 %v9108_v9 }
 0x990   :  { %v4787_v7 = vmul.f32 -1.442695, %v3677_v19  ;;  %v3823_v52 = vmul.f32 %v9152_v53, %v3822_v23  ;;  %vm9247_vm11 = vmor %vm3825_vm5, %vm3826_vm3 }
 0x992   :  { %5288 = vpow2.f32 %v4787_v7  ;;  %v3824_v3 = vadd.f32 %v9152_v53, %v3823_v52 }
 0x994   :  { %v3828_v23 = vsel %vm9247_vm11, %v9152_v53, %v3824_v3 }
 0x995   :  { %v3654_v11 = vpop.f32.mrf.mxu0 }
 0x996   :  { %v3678_v13 = vadd.f32 %v3654_v11, %v3597_v28  ;;  %v3769_v11 = vand.u32 2147483647, %v9097_v36  ;;  %v3831_v36 = vand.u32 2147483648, %v9108_v9  ;;  %v3846_v9 = vand.u32 2147483648, %v9110_v47 }
 0x997   :  { %v3844_v28 = vand.u32 2147483647, %v9110_v47 }
 0x998   :  { %5290 = vtanh.f32 %v3678_v13  ;;  %v5289_v40 = vpop.eup %5288  ;;  %v3807_v13 = vsub.f32 1.0, %v3806_v27  ;;  %vm9205_vm4 = vcmp.eq.f32.partialorder %v3769_v11, 8.507059e+37 }
 0x999   :  { %5292 = vpow2.f32 %v4786_v42  ;;  %v9174_v32 = vadd.f32 1.0, %v5289_v40  ;;  %v3753_v42 = vsel %vm9185_vm8, %v9104_v30, %v3749_v45  ;;  %v3598_v30 = vld [vmem:[#allocation2 + $0x3e8] sm:$0xff]  ;;  %vm3840_vm8 = vweird.f32 %v9110_v47 }
 0x99a   :  { %5294 = vpow2.f32 %v4785_v4  ;;  %v3837_v4 = vsub.f32 1.0, %v3836_v57  ;;  %v9213_v1 = vsel %vm9178_vm6, %v3757_v17, %v3753_v42  ;;  %v3808_v16 = vmul.f32 %v9142_v59, %v3807_v13  ;;  %vm9266_vm6 = vmor %vm3810_vm12, %vm3811_vm10 }
 0x99b   :  { %5296 = vpow2.f32 %v4784_v2  ;;  %vm9277_vm0 = vmor %vm3840_vm8, %vm3841_vm13  ;;  %v3817_v13 = vor.u32 1.1754944e-38, %v3816_v22  ;;  %vm3845_vm3 = vcmp.eq.f32.partialorder %v3844_v28, 8.507059e+37  ;;  %vm3785_vm12 = vcmp.eq.f32.partialorder %v3784_v44, 8.507059e+37 }
 0x99c   :  { %5298 = vrcp.f32 %v9174_v32  ;;  %v3838_v40 = vmul.f32 %v9157_v18, %v3837_v4  ;;  %v3906_v44 = vand.u32 2147483648, %v9174_v32 }
 0x99d   :  { %v3657_v10 = vpop.f32.mrf.mxu0 }
 0x99e   :  { %v5291_v37 = vpop.eup %5290  ;;  %v3679_v20 = vadd.f32 %v3657_v10, %v3598_v30  ;;  %v3787_v10 = vor.u32 1.1754944e-38, %v3786_v14 }
 0x99f   :  { %v3918_v39 = vmul.f32 %v5291_v37, %v3743_v49  ;;  %v5293_v19 = vpop.eup %5292  ;;  %v3768_v37 = vsel %vm9222_vm9, %v9124_v12, %v3764_v63  ;;  %v3779_v49 = vadd.f32 %v9135_v29, %v3778_v62  ;;  %vm3815_vm9 = vcmp.eq.f32.partialorder %v3814_v31, 8.507059e+37 }
 0x9a0   :  { %v5295_v25 = vpop.eup %5294  ;;  %v9183_v55 = vadd.f32 1.0, %v5293_v19  ;;  %v3600_v19 = vld [vmem:[#allocation2 + $0x3f8] sm:$0xff]  ;;  %v3773_v42 = vsel %vm9205_vm4, %v3772_v41, %v3768_v37  ;;  %vm3782_vm4 = vmor %vm3780_vm14, %vm3781_vm15  ;;  %vm3900_vm15 = vweird.f32 %v9174_v32 }
 0x9a1   :  { %v9176_v15 = vadd.f32 %v3918_v39, %v3914_v61  ;;  %v5297_v6 = vpop.eup %5296  ;;  %v9191_v5 = vadd.f32 1.0, %v5295_v25  ;;  %v3809_v39 = vadd.f32 %v9142_v59, %v3808_v16  ;;  %v3839_v25 = vadd.f32 %v9157_v18, %v3838_v40 }
 0x9a2   :  { %v9201_v2 = vadd.f32 1.0, %v5297_v6  ;;  %5300 = vrcp.f32 %v9183_v55  ;;  %v9233_v54 = vpop.eup %5298  ;;  %v3832_v6 = vor.u32 1.1754944e-38, %v3831_v36  ;;  %v3783_v63 = vsel %vm3782_vm4, %v9135_v29, %v3779_v49 }
 0x9a3   :  { %5302 = vrcp.f32 %v9191_v5  ;;  %v3896_v57 = vmul.f32 %v9233_v54, %v9174_v32  ;;  %v3813_v58 = vsel %vm9266_vm6, %v9142_v59, %v3809_v39  ;;  %v3843_v4 = vsel %vm9277_vm0, %v9157_v18, %v3839_v25 }
 0x9a4   :  { %v3833_v47 = vsel %vm3830_vm7, %v3832_v6, %v3828_v23  ;;  %v3818_v18 = vsel %vm3815_vm9, %v3817_v13, %v3813_v58  ;;  %v3788_v40 = vsel %vm3785_vm12, %v3787_v10, %v3783_v63  ;;  %vm3901_vm14 = vweird.f32 %v9233_v54  ;;  %v9373_v63 = vld [vmem:[#allocation3 + $0x10] sm:$0xff] }
 0x9a5   :  { %v3660_v21 = vpop.f32.mrf.mxu0  ;;  %v3897_v52 = vsub.f32 1.0, %v3896_v57  ;;  %v3916_v30 = vmul.f32 %v3833_v47, %v8950_v0  ;;  %v3915_v3 = vmul.f32 %v3818_v18, %v8956_v24  ;;  %vm9317_vm5 = vmor %vm3900_vm15, %vm3901_vm14  ;;  %v3891_v39 = vand.u32 2147483648, %v9183_v55  ;;  %v9375_v18 = vld [vmem:[#allocation3 + $0x20] sm:$0xff] }
 0x9a6   :  { %v3680_v46 = vadd.f32 %v3660_v21, %v3599_v38  ;;  %v3847_v21 = vor.u32 1.1754944e-38, %v3846_v9  ;;  %vm3885_vm6 = vweird.f32 %v9183_v55  ;;  %v3907_v25 = vor.u32 1.1754944e-38, %v3906_v44 }
 0x9a7   :  { %v3898_v48 = vmul.f32 %v9233_v54, %v3897_v52  ;;  %vm3870_vm0 = vweird.f32 %v9191_v5  ;;  %v3876_v57 = vand.u32 2147483648, %v9191_v5  ;;  %v3892_v50 = vor.u32 1.1754944e-38, %v3891_v39  ;;  %v3967_v52 = vpop.permute.xlu0 %3966 }
 0x9a8   :  { %5304 = vtanh.f32 %v3680_v46  ;;  %v9242_v12 = vpop.eup %5300  ;;  %v3848_v51 = vsel %vm3845_vm3, %v3847_v21, %v3843_v4  ;;  %vm3855_vm9 = vweird.f32 %v9201_v2  ;;  %v3861_v31 = vand.u32 2147483648, %v9201_v2 }
 0x9a9   :  { %5306 = vrcp.f32 %v9201_v2  ;;  %v9254_v27 = vpop.eup %5302  ;;  %v3881_v60 = vmul.f32 %v9242_v12, %v9183_v55  ;;  %v3917_v29 = vmul.f32 %v3848_v51, %v8958_v33  ;;  %v3899_v8 = vadd.f32 %v9233_v54, %v3898_v48  ;;  %v9379_v51 = vld [vmem:[#allocation3 + $0x40] sm:$0xff] }
 0x9aa   :  { %5308 = vtanh.f32 %v3679_v20  ;;  %v3866_v14 = vmul.f32 %v9254_v27, %v9191_v5  ;;  %v3904_v33 = vand.u32 2147483647, %v9174_v32  ;;  %vm3886_vm10 = vweird.f32 %v9242_v12 }
 0x9ab   :  { %v3882_v41 = vsub.f32 1.0, %v3881_v60  ;;  %vm3871_vm11 = vweird.f32 %v9254_v27  ;;  %v3889_v32 = vand.u32 2147483647, %v9183_v55  ;;  %vm9331_vm8 = vmor %vm3885_vm6, %vm3886_vm10  ;;  %v3874_v55 = vand.u32 2147483647, %v9191_v5 }
 0x9ac   :  { %v3867_v37 = vsub.f32 1.0, %v3866_v14  ;;  %vm3905_vm7 = vcmp.eq.f32.partialorder %v3904_v33, 8.507059e+37  ;;  %vm9344_vm4 = vmor %vm3870_vm0, %vm3871_vm11  ;;  %v3960_v14 = vld [vmem:[%s9532_s6] sm:$0xff]  ;;  %vm4155_vm10 = vcmask 1041409   ;;  %vm4161_vm11 = vcmask 1043459  }
 0x9ad   :  { %v3663_v45 = vpop.f32.mrf.mxu0  ;;  %v3883_v0 = vmul.f32 %v9242_v12, %v3882_v41  ;;  %vm3890_vm3 = vcmp.eq.f32.partialorder %v3889_v32, 8.507059e+37  ;;  %vm3875_vm14 = vcmp.eq.f32.partialorder %v3874_v55, 8.507059e+37  ;;  %v9381_v41 = vld [vmem:[#allocation3 + $0x50] sm:$0xff]  ;;  %v9417_v32 = vld [vmem:[#allocation3 + $0x58] sm:$0xff]  ;;  %vm4167_vm6 = vcmask 1045509  }
 0x9ae   :  { %v3681_v7 = vadd.f32 %v3663_v45, %v3600_v19  ;;  %v5305_v17 = vpop.eup %5304  ;;  %v3903_v19 = vsel %vm9317_vm5, %v9233_v54, %v3899_v8  ;;  %v9403_v8 = vld [vmem:[#allocation3 + $0x18] sm:$0xff]  ;;  %vm4158_vm5 = vcmask 1042434   ;;  %vm4173_vm0 = vcmask 1047559  }
 0x9af   :  { %v9273_v11 = vpop.eup %5306  ;;  %v3920_v46 = vmul.f32 %v5305_v17, %v3773_v42  ;;  %v3884_v10 = vadd.f32 %v9242_v12, %v3883_v0  ;;  %v3908_v17 = vsel %vm3905_vm7, %v3907_v25, %v3903_v19  ;;  %v3877_v42 = vor.u32 1.1754944e-38, %v3876_v57  ;;  %v9415_v19 = vld [vmem:[#allocation3 + $0x48] sm:$0xff] }
 0x9b0   :  { %5310 = vtanh.f32 %v3681_v7  ;;  %v5309_v38 = vpop.eup %5308  ;;  %v3851_v59 = vmul.f32 %v9273_v11, %v9201_v2  ;;  %vm3856_vm13 = vweird.f32 %v9273_v11 }
 0x9b1   :  { %v3919_v62 = vmul.f32 %v5309_v38, %v9213_v1  ;;  %v3924_v16 = vadd.f32 %v3920_v46, %v3916_v30  ;;  %v3868_v1 = vmul.f32 %v9254_v27, %v3867_v37  ;;  %v3888_v54 = vsel %vm9331_vm8, %v9242_v12, %v3884_v10  ;;  %vm3857_vm12 = vmor %vm3855_vm9, %vm3856_vm13  ;;  %v9377_v30 = vld [vmem:[#allocation3 + $0x30] sm:$0xff] }
 0x9b2   :  { %v3852_v49 = vsub.f32 1.0, %v3851_v59  ;;  %v3859_v12 = vand.u32 2147483647, %v9201_v2  ;;  %v3893_v60 = vsel %vm3890_vm3, %v3892_v50, %v3888_v54  ;;  %v3862_v38 = vor.u32 1.1754944e-38, %v3861_v31 }
 0x9b3   :  { %v3923_v56 = vadd.f32 %v3919_v62, %v3915_v3  ;;  %5312 = vtanh.f32 %v3924_v16  ;;  %v3869_v45 = vadd.f32 %v9254_v27, %v3868_v1  ;;  %vm4164_vm13 = vcmask 1044484  }
 0x9b4   :  { %v3853_v24 = vmul.f32 %v9273_v11, %v3852_v49  ;;  %vm3860_vm15 = vcmp.eq.f32.partialorder %v3859_v12, 8.507059e+37  ;;  %vm4170_vm8 = vcmask 1046534  }
 0x9b5   :  { %v3873_v5 = vsel %vm9344_vm4, %v9254_v27, %v3869_v45  ;;  %v9419_v45 = vld [vmem:[#allocation3 + $0x68] sm:$0xff] }
 0x9b6   :  { %v5311_v20 = vpop.eup %5310  ;;  %v3854_v7 = vadd.f32 %v9273_v11, %v3853_v24  ;;  %v3878_v4 = vsel %vm3875_vm14, %v3877_v42, %v3873_v5  ;;  %v9407_v24 = vld [vmem:[#allocation3 + $0x28] sm:$0xff] }
 0x9b7   :  { %v3921_v36 = vmul.f32 %v5311_v20, %v3788_v40 }
 0x9b8   :  { %v3858_v58 = vsel %vm3857_vm12, %v9273_v11, %v3854_v7  ;;  %v3961_v11 = vld [vmem:[%s9532_s6 + $0x8] sm:$0xff]  ;;  %vm4268_vm12 = vcmask 130048  }
 0x9b9   :  { %v3925_v22 = vadd.f32 %v3921_v36, %v3917_v29  ;;  %v5313_v23 = vpop.eup %5312  ;;  %v3863_v2 = vsel %vm3860_vm15, %v3862_v38, %v3858_v58  ;;  %v9396_v29 = vld [vmem:[#allocation3 + $0x60] sm:$0xff]  ;;  %v3972_v36 = vpop.permute.xlu1 %3971 }
 0x9ba   :  { %v3932_v13 = vmul.f32 %v5313_v23, %v3893_v60 }
 0x9bb   :  { %5314 = vtanh.f32 %v3925_v22  ;;  %v9401_v22 = vld [vmem:[#allocation3 + $0x8] sm:$0xff] }
 0x9bc   :  { %5316 = vtanh.f32 %v3923_v56 }
 0x9bd   :  { %5318 = vtanh.f32 %v9176_v15 }
 0x9c1   :  { %v5315_v15 = vpop.eup %5314 }
 0x9c2   :  { %v3933_v28 = vmul.f32 %v5315_v15, %v3908_v17  ;;  %v5317_v53 = vpop.eup %5316 }
 0x9c3   :  { %v5319_v47 = vpop.eup %5318  ;;  %v3931_v27 = vmul.f32 %v5317_v53, %v3878_v4 }
 0x9c4   :  { %3946 = vmatpush.msrb.mxu2 %v3933_v28  ;;  %3992 = vmatpush.msrb.mxu1 %v3933_v28  ;;  %v3930_v21 = vmul.f32 %v5319_v47, %v3863_v2 }
 0x9c6   :  { %3947 = vmatpush.msrb.mxu2 %v3932_v13  ;;  %3993 = vmatpush.msrb.mxu1 %v3932_v13 }
 0x9c8   :  { %3948 = vmatpush.msrb.mxu2 %v3931_v27  ;;  %3994 = vmatpush.msrb.mxu1 %v3931_v27 }
 0x9ca   :  { %3949 = vmatpush.msrb.mxu2 %v3930_v21  ;;  %3995 = vmatpush.msrb.mxu1 %v3930_v21 }
 0x9cb   :  { %4788 = vmatmul.msk.f32.vlgmr.msrb.gmra.mxu2 %vm912_vm2, %v9015_v35  ;;  %4790 = vmatmul.msk.f32.vlgmr.msrb.gmra.mxu1 %vm912_vm2, %v3960_v14  ;;  %v9371_v35 = vld [vmem:[#allocation3] sm:$0xff] }
 0x9cc   :  { %4334 = vmatpush.msra.mxu1 %v3933_v28 }
 0x9ce   :  { %4335 = vmatpush.msra.mxu1 %v3932_v13 }
 0x9d0   :  { %4336 = vmatpush.msra.mxu1 %v3931_v27 }
 0x9d2   :  { %4337 = vmatpush.msra.mxu1 %v3930_v21 }
 0x9d3   :  { %4789 = vmatmul.msk.f32.gmra.mxu2 %vm912_vm2, %v9022_v43  ;;  %4791 = vmatmul.msk.f32.gmra.mxu1 %vm912_vm2, %v3961_v11 }
 0xa48   :  { %v3997_v46 = vpop.f32.mrf.mxu1 }
 0xa49   :  { %v9369_v59 = vadd.f32 %v3997_v46, %v3967_v52 }
 0xa4b   :  { %v4019_v43 = vmul.f32 %v9371_v35, %v9369_v59  ;;  %v4021_v62 = vmul.f32 %v9373_v63, %v9369_v59  ;;  %v4023_v16 = vmul.f32 %v9375_v18, %v9369_v59  ;;  %v4025_v40 = vmul.f32 %v9377_v30, %v9369_v59 }
 0xa4c   :  { %v4027_v48 = vmul.f32 %v9379_v51, %v9369_v59  ;;  %v4029_v37 = vmul.f32 %v9381_v41, %v9369_v59  ;;  %v4031_v0 = vmul.f32 %v9396_v29, %v9369_v59 }
 0xa4d   :  { %v4035_v1 = vsel %vm271_vm1, %v4019_v43, 0.0  ;;  %v4044_v44 = vsel %vm271_vm1, %v4021_v62, 0.0  ;;  %v4053_v33 = vsel %vm271_vm1, %v4023_v16, 0.0  ;;  %v4062_v10 = vsel %vm271_vm1, %v4025_v40, 0.0 }
 0xa4e   :  { %v3951_v20 = vpop.f32.mrf.mxu2  ;;  %v4071_v61 = vsel %vm271_vm1, %v4027_v48, 0.0  ;;  %v4080_v39 = vsel %vm271_vm1, %v4029_v37, 0.0  ;;  %v4089_v15 = vsel %vm271_vm1, %v4031_v0, 0.0 }
 0xa4f   :  { %v3952_v3 = vadd.f32 %v3951_v20, %v6709_v34  ;;  %v9409_v34 = vld [vmem:[#allocation3 + $0x38] sm:$0xff] }
 0xa50   :  { %v4000_v49 = vpop.f32.mrf.mxu1 }
 0xa51   :  { %3958 = vst.msk [vmem:[#allocation3 + $0x70] sm:$0xff] %vm271_vm1, %v3952_v3  ;;  %v4001_v56 = vadd.f32 %v4000_v49, %v3972_v36 }
 0xa53   :  { %v4020_v25 = vmul.f32 %v9401_v22, %v4001_v56  ;;  %v4022_v9 = vmul.f32 %v9403_v8, %v4001_v56  ;;  %v4024_v57 = vmul.f32 %v9407_v24, %v4001_v56  ;;  %v4026_v23 = vmul.f32 %v9409_v34, %v4001_v56 }
 0xa54   :  { %v4028_v54 = vmul.f32 %v9415_v19, %v4001_v56  ;;  %v4030_v55 = vmul.f32 %v9417_v32, %v4001_v56  ;;  %v4032_v7 = vmul.f32 %v9419_v45, %v4001_v56 }
 0xa55   :  { %v4036_v17 = vsel %vm271_vm1, %v4020_v25, 0.0  ;;  %v4045_v50 = vsel %vm271_vm1, %v4022_v9, 0.0  ;;  %v4054_v6 = vsel %vm271_vm1, %v4024_v57, 0.0  ;;  %v4063_v31 = vsel %vm271_vm1, %v4026_v23, 0.0 }
 0xa56   :  { %v3954_v28 = vpop.f32.mrf.mxu2  ;;  %v4037_v5 = vadd.f32 %v4036_v17, %v4035_v1  ;;  %v4046_v12 = vadd.f32 %v4045_v50, %v4044_v44  ;;  %v4055_v53 = vadd.f32 %v4054_v6, %v4053_v33  ;;  %v4064_v60 = vadd.f32 %v4063_v31, %v4062_v10 }
 0xa57   :  { %v3955_v42 = vadd.f32 %v3954_v28, %v6713_v26  ;;  %v4072_v13 = vsel %vm271_vm1, %v4028_v54, 0.0  ;;  %v4081_v58 = vsel %vm271_vm1, %v4030_v55, 0.0  ;;  %v4090_v47 = vsel %vm271_vm1, %v4032_v7, 0.0 }
 0xa58   :  { %v4038_v4 = vrot.slane %v4037_v5, 4  ;;  %v4047_v38 = vrot.slane %v4046_v12, 4  ;;  %v4056_v27 = vrot.slane %v4055_v53, 4  ;;  %v4065_v2 = vrot.slane %v4064_v60, 4  ;;  %v9438_v20 = vld [vmem:[#allocation3 + $0x70] sm:$0xff] }
 0xa59   :  { %3959 = vst.msk [vmem:[#allocation3 + $0x78] sm:$0xff] %vm271_vm1, %v3955_v42  ;;  %v4073_v21 = vadd.f32 %v4072_v13, %v4071_v61  ;;  %v4082_v14 = vadd.f32 %v4081_v58, %v4080_v39  ;;  %v4091_v11 = vadd.f32 %v4090_v47, %v4089_v15  ;;  %v4033_v0 = vmul.f32 %v9438_v20, %v9369_v59 }
 0xa5a   :  { %v4039_v52 = vadd.f32 %v4038_v4, %v4037_v5  ;;  %v4048_v46 = vadd.f32 %v4047_v38, %v4046_v12  ;;  %v4057_v16 = vadd.f32 %v4056_v27, %v4055_v53  ;;  %v4066_v40 = vadd.f32 %v4065_v2, %v4064_v60 }
 0xa5b   :  { %v4074_v43 = vrot.slane %v4073_v21, 4  ;;  %v4083_v62 = vrot.slane %v4082_v14, 4  ;;  %v4092_v26 = vrot.slane %v4091_v11, 4  ;;  %v4098_v55 = vsel %vm271_vm1, %v4033_v0, 0.0 }
 0xa5c   :  { %v4040_v48 = vrot.slane %v4039_v52, 2  ;;  %v4049_v49 = vrot.slane %v4048_v46, 2  ;;  %v4058_v10 = vrot.slane %v4057_v16, 2  ;;  %v4067_v9 = vrot.slane %v4066_v40, 2 }
 0xa5d   :  { %v4075_v37 = vadd.f32 %v4074_v43, %v4073_v21  ;;  %v4084_v3 = vadd.f32 %v4083_v62, %v4082_v14  ;;  %v4093_v36 = vadd.f32 %v4092_v26, %v4091_v11 }
 0xa5e   :  { %v4041_v25 = vadd.f32 %v4040_v48, %v4039_v52  ;;  %v4050_v57 = vadd.f32 %v4049_v49, %v4048_v46  ;;  %v4059_v15 = vadd.f32 %v4058_v10, %v4057_v16  ;;  %v4068_v6 = vadd.f32 %v4067_v9, %v4066_v40 }
 0xa5f   :  { %v4076_v1 = vrot.slane %v4075_v37, 2  ;;  %v4085_v44 = vrot.slane %v4084_v3, 2  ;;  %v4094_v61 = vrot.slane %v4093_v36, 2 }
 0xa60   :  { %v9442_v33 = vld [vmem:[#allocation3 + $0x78] sm:$0xff]  ;;  %v4042_v50 = vrot.slane %v4041_v25, 1  ;;  %v4051_v31 = vrot.slane %v4050_v57, 1  ;;  %v4060_v53 = vrot.slane %v4059_v15, 1  ;;  %v4069_v13 = vrot.slane %v4068_v6, 1 }
 0xa61   :  { %v4034_v39 = vmul.f32 %v9442_v33, %v4001_v56  ;;  %v4077_v23 = vadd.f32 %v4076_v1, %v4075_v37  ;;  %v4086_v54 = vadd.f32 %v4085_v44, %v4084_v3  ;;  %v4095_v17 = vadd.f32 %v4094_v61, %v4093_v36 }
 0xa62   :  { %v4043_v42 = vadd.f32 %v4042_v50, %v4041_v25  ;;  %v4052_v58 = vadd.f32 %v4051_v31, %v4050_v57  ;;  %v4061_v27 = vadd.f32 %v4060_v53, %v4059_v15  ;;  %v4070_v14 = vadd.f32 %v4069_v13, %v4068_v6 }
 0xa63   :  { %v4099_v7 = vsel %vm271_vm1, %v4034_v39, 0.0  ;;  %v4078_v28 = vrot.slane %v4077_v23, 1  ;;  %v4087_v5 = vrot.slane %v4086_v54, 1  ;;  %v4096_v56 = vrot.slane %v4095_v17, 1 }
 0xa64   :  { %v4100_v59 = vadd.f32 %v4099_v7, %v4098_v55  ;;  %v4107_v11 = vsel %vm271_vm1, %v4043_v42, -inf  ;;  %v4108_v46 = vsel %vm271_vm1, %v4052_v58, -inf  ;;  %v4109_v16 = vsel %vm271_vm1, %v4061_v27, -inf }
 0xa65   :  { %v4079_v47 = vadd.f32 %v4078_v28, %v4077_v23  ;;  %v4088_v4 = vadd.f32 %v4087_v5, %v4086_v54  ;;  %v4097_v2 = vadd.f32 %v4096_v56, %v4095_v17  ;;  %v4110_v3 = vsel %vm271_vm1, %v4070_v14, -inf }
 0xa66   :  { %v4101_v12 = vrot.slane %v4100_v59, 4 }
 0xa67   :  { %v4111_v43 = vsel %vm271_vm1, %v4079_v47, -inf  ;;  %v4113_v62 = vsel %vm271_vm1, %v4088_v4, -inf  ;;  %v4115_v40 = vsel %vm271_vm1, %v4097_v2, -inf }
 0xa68   :  { %v4102_v60 = vadd.f32 %v4101_v12, %v4100_v59  ;;  %v4112_v48 = vmax.f32 %v4107_v11, %v4111_v43  ;;  %v4114_v37 = vmax.f32 %v4108_v46, %v4113_v62  ;;  %v4116_v49 = vmax.f32 %v4109_v16, %v4115_v40 }
 0xa6a   :  { %v4103_v38 = vrot.slane %v4102_v60, 2  ;;  %v4119_v1 = vmax.f32 %v4112_v48, %v4114_v37 }
 0xa6c   :  { %v4104_v21 = vadd.f32 %v4103_v38, %v4102_v60 }
 0xa6e   :  { %v4105_v52 = vrot.slane %v4104_v21, 1 }
 0xa70   :  { %v4106_v26 = vadd.f32 %v4105_v52, %v4104_v21 }
 0xa72   :  { %v4117_v36 = vsel %vm271_vm1, %v4106_v26, -inf }
 0xa73   :  { %v4118_v0 = vmax.f32 %v4110_v3, %v4117_v36 }
 0xa75   :  { %v4120_v44 = vmax.f32 %v4116_v49, %v4118_v0 }
 0xa77   :  { %v4121_v10 = vmax.f32 %v4119_v1, %v4120_v44 }
 0xa79   :  { %v4122_v61 = vsub.f32 %v4043_v42, %v4121_v10  ;;  %v4123_v39 = vsub.f32 %v4052_v58, %v4121_v10  ;;  %v4124_v25 = vsub.f32 %v4061_v27, %v4121_v10  ;;  %v4125_v9 = vsub.f32 %v4070_v14, %v4121_v10 }
 0xa7a   :  { %v4126_v57 = vsub.f32 %v4079_v47, %v4121_v10  ;;  %v4127_v23 = vsub.f32 %v4088_v4, %v4121_v10  ;;  %v4128_v54 = vsub.f32 %v4097_v2, %v4121_v10  ;;  %v4129_v17 = vsub.f32 %v4106_v26, %v4121_v10 }
 0xa7b   :  { %v4130_v55 = vmul.f32 1.442695, %v4122_v61  ;;  %v4132_v7 = vmul.f32 1.442695, %v4123_v39  ;;  %v4134_v15 = vmul.f32 1.442695, %v4124_v25 }
 0xa7c   :  { %v4136_v59 = vmul.f32 1.442695, %v4125_v9  ;;  %v4138_v50 = vmul.f32 1.442695, %v4126_v57  ;;  %v4140_v6 = vmul.f32 1.442695, %v4127_v23 }
 0xa7d   :  { %5320 = vpow2.f32 %v4130_v55  ;;  %v4142_v31 = vmul.f32 1.442695, %v4128_v54  ;;  %v4144_v28 = vmul.f32 1.442695, %v4129_v17  ;;  %v4260_v57 = vld [vmem:[%s9533_s8] sm:$0xff] }
 0xa7e   :  { %5322 = vpow2.f32 %v4132_v7  ;;  %4796 = vmatmul.msk.f32.vlgmr.msra.gmra.mxu1 %vm912_vm2, %v4260_v57 }
 0xa7f   :  { %5324 = vpow2.f32 %v4134_v15 }
 0xa80   :  { %5326 = vpow2.f32 %v4136_v59 }
 0xa81   :  { %5328 = vpow2.f32 %v4138_v50 }
 0xa82   :  { %5330 = vpow2.f32 %v4140_v6 }
 0xa83   :  { %v5321_v5 = vpop.eup %5320  ;;  %5332 = vpow2.f32 %v4142_v31 }
 0xa84   :  { %v5323_v12 = vpop.eup %5322  ;;  %5334 = vpow2.f32 %v4144_v28 }
 0xa85   :  { %v5325_v53 = vpop.eup %5324  ;;  %v4154_v56 = vrot.slane %v5323_v12, 7 }
 0xa86   :  { %v5327_v60 = vpop.eup %5326  ;;  %v4157_v42 = vrot.slane %v5325_v53, 6 }
 0xa87   :  { %v5329_v13 = vpop.eup %5328  ;;  %v4156_v58 = vsel %vm4155_vm10, %v4154_v56, %v5321_v5  ;;  %v4160_v47 = vrot.slane %v5327_v60, 5 }
 0xa88   :  { %v5331_v4 = vpop.eup %5330  ;;  %v4159_v38 = vsel %vm4158_vm5, %v4157_v42, %v4156_v58  ;;  %v4163_v27 = vrot.slane %v5329_v13, 4 }
 0xa89   :  { %v5333_v2 = vpop.eup %5332  ;;  %v4162_v21 = vsel %vm4161_vm11, %v4160_v47, %v4159_v38  ;;  %v4166_v14 = vrot.slane %v5331_v4, 3  ;;  %v4261_v47 = vld [vmem:[%s9533_s8 + $0x8] sm:$0xff] }
 0xa8a   :  { %v5335_v11 = vpop.eup %5334  ;;  %v4165_v52 = vsel %vm4164_vm13, %v4163_v27, %v4162_v21  ;;  %v4169_v46 = vrot.slane %v5333_v2, 2  ;;  %4797 = vmatmul.msk.f32.gmra.mxu1 %vm912_vm2, %v4261_v47 }
 0xa8b   :  { %v4168_v43 = vsel %vm4167_vm6, %v4166_v14, %v4165_v52  ;;  %v4172_v62 = vrot.slane %v5335_v11, 1 }
 0xa8c   :  { %v4171_v26 = vsel %vm4170_vm8, %v4169_v46, %v4168_v43 }
 0xa8d   :  { %v4174_v16 = vsel %vm4173_vm0, %v4172_v62, %v4171_v26 }
 0xa8e   :  { %v4176_v40 = vsel %vm271_vm1, %v4174_v16, 0.0 }
 0xa8f   :  { %v4177_v48 = vrot.slane %v4176_v40, 4 }
 0xa91   :  { %v4178_v37 = vadd.f32 %v4177_v48, %v4176_v40 }
 0xa93   :  { %v4179_v3 = vrot.slane %v4178_v37, 2 }
 0xa95   :  { %v4180_v36 = vadd.f32 %v4179_v3, %v4178_v37 }
 0xa97   :  { %v4181_v49 = vrot.slane %v4180_v36, 1 }
 0xa99   :  { %v4182_v0 = vadd.f32 %v4181_v49, %v4180_v36 }
 0xa9b   :  { %v4183_v1 = vperm.slane %v4182_v0, 0 }
 0xa9d   :  { %5336 = vrcp.f32 %v4183_v1  ;;  %v4195_v39 = vand.u32 2147483648, %v4183_v1  ;;  %v4193_v9 = vand.u32 2147483647, %v4183_v1  ;;  %vm4189_vm4 = vweird.f32 %v4183_v1 }
 0xa9f   :  { %v4196_v54 = vor.u32 1.1754944e-38, %v4195_v39  ;;  %vm4194_vm3 = vcmp.eq.f32.partialorder %v4193_v9, 8.507059e+37 }
 0xaa3   :  { %v5337_v44 = vpop.eup %5336 }
 0xaa4   :  { %v4185_v10 = vmul.f32 %v5337_v44, %v4183_v1  ;;  %vm4190_vm7 = vweird.f32 %v5337_v44 }
 0xaa5   :  { %vm4191_vm9 = vmor %vm4189_vm4, %vm4190_vm7 }
 0xaa6   :  { %v4186_v61 = vsub.f32 1.0, %v4185_v10 }
 0xaa8   :  { %v4187_v25 = vmul.f32 %v5337_v44, %v4186_v61 }
 0xaaa   :  { %v4188_v23 = vadd.f32 %v5337_v44, %v4187_v25 }
 0xaac   :  { %v4192_v55 = vsel %vm4191_vm9, %v5337_v44, %v4188_v23 }
 0xaad   :  { %v4197_v7 = vsel %vm4194_vm3, %v4196_v54, %v4192_v55 }
 0xaae   :  { %v4198_v15 = vmul.f32 %v5321_v5, %v4197_v7  ;;  %v4199_v17 = vmul.f32 %v5323_v12, %v4197_v7  ;;  %v4200_v59 = vmul.f32 %v5325_v53, %v4197_v7  ;;  %v4201_v50 = vmul.f32 %v5327_v60, %v4197_v7 }
 0xaaf   :  { %v4202_v6 = vmul.f32 %v5329_v13, %v4197_v7  ;;  %v4203_v31 = vmul.f32 %v5331_v4, %v4197_v7  ;;  %v4204_v38 = vmul.f32 %v5333_v2, %v4197_v7  ;;  %v4205_v53 = vmul.f32 %v5335_v11, %v4197_v7 }
 0xab0   :  { %v4206_v28 = vperm.slane %v4198_v15, 0  ;;  %v4207_v56 = vperm.slane %v4199_v17, 0  ;;  %v4208_v42 = vperm.slane %v4200_v59, 0  ;;  %v4209_v58 = vperm.slane %v4201_v50, 0  ;;  %v4265_v59 = vld [vmem:[%s9534_s9 + $0x8] sm:$0xff]  ;;  %v4266_v50 = vld [vmem:[%s9534_s9 + $0x10] sm:$0xff] }
 0xab1   :  { %v4210_v27 = vperm.slane %v4202_v6, 0  ;;  %v4211_v60 = vperm.slane %v4203_v31, 0  ;;  %v4212_v52 = vperm.slane %v4204_v38, 0  ;;  %v4213_v11 = vperm.slane %v4205_v53, 0  ;;  %v4267_v6 = vld [vmem:[%s9534_s9 + $0x18] sm:$0xff]  ;;  %v4373_v38 = vpop.permute.xlu2 %4372 }
 0xab2   :  { %v4215_v21 = vmul.f32 %v4206_v28, %v9401_v22  ;;  %v4217_v5 = vmul.f32 %v4207_v56, %v9403_v8  ;;  %v4219_v12 = vmul.f32 %v4208_v42, %v9407_v24  ;;  %v4221_v13 = vmul.f32 %v4209_v58, %v9409_v34 }
 0xab3   :  { %v4223_v2 = vmul.f32 %v4210_v27, %v9415_v19  ;;  %v4214_v22 = vmul.f32 %v4206_v28, %v9371_v35  ;;  %v4216_v8 = vmul.f32 %v4207_v56, %v9373_v63  ;;  %v4218_v24 = vmul.f32 %v4208_v42, %v9375_v18  ;;  %v4262_v35 = vld [vmem:[%s9533_s8 + $0x10] sm:$0xff] }
 0xab4   :  { %v4245_v4 = vsel %vm271_vm1, %v4215_v21, 0.0  ;;  %v4246_v14 = vsel %vm271_vm1, %v4217_v5, 0.0  ;;  %v4248_v43 = vsel %vm271_vm1, %v4219_v12, 0.0  ;;  %v4225_v62 = vmul.f32 %v4211_v60, %v9417_v32  ;;  %4798 = vmatmul.msk.f32.gmra.mxu1 %vm912_vm2, %v4262_v35 }
 0xab5   :  { %v4247_v46 = vadd.f32 %v4246_v14, %v4245_v4  ;;  %v4250_v26 = vsel %vm271_vm1, %v4221_v13, 0.0  ;;  %v4220_v16 = vmul.f32 %v4209_v58, %v9377_v30  ;;  %v4230_v40 = vsel %vm271_vm1, %v4214_v22, 0.0  ;;  %v4368_v13 = vpop.permute.xlu0 %4367  ;;  %v4379_v22 = vld [vmem:[%s9535_s11] sm:$0xf] }
 0xab6   :  { %v4231_v19 = vsel %vm271_vm1, %v4216_v8, 0.0  ;;  %v4227_v18 = vmul.f32 %v4212_v52, %v9419_v45  ;;  %v4252_v32 = vsel %vm271_vm1, %v4223_v2, 0.0  ;;  %v4222_v37 = vmul.f32 %v4210_v27, %v9379_v51 }
 0xab7   :  { %v4249_v34 = vadd.f32 %v4248_v43, %v4247_v46  ;;  %v4232_v63 = vadd.f32 %v4231_v19, %v4230_v40  ;;  %v4233_v30 = vsel %vm271_vm1, %v4218_v24, 0.0  ;;  %v4229_v49 = vmul.f32 %v4213_v11, %v9442_v33 }
 0xab8   :  { %v4254_v0 = vsel %vm271_vm1, %v4225_v62, 0.0  ;;  %v4224_v1 = vmul.f32 %v4211_v60, %v9381_v41  ;;  %v4235_v44 = vsel %vm271_vm1, %v4220_v16, 0.0  ;;  %v4256_v45 = vsel %vm271_vm1, %v4227_v18, 0.0  ;;  %v4263_v41 = vld [vmem:[%s9533_s8 + $0x18] sm:$0xff] }
 0xab9   :  { %v4251_v48 = vadd.f32 %v4250_v26, %v4249_v34  ;;  %v4234_v36 = vadd.f32 %v4233_v30, %v4232_v63  ;;  %v4226_v39 = vmul.f32 %v4212_v52, %v9396_v29  ;;  %v4237_v51 = vsel %vm271_vm1, %v4222_v37, 0.0  ;;  %v4363_v52 = vpop.permute.xlu1 %4362  ;;  %v4358_v46 = vpop.permute.xlu2 %4357 }
 0xaba   :  { %v4258_v57 = vsel %vm271_vm1, %v4229_v49, 0.0  ;;  %v4228_v33 = vmul.f32 %v4213_v11, %v9438_v20  ;;  %v4239_v23 = vsel %vm271_vm1, %v4224_v1, 0.0  ;;  %v4264_v20 = vld [vmem:[%s9534_s9] sm:$0xff] }
 0xabb   :  { %v4253_v3 = vadd.f32 %v4252_v32, %v4251_v48  ;;  %v4236_v61 = vadd.f32 %v4235_v44, %v4234_v36  ;;  %v4241_v29 = vsel %vm271_vm1, %v4226_v39, 0.0 }
 0xabc   :  { %4799 = vmatmul.msk.f32.gmra.mxu1 %vm912_vm2, %v4263_v41  ;;  %v4243_v15 = vsel %vm271_vm1, %v4228_v33, 0.0  ;;  %vm4409_vm1 = vcmask 11264  }
 0xabd   :  { %v4255_v10 = vadd.f32 %v4254_v0, %v4253_v3  ;;  %v4238_v9 = vadd.f32 %v4237_v51, %v4236_v61  ;;  %v4384_v8 = vpop.permute.xlu0 %4383 }
 0xabf   :  { %v4257_v25 = vadd.f32 %v4256_v45, %v4255_v10  ;;  %v4240_v55 = vadd.f32 %v4239_v23, %v4238_v9 }
 0xac1   :  { %v4259_v54 = vadd.f32 %v4258_v57, %v4257_v25  ;;  %v4242_v7 = vadd.f32 %v4241_v29, %v4240_v55 }
 0xac3   :  { %4295 = vmatpush.msra.mxu2 %v4259_v54  ;;  %v4244_v17 = vadd.f32 %v4243_v15, %v4242_v7 }
 0xac5   :  { %4296 = vmatpush.msra.mxu2 %v4244_v17 }
 0xac6   :  { %4792 = vmatmul.msk.f32.vlgmr.msra.gmra.mxu2 %vm4268_vm12, %v4264_v20 }
 0xace   :  { %4793 = vmatmul.msk.f32.gmra.mxu2 %vm4268_vm12, %v4265_v59 }
 0xad6   :  { %4794 = vmatmul.msk.f32.gmra.mxu2 %vm4268_vm12, %v4266_v50 }
 0xade   :  { %4795 = vmatmul.msk.f32.gmra.mxu2 %vm4268_vm12, %v4267_v6 }
 0xafb   :  { %v4339_v31 = vpop.f32.mrf.mxu1 }
 0xb07   :  { %v4342_v56 = vpop.f32.mrf.mxu1 }
 0xb31   :  { %v4345_v58 = vpop.f32.mrf.mxu1 }
 0xb39   :  { %v4348_v27 = vpop.f32.mrf.mxu1 }
 0xb49   :  { %v4298_v28 = vpop.f32.mrf.mxu2 }
 0xb4a   :  { %v4340_v4 = vadd.f32 %v4339_v31, %v4298_v28 }
 0xb4c   :  { %v4375_v43 = vadd.f32 %v4358_v46, %v4340_v4 }
 0xb51   :  { %v4301_v42 = vpop.f32.mrf.mxu2 }
 0xb52   :  { %v4343_v53 = vadd.f32 %v4342_v56, %v4301_v42 }
 0xb54   :  { %v4376_v2 = vadd.f32 %v4363_v52, %v4343_v53 }
 0xb59   :  { %v4304_v47 = vpop.f32.mrf.mxu2 }
 0xb5a   :  { %v4346_v5 = vadd.f32 %v4345_v58, %v4304_v47 }
 0xb5c   :  { %v4377_v14 = vadd.f32 %v4368_v13, %v4346_v5 }
 0xb61   :  { %v4307_v21 = vpop.f32.mrf.mxu2 }
 0xb62   :  { %v4349_v12 = vadd.f32 %v4348_v27, %v4307_v21 }
 0xb64   :  { %v4378_v60 = vadd.f32 %v4373_v38, %v4349_v12 }
 0xb66   :  { %4401 = vmatpush.msrb.mxu3 %v4378_v60 }
 0xb68   :  { %4402 = vmatpush.msrb.mxu3 %v4377_v14 }
 0xb6a   :  { %4403 = vmatpush.msrb.mxu3 %v4376_v2 }
 0xb6c   :  { %4404 = vmatpush.msrb.mxu3 %v4375_v43 }
 0xb6d   :  { %4800 = vmatmul.msk.f32.vlgmr.msrb.gmra.mxu3 %vm912_vm2, %v4379_v22 }
 0xbf0   :  { %v4406_v24 = vpop.f32.mrf.mxu3 }
 0xbf1   :  { %v4407_v11 = vadd.f32 %v4406_v24, %v4384_v8 }
 0xbf3   :  { %4410 = vst.msk [vmem:[%s9536_s13] sm:$0xf] %vm4409_vm1, %v4407_v11 }

</bundles_post_ra>
